<compile_context>
chip_gen: v7x
topology: tpu7x:2x2x1
jax: 0.10.0
libtpu: 0.0.40
codegen_flags: <defaults>
</compile_context>

<pallas_src>
import functools

import jax
import jax.numpy as jnp
from jax.experimental import pallas as pl
from jax.experimental.pallas import tpu as pltpu

BN_EPS = 1e-5
LAYER_CFGS = [  # (in_channels, out_channels, blocks, stride) as in _make_layer
    (64, 64, 3, 1),
    (64, 128, 4, 2),
    (128, 256, 6, 2),
    (256, 512, 3, 2),
]

ACT_DTYPE = jnp.bfloat16   # activations / weights fed to the MXU
ACC_DTYPE = jnp.float32    # accumulation, bias, epilogue math


def _ru(x, m):
    return ((x + m - 1) // m) * m


@functools.lru_cache(maxsize=1)
def _vmem_budget_bytes():
    try:
        return int(pltpu.get_tpu_info().vmem_capacity_bytes)
    except Exception:
        return 64 * 1024 * 1024   # conservative (v7x per-TC VMEM)


# ----------------------------- Pallas kernels ------------------------------

def _mm_kernel_1k(*refs, has_bias, has_res, relu):
    """Fused matmul, whole K in one block: out = A@B [+bias] [+res] [ReLU]."""
    a_ref, b_ref = refs[0], refs[1]
    idx = 2
    bias_ref = res_ref = None
    if has_bias:
        bias_ref = refs[idx]
        idx += 1
    if has_res:
        res_ref = refs[idx]
        idx += 1
    o_ref = refs[idx]

    acc = jnp.dot(a_ref[...], b_ref[...], preferred_element_type=jnp.float32)
    if has_bias:
        acc = acc + bias_ref[...]
    if has_res:
        acc = acc + res_ref[...].astype(jnp.float32)
    if relu:
        acc = jnp.maximum(acc, 0.0)
    o_ref[...] = acc.astype(o_ref.dtype)


def _mm_kernel_mk(*refs, has_bias, has_res, relu):
    """K-tiled fused matmul (fallback for large K): f32 VMEM accumulator."""
    a_ref, b_ref = refs[0], refs[1]
    idx = 2
    bias_ref = res_ref = None
    if has_bias:
        bias_ref = refs[idx]
        idx += 1
    if has_res:
        res_ref = refs[idx]
        idx += 1
    o_ref, acc_ref = refs[idx], refs[idx + 1]

    k = pl.program_id(2)
    part = jnp.dot(a_ref[...], b_ref[...], preferred_element_type=jnp.float32)

    @pl.when(k == 0)
    def _first():
        acc_ref[...] = part

    @pl.when(k != 0)
    def _rest():
        acc_ref[...] += part

    @pl.when(k == pl.num_programs(2) - 1)
    def _finalize():
        acc = acc_ref[...]
        if has_bias:
            acc = acc + bias_ref[...]
        if has_res:
            acc = acc + res_ref[...].astype(jnp.float32)
        if relu:
            acc = jnp.maximum(acc, 0.0)
        o_ref[...] = acc.astype(o_ref.dtype)


def _conv3x3_kernel(x_ref, w_ref, o_ref, *, shifts, m_out, relu):
    """3x3/stride-1 conv as 9 shifted-slab matmuls accumulated in f32.

    x_ref: (m_out + max_shift, Cin) flattened padded activation.
    w_ref: (9, Cin, Cout) per-tap weights.
    o_ref: (m_out, Cout) output in padded flat coordinates (caller crops).
    """
    acc = None
    for t, s in enumerate(shifts):
        a = x_ref[s:s + m_out, :]
        p = jnp.dot(a, w_ref[t], preferred_element_type=jnp.float32)
        acc = p if acc is None else acc + p
    if relu:
        acc = jnp.maximum(acc, 0.0)
    o_ref[...] = acc.astype(o_ref.dtype)


def _maxpool3x3s2_kernel(p00_ref, p01_ref, p10_ref, p11_ref, o_ref, *, oh, ow):
    """3x3/stride-2/pad-1 max-pool from the four stride-2 phases of the padded
    input; every tap is a plain (un-strided) slice of one phase array."""
    phases = {(0, 0): p00_ref, (0, 1): p01_ref,
              (1, 0): p10_ref, (1, 1): p11_ref}
    res = None
    for i in range(3):
        for j in range(3):
            src = phases[(i % 2, j % 2)]
            a, b = i // 2, j // 2
            win = src[:, a:a + oh, b:b + ow, :]
            res = win if res is None else jnp.maximum(res, win)
    o_ref[...] = res


def _avgpool_kernel(x_ref, o_ref, *, inv_hw):
    s = jnp.sum(x_ref[...].astype(jnp.float32), axis=1) * inv_hw
    o_ref[...] = s.astype(o_ref.dtype)


# --------------------------- Pallas call wrappers ---------------------------

def matmul_fused(a, b, bias=None, residual=None, relu=False,
                 out_dtype=ACT_DTYPE):
    """a: (M, K), b: (K, N) -> (M, N) with fused bias/residual/ReLU epilogue.

    Operands in bf16, f32 accumulation.  No N/K padding is ever needed because
    full-extent blocks are used; M is only padded when it exceeds 256 and is
    not a 256 multiple (never at this model's shapes).
    """
    M, K = a.shape
    K2, N = b.shape
    assert K == K2

    # ---- M tiling ----
    if M <= 256:
        TM, Mp = M, M
    else:
        TM = 256
        Mp = _ru(M, TM)
    # ---- N tiling (full-extent, or 256/128 multiples -> >=2 parallel tiles) --
    if N <= 256:
        TN = N
    elif N % 256 == 0:
        TN = 256
    elif N % 128 == 0:
        TN = 128
    else:
        TN = N

    a_p = a.astype(ACT_DTYPE)
    res_p = residual.astype(ACT_DTYPE) if residual is not None else None
    if Mp != M:
        a_p = jnp.pad(a_p, ((0, Mp - M), (0, 0)))
        if res_p is not None:
            res_p = jnp.pad(res_p, ((0, Mp - M), (0, 0)))
    b_p = b.astype(ACT_DTYPE)
    bias_p = (jnp.reshape(bias, (1, N)).astype(ACC_DTYPE)
              if bias is not None else None)

    # Single K block whenever the (double-buffered) A/B tiles fit comfortably.
    single_k = 2 * 2 * K * (TM + TN) <= _vmem_budget_bytes() // 8

    if single_k:
        gm, gn = Mp // TM, N // TN
        args = [a_p, b_p]
        in_specs = [pl.BlockSpec((TM, K), lambda i, j: (i, 0)),
                    pl.BlockSpec((K, TN), lambda i, j: (0, j))]
        if bias_p is not None:
            args.append(bias_p)
            in_specs.append(pl.BlockSpec((1, TN), lambda i, j: (0, j)))
        if res_p is not None:
            args.append(res_p)
            in_specs.append(pl.BlockSpec((TM, TN), lambda i, j: (i, j)))
        kernel = functools.partial(_mm_kernel_1k, has_bias=bias is not None,
                                   has_res=residual is not None, relu=relu)
        out = pl.pallas_call(
            kernel,
            out_shape=jax.ShapeDtypeStruct((Mp, N), out_dtype),
            grid=(gm, gn),
            in_specs=in_specs,
            out_specs=pl.BlockSpec((TM, TN), lambda i, j: (i, j)),
            compiler_params=pltpu.CompilerParams(
                dimension_semantics=("parallel", "parallel")),
        )(*args)
    else:
        TK = 512
        Kp = _ru(K, TK)
        if Kp != K:
            a_p = jnp.pad(a_p, ((0, 0), (0, Kp - K)))
            b_p = jnp.pad(b_p, ((0, Kp - K), (0, 0)))
        gm, gn, gk = Mp // TM, N // TN, Kp // TK
        args = [a_p, b_p]
        in_specs = [pl.BlockSpec((TM, TK), lambda i, j, k: (i, k)),
                    pl.BlockSpec((TK, TN), lambda i, j, k: (k, j))]
        if bias_p is not None:
            args.append(bias_p)
            in_specs.append(pl.BlockSpec((1, TN), lambda i, j, k: (0, j)))
        if res_p is not None:
            args.append(res_p)
            in_specs.append(pl.BlockSpec((TM, TN), lambda i, j, k: (i, j)))
        kernel = functools.partial(_mm_kernel_mk, has_bias=bias is not None,
                                   has_res=residual is not None, relu=relu)
        out = pl.pallas_call(
            kernel,
            out_shape=jax.ShapeDtypeStruct((Mp, N), out_dtype),
            grid=(gm, gn, gk),
            in_specs=in_specs,
            out_specs=pl.BlockSpec((TM, TN), lambda i, j, k: (i, j)),
            scratch_shapes=[pltpu.VMEM((TM, TN), jnp.float32)],
            compiler_params=pltpu.CompilerParams(
                dimension_semantics=("parallel", "parallel", "arbitrary")),
        )(*args)

    if Mp != M:
        out = out[:M]
    return out


def _im2col(x, kh, kw, stride, pad):
    """x: (N, H, W, C) -> patches (N*OH*OW, KH*KW*C), plus OH, OW.

    Only used for the 7x7/stride-2 stem (3 input channels -> ~150 KB expansion)
    and as a safety fallback for oversized 3x3 inputs."""
    N, H, W, C = x.shape
    OH = (H + 2 * pad - kh) // stride + 1
    OW = (W + 2 * pad - kw) // stride + 1
    x_p = jnp.pad(x, ((0, 0), (pad, pad), (pad, pad), (0, 0)))
    cols = [x_p[:, i:i + stride * OH:stride, j:j + stride * OW:stride, :]
            for i in range(kh) for j in range(kw)]
    patches = jnp.concatenate(cols, axis=-1)
    return patches.reshape(N * OH * OW, kh * kw * C), OH, OW


def conv1x1(x, wm, stride=1, bias=None, residual=None, relu=False):
    """1x1 conv: x NHWC (bf16), wm (Cin, Cout) bf16."""
    if stride != 1:
        x = x[:, ::stride, ::stride, :]
    N, H, W, C = x.shape
    Cout = wm.shape[1]
    a = x.reshape(N * H * W, C)
    res2 = residual.reshape(N * H * W, Cout) if residual is not None else None
    out = matmul_fused(a, wm, bias=bias, residual=res2, relu=relu)
    return out.reshape(N, H, W, Cout)


def conv3x3_s1(x, w9, relu=False):
    """3x3, stride 1, pad 1 conv via in-VMEM shifted-slab tap accumulation.

    The padded activation is flattened to (N*Hp*Wp, C); the 9 taps become
    static row shifts of that slab, so the activation is read from HBM once
    (no 9x im2col materialization)."""
    N, H, W, C = x.shape
    Cout = w9.shape[-1]
    Hp, Wp = H + 2, W + 2
    m_out = N * Hp * Wp
    ext = 2 * Wp + 2                       # largest tap shift
    shifts = tuple(i * Wp + j for i in range(3) for j in range(3))

    vmem_need = 2 * 2 * ((m_out + ext) * C + 9 * C * Cout + m_out * Cout) \
        + 4 * m_out * Cout
    if vmem_need > _vmem_budget_bytes() // 2:
        # TODO(synk): tile the slab over M for large spatial inputs; at this
        # model's shapes the whole padded activation fits VMEM, so only a
        # safety fallback to im2col + tiled matmul is provided here.
        a, oh, ow = _im2col(x, 3, 3, 1, 1)
        out = matmul_fused(a, w9.reshape(9 * C, Cout), relu=relu)
        return out.reshape(N, oh, ow, Cout)

    x_p = jnp.pad(x, ((0, 0), (1, 1), (1, 1), (0, 0)))
    x2 = jnp.pad(x_p.reshape(m_out, C), ((0, ext), (0, 0)))

    out = pl.pallas_call(
        functools.partial(_conv3x3_kernel, shifts=shifts, m_out=m_out,
                          relu=relu),
        out_shape=jax.ShapeDtypeStruct((m_out, Cout), ACT_DTYPE),
        grid=(1,),
        in_specs=[pl.BlockSpec((m_out + ext, C), lambda i: (0, 0)),
                  pl.BlockSpec((9, C, Cout), lambda i: (0, 0, 0))],
        out_specs=pl.BlockSpec((m_out, Cout), lambda i: (0, 0)),
        compiler_params=pltpu.CompilerParams(
            dimension_semantics=("arbitrary",)),
    )(x2, w9)
    # Crop the padded-coordinate rows back to the valid output window.
    return out.reshape(N, Hp, Wp, Cout)[:, :H, :W, :]


def conv_kxk_im2col(x, wm, kh, kw, stride, pad, bias=None, relu=False):
    """General KxK conv via im2col + fused matmul (used for the 7x7 stem)."""
    N = x.shape[0]
    Cout = wm.shape[1]
    a, OH, OW = _im2col(x, kh, kw, stride, pad)
    out = matmul_fused(a, wm, bias=bias, relu=relu)
    return out.reshape(N, OH, OW, Cout)


def maxpool2d_3x3_s2(x):
    """3x3 / stride 2 / pad 1 max-pool (PyTorch semantics: -inf padding)."""
    N, H, W, C = x.shape
    assert H % 2 == 0 and W % 2 == 0, "maxpool kernel assumes even H, W"
    OH, OW = H // 2, W // 2
    x_p = jnp.pad(x, ((0, 0), (1, 1), (1, 1), (0, 0)),
                  constant_values=float("-inf"))
    # Four stride-2 phases: same total size as x_p (no 9x expansion).
    phases = [x_p[:, r::2, c::2, :] for r in (0, 1) for c in (0, 1)]
    h2, w2 = OH + 1, OW + 1
    return pl.pallas_call(
        functools.partial(_maxpool3x3s2_kernel, oh=OH, ow=OW),
        out_shape=jax.ShapeDtypeStruct((N, OH, OW, C), x.dtype),
        grid=(1,),
        in_specs=[pl.BlockSpec((N, h2, w2, C), lambda i: (0, 0, 0, 0))
                  for _ in range(4)],
        out_specs=pl.BlockSpec((N, OH, OW, C), lambda i: (0, 0, 0, 0)),
        compiler_params=pltpu.CompilerParams(
            dimension_semantics=("arbitrary",)),
    )(*phases)


def global_avgpool(x):
    N, H, W, C = x.shape
    xf = x.reshape(N, H * W, C)
    return pl.pallas_call(
        functools.partial(_avgpool_kernel, inv_hw=1.0 / (H * W)),
        out_shape=jax.ShapeDtypeStruct((N, C), x.dtype),
        grid=(1,),
        in_specs=[pl.BlockSpec((N, H * W, C), lambda i: (0, 0, 0))],
        out_specs=pl.BlockSpec((N, C), lambda i: (0, 0)),
        compiler_params=pltpu.CompilerParams(
            dimension_semantics=("arbitrary",)),
    )(xf)


# ------------------------------ Model forward -------------------------------

def bottleneck_forward(x, blk, downsample=None, stride=1):
    # Reference: identity = x; if downsample: x = downsample(identity)
    # out = relu(conv1(x)); out = relu(conv2(out)); out = conv3(out) + x; relu
    # (bn1/bn2/bn3 are never invoked in the reference forward.)
    if downsample is not None:
        x = conv1x1(x, downsample['wm'], stride=stride,
                    bias=downsample['bias'])
    out = conv1x1(x, blk['conv1'], relu=True)
    out = conv3x3_s1(out, blk['conv2'], relu=True)
    out = conv1x1(out, blk['conv3'], residual=x, relu=True)
    return out


def resnet50_forward(params, x_nchw):
    x = jnp.transpose(x_nchw, (0, 2, 3, 1)).astype(ACT_DTYPE)   # NCHW -> NHWC
    # Top-level bn1 is never applied in the reference forward: conv1 -> relu.
    x = conv_kxk_im2col(x, params['conv1'], 7, 7, 2, 3, relu=True)
    x = maxpool2d_3x3_s2(x)
    for li, (_in_ch, _out_ch, blocks, stride) in enumerate(LAYER_CFGS):
        layer = params['layers'][li]
        for bi in range(blocks):
            blk = layer['blocks'][bi]
            if bi == 0:
                x = bottleneck_forward(x, blk,
                                       downsample=layer['downsample'],
                                       stride=stride)
            else:
                x = bottleneck_forward(x, blk)
    x = global_avgpool(x)                                        # (N, 512)
    logits = matmul_fused(x, params['fc_w'], bias=params['fc_b'],
                          out_dtype=jnp.float32)
    return logits


# ------------------------------ Parameter init -------------------------------

def _conv_w(key, cout, cin, kh, kw):
    std = (2.0 / (cin * kh * kw)) ** 0.5
    return jax.random.normal(key, (cout, cin, kh, kw), jnp.float32) * std


def init_raw_params(key, num_classes=10):
    """Raw PyTorch-layout parameters (conv weights (Cout,Cin,KH,KW), BN stats)."""
    keys = iter(jax.random.split(key, 128))
    p = {'conv1': _conv_w(next(keys), 64, 3, 7, 7)}
    layers = []
    for in_ch, out_ch, blocks, _stride in LAYER_CFGS:
        ds = {
            'w': _conv_w(next(keys), out_ch, in_ch, 1, 1),
            'gamma': jnp.ones((out_ch,), jnp.float32),
            'beta': jnp.zeros((out_ch,), jnp.float32),
            'mean': jnp.zeros((out_ch,), jnp.float32),
            'var': jnp.ones((out_ch,), jnp.float32),
        }
        mid = out_ch // 4
        blks = [{'conv1': _conv_w(next(keys), mid, out_ch, 1, 1),
                 'conv2': _conv_w(next(keys), mid, mid, 3, 3),
                 'conv3': _conv_w(next(keys), out_ch, mid, 1, 1)}
                for _ in range(blocks)]
        layers.append({'downsample': ds, 'blocks': blks})
    p['layers'] = layers
    p['fc_w'] = jax.random.normal(next(keys), (num_classes, 512),
                                  jnp.float32) * (1.0 / 512 ** 0.5)
    p['fc_b'] = jnp.zeros((num_classes,), jnp.float32)
    return p


def _pack_1x1(w):
    # (Cout, Cin, 1, 1) -> (Cin, Cout)
    return jnp.transpose(w[:, :, 0, 0], (1, 0)).astype(ACT_DTYPE)


def _pack_kxk(w):
    # (Cout, Cin, KH, KW) -> (KH*KW*Cin, Cout)   (tap-major, channel-minor)
    cout, cin, kh, kw = w.shape
    return (jnp.transpose(w, (2, 3, 1, 0))
            .reshape(kh * kw * cin, cout).astype(ACT_DTYPE))


def _pack_3x3_taps(w):
    # (Cout, Cin, 3, 3) -> (9, Cin, Cout) for the shifted-slab kernel
    cout, cin, kh, kw = w.shape
    return (jnp.transpose(w, (2, 3, 1, 0))
            .reshape(kh * kw, cin, cout).astype(ACT_DTYPE))


def prepare_params(raw):
    """One-time param prep: fold the downsample BatchNorm (eval mode) into the
    conv, pack every weight into bf16 MXU layout, pre-shape biases.  No per
    forward-pass padding remains (kernels use full-extent blocks)."""
    # TODO(synk): downsample BN folded with running stats (eval mode);
    # training-mode batch statistics are not reproduced.
    p = {'conv1': _pack_kxk(raw['conv1'])}
    layers = []
    for lraw in raw['layers']:
        ds = lraw['downsample']
        scale = ds['gamma'] / jnp.sqrt(ds['var'] + BN_EPS)
        w_eff = ds['w'] * scale[:, None, None, None]
        b_eff = (ds['beta'] - ds['mean'] * scale).reshape(1, -1)
        layers.append({
            'downsample': {'wm': _pack_1x1(w_eff),
                           'bias': b_eff.astype(jnp.float32)},
            'blocks': [{'conv1': _pack_1x1(b['conv1']),
                        'conv2': _pack_3x3_taps(b['conv2']),
                        'conv3': _pack_1x1(b['conv3'])}
                       for b in lraw['blocks']],
        })
    p['layers'] = layers
    p['fc_w'] = raw['fc_w'].T.astype(ACT_DTYPE)          # (512, num_classes)
    p['fc_b'] = raw['fc_b'].reshape(1, -1).astype(jnp.float32)
    return p


# ---------------------------------- main -------------------------------------

if __name__ == "__main__":
    key = jax.random.PRNGKey(0)
    raw_params = init_raw_params(key, num_classes=10)
    params = prepare_params(raw_params)
    x = jax.random.normal(jax.random.fold_in(key, 999), (2, 3, 32, 32),
                          jnp.float32)

    forward = jax.jit(resnet50_forward)
    logits = forward(params, x)
    jax.block_until_ready(logits)

    assert logits.shape == (2, 10), logits.shape
    assert bool(jnp.all(jnp.isfinite(logits)))
    print("KERNEL_OK")
</pallas_src>

<mosaic_0001>
module attributes {stable_mosaic.version = 11 : i64} {
  func.func @_mm_kernel_1k(%arg0: i32, %arg1: i32, %arg2: memref<256x147xbf16, #tpu.memory_space<vmem>>, %arg3: memref<147x64xbf16, #tpu.memory_space<vmem>>, %arg4: memref<256x64xbf16, #tpu.memory_space<vmem>>) attributes {dimension_semantics = [#tpu.dimension_semantics<parallel>, #tpu.dimension_semantics<parallel>], iteration_bounds = array<i64: 2, 1>, scalar_prefetch = 0 : i64, scratch_operands = 0 : i64, tpu.core_type = #tpu.core_type<tc>, window_params = [{transform_indices = @transform_0, window_bounds = array<i64: 256, 147>}, {transform_indices = @transform_1, window_bounds = array<i64: 147, 64>}, {transform_indices = @transform_2, window_bounds = array<i64: 256, 64>}]} {
    %c0 = arith.constant 0 : index
    %c0_0 = arith.constant 0 : index
    %0 = vector.load %arg2[%c0, %c0_0] : memref<256x147xbf16, #tpu.memory_space<vmem>>, vector<256x147xbf16>
    %c0_1 = arith.constant 0 : index
    %c0_2 = arith.constant 0 : index
    %1 = vector.load %arg3[%c0_1, %c0_2] : memref<147x64xbf16, #tpu.memory_space<vmem>>, vector<147x64xbf16>
    %cst = arith.constant dense<0.000000e+00> : vector<256x64xf32>
    %2 = tpu.matmul %0, %1, %cst {dimension_numbers = #tpu.dot_dimension_numbers<[1], [0], [0], [1], [0, 0, 1, 1], [], []>} : vector<256x147xbf16>, vector<147x64xbf16>, vector<256x64xf32> -> vector<256x64xf32>
    %cst_3 = arith.constant 0.000000e+00 : f32
    %3 = vector.broadcast %cst_3 : f32 to vector<256x64xf32>
    %4 = arith.maximumf %2, %3 : vector<256x64xf32>
    %5 = arith.truncf %4 : vector<256x64xf32> to vector<256x64xbf16>
    %c0_4 = arith.constant 0 : index
    %c0_5 = arith.constant 0 : index
    %6 = vector.load %arg4[%c0_4, %c0_5] : memref<256x64xbf16, #tpu.memory_space<vmem>>, vector<256x64xbf16>
    tpu.vector_store %arg4[%c0_4, %c0_5], %5 {strides = array<i32>} : memref<256x64xbf16, #tpu.memory_space<vmem>>, vector<256x64xbf16>,
    return
  }
  func.func @transform_0(%arg0: i32, %arg1: i32) -> (i32, i32) {
    %c0_i32 = arith.constant 0 : i32
    %c0_i32_0 = arith.constant 0 : i32
    return %arg0, %c0_i32 : i32, i32
  }
  func.func @transform_1(%arg0: i32, %arg1: i32) -> (i32, i32) {
    %c0_i32 = arith.constant 0 : i32
    %c0_i32_0 = arith.constant 0 : i32
    return %c0_i32, %arg1 : i32, i32
  }
  func.func @transform_2(%arg0: i32, %arg1: i32) -> (i32, i32) {
    %c0_i32 = arith.constant 0 : i32
    return %arg0, %arg1 : i32, i32
  }
}

module attributes {stable_mosaic.version = 11 : i64} {
  func.func @_mm_kernel_1k(%arg0: i32, %arg1: i32, %arg2: memref<128x64xbf16, #tpu.memory_space<vmem>>, %arg3: memref<64x16xbf16, #tpu.memory_space<vmem>>, %arg4: memref<128x16xbf16, #tpu.memory_space<vmem>>) attributes {dimension_semantics = [#tpu.dimension_semantics<parallel>, #tpu.dimension_semantics<parallel>], iteration_bounds = array<i64: 1, 1>, scalar_prefetch = 0 : i64, scratch_operands = 0 : i64, tpu.core_type = #tpu.core_type<tc>, window_params = [{transform_indices = @transform_0, window_bounds = array<i64: 128, 64>}, {transform_indices = @transform_1, window_bounds = array<i64: 64, 16>}, {transform_indices = @transform_2, window_bounds = array<i64: 128, 16>}]} {
    %c0 = arith.constant 0 : index
    %c0_0 = arith.constant 0 : index
    %0 = vector.load %arg2[%c0, %c0_0] : memref<128x64xbf16, #tpu.memory_space<vmem>>, vector<128x64xbf16>
    %c0_1 = arith.constant 0 : index
    %c0_2 = arith.constant 0 : index
    %1 = vector.load %arg3[%c0_1, %c0_2] : memref<64x16xbf16, #tpu.memory_space<vmem>>, vector<64x16xbf16>
    %cst = arith.constant dense<0.000000e+00> : vector<128x16xf32>
    %2 = tpu.matmul %0, %1, %cst {dimension_numbers = #tpu.dot_dimension_numbers<[1], [0], [0], [1], [0, 0, 1, 1], [], []>} : vector<128x64xbf16>, vector<64x16xbf16>, vector<128x16xf32> -> vector<128x16xf32>
    %cst_3 = arith.constant 0.000000e+00 : f32
    %3 = vector.broadcast %cst_3 : f32 to vector<128x16xf32>
    %4 = arith.maximumf %2, %3 : vector<128x16xf32>
    %5 = arith.truncf %4 : vector<128x16xf32> to vector<128x16xbf16>
    %c0_4 = arith.constant 0 : index
    %c0_5 = arith.constant 0 : index
    %6 = vector.load %arg4[%c0_4, %c0_5] : memref<128x16xbf16, #tpu.memory_space<vmem>>, vector<128x16xbf16>
    tpu.vector_store %arg4[%c0_4, %c0_5], %5 {strides = array<i32>} : memref<128x16xbf16, #tpu.memory_space<vmem>>, vector<128x16xbf16>,
    return
  }
  func.func @transform_0(%arg0: i32, %arg1: i32) -> (i32, i32) {
    %c0_i32 = arith.constant 0 : i32
    %c0_i32_0 = arith.constant 0 : i32
    return %arg0, %c0_i32 : i32, i32
  }
  func.func @transform_1(%arg0: i32, %arg1: i32) -> (i32, i32) {
    %c0_i32 = arith.constant 0 : i32
    %c0_i32_0 = arith.constant 0 : i32
    return %c0_i32, %arg1 : i32, i32
  }
  func.func @transform_2(%arg0: i32, %arg1: i32) -> (i32, i32) {
    %c0_i32 = arith.constant 0 : i32
    return %arg0, %arg1 : i32, i32
  }
}

module attributes {stable_mosaic.version = 11 : i64} {
  func.func @_maxpool3x3s2_kernel(%arg0: i32, %arg1: memref<2x9x9x64xbf16, #tpu.memory_space<vmem>>, %arg2: memref<2x9x9x64xbf16, #tpu.memory_space<vmem>>, %arg3: memref<2x9x9x64xbf16, #tpu.memory_space<vmem>>, %arg4: memref<2x9x9x64xbf16, #tpu.memory_space<vmem>>, %arg5: memref<2x8x8x64xbf16, #tpu.memory_space<vmem>>) attributes {dimension_semantics = [#tpu.dimension_semantics<arbitrary>], iteration_bounds = array<i64: 1>, scalar_prefetch = 0 : i64, scratch_operands = 0 : i64, tpu.core_type = #tpu.core_type<tc>, window_params = [{pipeline_mode = #tpu.pipeline_mode<synchronous>, transform_indices = @transform_0, window_bounds = array<i64: 2, 9, 9, 64>}, {pipeline_mode = #tpu.pipeline_mode<synchronous>, transform_indices = @transform_1, window_bounds = array<i64: 2, 9, 9, 64>}, {pipeline_mode = #tpu.pipeline_mode<synchronous>, transform_indices = @transform_2, window_bounds = array<i64: 2, 9, 9, 64>}, {pipeline_mode = #tpu.pipeline_mode<synchronous>, transform_indices = @transform_3, window_bounds = array<i64: 2, 9, 9, 64>}, {pipeline_mode = #tpu.pipeline_mode<synchronous>, transform_indices = @transform_4, window_bounds = array<i64: 2, 8, 8, 64>}]} {
    %c0 = arith.constant 0 : index
    %c0_0 = arith.constant 0 : index
    %c0_1 = arith.constant 0 : index
    %c0_2 = arith.constant 0 : index
    %0 = vector.load %arg1[%c0, %c0_0, %c0_1, %c0_2] : memref<2x9x9x64xbf16, #tpu.memory_space<vmem>>, vector<2x8x8x64xbf16>
    %c0_3 = arith.constant 0 : index
    %c0_4 = arith.constant 0 : index
    %c0_5 = arith.constant 0 : index
    %c0_6 = arith.constant 0 : index
    %1 = vector.load %arg2[%c0_3, %c0_4, %c0_5, %c0_6] : memref<2x9x9x64xbf16, #tpu.memory_space<vmem>>, vector<2x8x8x64xbf16>
    %2 = arith.maximumf %0, %1 : vector<2x8x8x64xbf16>
    %c0_7 = arith.constant 0 : index
    %c0_8 = arith.constant 0 : index
    %c1 = arith.constant 1 : index
    %c0_9 = arith.constant 0 : index
    %3 = vector.load %arg1[%c0_7, %c0_8, %c1, %c0_9] : memref<2x9x9x64xbf16, #tpu.memory_space<vmem>>, vector<2x8x8x64xbf16>
    %4 = arith.maximumf %2, %3 : vector<2x8x8x64xbf16>
    %c0_10 = arith.constant 0 : index
    %c0_11 = arith.constant 0 : index
    %c0_12 = arith.constant 0 : index
    %c0_13 = arith.constant 0 : index
    %5 = vector.load %arg3[%c0_10, %c0_11, %c0_12, %c0_13] : memref<2x9x9x64xbf16, #tpu.memory_space<vmem>>, vector<2x8x8x64xbf16>
    %6 = arith.maximumf %4, %5 : vector<2x8x8x64xbf16>
    %c0_14 = arith.constant 0 : index
    %c0_15 = arith.constant 0 : index
    %c0_16 = arith.constant 0 : index
    %c0_17 = arith.constant 0 : index
    %7 = vector.load %arg4[%c0_14, %c0_15, %c0_16, %c0_17] : memref<2x9x9x64xbf16, #tpu.memory_space<vmem>>, vector<2x8x8x64xbf16>
    %8 = arith.maximumf %6, %7 : vector<2x8x8x64xbf16>
    %c0_18 = arith.constant 0 : index
    %c0_19 = arith.constant 0 : index
    %c1_20 = arith.constant 1 : index
    %c0_21 = arith.constant 0 : index
    %9 = vector.load %arg3[%c0_18, %c0_19, %c1_20, %c0_21] : memref<2x9x9x64xbf16, #tpu.memory_space<vmem>>, vector<2x8x8x64xbf16>
    %10 = arith.maximumf %8, %9 : vector<2x8x8x64xbf16>
    %c0_22 = arith.constant 0 : index
    %c1_23 = arith.constant 1 : index
    %c0_24 = arith.constant 0 : index
    %c0_25 = arith.constant 0 : index
    %11 = vector.load %arg1[%c0_22, %c1_23, %c0_24, %c0_25] : memref<2x9x9x64xbf16, #tpu.memory_space<vmem>>, vector<2x8x8x64xbf16>
    %12 = arith.maximumf %10, %11 : vector<2x8x8x64xbf16>
    %c0_26 = arith.constant 0 : index
    %c1_27 = arith.constant 1 : index
    %c0_28 = arith.constant 0 : index
    %c0_29 = arith.constant 0 : index
    %13 = vector.load %arg2[%c0_26, %c1_27, %c0_28, %c0_29] : memref<2x9x9x64xbf16, #tpu.memory_space<vmem>>, vector<2x8x8x64xbf16>
    %14 = arith.maximumf %12, %13 : vector<2x8x8x64xbf16>
    %c0_30 = arith.constant 0 : index
    %c1_31 = arith.constant 1 : index
    %c1_32 = arith.constant 1 : index
    %c0_33 = arith.constant 0 : index
    %15 = vector.load %arg1[%c0_30, %c1_31, %c1_32, %c0_33] : memref<2x9x9x64xbf16, #tpu.memory_space<vmem>>, vector<2x8x8x64xbf16>
    %16 = arith.maximumf %14, %15 : vector<2x8x8x64xbf16>
    %c0_34 = arith.constant 0 : index
    %c0_35 = arith.constant 0 : index
    %c0_36 = arith.constant 0 : index
    %c0_37 = arith.constant 0 : index
    %17 = vector.load %arg5[%c0_34, %c0_35, %c0_36, %c0_37] : memref<2x8x8x64xbf16, #tpu.memory_space<vmem>>, vector<2x8x8x64xbf16>
    tpu.vector_store %arg5[%c0_34, %c0_35, %c0_36, %c0_37], %16 {strides = array<i32>} : memref<2x8x8x64xbf16, #tpu.memory_space<vmem>>, vector<2x8x8x64xbf16>,
    return
  }
  func.func @transform_0(%arg0: i32) -> (i32, i32, i32, i32) {
    %c0_i32 = arith.constant 0 : i32
    %c0_i32_0 = arith.constant 0 : i32
    %c0_i32_1 = arith.constant 0 : i32
    %c0_i32_2 = arith.constant 0 : i32
    %c0_i32_3 = arith.constant 0 : i32
    return %c0_i32, %c0_i32_0, %c0_i32_1, %c0_i32_2 : i32, i32, i32, i32
  }
  func.func @transform_1(%arg0: i32) -> (i32, i32, i32, i32) {
    %c0_i32 = arith.constant 0 : i32
    %c0_i32_0 = arith.constant 0 : i32
    %c0_i32_1 = arith.constant 0 : i32
    %c0_i32_2 = arith.constant 0 : i32
    %c0_i32_3 = arith.constant 0 : i32
    return %c0_i32, %c0_i32_0, %c0_i32_1, %c0_i32_2 : i32, i32, i32, i32
  }
  func.func @transform_2(%arg0: i32) -> (i32, i32, i32, i32) {
    %c0_i32 = arith.constant 0 : i32
    %c0_i32_0 = arith.constant 0 : i32
    %c0_i32_1 = arith.constant 0 : i32
    %c0_i32_2 = arith.constant 0 : i32
    %c0_i32_3 = arith.constant 0 : i32
    return %c0_i32, %c0_i32_0, %c0_i32_1, %c0_i32_2 : i32, i32, i32, i32
  }
  func.func @transform_3(%arg0: i32) -> (i32, i32, i32, i32) {
    %c0_i32 = arith.constant 0 : i32
    %c0_i32_0 = arith.constant 0 : i32
    %c0_i32_1 = arith.constant 0 : i32
    %c0_i32_2 = arith.constant 0 : i32
    %c0_i32_3 = arith.constant 0 : i32
    return %c0_i32, %c0_i32_0, %c0_i32_1, %c0_i32_2 : i32, i32, i32, i32
  }
  func.func @transform_4(%arg0: i32) -> (i32, i32, i32, i32) {
    %c0_i32 = arith.constant 0 : i32
    %c0_i32_0 = arith.constant 0 : i32
    %c0_i32_1 = arith.constant 0 : i32
    %c0_i32_2 = arith.constant 0 : i32
    %c0_i32_3 = arith.constant 0 : i32
    return %c0_i32, %c0_i32_0, %c0_i32_1, %c0_i32_2 : i32, i32, i32, i32
  }
}

module attributes {stable_mosaic.version = 11 : i64} {
  func.func @_mm_kernel_1k(%arg0: i32, %arg1: i32, %arg2: memref<128x64xbf16, #tpu.memory_space<vmem>>, %arg3: memref<64x64xbf16, #tpu.memory_space<vmem>>, %arg4: memref<1x64xf32, #tpu.memory_space<vmem>>, %arg5: memref<128x64xbf16, #tpu.memory_space<vmem>>) attributes {dimension_semantics = [#tpu.dimension_semantics<parallel>, #tpu.dimension_semantics<parallel>], iteration_bounds = array<i64: 1, 1>, scalar_prefetch = 0 : i64, scratch_operands = 0 : i64, tpu.core_type = #tpu.core_type<tc>, window_params = [{transform_indices = @transform_0, window_bounds = array<i64: 128, 64>}, {transform_indices = @transform_1, window_bounds = array<i64: 64, 64>}, {transform_indices = @transform_2, window_bounds = array<i64: 1, 64>}, {transform_indices = @transform_3, window_bounds = array<i64: 128, 64>}]} {
    %c0 = arith.constant 0 : index
    %c0_0 = arith.constant 0 : index
    %0 = vector.load %arg2[%c0, %c0_0] : memref<128x64xbf16, #tpu.memory_space<vmem>>, vector<128x64xbf16>
    %c0_1 = arith.constant 0 : index
    %c0_2 = arith.constant 0 : index
    %1 = vector.load %arg3[%c0_1, %c0_2] : memref<64x64xbf16, #tpu.memory_space<vmem>>, vector<64x64xbf16>
    %cst = arith.constant dense<0.000000e+00> : vector<128x64xf32>
    %2 = tpu.matmul %0, %1, %cst {dimension_numbers = #tpu.dot_dimension_numbers<[1], [0], [0], [1], [0, 0, 1, 1], [], []>} : vector<128x64xbf16>, vector<64x64xbf16>, vector<128x64xf32> -> vector<128x64xf32>
    %c0_3 = arith.constant 0 : index
    %c0_4 = arith.constant 0 : index
    %3 = vector.load %arg4[%c0_3, %c0_4] : memref<1x64xf32, #tpu.memory_space<vmem>>, vector<1x64xf32>
    %4 = vector.broadcast %3 : vector<1x64xf32> to vector<128x64xf32>
    %5 = arith.addf %2, %4 : vector<128x64xf32>
    %6 = arith.truncf %5 : vector<128x64xf32> to vector<128x64xbf16>
    %c0_5 = arith.constant 0 : index
    %c0_6 = arith.constant 0 : index
    %7 = vector.load %arg5[%c0_5, %c0_6] : memref<128x64xbf16, #tpu.memory_space<vmem>>, vector<128x64xbf16>
    tpu.vector_store %arg5[%c0_5, %c0_6], %6 {strides = array<i32>} : memref<128x64xbf16, #tpu.memory_space<vmem>>, vector<128x64xbf16>,
    return
  }
  func.func @transform_0(%arg0: i32, %arg1: i32) -> (i32, i32) {
    %c0_i32 = arith.constant 0 : i32
    %c0_i32_0 = arith.constant 0 : i32
    return %arg0, %c0_i32 : i32, i32
  }
  func.func @transform_1(%arg0: i32, %arg1: i32) -> (i32, i32) {
    %c0_i32 = arith.constant 0 : i32
    %c0_i32_0 = arith.constant 0 : i32
    return %c0_i32, %arg1 : i32, i32
  }
  func.func @transform_2(%arg0: i32, %arg1: i32) -> (i32, i32) {
    %c0_i32 = arith.constant 0 : i32
    %c0_i32_0 = arith.constant 0 : i32
    return %c0_i32, %arg1 : i32, i32
  }
  func.func @transform_3(%arg0: i32, %arg1: i32) -> (i32, i32) {
    %c0_i32 = arith.constant 0 : i32
    return %arg0, %arg1 : i32, i32
  }
}

module attributes {stable_mosaic.version = 11 : i64} {
  func.func @_conv3x3_kernel(%arg0: i32, %arg1: memref<222x16xbf16, #tpu.memory_space<vmem>>, %arg2: memref<9x16x16xbf16, #tpu.memory_space<vmem>>, %arg3: memref<200x16xbf16, #tpu.memory_space<vmem>>) attributes {dimension_semantics = [#tpu.dimension_semantics<arbitrary>], iteration_bounds = array<i64: 1>, scalar_prefetch = 0 : i64, scratch_operands = 0 : i64, tpu.core_type = #tpu.core_type<tc>, window_params = [{pipeline_mode = #tpu.pipeline_mode<synchronous>, transform_indices = @transform_0, window_bounds = array<i64: 222, 16>}, {pipeline_mode = #tpu.pipeline_mode<synchronous>, transform_indices = @transform_1, window_bounds = array<i64: 9, 16, 16>}, {pipeline_mode = #tpu.pipeline_mode<synchronous>, transform_indices = @transform_2, window_bounds = array<i64: 200, 16>}]} {
    %c0 = arith.constant 0 : index
    %c0_0 = arith.constant 0 : index
    %0 = vector.load %arg1[%c0, %c0_0] : memref<222x16xbf16, #tpu.memory_space<vmem>>, vector<200x16xbf16>
    %c0_1 = arith.constant 0 : index
    %c0_2 = arith.constant 0 : index
    %c0_3 = arith.constant 0 : index
    %1 = vector.load %arg2[%c0_1, %c0_2, %c0_3] : memref<9x16x16xbf16, #tpu.memory_space<vmem>>, vector<1x16x16xbf16>
    %2 = vector.shape_cast %1 : vector<1x16x16xbf16> to vector<16x16xbf16>
    %cst = arith.constant dense<0.000000e+00> : vector<200x16xf32>
    %3 = tpu.matmul %0, %2, %cst {dimension_numbers = #tpu.dot_dimension_numbers<[1], [0], [0], [1], [0, 0, 1, 1], [], []>} : vector<200x16xbf16>, vector<16x16xbf16>, vector<200x16xf32> -> vector<200x16xf32>
    %c1 = arith.constant 1 : index
    %c0_4 = arith.constant 0 : index
    %4 = vector.load %arg1[%c1, %c0_4] : memref<222x16xbf16, #tpu.memory_space<vmem>>, vector<200x16xbf16>
    %c1_5 = arith.constant 1 : index
    %c0_6 = arith.constant 0 : index
    %c0_7 = arith.constant 0 : index
    %5 = vector.load %arg2[%c1_5, %c0_6, %c0_7] : memref<9x16x16xbf16, #tpu.memory_space<vmem>>, vector<1x16x16xbf16>
    %6 = vector.shape_cast %5 : vector<1x16x16xbf16> to vector<16x16xbf16>
    %cst_8 = arith.constant dense<0.000000e+00> : vector<200x16xf32>
    %7 = tpu.matmul %4, %6, %cst_8 {dimension_numbers = #tpu.dot_dimension_numbers<[1], [0], [0], [1], [0, 0, 1, 1], [], []>} : vector<200x16xbf16>, vector<16x16xbf16>, vector<200x16xf32> -> vector<200x16xf32>
    %8 = arith.addf %3, %7 : vector<200x16xf32>
    %c2 = arith.constant 2 : index
    %c0_9 = arith.constant 0 : index
    %9 = vector.load %arg1[%c2, %c0_9] : memref<222x16xbf16, #tpu.memory_space<vmem>>, vector<200x16xbf16>
    %c2_10 = arith.constant 2 : index
    %c0_11 = arith.constant 0 : index
    %c0_12 = arith.constant 0 : index
    %10 = vector.load %arg2[%c2_10, %c0_11, %c0_12] : memref<9x16x16xbf16, #tpu.memory_space<vmem>>, vector<1x16x16xbf16>
    %11 = vector.shape_cast %10 : vector<1x16x16xbf16> to vector<16x16xbf16>
    %cst_13 = arith.constant dense<0.000000e+00> : vector<200x16xf32>
    %12 = tpu.matmul %9, %11, %cst_13 {dimension_numbers = #tpu.dot_dimension_numbers<[1], [0], [0], [1], [0, 0, 1, 1], [], []>} : vector<200x16xbf16>, vector<16x16xbf16>, vector<200x16xf32> -> vector<200x16xf32>
    %13 = arith.addf %8, %12 : vector<200x16xf32>
    %c10 = arith.constant 10 : index
    %c0_14 = arith.constant 0 : index
    %14 = vector.load %arg1[%c10, %c0_14] : memref<222x16xbf16, #tpu.memory_space<vmem>>, vector<200x16xbf16>
    %c3 = arith.constant 3 : index
    %c0_15 = arith.constant 0 : index
    %c0_16 = arith.constant 0 : index
    %15 = vector.load %arg2[%c3, %c0_15, %c0_16] : memref<9x16x16xbf16, #tpu.memory_space<vmem>>, vector<1x16x16xbf16>
    %16 = vector.shape_cast %15 : vector<1x16x16xbf16> to vector<16x16xbf16>
    %cst_17 = arith.constant dense<0.000000e+00> : vector<200x16xf32>
    %17 = tpu.matmul %14, %16, %cst_17 {dimension_numbers = #tpu.dot_dimension_numbers<[1], [0], [0], [1], [0, 0, 1, 1], [], []>} : vector<200x16xbf16>, vector<16x16xbf16>, vector<200x16xf32> -> vector<200x16xf32>
    %18 = arith.addf %13, %17 : vector<200x16xf32>
    %c11 = arith.constant 11 : index
    %c0_18 = arith.constant 0 : index
    %19 = vector.load %arg1[%c11, %c0_18] : memref<222x16xbf16, #tpu.memory_space<vmem>>, vector<200x16xbf16>
    %c4 = arith.constant 4 : index
    %c0_19 = arith.constant 0 : index
    %c0_20 = arith.constant 0 : index
    %20 = vector.load %arg2[%c4, %c0_19, %c0_20] : memref<9x16x16xbf16, #tpu.memory_space<vmem>>, vector<1x16x16xbf16>
    %21 = vector.shape_cast %20 : vector<1x16x16xbf16> to vector<16x16xbf16>
    %cst_21 = arith.constant dense<0.000000e+00> : vector<200x16xf32>
    %22 = tpu.matmul %19, %21, %cst_21 {dimension_numbers = #tpu.dot_dimension_numbers<[1], [0], [0], [1], [0, 0, 1, 1], [], []>} : vector<200x16xbf16>, vector<16x16xbf16>, vector<200x16xf32> -> vector<200x16xf32>
    %23 = arith.addf %18, %22 : vector<200x16xf32>
    %c12 = arith.constant 12 : index
    %c0_22 = arith.constant 0 : index
    %24 = vector.load %arg1[%c12, %c0_22] : memref<222x16xbf16, #tpu.memory_space<vmem>>, vector<200x16xbf16>
    %c5 = arith.constant 5 : index
    %c0_23 = arith.constant 0 : index
    %c0_24 = arith.constant 0 : index
    %25 = vector.load %arg2[%c5, %c0_23, %c0_24] : memref<9x16x16xbf16, #tpu.memory_space<vmem>>, vector<1x16x16xbf16>
    %26 = vector.shape_cast %25 : vector<1x16x16xbf16> to vector<16x16xbf16>
    %cst_25 = arith.constant dense<0.000000e+00> : vector<200x16xf32>
    %27 = tpu.matmul %24, %26, %cst_25 {dimension_numbers = #tpu.dot_dimension_numbers<[1], [0], [0], [1], [0, 0, 1, 1], [], []>} : vector<200x16xbf16>, vector<16x16xbf16>, vector<200x16xf32> -> vector<200x16xf32>
    %28 = arith.addf %23, %27 : vector<200x16xf32>
    %c20 = arith.constant 20 : index
    %c0_26 = arith.constant 0 : index
    %29 = vector.load %arg1[%c20, %c0_26] : memref<222x16xbf16, #tpu.memory_space<vmem>>, vector<200x16xbf16>
    %c6 = arith.constant 6 : index
    %c0_27 = arith.constant 0 : index
    %c0_28 = arith.constant 0 : index
    %30 = vector.load %arg2[%c6, %c0_27, %c0_28] : memref<9x16x16xbf16, #tpu.memory_space<vmem>>, vector<1x16x16xbf16>
    %31 = vector.shape_cast %30 : vector<1x16x16xbf16> to vector<16x16xbf16>
    %cst_29 = arith.constant dense<0.000000e+00> : vector<200x16xf32>
    %32 = tpu.matmul %29, %31, %cst_29 {dimension_numbers = #tpu.dot_dimension_numbers<[1], [0], [0], [1], [0, 0, 1, 1], [], []>} : vector<200x16xbf16>, vector<16x16xbf16>, vector<200x16xf32> -> vector<200x16xf32>
    %33 = arith.addf %28, %32 : vector<200x16xf32>
    %c21 = arith.constant 21 : index
    %c0_30 = arith.constant 0 : index
    %34 = vector.load %arg1[%c21, %c0_30] : memref<222x16xbf16, #tpu.memory_space<vmem>>, vector<200x16xbf16>
    %c7 = arith.constant 7 : index
    %c0_31 = arith.constant 0 : index
    %c0_32 = arith.constant 0 : index
    %35 = vector.load %arg2[%c7, %c0_31, %c0_32] : memref<9x16x16xbf16, #tpu.memory_space<vmem>>, vector<1x16x16xbf16>
    %36 = vector.shape_cast %35 : vector<1x16x16xbf16> to vector<16x16xbf16>
    %cst_33 = arith.constant dense<0.000000e+00> : vector<200x16xf32>
    %37 = tpu.matmul %34, %36, %cst_33 {dimension_numbers = #tpu.dot_dimension_numbers<[1], [0], [0], [1], [0, 0, 1, 1], [], []>} : vector<200x16xbf16>, vector<16x16xbf16>, vector<200x16xf32> -> vector<200x16xf32>
    %38 = arith.addf %33, %37 : vector<200x16xf32>
    %c22 = arith.constant 22 : index
    %c0_34 = arith.constant 0 : index
    %39 = vector.load %arg1[%c22, %c0_34] : memref<222x16xbf16, #tpu.memory_space<vmem>>, vector<200x16xbf16>
    %c8 = arith.constant 8 : index
    %c0_35 = arith.constant 0 : index
    %c0_36 = arith.constant 0 : index
    %40 = vector.load %arg2[%c8, %c0_35, %c0_36] : memref<9x16x16xbf16, #tpu.memory_space<vmem>>, vector<1x16x16xbf16>
    %41 = vector.shape_cast %40 : vector<1x16x16xbf16> to vector<16x16xbf16>
    %cst_37 = arith.constant dense<0.000000e+00> : vector<200x16xf32>
    %42 = tpu.matmul %39, %41, %cst_37 {dimension_numbers = #tpu.dot_dimension_numbers<[1], [0], [0], [1], [0, 0, 1, 1], [], []>} : vector<200x16xbf16>, vector<16x16xbf16>, vector<200x16xf32> -> vector<200x16xf32>
    %43 = arith.addf %38, %42 : vector<200x16xf32>
    %cst_38 = arith.constant 0.000000e+00 : f32
    %44 = vector.broadcast %cst_38 : f32 to vector<200x16xf32>
    %45 = arith.maximumf %43, %44 : vector<200x16xf32>
    %46 = arith.truncf %45 : vector<200x16xf32> to vector<200x16xbf16>
    %c0_39 = arith.constant 0 : index
    %c0_40 = arith.constant 0 : index
    %47 = vector.load %arg3[%c0_39, %c0_40] : memref<200x16xbf16, #tpu.memory_space<vmem>>, vector<200x16xbf16>
    tpu.vector_store %arg3[%c0_39, %c0_40], %46 {strides = array<i32>} : memref<200x16xbf16, #tpu.memory_space<vmem>>, vector<200x16xbf16>,
    return
  }
  func.func @transform_0(%arg0: i32) -> (i32, i32) {
    %c0_i32 = arith.constant 0 : i32
    %c0_i32_0 = arith.constant 0 : i32
    %c0_i32_1 = arith.constant 0 : i32
    return %c0_i32, %c0_i32_0 : i32, i32
  }
  func.func @transform_1(%arg0: i32) -> (i32, i32, i32) {
    %c0_i32 = arith.constant 0 : i32
    %c0_i32_0 = arith.constant 0 : i32
    %c0_i32_1 = arith.constant 0 : i32
    %c0_i32_2 = arith.constant 0 : i32
    return %c0_i32, %c0_i32_0, %c0_i32_1 : i32, i32, i32
  }
  func.func @transform_2(%arg0: i32) -> (i32, i32) {
    %c0_i32 = arith.constant 0 : i32
    %c0_i32_0 = arith.constant 0 : i32
    %c0_i32_1 = arith.constant 0 : i32
    return %c0_i32, %c0_i32_0 : i32, i32
  }
}

module attributes {stable_mosaic.version = 11 : i64} {
  func.func @_mm_kernel_1k(%arg0: i32, %arg1: i32, %arg2: memref<128x16xbf16, #tpu.memory_space<vmem>>, %arg3: memref<16x64xbf16, #tpu.memory_space<vmem>>, %arg4: memref<128x64xbf16, #tpu.memory_space<vmem>>, %arg5: memref<128x64xbf16, #tpu.memory_space<vmem>>) attributes {dimension_semantics = [#tpu.dimension_semantics<parallel>, #tpu.dimension_semantics<parallel>], iteration_bounds = array<i64: 1, 1>, scalar_prefetch = 0 : i64, scratch_operands = 0 : i64, tpu.core_type = #tpu.core_type<tc>, window_params = [{transform_indices = @transform_0, window_bounds = array<i64: 128, 16>}, {transform_indices = @transform_1, window_bounds = array<i64: 16, 64>}, {transform_indices = @transform_2, window_bounds = array<i64: 128, 64>}, {transform_indices = @transform_3, window_bounds = array<i64: 128, 64>}]} {
    %c0 = arith.constant 0 : index
    %c0_0 = arith.constant 0 : index
    %0 = vector.load %arg2[%c0, %c0_0] : memref<128x16xbf16, #tpu.memory_space<vmem>>, vector<128x16xbf16>
    %c0_1 = arith.constant 0 : index
    %c0_2 = arith.constant 0 : index
    %1 = vector.load %arg3[%c0_1, %c0_2] : memref<16x64xbf16, #tpu.memory_space<vmem>>, vector<16x64xbf16>
    %cst = arith.constant dense<0.000000e+00> : vector<128x64xf32>
    %2 = tpu.matmul %0, %1, %cst {dimension_numbers = #tpu.dot_dimension_numbers<[1], [0], [0], [1], [0, 0, 1, 1], [], []>} : vector<128x16xbf16>, vector<16x64xbf16>, vector<128x64xf32> -> vector<128x64xf32>
    %c0_3 = arith.constant 0 : index
    %c0_4 = arith.constant 0 : index
    %3 = vector.load %arg4[%c0_3, %c0_4] : memref<128x64xbf16, #tpu.memory_space<vmem>>, vector<128x64xbf16>
    %4 = arith.extf %3 : vector<128x64xbf16> to vector<128x64xf32>
    %5 = arith.addf %2, %4 : vector<128x64xf32>
    %cst_5 = arith.constant 0.000000e+00 : f32
    %6 = vector.broadcast %cst_5 : f32 to vector<128x64xf32>
    %7 = arith.maximumf %5, %6 : vector<128x64xf32>
    %8 = arith.truncf %7 : vector<128x64xf32> to vector<128x64xbf16>
    %c0_6 = arith.constant 0 : index
    %c0_7 = arith.constant 0 : index
    %9 = vector.load %arg5[%c0_6, %c0_7] : memref<128x64xbf16, #tpu.memory_space<vmem>>, vector<128x64xbf16>
    tpu.vector_store %arg5[%c0_6, %c0_7], %8 {strides = array<i32>} : memref<128x64xbf16, #tpu.memory_space<vmem>>, vector<128x64xbf16>,
    return
  }
  func.func @transform_0(%arg0: i32, %arg1: i32) -> (i32, i32) {
    %c0_i32 = arith.constant 0 : i32
    %c0_i32_0 = arith.constant 0 : i32
    return %arg0, %c0_i32 : i32, i32
  }
  func.func @transform_1(%arg0: i32, %arg1: i32) -> (i32, i32) {
    %c0_i32 = arith.constant 0 : i32
    %c0_i32_0 = arith.constant 0 : i32
    return %c0_i32, %arg1 : i32, i32
  }
  func.func @transform_2(%arg0: i32, %arg1: i32) -> (i32, i32) {
    %c0_i32 = arith.constant 0 : i32
    return %arg0, %arg1 : i32, i32
  }
  func.func @transform_3(%arg0: i32, %arg1: i32) -> (i32, i32) {
    %c0_i32 = arith.constant 0 : i32
    return %arg0, %arg1 : i32, i32
  }
}

module attributes {stable_mosaic.version = 11 : i64} {
  func.func @_mm_kernel_1k(%arg0: i32, %arg1: i32, %arg2: memref<32x128xbf16, #tpu.memory_space<vmem>>, %arg3: memref<128x32xbf16, #tpu.memory_space<vmem>>, %arg4: memref<32x32xbf16, #tpu.memory_space<vmem>>) attributes {dimension_semantics = [#tpu.dimension_semantics<parallel>, #tpu.dimension_semantics<parallel>], iteration_bounds = array<i64: 1, 1>, scalar_prefetch = 0 : i64, scratch_operands = 0 : i64, tpu.core_type = #tpu.core_type<tc>, window_params = [{transform_indices = @transform_0, window_bounds = array<i64: 32, 128>}, {transform_indices = @transform_1, window_bounds = array<i64: 128, 32>}, {transform_indices = @transform_2, window_bounds = array<i64: 32, 32>}]} {
    %c0 = arith.constant 0 : index
    %c0_0 = arith.constant 0 : index
    %0 = vector.load %arg2[%c0, %c0_0] : memref<32x128xbf16, #tpu.memory_space<vmem>>, vector<32x128xbf16>
    %c0_1 = arith.constant 0 : index
    %c0_2 = arith.constant 0 : index
    %1 = vector.load %arg3[%c0_1, %c0_2] : memref<128x32xbf16, #tpu.memory_space<vmem>>, vector<128x32xbf16>
    %cst = arith.constant dense<0.000000e+00> : vector<32x32xf32>
    %2 = tpu.matmul %0, %1, %cst {dimension_numbers = #tpu.dot_dimension_numbers<[1], [0], [0], [1], [0, 0, 1, 1], [], []>} : vector<32x128xbf16>, vector<128x32xbf16>, vector<32x32xf32> -> vector<32x32xf32>
    %cst_3 = arith.constant 0.000000e+00 : f32
    %3 = vector.broadcast %cst_3 : f32 to vector<32x32xf32>
    %4 = arith.maximumf %2, %3 : vector<32x32xf32>
    %5 = arith.truncf %4 : vector<32x32xf32> to vector<32x32xbf16>
    %c0_4 = arith.constant 0 : index
    %c0_5 = arith.constant 0 : index
    %6 = vector.load %arg4[%c0_4, %c0_5] : memref<32x32xbf16, #tpu.memory_space<vmem>>, vector<32x32xbf16>
    tpu.vector_store %arg4[%c0_4, %c0_5], %5 {strides = array<i32>} : memref<32x32xbf16, #tpu.memory_space<vmem>>, vector<32x32xbf16>,
    return
  }
  func.func @transform_0(%arg0: i32, %arg1: i32) -> (i32, i32) {
    %c0_i32 = arith.constant 0 : i32
    %c0_i32_0 = arith.constant 0 : i32
    return %arg0, %c0_i32 : i32, i32
  }
  func.func @transform_1(%arg0: i32, %arg1: i32) -> (i32, i32) {
    %c0_i32 = arith.constant 0 : i32
    %c0_i32_0 = arith.constant 0 : i32
    return %c0_i32, %arg1 : i32, i32
  }
  func.func @transform_2(%arg0: i32, %arg1: i32) -> (i32, i32) {
    %c0_i32 = arith.constant 0 : i32
    return %arg0, %arg1 : i32, i32
  }
}

module attributes {stable_mosaic.version = 11 : i64} {
  func.func @_mm_kernel_1k(%arg0: i32, %arg1: i32, %arg2: memref<32x64xbf16, #tpu.memory_space<vmem>>, %arg3: memref<64x128xbf16, #tpu.memory_space<vmem>>, %arg4: memref<1x128xf32, #tpu.memory_space<vmem>>, %arg5: memref<32x128xbf16, #tpu.memory_space<vmem>>) attributes {dimension_semantics = [#tpu.dimension_semantics<parallel>, #tpu.dimension_semantics<parallel>], iteration_bounds = array<i64: 1, 1>, scalar_prefetch = 0 : i64, scratch_operands = 0 : i64, tpu.core_type = #tpu.core_type<tc>, window_params = [{transform_indices = @transform_0, window_bounds = array<i64: 32, 64>}, {transform_indices = @transform_1, window_bounds = array<i64: 64, 128>}, {transform_indices = @transform_2, window_bounds = array<i64: 1, 128>}, {transform_indices = @transform_3, window_bounds = array<i64: 32, 128>}]} {
    %c0 = arith.constant 0 : index
    %c0_0 = arith.constant 0 : index
    %0 = vector.load %arg2[%c0, %c0_0] : memref<32x64xbf16, #tpu.memory_space<vmem>>, vector<32x64xbf16>
    %c0_1 = arith.constant 0 : index
    %c0_2 = arith.constant 0 : index
    %1 = vector.load %arg3[%c0_1, %c0_2] : memref<64x128xbf16, #tpu.memory_space<vmem>>, vector<64x128xbf16>
    %cst = arith.constant dense<0.000000e+00> : vector<32x128xf32>
    %2 = tpu.matmul %0, %1, %cst {dimension_numbers = #tpu.dot_dimension_numbers<[1], [0], [0], [1], [0, 0, 1, 1], [], []>} : vector<32x64xbf16>, vector<64x128xbf16>, vector<32x128xf32> -> vector<32x128xf32>
    %c0_3 = arith.constant 0 : index
    %c0_4 = arith.constant 0 : index
    %3 = vector.load %arg4[%c0_3, %c0_4] : memref<1x128xf32, #tpu.memory_space<vmem>>, vector<1x128xf32>
    %4 = vector.broadcast %3 : vector<1x128xf32> to vector<32x128xf32>
    %5 = arith.addf %2, %4 : vector<32x128xf32>
    %6 = arith.truncf %5 : vector<32x128xf32> to vector<32x128xbf16>
    %c0_5 = arith.constant 0 : index
    %c0_6 = arith.constant 0 : index
    %7 = vector.load %arg5[%c0_5, %c0_6] : memref<32x128xbf16, #tpu.memory_space<vmem>>, vector<32x128xbf16>
    tpu.vector_store %arg5[%c0_5, %c0_6], %6 {strides = array<i32>} : memref<32x128xbf16, #tpu.memory_space<vmem>>, vector<32x128xbf16>,
    return
  }
  func.func @transform_0(%arg0: i32, %arg1: i32) -> (i32, i32) {
    %c0_i32 = arith.constant 0 : i32
    %c0_i32_0 = arith.constant 0 : i32
    return %arg0, %c0_i32 : i32, i32
  }
  func.func @transform_1(%arg0: i32, %arg1: i32) -> (i32, i32) {
    %c0_i32 = arith.constant 0 : i32
    %c0_i32_0 = arith.constant 0 : i32
    return %c0_i32, %arg1 : i32, i32
  }
  func.func @transform_2(%arg0: i32, %arg1: i32) -> (i32, i32) {
    %c0_i32 = arith.constant 0 : i32
    %c0_i32_0 = arith.constant 0 : i32
    return %c0_i32, %arg1 : i32, i32
  }
  func.func @transform_3(%arg0: i32, %arg1: i32) -> (i32, i32) {
    %c0_i32 = arith.constant 0 : i32
    return %arg0, %arg1 : i32, i32
  }
}

module attributes {stable_mosaic.version = 11 : i64} {
  func.func @_mm_kernel_1k(%arg0: i32, %arg1: i32, %arg2: memref<32x32xbf16, #tpu.memory_space<vmem>>, %arg3: memref<32x128xbf16, #tpu.memory_space<vmem>>, %arg4: memref<32x128xbf16, #tpu.memory_space<vmem>>, %arg5: memref<32x128xbf16, #tpu.memory_space<vmem>>) attributes {dimension_semantics = [#tpu.dimension_semantics<parallel>, #tpu.dimension_semantics<parallel>], iteration_bounds = array<i64: 1, 1>, scalar_prefetch = 0 : i64, scratch_operands = 0 : i64, tpu.core_type = #tpu.core_type<tc>, window_params = [{transform_indices = @transform_0, window_bounds = array<i64: 32, 32>}, {transform_indices = @transform_1, window_bounds = array<i64: 32, 128>}, {transform_indices = @transform_2, window_bounds = array<i64: 32, 128>}, {transform_indices = @transform_3, window_bounds = array<i64: 32, 128>}]} {
    %c0 = arith.constant 0 : index
    %c0_0 = arith.constant 0 : index
    %0 = vector.load %arg2[%c0, %c0_0] : memref<32x32xbf16, #tpu.memory_space<vmem>>, vector<32x32xbf16>
    %c0_1 = arith.constant 0 : index
    %c0_2 = arith.constant 0 : index
    %1 = vector.load %arg3[%c0_1, %c0_2] : memref<32x128xbf16, #tpu.memory_space<vmem>>, vector<32x128xbf16>
    %cst = arith.constant dense<0.000000e+00> : vector<32x128xf32>
    %2 = tpu.matmul %0, %1, %cst {dimension_numbers = #tpu.dot_dimension_numbers<[1], [0], [0], [1], [0, 0, 1, 1], [], []>} : vector<32x32xbf16>, vector<32x128xbf16>, vector<32x128xf32> -> vector<32x128xf32>
    %c0_3 = arith.constant 0 : index
    %c0_4 = arith.constant 0 : index
    %3 = vector.load %arg4[%c0_3, %c0_4] : memref<32x128xbf16, #tpu.memory_space<vmem>>, vector<32x128xbf16>
    %4 = arith.extf %3 : vector<32x128xbf16> to vector<32x128xf32>
    %5 = arith.addf %2, %4 : vector<32x128xf32>
    %cst_5 = arith.constant 0.000000e+00 : f32
    %6 = vector.broadcast %cst_5 : f32 to vector<32x128xf32>
    %7 = arith.maximumf %5, %6 : vector<32x128xf32>
    %8 = arith.truncf %7 : vector<32x128xf32> to vector<32x128xbf16>
    %c0_6 = arith.constant 0 : index
    %c0_7 = arith.constant 0 : index
    %9 = vector.load %arg5[%c0_6, %c0_7] : memref<32x128xbf16, #tpu.memory_space<vmem>>, vector<32x128xbf16>
    tpu.vector_store %arg5[%c0_6, %c0_7], %8 {strides = array<i32>} : memref<32x128xbf16, #tpu.memory_space<vmem>>, vector<32x128xbf16>,
    return
  }
  func.func @transform_0(%arg0: i32, %arg1: i32) -> (i32, i32) {
    %c0_i32 = arith.constant 0 : i32
    %c0_i32_0 = arith.constant 0 : i32
    return %arg0, %c0_i32 : i32, i32
  }
  func.func @transform_1(%arg0: i32, %arg1: i32) -> (i32, i32) {
    %c0_i32 = arith.constant 0 : i32
    %c0_i32_0 = arith.constant 0 : i32
    return %c0_i32, %arg1 : i32, i32
  }
  func.func @transform_2(%arg0: i32, %arg1: i32) -> (i32, i32) {
    %c0_i32 = arith.constant 0 : i32
    return %arg0, %arg1 : i32, i32
  }
  func.func @transform_3(%arg0: i32, %arg1: i32) -> (i32, i32) {
    %c0_i32 = arith.constant 0 : i32
    return %arg0, %arg1 : i32, i32
  }
}

module attributes {stable_mosaic.version = 11 : i64} {
  func.func @_mm_kernel_1k(%arg0: i32, %arg1: i32, %arg2: memref<8x128xbf16, #tpu.memory_space<vmem>>, %arg3: memref<128x256xbf16, #tpu.memory_space<vmem>>, %arg4: memref<1x256xf32, #tpu.memory_space<vmem>>, %arg5: memref<8x256xbf16, #tpu.memory_space<vmem>>) attributes {dimension_semantics = [#tpu.dimension_semantics<parallel>, #tpu.dimension_semantics<parallel>], iteration_bounds = array<i64: 1, 1>, scalar_prefetch = 0 : i64, scratch_operands = 0 : i64, tpu.core_type = #tpu.core_type<tc>, window_params = [{transform_indices = @transform_0, window_bounds = array<i64: 8, 128>}, {transform_indices = @transform_1, window_bounds = array<i64: 128, 256>}, {transform_indices = @transform_2, window_bounds = array<i64: 1, 256>}, {transform_indices = @transform_3, window_bounds = array<i64: 8, 256>}]} {
    %c0 = arith.constant 0 : index
    %c0_0 = arith.constant 0 : index
    %0 = vector.load %arg2[%c0, %c0_0] : memref<8x128xbf16, #tpu.memory_space<vmem>>, vector<8x128xbf16>
    %c0_1 = arith.constant 0 : index
    %c0_2 = arith.constant 0 : index
    %1 = vector.load %arg3[%c0_1, %c0_2] : memref<128x256xbf16, #tpu.memory_space<vmem>>, vector<128x256xbf16>
    %cst = arith.constant dense<0.000000e+00> : vector<8x256xf32>
    %2 = tpu.matmul %0, %1, %cst {dimension_numbers = #tpu.dot_dimension_numbers<[1], [0], [0], [1], [0, 0, 1, 1], [], []>} : vector<8x128xbf16>, vector<128x256xbf16>, vector<8x256xf32> -> vector<8x256xf32>
    %c0_3 = arith.constant 0 : index
    %c0_4 = arith.constant 0 : index
    %3 = vector.load %arg4[%c0_3, %c0_4] : memref<1x256xf32, #tpu.memory_space<vmem>>, vector<1x256xf32>
    %4 = vector.broadcast %3 : vector<1x256xf32> to vector<8x256xf32>
    %5 = arith.addf %2, %4 : vector<8x256xf32>
    %6 = arith.truncf %5 : vector<8x256xf32> to vector<8x256xbf16>
    %c0_5 = arith.constant 0 : index
    %c0_6 = arith.constant 0 : index
    %7 = vector.load %arg5[%c0_5, %c0_6] : memref<8x256xbf16, #tpu.memory_space<vmem>>, vector<8x256xbf16>
    tpu.vector_store %arg5[%c0_5, %c0_6], %6 {strides = array<i32>} : memref<8x256xbf16, #tpu.memory_space<vmem>>, vector<8x256xbf16>,
    return
  }
  func.func @transform_0(%arg0: i32, %arg1: i32) -> (i32, i32) {
    %c0_i32 = arith.constant 0 : i32
    %c0_i32_0 = arith.constant 0 : i32
    return %arg0, %c0_i32 : i32, i32
  }
  func.func @transform_1(%arg0: i32, %arg1: i32) -> (i32, i32) {
    %c0_i32 = arith.constant 0 : i32
    %c0_i32_0 = arith.constant 0 : i32
    return %c0_i32, %arg1 : i32, i32
  }
  func.func @transform_2(%arg0: i32, %arg1: i32) -> (i32, i32) {
    %c0_i32 = arith.constant 0 : i32
    %c0_i32_0 = arith.constant 0 : i32
    return %c0_i32, %arg1 : i32, i32
  }
  func.func @transform_3(%arg0: i32, %arg1: i32) -> (i32, i32) {
    %c0_i32 = arith.constant 0 : i32
    return %arg0, %arg1 : i32, i32
  }
}

module attributes {stable_mosaic.version = 11 : i64} {
  func.func @_conv3x3_kernel(%arg0: i32, %arg1: memref<86x32xbf16, #tpu.memory_space<vmem>>, %arg2: memref<9x32x32xbf16, #tpu.memory_space<vmem>>, %arg3: memref<72x32xbf16, #tpu.memory_space<vmem>>) attributes {dimension_semantics = [#tpu.dimension_semantics<arbitrary>], iteration_bounds = array<i64: 1>, scalar_prefetch = 0 : i64, scratch_operands = 0 : i64, tpu.core_type = #tpu.core_type<tc>, window_params = [{pipeline_mode = #tpu.pipeline_mode<synchronous>, transform_indices = @transform_0, window_bounds = array<i64: 86, 32>}, {pipeline_mode = #tpu.pipeline_mode<synchronous>, transform_indices = @transform_1, window_bounds = array<i64: 9, 32, 32>}, {pipeline_mode = #tpu.pipeline_mode<synchronous>, transform_indices = @transform_2, window_bounds = array<i64: 72, 32>}]} {
    %c0 = arith.constant 0 : index
    %c0_0 = arith.constant 0 : index
    %0 = vector.load %arg1[%c0, %c0_0] : memref<86x32xbf16, #tpu.memory_space<vmem>>, vector<72x32xbf16>
    %c0_1 = arith.constant 0 : index
    %c0_2 = arith.constant 0 : index
    %c0_3 = arith.constant 0 : index
    %1 = vector.load %arg2[%c0_1, %c0_2, %c0_3] : memref<9x32x32xbf16, #tpu.memory_space<vmem>>, vector<1x32x32xbf16>
    %2 = vector.shape_cast %1 : vector<1x32x32xbf16> to vector<32x32xbf16>
    %cst = arith.constant dense<0.000000e+00> : vector<72x32xf32>
    %3 = tpu.matmul %0, %2, %cst {dimension_numbers = #tpu.dot_dimension_numbers<[1], [0], [0], [1], [0, 0, 1, 1], [], []>} : vector<72x32xbf16>, vector<32x32xbf16>, vector<72x32xf32> -> vector<72x32xf32>
    %c1 = arith.constant 1 : index
    %c0_4 = arith.constant 0 : index
    %4 = vector.load %arg1[%c1, %c0_4] : memref<86x32xbf16, #tpu.memory_space<vmem>>, vector<72x32xbf16>
    %c1_5 = arith.constant 1 : index
    %c0_6 = arith.constant 0 : index
    %c0_7 = arith.constant 0 : index
    %5 = vector.load %arg2[%c1_5, %c0_6, %c0_7] : memref<9x32x32xbf16, #tpu.memory_space<vmem>>, vector<1x32x32xbf16>
    %6 = vector.shape_cast %5 : vector<1x32x32xbf16> to vector<32x32xbf16>
    %cst_8 = arith.constant dense<0.000000e+00> : vector<72x32xf32>
    %7 = tpu.matmul %4, %6, %cst_8 {dimension_numbers = #tpu.dot_dimension_numbers<[1], [0], [0], [1], [0, 0, 1, 1], [], []>} : vector<72x32xbf16>, vector<32x32xbf16>, vector<72x32xf32> -> vector<72x32xf32>
    %8 = arith.addf %3, %7 : vector<72x32xf32>
    %c2 = arith.constant 2 : index
    %c0_9 = arith.constant 0 : index
    %9 = vector.load %arg1[%c2, %c0_9] : memref<86x32xbf16, #tpu.memory_space<vmem>>, vector<72x32xbf16>
    %c2_10 = arith.constant 2 : index
    %c0_11 = arith.constant 0 : index
    %c0_12 = arith.constant 0 : index
    %10 = vector.load %arg2[%c2_10, %c0_11, %c0_12] : memref<9x32x32xbf16, #tpu.memory_space<vmem>>, vector<1x32x32xbf16>
    %11 = vector.shape_cast %10 : vector<1x32x32xbf16> to vector<32x32xbf16>
    %cst_13 = arith.constant dense<0.000000e+00> : vector<72x32xf32>
    %12 = tpu.matmul %9, %11, %cst_13 {dimension_numbers = #tpu.dot_dimension_numbers<[1], [0], [0], [1], [0, 0, 1, 1], [], []>} : vector<72x32xbf16>, vector<32x32xbf16>, vector<72x32xf32> -> vector<72x32xf32>
    %13 = arith.addf %8, %12 : vector<72x32xf32>
    %c6 = arith.constant 6 : index
    %c0_14 = arith.constant 0 : index
    %14 = vector.load %arg1[%c6, %c0_14] : memref<86x32xbf16, #tpu.memory_space<vmem>>, vector<72x32xbf16>
    %c3 = arith.constant 3 : index
    %c0_15 = arith.constant 0 : index
    %c0_16 = arith.constant 0 : index
    %15 = vector.load %arg2[%c3, %c0_15, %c0_16] : memref<9x32x32xbf16, #tpu.memory_space<vmem>>, vector<1x32x32xbf16>
    %16 = vector.shape_cast %15 : vector<1x32x32xbf16> to vector<32x32xbf16>
    %cst_17 = arith.constant dense<0.000000e+00> : vector<72x32xf32>
    %17 = tpu.matmul %14, %16, %cst_17 {dimension_numbers = #tpu.dot_dimension_numbers<[1], [0], [0], [1], [0, 0, 1, 1], [], []>} : vector<72x32xbf16>, vector<32x32xbf16>, vector<72x32xf32> -> vector<72x32xf32>
    %18 = arith.addf %13, %17 : vector<72x32xf32>
    %c7 = arith.constant 7 : index
    %c0_18 = arith.constant 0 : index
    %19 = vector.load %arg1[%c7, %c0_18] : memref<86x32xbf16, #tpu.memory_space<vmem>>, vector<72x32xbf16>
    %c4 = arith.constant 4 : index
    %c0_19 = arith.constant 0 : index
    %c0_20 = arith.constant 0 : index
    %20 = vector.load %arg2[%c4, %c0_19, %c0_20] : memref<9x32x32xbf16, #tpu.memory_space<vmem>>, vector<1x32x32xbf16>
    %21 = vector.shape_cast %20 : vector<1x32x32xbf16> to vector<32x32xbf16>
    %cst_21 = arith.constant dense<0.000000e+00> : vector<72x32xf32>
    %22 = tpu.matmul %19, %21, %cst_21 {dimension_numbers = #tpu.dot_dimension_numbers<[1], [0], [0], [1], [0, 0, 1, 1], [], []>} : vector<72x32xbf16>, vector<32x32xbf16>, vector<72x32xf32> -> vector<72x32xf32>
    %23 = arith.addf %18, %22 : vector<72x32xf32>
    %c8 = arith.constant 8 : index
    %c0_22 = arith.constant 0 : index
    %24 = vector.load %arg1[%c8, %c0_22] : memref<86x32xbf16, #tpu.memory_space<vmem>>, vector<72x32xbf16>
    %c5 = arith.constant 5 : index
    %c0_23 = arith.constant 0 : index
    %c0_24 = arith.constant 0 : index
    %25 = vector.load %arg2[%c5, %c0_23, %c0_24] : memref<9x32x32xbf16, #tpu.memory_space<vmem>>, vector<1x32x32xbf16>
    %26 = vector.shape_cast %25 : vector<1x32x32xbf16> to vector<32x32xbf16>
    %cst_25 = arith.constant dense<0.000000e+00> : vector<72x32xf32>
    %27 = tpu.matmul %24, %26, %cst_25 {dimension_numbers = #tpu.dot_dimension_numbers<[1], [0], [0], [1], [0, 0, 1, 1], [], []>} : vector<72x32xbf16>, vector<32x32xbf16>, vector<72x32xf32> -> vector<72x32xf32>
    %28 = arith.addf %23, %27 : vector<72x32xf32>
    %c12 = arith.constant 12 : index
    %c0_26 = arith.constant 0 : index
    %29 = vector.load %arg1[%c12, %c0_26] : memref<86x32xbf16, #tpu.memory_space<vmem>>, vector<72x32xbf16>
    %c6_27 = arith.constant 6 : index
    %c0_28 = arith.constant 0 : index
    %c0_29 = arith.constant 0 : index
    %30 = vector.load %arg2[%c6_27, %c0_28, %c0_29] : memref<9x32x32xbf16, #tpu.memory_space<vmem>>, vector<1x32x32xbf16>
    %31 = vector.shape_cast %30 : vector<1x32x32xbf16> to vector<32x32xbf16>
    %cst_30 = arith.constant dense<0.000000e+00> : vector<72x32xf32>
    %32 = tpu.matmul %29, %31, %cst_30 {dimension_numbers = #tpu.dot_dimension_numbers<[1], [0], [0], [1], [0, 0, 1, 1], [], []>} : vector<72x32xbf16>, vector<32x32xbf16>, vector<72x32xf32> -> vector<72x32xf32>
    %33 = arith.addf %28, %32 : vector<72x32xf32>
    %c13 = arith.constant 13 : index
    %c0_31 = arith.constant 0 : index
    %34 = vector.load %arg1[%c13, %c0_31] : memref<86x32xbf16, #tpu.memory_space<vmem>>, vector<72x32xbf16>
    %c7_32 = arith.constant 7 : index
    %c0_33 = arith.constant 0 : index
    %c0_34 = arith.constant 0 : index
    %35 = vector.load %arg2[%c7_32, %c0_33, %c0_34] : memref<9x32x32xbf16, #tpu.memory_space<vmem>>, vector<1x32x32xbf16>
    %36 = vector.shape_cast %35 : vector<1x32x32xbf16> to vector<32x32xbf16>
    %cst_35 = arith.constant dense<0.000000e+00> : vector<72x32xf32>
    %37 = tpu.matmul %34, %36, %cst_35 {dimension_numbers = #tpu.dot_dimension_numbers<[1], [0], [0], [1], [0, 0, 1, 1], [], []>} : vector<72x32xbf16>, vector<32x32xbf16>, vector<72x32xf32> -> vector<72x32xf32>
    %38 = arith.addf %33, %37 : vector<72x32xf32>
    %c14 = arith.constant 14 : index
    %c0_36 = arith.constant 0 : index
    %39 = vector.load %arg1[%c14, %c0_36] : memref<86x32xbf16, #tpu.memory_space<vmem>>, vector<72x32xbf16>
    %c8_37 = arith.constant 8 : index
    %c0_38 = arith.constant 0 : index
    %c0_39 = arith.constant 0 : index
    %40 = vector.load %arg2[%c8_37, %c0_38, %c0_39] : memref<9x32x32xbf16, #tpu.memory_space<vmem>>, vector<1x32x32xbf16>
    %41 = vector.shape_cast %40 : vector<1x32x32xbf16> to vector<32x32xbf16>
    %cst_40 = arith.constant dense<0.000000e+00> : vector<72x32xf32>
    %42 = tpu.matmul %39, %41, %cst_40 {dimension_numbers = #tpu.dot_dimension_numbers<[1], [0], [0], [1], [0, 0, 1, 1], [], []>} : vector<72x32xbf16>, vector<32x32xbf16>, vector<72x32xf32> -> vector<72x32xf32>
    %43 = arith.addf %38, %42 : vector<72x32xf32>
    %cst_41 = arith.constant 0.000000e+00 : f32
    %44 = vector.broadcast %cst_41 : f32 to vector<72x32xf32>
    %45 = arith.maximumf %43, %44 : vector<72x32xf32>
    %46 = arith.truncf %45 : vector<72x32xf32> to vector<72x32xbf16>
    %c0_42 = arith.constant 0 : index
    %c0_43 = arith.constant 0 : index
    %47 = vector.load %arg3[%c0_42, %c0_43] : memref<72x32xbf16, #tpu.memory_space<vmem>>, vector<72x32xbf16>
    tpu.vector_store %arg3[%c0_42, %c0_43], %46 {strides = array<i32>} : memref<72x32xbf16, #tpu.memory_space<vmem>>, vector<72x32xbf16>,
    return
  }
  func.func @transform_0(%arg0: i32) -> (i32, i32) {
    %c0_i32 = arith.constant 0 : i32
    %c0_i32_0 = arith.constant 0 : i32
    %c0_i32_1 = arith.constant 0 : i32
    return %c0_i32, %c0_i32_0 : i32, i32
  }
  func.func @transform_1(%arg0: i32) -> (i32, i32, i32) {
    %c0_i32 = arith.constant 0 : i32
    %c0_i32_0 = arith.constant 0 : i32
    %c0_i32_1 = arith.constant 0 : i32
    %c0_i32_2 = arith.constant 0 : i32
    return %c0_i32, %c0_i32_0, %c0_i32_1 : i32, i32, i32
  }
  func.func @transform_2(%arg0: i32) -> (i32, i32) {
    %c0_i32 = arith.constant 0 : i32
    %c0_i32_0 = arith.constant 0 : i32
    %c0_i32_1 = arith.constant 0 : i32
    return %c0_i32, %c0_i32_0 : i32, i32
  }
}

module attributes {stable_mosaic.version = 11 : i64} {
  func.func @_mm_kernel_1k(%arg0: i32, %arg1: i32, %arg2: memref<8x256xbf16, #tpu.memory_space<vmem>>, %arg3: memref<256x64xbf16, #tpu.memory_space<vmem>>, %arg4: memref<8x64xbf16, #tpu.memory_space<vmem>>) attributes {dimension_semantics = [#tpu.dimension_semantics<parallel>, #tpu.dimension_semantics<parallel>], iteration_bounds = array<i64: 1, 1>, scalar_prefetch = 0 : i64, scratch_operands = 0 : i64, tpu.core_type = #tpu.core_type<tc>, window_params = [{transform_indices = @transform_0, window_bounds = array<i64: 8, 256>}, {transform_indices = @transform_1, window_bounds = array<i64: 256, 64>}, {transform_indices = @transform_2, window_bounds = array<i64: 8, 64>}]} {
    %c0 = arith.constant 0 : index
    %c0_0 = arith.constant 0 : index
    %0 = vector.load %arg2[%c0, %c0_0] : memref<8x256xbf16, #tpu.memory_space<vmem>>, vector<8x256xbf16>
    %c0_1 = arith.constant 0 : index
    %c0_2 = arith.constant 0 : index
    %1 = vector.load %arg3[%c0_1, %c0_2] : memref<256x64xbf16, #tpu.memory_space<vmem>>, vector<256x64xbf16>
    %cst = arith.constant dense<0.000000e+00> : vector<8x64xf32>
    %2 = tpu.matmul %0, %1, %cst {dimension_numbers = #tpu.dot_dimension_numbers<[1], [0], [0], [1], [0, 0, 1, 1], [], []>} : vector<8x256xbf16>, vector<256x64xbf16>, vector<8x64xf32> -> vector<8x64xf32>
    %cst_3 = arith.constant 0.000000e+00 : f32
    %3 = vector.broadcast %cst_3 : f32 to vector<8x64xf32>
    %4 = arith.maximumf %2, %3 : vector<8x64xf32>
    %5 = arith.truncf %4 : vector<8x64xf32> to vector<8x64xbf16>
    %c0_4 = arith.constant 0 : index
    %c0_5 = arith.constant 0 : index
    %6 = vector.load %arg4[%c0_4, %c0_5] : memref<8x64xbf16, #tpu.memory_space<vmem>>, vector<8x64xbf16>
    tpu.vector_store %arg4[%c0_4, %c0_5], %5 {strides = array<i32>} : memref<8x64xbf16, #tpu.memory_space<vmem>>, vector<8x64xbf16>,
    return
  }
  func.func @transform_0(%arg0: i32, %arg1: i32) -> (i32, i32) {
    %c0_i32 = arith.constant 0 : i32
    %c0_i32_0 = arith.constant 0 : i32
    return %arg0, %c0_i32 : i32, i32
  }
  func.func @transform_1(%arg0: i32, %arg1: i32) -> (i32, i32) {
    %c0_i32 = arith.constant 0 : i32
    %c0_i32_0 = arith.constant 0 : i32
    return %c0_i32, %arg1 : i32, i32
  }
  func.func @transform_2(%arg0: i32, %arg1: i32) -> (i32, i32) {
    %c0_i32 = arith.constant 0 : i32
    return %arg0, %arg1 : i32, i32
  }
}

module attributes {stable_mosaic.version = 11 : i64} {
  func.func @_conv3x3_kernel(%arg0: i32, %arg1: memref<42x64xbf16, #tpu.memory_space<vmem>>, %arg2: memref<9x64x64xbf16, #tpu.memory_space<vmem>>, %arg3: memref<32x64xbf16, #tpu.memory_space<vmem>>) attributes {dimension_semantics = [#tpu.dimension_semantics<arbitrary>], iteration_bounds = array<i64: 1>, scalar_prefetch = 0 : i64, scratch_operands = 0 : i64, tpu.core_type = #tpu.core_type<tc>, window_params = [{pipeline_mode = #tpu.pipeline_mode<synchronous>, transform_indices = @transform_0, window_bounds = array<i64: 42, 64>}, {pipeline_mode = #tpu.pipeline_mode<synchronous>, transform_indices = @transform_1, window_bounds = array<i64: 9, 64, 64>}, {pipeline_mode = #tpu.pipeline_mode<synchronous>, transform_indices = @transform_2, window_bounds = array<i64: 32, 64>}]} {
    %c0 = arith.constant 0 : index
    %c0_0 = arith.constant 0 : index
    %0 = vector.load %arg1[%c0, %c0_0] : memref<42x64xbf16, #tpu.memory_space<vmem>>, vector<32x64xbf16>
    %c0_1 = arith.constant 0 : index
    %c0_2 = arith.constant 0 : index
    %c0_3 = arith.constant 0 : index
    %1 = vector.load %arg2[%c0_1, %c0_2, %c0_3] : memref<9x64x64xbf16, #tpu.memory_space<vmem>>, vector<1x64x64xbf16>
    %2 = vector.shape_cast %1 : vector<1x64x64xbf16> to vector<64x64xbf16>
    %cst = arith.constant dense<0.000000e+00> : vector<32x64xf32>
    %3 = tpu.matmul %0, %2, %cst {dimension_numbers = #tpu.dot_dimension_numbers<[1], [0], [0], [1], [0, 0, 1, 1], [], []>} : vector<32x64xbf16>, vector<64x64xbf16>, vector<32x64xf32> -> vector<32x64xf32>
    %c1 = arith.constant 1 : index
    %c0_4 = arith.constant 0 : index
    %4 = vector.load %arg1[%c1, %c0_4] : memref<42x64xbf16, #tpu.memory_space<vmem>>, vector<32x64xbf16>
    %c1_5 = arith.constant 1 : index
    %c0_6 = arith.constant 0 : index
    %c0_7 = arith.constant 0 : index
    %5 = vector.load %arg2[%c1_5, %c0_6, %c0_7] : memref<9x64x64xbf16, #tpu.memory_space<vmem>>, vector<1x64x64xbf16>
    %6 = vector.shape_cast %5 : vector<1x64x64xbf16> to vector<64x64xbf16>
    %cst_8 = arith.constant dense<0.000000e+00> : vector<32x64xf32>
    %7 = tpu.matmul %4, %6, %cst_8 {dimension_numbers = #tpu.dot_dimension_numbers<[1], [0], [0], [1], [0, 0, 1, 1], [], []>} : vector<32x64xbf16>, vector<64x64xbf16>, vector<32x64xf32> -> vector<32x64xf32>
    %8 = arith.addf %3, %7 : vector<32x64xf32>
    %c2 = arith.constant 2 : index
    %c0_9 = arith.constant 0 : index
    %9 = vector.load %arg1[%c2, %c0_9] : memref<42x64xbf16, #tpu.memory_space<vmem>>, vector<32x64xbf16>
    %c2_10 = arith.constant 2 : index
    %c0_11 = arith.constant 0 : index
    %c0_12 = arith.constant 0 : index
    %10 = vector.load %arg2[%c2_10, %c0_11, %c0_12] : memref<9x64x64xbf16, #tpu.memory_space<vmem>>, vector<1x64x64xbf16>
    %11 = vector.shape_cast %10 : vector<1x64x64xbf16> to vector<64x64xbf16>
    %cst_13 = arith.constant dense<0.000000e+00> : vector<32x64xf32>
    %12 = tpu.matmul %9, %11, %cst_13 {dimension_numbers = #tpu.dot_dimension_numbers<[1], [0], [0], [1], [0, 0, 1, 1], [], []>} : vector<32x64xbf16>, vector<64x64xbf16>, vector<32x64xf32> -> vector<32x64xf32>
    %13 = arith.addf %8, %12 : vector<32x64xf32>
    %c4 = arith.constant 4 : index
    %c0_14 = arith.constant 0 : index
    %14 = vector.load %arg1[%c4, %c0_14] : memref<42x64xbf16, #tpu.memory_space<vmem>>, vector<32x64xbf16>
    %c3 = arith.constant 3 : index
    %c0_15 = arith.constant 0 : index
    %c0_16 = arith.constant 0 : index
    %15 = vector.load %arg2[%c3, %c0_15, %c0_16] : memref<9x64x64xbf16, #tpu.memory_space<vmem>>, vector<1x64x64xbf16>
    %16 = vector.shape_cast %15 : vector<1x64x64xbf16> to vector<64x64xbf16>
    %cst_17 = arith.constant dense<0.000000e+00> : vector<32x64xf32>
    %17 = tpu.matmul %14, %16, %cst_17 {dimension_numbers = #tpu.dot_dimension_numbers<[1], [0], [0], [1], [0, 0, 1, 1], [], []>} : vector<32x64xbf16>, vector<64x64xbf16>, vector<32x64xf32> -> vector<32x64xf32>
    %18 = arith.addf %13, %17 : vector<32x64xf32>
    %c5 = arith.constant 5 : index
    %c0_18 = arith.constant 0 : index
    %19 = vector.load %arg1[%c5, %c0_18] : memref<42x64xbf16, #tpu.memory_space<vmem>>, vector<32x64xbf16>
    %c4_19 = arith.constant 4 : index
    %c0_20 = arith.constant 0 : index
    %c0_21 = arith.constant 0 : index
    %20 = vector.load %arg2[%c4_19, %c0_20, %c0_21] : memref<9x64x64xbf16, #tpu.memory_space<vmem>>, vector<1x64x64xbf16>
    %21 = vector.shape_cast %20 : vector<1x64x64xbf16> to vector<64x64xbf16>
    %cst_22 = arith.constant dense<0.000000e+00> : vector<32x64xf32>
    %22 = tpu.matmul %19, %21, %cst_22 {dimension_numbers = #tpu.dot_dimension_numbers<[1], [0], [0], [1], [0, 0, 1, 1], [], []>} : vector<32x64xbf16>, vector<64x64xbf16>, vector<32x64xf32> -> vector<32x64xf32>
    %23 = arith.addf %18, %22 : vector<32x64xf32>
    %c6 = arith.constant 6 : index
    %c0_23 = arith.constant 0 : index
    %24 = vector.load %arg1[%c6, %c0_23] : memref<42x64xbf16, #tpu.memory_space<vmem>>, vector<32x64xbf16>
    %c5_24 = arith.constant 5 : index
    %c0_25 = arith.constant 0 : index
    %c0_26 = arith.constant 0 : index
    %25 = vector.load %arg2[%c5_24, %c0_25, %c0_26] : memref<9x64x64xbf16, #tpu.memory_space<vmem>>, vector<1x64x64xbf16>
    %26 = vector.shape_cast %25 : vector<1x64x64xbf16> to vector<64x64xbf16>
    %cst_27 = arith.constant dense<0.000000e+00> : vector<32x64xf32>
    %27 = tpu.matmul %24, %26, %cst_27 {dimension_numbers = #tpu.dot_dimension_numbers<[1], [0], [0], [1], [0, 0, 1, 1], [], []>} : vector<32x64xbf16>, vector<64x64xbf16>, vector<32x64xf32> -> vector<32x64xf32>
    %28 = arith.addf %23, %27 : vector<32x64xf32>
    %c8 = arith.constant 8 : index
    %c0_28 = arith.constant 0 : index
    %29 = vector.load %arg1[%c8, %c0_28] : memref<42x64xbf16, #tpu.memory_space<vmem>>, vector<32x64xbf16>
    %c6_29 = arith.constant 6 : index
    %c0_30 = arith.constant 0 : index
    %c0_31 = arith.constant 0 : index
    %30 = vector.load %arg2[%c6_29, %c0_30, %c0_31] : memref<9x64x64xbf16, #tpu.memory_space<vmem>>, vector<1x64x64xbf16>
    %31 = vector.shape_cast %30 : vector<1x64x64xbf16> to vector<64x64xbf16>
    %cst_32 = arith.constant dense<0.000000e+00> : vector<32x64xf32>
    %32 = tpu.matmul %29, %31, %cst_32 {dimension_numbers = #tpu.dot_dimension_numbers<[1], [0], [0], [1], [0, 0, 1, 1], [], []>} : vector<32x64xbf16>, vector<64x64xbf16>, vector<32x64xf32> -> vector<32x64xf32>
    %33 = arith.addf %28, %32 : vector<32x64xf32>
    %c9 = arith.constant 9 : index
    %c0_33 = arith.constant 0 : index
    %34 = vector.load %arg1[%c9, %c0_33] : memref<42x64xbf16, #tpu.memory_space<vmem>>, vector<32x64xbf16>
    %c7 = arith.constant 7 : index
    %c0_34 = arith.constant 0 : index
    %c0_35 = arith.constant 0 : index
    %35 = vector.load %arg2[%c7, %c0_34, %c0_35] : memref<9x64x64xbf16, #tpu.memory_space<vmem>>, vector<1x64x64xbf16>
    %36 = vector.shape_cast %35 : vector<1x64x64xbf16> to vector<64x64xbf16>
    %cst_36 = arith.constant dense<0.000000e+00> : vector<32x64xf32>
    %37 = tpu.matmul %34, %36, %cst_36 {dimension_numbers = #tpu.dot_dimension_numbers<[1], [0], [0], [1], [0, 0, 1, 1], [], []>} : vector<32x64xbf16>, vector<64x64xbf16>, vector<32x64xf32> -> vector<32x64xf32>
    %38 = arith.addf %33, %37 : vector<32x64xf32>
    %c10 = arith.constant 10 : index
    %c0_37 = arith.constant 0 : index
    %39 = vector.load %arg1[%c10, %c0_37] : memref<42x64xbf16, #tpu.memory_space<vmem>>, vector<32x64xbf16>
    %c8_38 = arith.constant 8 : index
    %c0_39 = arith.constant 0 : index
    %c0_40 = arith.constant 0 : index
    %40 = vector.load %arg2[%c8_38, %c0_39, %c0_40] : memref<9x64x64xbf16, #tpu.memory_space<vmem>>, vector<1x64x64xbf16>
    %41 = vector.shape_cast %40 : vector<1x64x64xbf16> to vector<64x64xbf16>
    %cst_41 = arith.constant dense<0.000000e+00> : vector<32x64xf32>
    %42 = tpu.matmul %39, %41, %cst_41 {dimension_numbers = #tpu.dot_dimension_numbers<[1], [0], [0], [1], [0, 0, 1, 1], [], []>} : vector<32x64xbf16>, vector<64x64xbf16>, vector<32x64xf32> -> vector<32x64xf32>
    %43 = arith.addf %38, %42 : vector<32x64xf32>
    %cst_42 = arith.constant 0.000000e+00 : f32
    %44 = vector.broadcast %cst_42 : f32 to vector<32x64xf32>
    %45 = arith.maximumf %43, %44 : vector<32x64xf32>
    %46 = arith.truncf %45 : vector<32x64xf32> to vector<32x64xbf16>
    %c0_43 = arith.constant 0 : index
    %c0_44 = arith.constant 0 : index
    %47 = vector.load %arg3[%c0_43, %c0_44] : memref<32x64xbf16, #tpu.memory_space<vmem>>, vector<32x64xbf16>
    tpu.vector_store %arg3[%c0_43, %c0_44], %46 {strides = array<i32>} : memref<32x64xbf16, #tpu.memory_space<vmem>>, vector<32x64xbf16>,
    return
  }
  func.func @transform_0(%arg0: i32) -> (i32, i32) {
    %c0_i32 = arith.constant 0 : i32
    %c0_i32_0 = arith.constant 0 : i32
    %c0_i32_1 = arith.constant 0 : i32
    return %c0_i32, %c0_i32_0 : i32, i32
  }
  func.func @transform_1(%arg0: i32) -> (i32, i32, i32) {
    %c0_i32 = arith.constant 0 : i32
    %c0_i32_0 = arith.constant 0 : i32
    %c0_i32_1 = arith.constant 0 : i32
    %c0_i32_2 = arith.constant 0 : i32
    return %c0_i32, %c0_i32_0, %c0_i32_1 : i32, i32, i32
  }
  func.func @transform_2(%arg0: i32) -> (i32, i32) {
    %c0_i32 = arith.constant 0 : i32
    %c0_i32_0 = arith.constant 0 : i32
    %c0_i32_1 = arith.constant 0 : i32
    return %c0_i32, %c0_i32_0 : i32, i32
  }
}

module attributes {stable_mosaic.version = 11 : i64} {
  func.func @_mm_kernel_1k(%arg0: i32, %arg1: i32, %arg2: memref<2x256xbf16, #tpu.memory_space<vmem>>, %arg3: memref<256x256xbf16, #tpu.memory_space<vmem>>, %arg4: memref<1x256xf32, #tpu.memory_space<vmem>>, %arg5: memref<2x256xbf16, #tpu.memory_space<vmem>>) attributes {dimension_semantics = [#tpu.dimension_semantics<parallel>, #tpu.dimension_semantics<parallel>], iteration_bounds = array<i64: 1, 2>, scalar_prefetch = 0 : i64, scratch_operands = 0 : i64, tpu.core_type = #tpu.core_type<tc>, window_params = [{transform_indices = @transform_0, window_bounds = array<i64: 2, 256>}, {transform_indices = @transform_1, window_bounds = array<i64: 256, 256>}, {transform_indices = @transform_2, window_bounds = array<i64: 1, 256>}, {transform_indices = @transform_3, window_bounds = array<i64: 2, 256>}]} {
    %c0 = arith.constant 0 : index
    %c0_0 = arith.constant 0 : index
    %0 = vector.load %arg2[%c0, %c0_0] : memref<2x256xbf16, #tpu.memory_space<vmem>>, vector<2x256xbf16>
    %c0_1 = arith.constant 0 : index
    %c0_2 = arith.constant 0 : index
    %1 = vector.load %arg3[%c0_1, %c0_2] : memref<256x256xbf16, #tpu.memory_space<vmem>>, vector<256x256xbf16>
    %cst = arith.constant dense<0.000000e+00> : vector<2x256xf32>
    %2 = tpu.matmul %0, %1, %cst {dimension_numbers = #tpu.dot_dimension_numbers<[1], [0], [0], [1], [0, 0, 1, 1], [], []>} : vector<2x256xbf16>, vector<256x256xbf16>, vector<2x256xf32> -> vector<2x256xf32>
    %c0_3 = arith.constant 0 : index
    %c0_4 = arith.constant 0 : index
    %3 = vector.load %arg4[%c0_3, %c0_4] : memref<1x256xf32, #tpu.memory_space<vmem>>, vector<1x256xf32>
    %4 = vector.broadcast %3 : vector<1x256xf32> to vector<2x256xf32>
    %5 = arith.addf %2, %4 : vector<2x256xf32>
    %6 = arith.truncf %5 : vector<2x256xf32> to vector<2x256xbf16>
    %c0_5 = arith.constant 0 : index
    %c0_6 = arith.constant 0 : index
    %7 = vector.load %arg5[%c0_5, %c0_6] : memref<2x256xbf16, #tpu.memory_space<vmem>>, vector<2x256xbf16>
    tpu.vector_store %arg5[%c0_5, %c0_6], %6 {strides = array<i32>} : memref<2x256xbf16, #tpu.memory_space<vmem>>, vector<2x256xbf16>,
    return
  }
  func.func @transform_0(%arg0: i32, %arg1: i32) -> (i32, i32) {
    %c0_i32 = arith.constant 0 : i32
    %c0_i32_0 = arith.constant 0 : i32
    return %arg0, %c0_i32 : i32, i32
  }
  func.func @transform_1(%arg0: i32, %arg1: i32) -> (i32, i32) {
    %c0_i32 = arith.constant 0 : i32
    %c0_i32_0 = arith.constant 0 : i32
    return %c0_i32, %arg1 : i32, i32
  }
  func.func @transform_2(%arg0: i32, %arg1: i32) -> (i32, i32) {
    %c0_i32 = arith.constant 0 : i32
    %c0_i32_0 = arith.constant 0 : i32
    return %c0_i32, %arg1 : i32, i32
  }
  func.func @transform_3(%arg0: i32, %arg1: i32) -> (i32, i32) {
    %c0_i32 = arith.constant 0 : i32
    return %arg0, %arg1 : i32, i32
  }
}

module attributes {stable_mosaic.version = 11 : i64} {
  func.func @_mm_kernel_1k(%arg0: i32, %arg1: i32, %arg2: memref<8x64xbf16, #tpu.memory_space<vmem>>, %arg3: memref<64x256xbf16, #tpu.memory_space<vmem>>, %arg4: memref<8x256xbf16, #tpu.memory_space<vmem>>, %arg5: memref<8x256xbf16, #tpu.memory_space<vmem>>) attributes {dimension_semantics = [#tpu.dimension_semantics<parallel>, #tpu.dimension_semantics<parallel>], iteration_bounds = array<i64: 1, 1>, scalar_prefetch = 0 : i64, scratch_operands = 0 : i64, tpu.core_type = #tpu.core_type<tc>, window_params = [{transform_indices = @transform_0, window_bounds = array<i64: 8, 64>}, {transform_indices = @transform_1, window_bounds = array<i64: 64, 256>}, {transform_indices = @transform_2, window_bounds = array<i64: 8, 256>}, {transform_indices = @transform_3, window_bounds = array<i64: 8, 256>}]} {
    %c0 = arith.constant 0 : index
    %c0_0 = arith.constant 0 : index
    %0 = vector.load %arg2[%c0, %c0_0] : memref<8x64xbf16, #tpu.memory_space<vmem>>, vector<8x64xbf16>
    %c0_1 = arith.constant 0 : index
    %c0_2 = arith.constant 0 : index
    %1 = vector.load %arg3[%c0_1, %c0_2] : memref<64x256xbf16, #tpu.memory_space<vmem>>, vector<64x256xbf16>
    %cst = arith.constant dense<0.000000e+00> : vector<8x256xf32>
    %2 = tpu.matmul %0, %1, %cst {dimension_numbers = #tpu.dot_dimension_numbers<[1], [0], [0], [1], [0, 0, 1, 1], [], []>} : vector<8x64xbf16>, vector<64x256xbf16>, vector<8x256xf32> -> vector<8x256xf32>
    %c0_3 = arith.constant 0 : index
    %c0_4 = arith.constant 0 : index
    %3 = vector.load %arg4[%c0_3, %c0_4] : memref<8x256xbf16, #tpu.memory_space<vmem>>, vector<8x256xbf16>
    %4 = arith.extf %3 : vector<8x256xbf16> to vector<8x256xf32>
    %5 = arith.addf %2, %4 : vector<8x256xf32>
    %cst_5 = arith.constant 0.000000e+00 : f32
    %6 = vector.broadcast %cst_5 : f32 to vector<8x256xf32>
    %7 = arith.maximumf %5, %6 : vector<8x256xf32>
    %8 = arith.truncf %7 : vector<8x256xf32> to vector<8x256xbf16>
    %c0_6 = arith.constant 0 : index
    %c0_7 = arith.constant 0 : index
    %9 = vector.load %arg5[%c0_6, %c0_7] : memref<8x256xbf16, #tpu.memory_space<vmem>>, vector<8x256xbf16>
    tpu.vector_store %arg5[%c0_6, %c0_7], %8 {strides = array<i32>} : memref<8x256xbf16, #tpu.memory_space<vmem>>, vector<8x256xbf16>,
    return
  }
  func.func @transform_0(%arg0: i32, %arg1: i32) -> (i32, i32) {
    %c0_i32 = arith.constant 0 : i32
    %c0_i32_0 = arith.constant 0 : i32
    return %arg0, %c0_i32 : i32, i32
  }
  func.func @transform_1(%arg0: i32, %arg1: i32) -> (i32, i32) {
    %c0_i32 = arith.constant 0 : i32
    %c0_i32_0 = arith.constant 0 : i32
    return %c0_i32, %arg1 : i32, i32
  }
  func.func @transform_2(%arg0: i32, %arg1: i32) -> (i32, i32) {
    %c0_i32 = arith.constant 0 : i32
    return %arg0, %arg1 : i32, i32
  }
  func.func @transform_3(%arg0: i32, %arg1: i32) -> (i32, i32) {
    %c0_i32 = arith.constant 0 : i32
    return %arg0, %arg1 : i32, i32
  }
}

module attributes {stable_mosaic.version = 11 : i64} {
  func.func @_mm_kernel_1k(%arg0: i32, %arg1: i32, %arg2: memref<2x512xbf16, #tpu.memory_space<vmem>>, %arg3: memref<512x128xbf16, #tpu.memory_space<vmem>>, %arg4: memref<2x128xbf16, #tpu.memory_space<vmem>>) attributes {dimension_semantics = [#tpu.dimension_semantics<parallel>, #tpu.dimension_semantics<parallel>], iteration_bounds = array<i64: 1, 1>, scalar_prefetch = 0 : i64, scratch_operands = 0 : i64, tpu.core_type = #tpu.core_type<tc>, window_params = [{transform_indices = @transform_0, window_bounds = array<i64: 2, 512>}, {transform_indices = @transform_1, window_bounds = array<i64: 512, 128>}, {transform_indices = @transform_2, window_bounds = array<i64: 2, 128>}]} {
    %c0 = arith.constant 0 : index
    %c0_0 = arith.constant 0 : index
    %0 = vector.load %arg2[%c0, %c0_0] : memref<2x512xbf16, #tpu.memory_space<vmem>>, vector<2x512xbf16>
    %c0_1 = arith.constant 0 : index
    %c0_2 = arith.constant 0 : index
    %1 = vector.load %arg3[%c0_1, %c0_2] : memref<512x128xbf16, #tpu.memory_space<vmem>>, vector<512x128xbf16>
    %cst = arith.constant dense<0.000000e+00> : vector<2x128xf32>
    %2 = tpu.matmul %0, %1, %cst {dimension_numbers = #tpu.dot_dimension_numbers<[1], [0], [0], [1], [0, 0, 1, 1], [], []>} : vector<2x512xbf16>, vector<512x128xbf16>, vector<2x128xf32> -> vector<2x128xf32>
    %cst_3 = arith.constant 0.000000e+00 : f32
    %3 = vector.broadcast %cst_3 : f32 to vector<2x128xf32>
    %4 = arith.maximumf %2, %3 : vector<2x128xf32>
    %5 = arith.truncf %4 : vector<2x128xf32> to vector<2x128xbf16>
    %c0_4 = arith.constant 0 : index
    %c0_5 = arith.constant 0 : index
    %6 = vector.load %arg4[%c0_4, %c0_5] : memref<2x128xbf16, #tpu.memory_space<vmem>>, vector<2x128xbf16>
    tpu.vector_store %arg4[%c0_4, %c0_5], %5 {strides = array<i32>} : memref<2x128xbf16, #tpu.memory_space<vmem>>, vector<2x128xbf16>,
    return
  }
  func.func @transform_0(%arg0: i32, %arg1: i32) -> (i32, i32) {
    %c0_i32 = arith.constant 0 : i32
    %c0_i32_0 = arith.constant 0 : i32
    return %arg0, %c0_i32 : i32, i32
  }
  func.func @transform_1(%arg0: i32, %arg1: i32) -> (i32, i32) {
    %c0_i32 = arith.constant 0 : i32
    %c0_i32_0 = arith.constant 0 : i32
    return %c0_i32, %arg1 : i32, i32
  }
  func.func @transform_2(%arg0: i32, %arg1: i32) -> (i32, i32) {
    %c0_i32 = arith.constant 0 : i32
    return %arg0, %arg1 : i32, i32
  }
}

module attributes {stable_mosaic.version = 11 : i64} {
  func.func @_mm_kernel_1k(%arg0: i32, %arg1: i32, %arg2: memref<2x128xbf16, #tpu.memory_space<vmem>>, %arg3: memref<128x256xbf16, #tpu.memory_space<vmem>>, %arg4: memref<2x256xbf16, #tpu.memory_space<vmem>>, %arg5: memref<2x256xbf16, #tpu.memory_space<vmem>>) attributes {dimension_semantics = [#tpu.dimension_semantics<parallel>, #tpu.dimension_semantics<parallel>], iteration_bounds = array<i64: 1, 2>, scalar_prefetch = 0 : i64, scratch_operands = 0 : i64, tpu.core_type = #tpu.core_type<tc>, window_params = [{transform_indices = @transform_0, window_bounds = array<i64: 2, 128>}, {transform_indices = @transform_1, window_bounds = array<i64: 128, 256>}, {transform_indices = @transform_2, window_bounds = array<i64: 2, 256>}, {transform_indices = @transform_3, window_bounds = array<i64: 2, 256>}]} {
    %c0 = arith.constant 0 : index
    %c0_0 = arith.constant 0 : index
    %0 = vector.load %arg2[%c0, %c0_0] : memref<2x128xbf16, #tpu.memory_space<vmem>>, vector<2x128xbf16>
    %c0_1 = arith.constant 0 : index
    %c0_2 = arith.constant 0 : index
    %1 = vector.load %arg3[%c0_1, %c0_2] : memref<128x256xbf16, #tpu.memory_space<vmem>>, vector<128x256xbf16>
    %cst = arith.constant dense<0.000000e+00> : vector<2x256xf32>
    %2 = tpu.matmul %0, %1, %cst {dimension_numbers = #tpu.dot_dimension_numbers<[1], [0], [0], [1], [0, 0, 1, 1], [], []>} : vector<2x128xbf16>, vector<128x256xbf16>, vector<2x256xf32> -> vector<2x256xf32>
    %c0_3 = arith.constant 0 : index
    %c0_4 = arith.constant 0 : index
    %3 = vector.load %arg4[%c0_3, %c0_4] : memref<2x256xbf16, #tpu.memory_space<vmem>>, vector<2x256xbf16>
    %4 = arith.extf %3 : vector<2x256xbf16> to vector<2x256xf32>
    %5 = arith.addf %2, %4 : vector<2x256xf32>
    %cst_5 = arith.constant 0.000000e+00 : f32
    %6 = vector.broadcast %cst_5 : f32 to vector<2x256xf32>
    %7 = arith.maximumf %5, %6 : vector<2x256xf32>
    %8 = arith.truncf %7 : vector<2x256xf32> to vector<2x256xbf16>
    %c0_6 = arith.constant 0 : index
    %c0_7 = arith.constant 0 : index
    %9 = vector.load %arg5[%c0_6, %c0_7] : memref<2x256xbf16, #tpu.memory_space<vmem>>, vector<2x256xbf16>
    tpu.vector_store %arg5[%c0_6, %c0_7], %8 {strides = array<i32>} : memref<2x256xbf16, #tpu.memory_space<vmem>>, vector<2x256xbf16>,
    return
  }
  func.func @transform_0(%arg0: i32, %arg1: i32) -> (i32, i32) {
    %c0_i32 = arith.constant 0 : i32
    %c0_i32_0 = arith.constant 0 : i32
    return %arg0, %c0_i32 : i32, i32
  }
  func.func @transform_1(%arg0: i32, %arg1: i32) -> (i32, i32) {
    %c0_i32 = arith.constant 0 : i32
    %c0_i32_0 = arith.constant 0 : i32
    return %c0_i32, %arg1 : i32, i32
  }
  func.func @transform_2(%arg0: i32, %arg1: i32) -> (i32, i32) {
    %c0_i32 = arith.constant 0 : i32
    return %arg0, %arg1 : i32, i32
  }
  func.func @transform_3(%arg0: i32, %arg1: i32) -> (i32, i32) {
    %c0_i32 = arith.constant 0 : i32
    return %arg0, %arg1 : i32, i32
  }
}

module attributes {stable_mosaic.version = 11 : i64} {
  func.func @_avgpool_kernel(%arg0: i32, %arg1: memref<2x1x512xbf16, #tpu.memory_space<vmem>>, %arg2: memref<2x512xbf16, #tpu.memory_space<vmem>>) attributes {dimension_semantics = [#tpu.dimension_semantics<arbitrary>], iteration_bounds = array<i64: 1>, scalar_prefetch = 0 : i64, scratch_operands = 0 : i64, tpu.core_type = #tpu.core_type<tc>, window_params = [{pipeline_mode = #tpu.pipeline_mode<synchronous>, transform_indices = @transform_0, window_bounds = array<i64: 2, 1, 512>}, {pipeline_mode = #tpu.pipeline_mode<synchronous>, transform_indices = @transform_1, window_bounds = array<i64: 2, 512>}]} {
    %c0 = arith.constant 0 : index
    %c0_0 = arith.constant 0 : index
    %c0_1 = arith.constant 0 : index
    %0 = vector.load %arg1[%c0, %c0_0, %c0_1] : memref<2x1x512xbf16, #tpu.memory_space<vmem>>, vector<2x1x512xbf16>
    %1 = arith.extf %0 : vector<2x1x512xbf16> to vector<2x1x512xf32>
    %cst = arith.constant dense<0.000000e+00> : vector<2x512xf32>
    %2 = vector.multi_reduction <add>, %1, %cst [1] : vector<2x1x512xf32> to vector<2x512xf32>
    %cst_2 = arith.constant 1.000000e+00 : f32
    %3 = vector.broadcast %cst_2 : f32 to vector<2x512xf32>
    %4 = arith.mulf %2, %3 : vector<2x512xf32>
    %5 = arith.truncf %4 : vector<2x512xf32> to vector<2x512xbf16>
    %c0_3 = arith.constant 0 : index
    %c0_4 = arith.constant 0 : index
    %6 = vector.load %arg2[%c0_3, %c0_4] : memref<2x512xbf16, #tpu.memory_space<vmem>>, vector<2x512xbf16>
    tpu.vector_store %arg2[%c0_3, %c0_4], %5 {strides = array<i32>} : memref<2x512xbf16, #tpu.memory_space<vmem>>, vector<2x512xbf16>,
    return
  }
  func.func @transform_0(%arg0: i32) -> (i32, i32, i32) {
    %c0_i32 = arith.constant 0 : i32
    %c0_i32_0 = arith.constant 0 : i32
    %c0_i32_1 = arith.constant 0 : i32
    %c0_i32_2 = arith.constant 0 : i32
    return %c0_i32, %c0_i32_0, %c0_i32_1 : i32, i32, i32
  }
  func.func @transform_1(%arg0: i32) -> (i32, i32) {
    %c0_i32 = arith.constant 0 : i32
    %c0_i32_0 = arith.constant 0 : i32
    %c0_i32_1 = arith.constant 0 : i32
    return %c0_i32, %c0_i32_0 : i32, i32
  }
}

module attributes {stable_mosaic.version = 11 : i64} {
  func.func @_conv3x3_kernel(%arg0: i32, %arg1: memref<26x128xbf16, #tpu.memory_space<vmem>>, %arg2: memref<9x128x128xbf16, #tpu.memory_space<vmem>>, %arg3: memref<18x128xbf16, #tpu.memory_space<vmem>>) attributes {dimension_semantics = [#tpu.dimension_semantics<arbitrary>], iteration_bounds = array<i64: 1>, scalar_prefetch = 0 : i64, scratch_operands = 0 : i64, tpu.core_type = #tpu.core_type<tc>, window_params = [{pipeline_mode = #tpu.pipeline_mode<synchronous>, transform_indices = @transform_0, window_bounds = array<i64: 26, 128>}, {pipeline_mode = #tpu.pipeline_mode<synchronous>, transform_indices = @transform_1, window_bounds = array<i64: 9, 128, 128>}, {pipeline_mode = #tpu.pipeline_mode<synchronous>, transform_indices = @transform_2, window_bounds = array<i64: 18, 128>}]} {
    %c0 = arith.constant 0 : index
    %c0_0 = arith.constant 0 : index
    %0 = vector.load %arg1[%c0, %c0_0] : memref<26x128xbf16, #tpu.memory_space<vmem>>, vector<18x128xbf16>
    %c0_1 = arith.constant 0 : index
    %c0_2 = arith.constant 0 : index
    %c0_3 = arith.constant 0 : index
    %1 = vector.load %arg2[%c0_1, %c0_2, %c0_3] : memref<9x128x128xbf16, #tpu.memory_space<vmem>>, vector<1x128x128xbf16>
    %2 = vector.shape_cast %1 : vector<1x128x128xbf16> to vector<128x128xbf16>
    %cst = arith.constant dense<0.000000e+00> : vector<18x128xf32>
    %3 = tpu.matmul %0, %2, %cst {dimension_numbers = #tpu.dot_dimension_numbers<[1], [0], [0], [1], [0, 0, 1, 1], [], []>} : vector<18x128xbf16>, vector<128x128xbf16>, vector<18x128xf32> -> vector<18x128xf32>
    %c1 = arith.constant 1 : index
    %c0_4 = arith.constant 0 : index
    %4 = vector.load %arg1[%c1, %c0_4] : memref<26x128xbf16, #tpu.memory_space<vmem>>, vector<18x128xbf16>
    %c1_5 = arith.constant 1 : index
    %c0_6 = arith.constant 0 : index
    %c0_7 = arith.constant 0 : index
    %5 = vector.load %arg2[%c1_5, %c0_6, %c0_7] : memref<9x128x128xbf16, #tpu.memory_space<vmem>>, vector<1x128x128xbf16>
    %6 = vector.shape_cast %5 : vector<1x128x128xbf16> to vector<128x128xbf16>
    %cst_8 = arith.constant dense<0.000000e+00> : vector<18x128xf32>
    %7 = tpu.matmul %4, %6, %cst_8 {dimension_numbers = #tpu.dot_dimension_numbers<[1], [0], [0], [1], [0, 0, 1, 1], [], []>} : vector<18x128xbf16>, vector<128x128xbf16>, vector<18x128xf32> -> vector<18x128xf32>
    %8 = arith.addf %3, %7 : vector<18x128xf32>
    %c2 = arith.constant 2 : index
    %c0_9 = arith.constant 0 : index
    %9 = vector.load %arg1[%c2, %c0_9] : memref<26x128xbf16, #tpu.memory_space<vmem>>, vector<18x128xbf16>
    %c2_10 = arith.constant 2 : index
    %c0_11 = arith.constant 0 : index
    %c0_12 = arith.constant 0 : index
    %10 = vector.load %arg2[%c2_10, %c0_11, %c0_12] : memref<9x128x128xbf16, #tpu.memory_space<vmem>>, vector<1x128x128xbf16>
    %11 = vector.shape_cast %10 : vector<1x128x128xbf16> to vector<128x128xbf16>
    %cst_13 = arith.constant dense<0.000000e+00> : vector<18x128xf32>
    %12 = tpu.matmul %9, %11, %cst_13 {dimension_numbers = #tpu.dot_dimension_numbers<[1], [0], [0], [1], [0, 0, 1, 1], [], []>} : vector<18x128xbf16>, vector<128x128xbf16>, vector<18x128xf32> -> vector<18x128xf32>
    %13 = arith.addf %8, %12 : vector<18x128xf32>
    %c3 = arith.constant 3 : index
    %c0_14 = arith.constant 0 : index
    %14 = vector.load %arg1[%c3, %c0_14] : memref<26x128xbf16, #tpu.memory_space<vmem>>, vector<18x128xbf16>
    %c3_15 = arith.constant 3 : index
    %c0_16 = arith.constant 0 : index
    %c0_17 = arith.constant 0 : index
    %15 = vector.load %arg2[%c3_15, %c0_16, %c0_17] : memref<9x128x128xbf16, #tpu.memory_space<vmem>>, vector<1x128x128xbf16>
    %16 = vector.shape_cast %15 : vector<1x128x128xbf16> to vector<128x128xbf16>
    %cst_18 = arith.constant dense<0.000000e+00> : vector<18x128xf32>
    %17 = tpu.matmul %14, %16, %cst_18 {dimension_numbers = #tpu.dot_dimension_numbers<[1], [0], [0], [1], [0, 0, 1, 1], [], []>} : vector<18x128xbf16>, vector<128x128xbf16>, vector<18x128xf32> -> vector<18x128xf32>
    %18 = arith.addf %13, %17 : vector<18x128xf32>
    %c4 = arith.constant 4 : index
    %c0_19 = arith.constant 0 : index
    %19 = vector.load %arg1[%c4, %c0_19] : memref<26x128xbf16, #tpu.memory_space<vmem>>, vector<18x128xbf16>
    %c4_20 = arith.constant 4 : index
    %c0_21 = arith.constant 0 : index
    %c0_22 = arith.constant 0 : index
    %20 = vector.load %arg2[%c4_20, %c0_21, %c0_22] : memref<9x128x128xbf16, #tpu.memory_space<vmem>>, vector<1x128x128xbf16>
    %21 = vector.shape_cast %20 : vector<1x128x128xbf16> to vector<128x128xbf16>
    %cst_23 = arith.constant dense<0.000000e+00> : vector<18x128xf32>
    %22 = tpu.matmul %19, %21, %cst_23 {dimension_numbers = #tpu.dot_dimension_numbers<[1], [0], [0], [1], [0, 0, 1, 1], [], []>} : vector<18x128xbf16>, vector<128x128xbf16>, vector<18x128xf32> -> vector<18x128xf32>
    %23 = arith.addf %18, %22 : vector<18x128xf32>
    %c5 = arith.constant 5 : index
    %c0_24 = arith.constant 0 : index
    %24 = vector.load %arg1[%c5, %c0_24] : memref<26x128xbf16, #tpu.memory_space<vmem>>, vector<18x128xbf16>
    %c5_25 = arith.constant 5 : index
    %c0_26 = arith.constant 0 : index
    %c0_27 = arith.constant 0 : index
    %25 = vector.load %arg2[%c5_25, %c0_26, %c0_27] : memref<9x128x128xbf16, #tpu.memory_space<vmem>>, vector<1x128x128xbf16>
    %26 = vector.shape_cast %25 : vector<1x128x128xbf16> to vector<128x128xbf16>
    %cst_28 = arith.constant dense<0.000000e+00> : vector<18x128xf32>
    %27 = tpu.matmul %24, %26, %cst_28 {dimension_numbers = #tpu.dot_dimension_numbers<[1], [0], [0], [1], [0, 0, 1, 1], [], []>} : vector<18x128xbf16>, vector<128x128xbf16>, vector<18x128xf32> -> vector<18x128xf32>
    %28 = arith.addf %23, %27 : vector<18x128xf32>
    %c6 = arith.constant 6 : index
    %c0_29 = arith.constant 0 : index
    %29 = vector.load %arg1[%c6, %c0_29] : memref<26x128xbf16, #tpu.memory_space<vmem>>, vector<18x128xbf16>
    %c6_30 = arith.constant 6 : index
    %c0_31 = arith.constant 0 : index
    %c0_32 = arith.constant 0 : index
    %30 = vector.load %arg2[%c6_30, %c0_31, %c0_32] : memref<9x128x128xbf16, #tpu.memory_space<vmem>>, vector<1x128x128xbf16>
    %31 = vector.shape_cast %30 : vector<1x128x128xbf16> to vector<128x128xbf16>
    %cst_33 = arith.constant dense<0.000000e+00> : vector<18x128xf32>
    %32 = tpu.matmul %29, %31, %cst_33 {dimension_numbers = #tpu.dot_dimension_numbers<[1], [0], [0], [1], [0, 0, 1, 1], [], []>} : vector<18x128xbf16>, vector<128x128xbf16>, vector<18x128xf32> -> vector<18x128xf32>
    %33 = arith.addf %28, %32 : vector<18x128xf32>
    %c7 = arith.constant 7 : index
    %c0_34 = arith.constant 0 : index
    %34 = vector.load %arg1[%c7, %c0_34] : memref<26x128xbf16, #tpu.memory_space<vmem>>, vector<18x128xbf16>
    %c7_35 = arith.constant 7 : index
    %c0_36 = arith.constant 0 : index
    %c0_37 = arith.constant 0 : index
    %35 = vector.load %arg2[%c7_35, %c0_36, %c0_37] : memref<9x128x128xbf16, #tpu.memory_space<vmem>>, vector<1x128x128xbf16>
    %36 = vector.shape_cast %35 : vector<1x128x128xbf16> to vector<128x128xbf16>
    %cst_38 = arith.constant dense<0.000000e+00> : vector<18x128xf32>
    %37 = tpu.matmul %34, %36, %cst_38 {dimension_numbers = #tpu.dot_dimension_numbers<[1], [0], [0], [1], [0, 0, 1, 1], [], []>} : vector<18x128xbf16>, vector<128x128xbf16>, vector<18x128xf32> -> vector<18x128xf32>
    %38 = arith.addf %33, %37 : vector<18x128xf32>
    %c8 = arith.constant 8 : index
    %c0_39 = arith.constant 0 : index
    %39 = vector.load %arg1[%c8, %c0_39] : memref<26x128xbf16, #tpu.memory_space<vmem>>, vector<18x128xbf16>
    %c8_40 = arith.constant 8 : index
    %c0_41 = arith.constant 0 : index
    %c0_42 = arith.constant 0 : index
    %40 = vector.load %arg2[%c8_40, %c0_41, %c0_42] : memref<9x128x128xbf16, #tpu.memory_space<vmem>>, vector<1x128x128xbf16>
    %41 = vector.shape_cast %40 : vector<1x128x128xbf16> to vector<128x128xbf16>
    %cst_43 = arith.constant dense<0.000000e+00> : vector<18x128xf32>
    %42 = tpu.matmul %39, %41, %cst_43 {dimension_numbers = #tpu.dot_dimension_numbers<[1], [0], [0], [1], [0, 0, 1, 1], [], []>} : vector<18x128xbf16>, vector<128x128xbf16>, vector<18x128xf32> -> vector<18x128xf32>
    %43 = arith.addf %38, %42 : vector<18x128xf32>
    %cst_44 = arith.constant 0.000000e+00 : f32
    %44 = vector.broadcast %cst_44 : f32 to vector<18x128xf32>
    %45 = arith.maximumf %43, %44 : vector<18x128xf32>
    %46 = arith.truncf %45 : vector<18x128xf32> to vector<18x128xbf16>
    %c0_45 = arith.constant 0 : index
    %c0_46 = arith.constant 0 : index
    %47 = vector.load %arg3[%c0_45, %c0_46] : memref<18x128xbf16, #tpu.memory_space<vmem>>, vector<18x128xbf16>
    tpu.vector_store %arg3[%c0_45, %c0_46], %46 {strides = array<i32>} : memref<18x128xbf16, #tpu.memory_space<vmem>>, vector<18x128xbf16>,
    return
  }
  func.func @transform_0(%arg0: i32) -> (i32, i32) {
    %c0_i32 = arith.constant 0 : i32
    %c0_i32_0 = arith.constant 0 : i32
    %c0_i32_1 = arith.constant 0 : i32
    return %c0_i32, %c0_i32_0 : i32, i32
  }
  func.func @transform_1(%arg0: i32) -> (i32, i32, i32) {
    %c0_i32 = arith.constant 0 : i32
    %c0_i32_0 = arith.constant 0 : i32
    %c0_i32_1 = arith.constant 0 : i32
    %c0_i32_2 = arith.constant 0 : i32
    return %c0_i32, %c0_i32_0, %c0_i32_1 : i32, i32, i32
  }
  func.func @transform_2(%arg0: i32) -> (i32, i32) {
    %c0_i32 = arith.constant 0 : i32
    %c0_i32_0 = arith.constant 0 : i32
    %c0_i32_1 = arith.constant 0 : i32
    return %c0_i32, %c0_i32_0 : i32, i32
  }
}

module attributes {stable_mosaic.version = 11 : i64} {
  func.func @_mm_kernel_1k(%arg0: i32, %arg1: i32, %arg2: memref<2x512xbf16, #tpu.memory_space<vmem>>, %arg3: memref<512x10xbf16, #tpu.memory_space<vmem>>, %arg4: memref<1x10xf32, #tpu.memory_space<vmem>>, %arg5: memref<2x10xf32, #tpu.memory_space<vmem>>) attributes {dimension_semantics = [#tpu.dimension_semantics<parallel>, #tpu.dimension_semantics<parallel>], iteration_bounds = array<i64: 1, 1>, scalar_prefetch = 0 : i64, scratch_operands = 0 : i64, tpu.core_type = #tpu.core_type<tc>, window_params = [{transform_indices = @transform_0, window_bounds = array<i64: 2, 512>}, {transform_indices = @transform_1, window_bounds = array<i64: 512, 10>}, {transform_indices = @transform_2, window_bounds = array<i64: 1, 10>}, {transform_indices = @transform_3, window_bounds = array<i64: 2, 10>}]} {
    %c0 = arith.constant 0 : index
    %c0_0 = arith.constant 0 : index
    %0 = vector.load %arg2[%c0, %c0_0] : memref<2x512xbf16, #tpu.memory_space<vmem>>, vector<2x512xbf16>
    %c0_1 = arith.constant 0 : index
    %c0_2 = arith.constant 0 : index
    %1 = vector.load %arg3[%c0_1, %c0_2] : memref<512x10xbf16, #tpu.memory_space<vmem>>, vector<512x10xbf16>
    %cst = arith.constant dense<0.000000e+00> : vector<2x10xf32>
    %2 = tpu.matmul %0, %1, %cst {dimension_numbers = #tpu.dot_dimension_numbers<[1], [0], [0], [1], [0, 0, 1, 1], [], []>} : vector<2x512xbf16>, vector<512x10xbf16>, vector<2x10xf32> -> vector<2x10xf32>
    %c0_3 = arith.constant 0 : index
    %c0_4 = arith.constant 0 : index
    %3 = vector.load %arg4[%c0_3, %c0_4] : memref<1x10xf32, #tpu.memory_space<vmem>>, vector<1x10xf32>
    %4 = vector.broadcast %3 : vector<1x10xf32> to vector<2x10xf32>
    %5 = arith.addf %2, %4 : vector<2x10xf32>
    %c0_5 = arith.constant 0 : index
    %c0_6 = arith.constant 0 : index
    %6 = vector.load %arg5[%c0_5, %c0_6] : memref<2x10xf32, #tpu.memory_space<vmem>>, vector<2x10xf32>
    tpu.vector_store %arg5[%c0_5, %c0_6], %5 {strides = array<i32>} : memref<2x10xf32, #tpu.memory_space<vmem>>, vector<2x10xf32>,
    return
  }
  func.func @transform_0(%arg0: i32, %arg1: i32) -> (i32, i32) {
    %c0_i32 = arith.constant 0 : i32
    %c0_i32_0 = arith.constant 0 : i32
    return %arg0, %c0_i32 : i32, i32
  }
  func.func @transform_1(%arg0: i32, %arg1: i32) -> (i32, i32) {
    %c0_i32 = arith.constant 0 : i32
    %c0_i32_0 = arith.constant 0 : i32
    return %c0_i32, %arg1 : i32, i32
  }
  func.func @transform_2(%arg0: i32, %arg1: i32) -> (i32, i32) {
    %c0_i32 = arith.constant 0 : i32
    %c0_i32_0 = arith.constant 0 : i32
    return %c0_i32, %arg1 : i32, i32
  }
  func.func @transform_3(%arg0: i32, %arg1: i32) -> (i32, i32) {
    %c0_i32 = arith.constant 0 : i32
    return %arg0, %arg1 : i32, i32
  }
}

</mosaic_0001>

<bundles_post_ra>
// kernel: resnet50_forward.58
= control target key start
LH: loop header
LB: loop body
LE: loop exit
PB: predicated region body
PF: predicated region fallthrough
CT: control target
= control target key end

     0   :  { %vm110_vm0 = vcmask 523264   ;;  %vm296_vm1 = vcmask 519168   ;;  %s557_s1 = inlined_call_operand.vmem [shape: bf16[64,64], index: 1, kind: input, shape index: {}]   ;;  %s558_s0 = inlined_call_operand.vmem [shape: bf16[128,64], index: 0, kind: input, shape index: {}]   ;;  %s559_s2 = inlined_call_operand.vmem [shape: f32[1,64], index: 2, kind: input, shape index: {}]   ;;  %s560_s3 = inlined_call_operand.vmem [shape: bf16[128,64], index: 3, kind: output, shape index: {}]  }
   0x1   :  { %v414_v0 = vld [vmem:[%s557_s1] sm:$0xff]   ;;  %v415_v1 = vld [vmem:[%s557_s1 + $0x8] sm:$0xff]   ;;  %v416_v2 = vld [vmem:[%s557_s1 + $0x10] sm:$0xff]  }
   0x2   :  { %382 = vmatprep.subr.bf16.mxu0 %v414_v0  ;;  %406 = vmatprep.subr.bf16.mxu1 %v414_v0  ;;  %v418_v3 = vld [vmem:[%s558_s0] sm:$0xff]   ;;  %v417_v5 = vld [vmem:[%s557_s1 + $0x18] sm:$0xff]   ;;  %v420_v6 = vld [vmem:[%s558_s0 + $0x8] sm:$0xff]  }
   0x3   :  { %383 = vmatpush3.bf16.msra.mxu0 %v414_v0  ;;  %410 = vmatpush3.bf16.msra.mxu1 %v414_v0  ;;  %v419_v4 = vld [vmem:[%s558_s0 + $0x20] sm:$0xff]   ;;  %v421_v7 = vld [vmem:[%s558_s0 + $0x28] sm:$0xff]   ;;  %v422_v8 = vld [vmem:[%s558_s0 + $0x10] sm:$0xff]  }
   0x4   :  { %384 = vmatprep.subr.bf16.mxu0 %v415_v1  ;;  %407 = vmatprep.subr.bf16.mxu1 %v415_v1  ;;  %v423_v9 = vld [vmem:[%s558_s0 + $0x30] sm:$0xff]   ;;  %v424_v10 = vld [vmem:[%s558_s0 + $0x18] sm:$0xff]   ;;  %v317_v12 = vld [vmem:[%s559_s2] ss:$0 sm:$0xff] }
   0x5   :  { %390 = vmatprep.mubr.msk.bf16.mxu0 %vm110_vm0, %v418_v3  ;;  %398 = vmatprep.mubr.msk.bf16.mxu1 %vm110_vm0, %v419_v4  ;;  %v425_v11 = vld [vmem:[%s558_s0 + $0x38] sm:$0xff]  }
   0x7   :  { %385 = vmatpush3.bf16.msra.mxu0 %v415_v1  ;;  %411 = vmatpush3.bf16.msra.mxu1 %v415_v1 }
   0x8   :  { %386 = vmatprep.subr.bf16.mxu0 %v416_v2  ;;  %408 = vmatprep.subr.bf16.mxu1 %v416_v2 }
   0xb   :  { %387 = vmatpush3.bf16.msra.mxu0 %v416_v2  ;;  %412 = vmatpush3.bf16.msra.mxu1 %v416_v2 }
   0xc   :  { %388 = vmatprep.subr.bf16.mxu0 %v417_v5  ;;  %409 = vmatprep.subr.bf16.mxu1 %v417_v5 }
   0xf   :  { %389 = vmatpush3.bf16.msra.mxu0 %v417_v5  ;;  %413 = vmatpush3.bf16.msra.mxu1 %v417_v5 }
  0x12   :  { %391 = vmatmul.mubr.msk.bf16.vlgmr.msra.gmra.mrb[0].mxu0 %vm110_vm0, %v420_v6  ;;  %399 = vmatmul.mubr.msk.bf16.vlgmr.msra.gmra.mrb[0].mxu1 %vm110_vm0, %v421_v7 }
  0x13   :  { %394 = vmatprep.mubr.msk.bf16.mxu0 %vm110_vm0, %v422_v8  ;;  %402 = vmatprep.mubr.msk.bf16.mxu1 %vm110_vm0, %v423_v9 }
  0x1a   :  { %395 = vmatmul.mubr.msk.bf16.gmra.mrb[4].mxu0 %vm110_vm0, %v424_v10  ;;  %403 = vmatmul.mubr.msk.bf16.gmra.mrb[4].mxu1 %vm110_vm0, %v425_v11 }
  0xe5   :  { %v392_v13 = vpop.f32.mrb[0].mxu0  ;;  %v400_v14 = vpop.f32.mrb[0].mxu1 }
  0xe6   :  { %v178_v15 = vadd.f32 %v392_v13, %v317_v12  ;;  %v210_v16 = vadd.f32 %v400_v14, %v317_v12  ;;  %v169_v17 = vpop.f32.mrb[1].mxu0  ;;  %v201_v18 = vpop.f32.mrb[1].mxu1 }
  0xe7   :  { %v170_v19 = vadd.f32 %v317_v12, %v169_v17  ;;  %v202_v20 = vadd.f32 %v317_v12, %v201_v18  ;;  %v393_v21 = vpop.f32.mrb[2].mxu0  ;;  %v401_v22 = vpop.f32.mrb[2].mxu1 }
  0xe8   :  { %v356_v23 = vpack.c.bf16 %v178_v15, %v178_v15  ;;  %v364_v24 = vpack.c.bf16 %v210_v16, %v210_v16  ;;  %v181_v25 = vadd.f32 %v393_v21, %v317_v12  ;;  %v213_v26 = vadd.f32 %v401_v22, %v317_v12  ;;  %v172_v27 = vpop.f32.mrb[3].mxu0  ;;  %v204_v28 = vpop.f32.mrb[3].mxu1 }
  0xe9   :  { %v354_v29 = vpack.c.bf16 %v170_v19, %v170_v19  ;;  %v362_v30 = vpack.c.bf16 %v202_v20, %v202_v20  ;;  %v173_v31 = vadd.f32 %v317_v12, %v172_v27  ;;  %v205_v32 = vadd.f32 %v317_v12, %v204_v28 }
  0xea   :  { %299 = vst.msk [vmem:[%s560_s3 + $0x8] sm:$0xf] %vm296_vm1, %v356_v23  ;;  %307 = vst.msk [vmem:[%s560_s3 + $0x28] sm:$0xf] %vm296_vm1, %v364_v24  ;;  %v357_v33 = vpack.c.bf16 %v181_v25, %v181_v25  ;;  %v365_v34 = vpack.c.bf16 %v213_v26, %v213_v26 }
  0xeb   :  { %297 = vst.msk [vmem:[%s560_s3] sm:$0xf] %vm296_vm1, %v354_v29  ;;  %305 = vst.msk [vmem:[%s560_s3 + $0x20] sm:$0xf] %vm296_vm1, %v362_v30  ;;  %v355_v35 = vpack.c.bf16 %v173_v31, %v173_v31  ;;  %v363_v36 = vpack.c.bf16 %v205_v32, %v205_v32 }
  0xec   :  { %300 = vst.msk [vmem:[%s560_s3 + $0xc] sm:$0xf] %vm296_vm1, %v357_v33  ;;  %308 = vst.msk [vmem:[%s560_s3 + $0x2c] sm:$0xf] %vm296_vm1, %v365_v34 }
  0xed   :  { %298 = vst.msk [vmem:[%s560_s3 + $0x4] sm:$0xf] %vm296_vm1, %v355_v35  ;;  %306 = vst.msk [vmem:[%s560_s3 + $0x24] sm:$0xf] %vm296_vm1, %v363_v36  ;;  %v396_v37 = vpop.f32.mrb[4].mxu0  ;;  %v404_v38 = vpop.f32.mrb[4].mxu1 }
  0xee   :  { %v194_v39 = vadd.f32 %v396_v37, %v317_v12  ;;  %v226_v40 = vadd.f32 %v404_v38, %v317_v12  ;;  %v185_v41 = vpop.f32.mrb[5].mxu0  ;;  %v217_v42 = vpop.f32.mrb[5].mxu1 }
  0xef   :  { %v186_v43 = vadd.f32 %v317_v12, %v185_v41  ;;  %v218_v44 = vadd.f32 %v317_v12, %v217_v42  ;;  %v397_v45 = vpop.f32.mrb[6].mxu0  ;;  %v405_v46 = vpop.f32.mrb[6].mxu1 }
  0xf0   :  { %v360_v47 = vpack.c.bf16 %v194_v39, %v194_v39  ;;  %v368_v48 = vpack.c.bf16 %v226_v40, %v226_v40  ;;  %v197_v49 = vadd.f32 %v397_v45, %v317_v12  ;;  %v229_v50 = vadd.f32 %v405_v46, %v317_v12  ;;  %v188_v51 = vpop.f32.mrb[7].mxu0  ;;  %v220_v52 = vpop.f32.mrb[7].mxu1 }
  0xf1   :  { %v358_v53 = vpack.c.bf16 %v186_v43, %v186_v43  ;;  %v366_v54 = vpack.c.bf16 %v218_v44, %v218_v44  ;;  %v189_v55 = vadd.f32 %v317_v12, %v188_v51  ;;  %v221_v56 = vadd.f32 %v317_v12, %v220_v52 }
  0xf2   :  { %303 = vst.msk [vmem:[%s560_s3 + $0x18] sm:$0xf] %vm296_vm1, %v360_v47  ;;  %311 = vst.msk [vmem:[%s560_s3 + $0x38] sm:$0xf] %vm296_vm1, %v368_v48  ;;  %v361_v57 = vpack.c.bf16 %v197_v49, %v197_v49  ;;  %v369_v58 = vpack.c.bf16 %v229_v50, %v229_v50 }
  0xf3   :  { %301 = vst.msk [vmem:[%s560_s3 + $0x10] sm:$0xf] %vm296_vm1, %v358_v53  ;;  %309 = vst.msk [vmem:[%s560_s3 + $0x30] sm:$0xf] %vm296_vm1, %v366_v54  ;;  %v359_v59 = vpack.c.bf16 %v189_v55, %v189_v55  ;;  %v367_v60 = vpack.c.bf16 %v221_v56, %v221_v56 }
  0xf4   :  { %304 = vst.msk [vmem:[%s560_s3 + $0x1c] sm:$0xf] %vm296_vm1, %v361_v57  ;;  %312 = vst.msk [vmem:[%s560_s3 + $0x3c] sm:$0xf] %vm296_vm1, %v369_v58 }
  0xf5   :  { %302 = vst.msk [vmem:[%s560_s3 + $0x14] sm:$0xf] %vm296_vm1, %v359_v59  ;;  %310 = vst.msk [vmem:[%s560_s3 + $0x34] sm:$0xf] %vm296_vm1, %v367_v60 }

// kernel: resnet50_forward.59
= control target key start
LH: loop header
LB: loop body
LE: loop exit
PB: predicated region body
PF: predicated region fallthrough
CT: control target
= control target key end

     0   :  { %vm100_vm0 = vcmask 523264   ;;  %vm302_vm1 = vcmask 125952   ;;  %s554_s1 = inlined_call_operand.vmem [shape: bf16[64,16], index: 1, kind: input, shape index: {}]   ;;  %s555_s0 = inlined_call_operand.vmem [shape: bf16[128,64], index: 0, kind: input, shape index: {}]   ;;  %s556_s2 = inlined_call_operand.vmem [shape: bf16[128,16], index: 2, kind: output, shape index: {}]  }
   0x1   :  { %v419_v0 = vld [vmem:[%s554_s1] sm:$0xff]   ;;  %v420_v1 = vld [vmem:[%s554_s1 + $0x8] sm:$0xff]   ;;  %v421_v2 = vld [vmem:[%s554_s1 + $0x10] sm:$0xff]  }
   0x2   :  { %387 = vmatprep.subr.bf16.mxu0 %v419_v0  ;;  %411 = vmatprep.subr.bf16.mxu1 %v419_v0  ;;  %v423_v3 = vld [vmem:[%s555_s0] sm:$0xff]   ;;  %v422_v5 = vld [vmem:[%s554_s1 + $0x18] sm:$0xff]   ;;  %v425_v6 = vld [vmem:[%s555_s0 + $0x8] sm:$0xff]  }
   0x3   :  { %388 = vmatpush3.bf16.msra.mxu0 %v419_v0  ;;  %415 = vmatpush3.bf16.msra.mxu1 %v419_v0  ;;  %v424_v4 = vld [vmem:[%s555_s0 + $0x20] sm:$0xff]   ;;  %v426_v7 = vld [vmem:[%s555_s0 + $0x28] sm:$0xff]   ;;  %v427_v8 = vld [vmem:[%s555_s0 + $0x10] sm:$0xff]  }
   0x4   :  { %389 = vmatprep.subr.bf16.mxu0 %v420_v1  ;;  %412 = vmatprep.subr.bf16.mxu1 %v420_v1  ;;  %v428_v9 = vld [vmem:[%s555_s0 + $0x30] sm:$0xff]   ;;  %v429_v10 = vld [vmem:[%s555_s0 + $0x18] sm:$0xff]  }
   0x5   :  { %395 = vmatprep.mubr.msk.bf16.mxu0 %vm100_vm0, %v423_v3  ;;  %403 = vmatprep.mubr.msk.bf16.mxu1 %vm100_vm0, %v424_v4  ;;  %v430_v11 = vld [vmem:[%s555_s0 + $0x38] sm:$0xff]  }
   0x7   :  { %390 = vmatpush3.bf16.msra.mxu0 %v420_v1  ;;  %416 = vmatpush3.bf16.msra.mxu1 %v420_v1 }
   0x8   :  { %391 = vmatprep.subr.bf16.mxu0 %v421_v2  ;;  %413 = vmatprep.subr.bf16.mxu1 %v421_v2 }
   0xb   :  { %392 = vmatpush3.bf16.msra.mxu0 %v421_v2  ;;  %417 = vmatpush3.bf16.msra.mxu1 %v421_v2 }
   0xc   :  { %393 = vmatprep.subr.bf16.mxu0 %v422_v5  ;;  %414 = vmatprep.subr.bf16.mxu1 %v422_v5 }
   0xf   :  { %394 = vmatpush3.bf16.msra.mxu0 %v422_v5  ;;  %418 = vmatpush3.bf16.msra.mxu1 %v422_v5 }
  0x12   :  { %396 = vmatmul.mubr.msk.bf16.vlgmr.msra.gmra.mrb[0].mxu0 %vm100_vm0, %v425_v6  ;;  %404 = vmatmul.mubr.msk.bf16.vlgmr.msra.gmra.mrb[0].mxu1 %vm100_vm0, %v426_v7 }
  0x13   :  { %399 = vmatprep.mubr.msk.bf16.mxu0 %vm100_vm0, %v427_v8  ;;  %407 = vmatprep.mubr.msk.bf16.mxu1 %vm100_vm0, %v428_v9 }
  0x1a   :  { %400 = vmatmul.mubr.msk.bf16.gmra.mrb[4].mxu0 %vm100_vm0, %v429_v10  ;;  %408 = vmatmul.mubr.msk.bf16.gmra.mrb[4].mxu1 %vm100_vm0, %v430_v11 }
  0xe5   :  { %v397_v12 = vpop.f32.mrb[0].mxu0  ;;  %v405_v13 = vpop.f32.mrb[0].mxu1 }
  0xe6   :  { %v224_v14 = vmax.f32 %v397_v12, 0.0  ;;  %v232_v15 = vmax.f32 %v405_v13, 0.0  ;;  %v159_v16 = vpop.f32.mrb[1].mxu0  ;;  %v191_v17 = vpop.f32.mrb[1].mxu1 }
  0xe7   :  { %v222_v18 = vmax.f32 %v159_v16, 0.0  ;;  %v230_v19 = vmax.f32 %v191_v17, 0.0  ;;  %v398_v20 = vpop.f32.mrb[2].mxu0  ;;  %v406_v21 = vpop.f32.mrb[2].mxu1 }
  0xe8   :  { %v361_v22 = vpack.c.bf16 %v224_v14, %v224_v14  ;;  %v369_v23 = vpack.c.bf16 %v232_v15, %v232_v15  ;;  %v225_v24 = vmax.f32 %v398_v20, 0.0  ;;  %v233_v25 = vmax.f32 %v406_v21, 0.0  ;;  %v162_v26 = vpop.f32.mrb[3].mxu0  ;;  %v194_v27 = vpop.f32.mrb[3].mxu1 }
  0xe9   :  { %v359_v28 = vpack.c.bf16 %v222_v18, %v222_v18  ;;  %v367_v29 = vpack.c.bf16 %v230_v19, %v230_v19  ;;  %v223_v30 = vmax.f32 %v162_v26, 0.0  ;;  %v231_v31 = vmax.f32 %v194_v27, 0.0 }
  0xea   :  { %305 = vst.msk [vmem:[%s556_s2 + $0x8] sm:$0xf] %vm302_vm1, %v361_v22  ;;  %313 = vst.msk [vmem:[%s556_s2 + $0x28] sm:$0xf] %vm302_vm1, %v369_v23  ;;  %v362_v32 = vpack.c.bf16 %v225_v24, %v225_v24  ;;  %v370_v33 = vpack.c.bf16 %v233_v25, %v233_v25 }
  0xeb   :  { %303 = vst.msk [vmem:[%s556_s2] sm:$0xf] %vm302_vm1, %v359_v28  ;;  %311 = vst.msk [vmem:[%s556_s2 + $0x20] sm:$0xf] %vm302_vm1, %v367_v29  ;;  %v360_v34 = vpack.c.bf16 %v223_v30, %v223_v30  ;;  %v368_v35 = vpack.c.bf16 %v231_v31, %v231_v31 }
  0xec   :  { %306 = vst.msk [vmem:[%s556_s2 + $0xc] sm:$0xf] %vm302_vm1, %v362_v32  ;;  %314 = vst.msk [vmem:[%s556_s2 + $0x2c] sm:$0xf] %vm302_vm1, %v370_v33 }
  0xed   :  { %304 = vst.msk [vmem:[%s556_s2 + $0x4] sm:$0xf] %vm302_vm1, %v360_v34  ;;  %312 = vst.msk [vmem:[%s556_s2 + $0x24] sm:$0xf] %vm302_vm1, %v368_v35  ;;  %v401_v36 = vpop.f32.mrb[4].mxu0  ;;  %v409_v37 = vpop.f32.mrb[4].mxu1 }
  0xee   :  { %v228_v38 = vmax.f32 %v401_v36, 0.0  ;;  %v236_v39 = vmax.f32 %v409_v37, 0.0  ;;  %v175_v40 = vpop.f32.mrb[5].mxu0  ;;  %v207_v41 = vpop.f32.mrb[5].mxu1 }
  0xef   :  { %v226_v42 = vmax.f32 %v175_v40, 0.0  ;;  %v234_v43 = vmax.f32 %v207_v41, 0.0  ;;  %v402_v44 = vpop.f32.mrb[6].mxu0  ;;  %v410_v45 = vpop.f32.mrb[6].mxu1 }
  0xf0   :  { %v365_v46 = vpack.c.bf16 %v228_v38, %v228_v38  ;;  %v373_v47 = vpack.c.bf16 %v236_v39, %v236_v39  ;;  %v229_v48 = vmax.f32 %v402_v44, 0.0  ;;  %v237_v49 = vmax.f32 %v410_v45, 0.0  ;;  %v178_v50 = vpop.f32.mrb[7].mxu0  ;;  %v210_v51 = vpop.f32.mrb[7].mxu1 }
  0xf1   :  { %v363_v52 = vpack.c.bf16 %v226_v42, %v226_v42  ;;  %v371_v53 = vpack.c.bf16 %v234_v43, %v234_v43  ;;  %v227_v54 = vmax.f32 %v178_v50, 0.0  ;;  %v235_v55 = vmax.f32 %v210_v51, 0.0 }
  0xf2   :  { %309 = vst.msk [vmem:[%s556_s2 + $0x18] sm:$0xf] %vm302_vm1, %v365_v46  ;;  %317 = vst.msk [vmem:[%s556_s2 + $0x38] sm:$0xf] %vm302_vm1, %v373_v47  ;;  %v366_v56 = vpack.c.bf16 %v229_v48, %v229_v48  ;;  %v374_v57 = vpack.c.bf16 %v237_v49, %v237_v49 }
  0xf3   :  { %307 = vst.msk [vmem:[%s556_s2 + $0x10] sm:$0xf] %vm302_vm1, %v363_v52  ;;  %315 = vst.msk [vmem:[%s556_s2 + $0x30] sm:$0xf] %vm302_vm1, %v371_v53  ;;  %v364_v58 = vpack.c.bf16 %v227_v54, %v227_v54  ;;  %v372_v59 = vpack.c.bf16 %v235_v55, %v235_v55 }
  0xf4   :  { %310 = vst.msk [vmem:[%s556_s2 + $0x1c] sm:$0xf] %vm302_vm1, %v366_v56  ;;  %318 = vst.msk [vmem:[%s556_s2 + $0x3c] sm:$0xf] %vm302_vm1, %v374_v57 }
  0xf5   :  { %308 = vst.msk [vmem:[%s556_s2 + $0x14] sm:$0xf] %vm302_vm1, %v364_v58  ;;  %316 = vst.msk [vmem:[%s556_s2 + $0x34] sm:$0xf] %vm302_vm1, %v372_v59 }

// kernel: resnet50_forward.56
= control target key start
LH: loop header
LB: loop body
LE: loop exit
PB: predicated region body
PF: predicated region fallthrough
CT: control target
= control target key end

     0   :  { %s1221_s9 = smov 0   ;;  %s1223_s10 = smov 0   ;;  %s1404_s0 = inlined_call_operand.vmem [shape: bf16[512,147], index: 0, kind: input, shape index: {}]   ;;  %s1405_s1 = inlined_call_operand.vmem [shape: bf16[147,64], index: 1, kind: input, shape index: {}]   ;;  %s1406_s2 = inlined_call_operand.vmem [shape: bf16[512,64], index: 2, kind: output, shape index: {}]  }
   0x1   :  { %s1225_s11 = smov 0  }
   0x2 LB: > { %s24_s12 = sadd.s32 1, %s1198_s10  ;;  %p945_p0 = scmp.ge.s32.totalorder %s1202_s11, 1  ;;  %s1202_s11 = sphi %s1225_s11, %s12_s11   ;;  %s1198_s10 = sphi %s1223_s10, %s1408_s10   ;;  %s1194_s9 = sphi %s1221_s9, %s1407_s9  }
   0x3   : > { %p26_p1 = scmp.ge.s32.totalorder %s24_s12, 2  ;;  %p137_p2 = scmp.lt.s32.totalorder %s1202_s11, 3 }
   0x5   : > { %s1410_s12 = smov (%p26_p1, %s24_s12), 0  ;;  %p138_p3 = pnand %p945_p0, %p137_p2 }
   0x6   : > { %v1122_v0 = vld [vmem:[%s1405_s1] sm:$0xff] (!%p138_p3)   ;;  %v1204_v1 = vmov (!%p138_p3), 0   ;;  %v1123_v2 = vld [vmem:[%s1405_s1 + $0x8] sm:$0xff] (!%p138_p3)   ;;  %v1124_v3 = vld [vmem:[%s1405_s1 + $0x10] sm:$0xff] (!%p138_p3)   ;;  %s946_s19 = sshll.u32 (!%p138_p3), %s1194_s9, 5  ;;  %vm440_vm0 = vcmask (!%p138_p3), 154624  }
   0x7   : > { %141 = sbr.rel (%p138_p3) target bundleno = 322 (0x142), region = 28  ;;  %496 = vmatprep.subr.bf16.mxu0 (!%p138_p3), %v1204_v1  ;;  %1076 = vmatprep.subr.bf16.mxu1 (!%p138_p3), %v1204_v1  ;;  %p168_p4 = scmp.lt.s32.totalorder (!%p138_p3), %s946_s19, 63  ;;  %v1125_v4 = vld [vmem:[%s1405_s1 + $0x18] sm:$0xff] (!%p138_p3)   ;;  %v1126_v5 = vld [vmem:[%s1405_s1 + $0x20] sm:$0xff] (!%p138_p3)   ;;  %v1127_v8 = vld [vmem:[%s1405_s1 + $0x28] sm:$0xff] (!%p138_p3)   ;;  %vm489_vm1 = vcmask (!%p138_p3), 1040384  }
   0x8   : > { %497 = vmatpush1.bf16.msra.mxu0 (!%p138_p3), %v1122_v0  ;;  %1086 = vmatpush1.bf16.msra.mxu1 (!%p138_p3), %v1122_v0  ;;  %v1128_v9 = vld [vmem:[%s1405_s1 + $0x30] sm:$0xff] (!%p138_p3)   ;;  %v1129_v10 = vld [vmem:[%s1405_s1 + $0x38] sm:$0xff] (!%p138_p3)   ;;  %vm490_vm2 = vcmask (!%p138_p3), 1041408   ;;  %v1205_v11 = vmov (!%p138_p3), 65535   ;;  %v1130_v13 = vld [vmem:[%s1405_s1 + $0x40] sm:$0xff] (!%p138_p3)   ;;  %vm817_vm3 = vcmask (!%p138_p3), 519168  }
   0x9   : > { %498 = vmatprep.subr.bf16.mxu0 (!%p138_p3), %v1204_v1  ;;  %1077 = vmatprep.subr.bf16.mxu1 (!%p138_p3), %v1204_v1  ;;  %v491_v12 = vsel (!%p138_p3), %vm489_vm1, 4294967295, %v1205_v11  ;;  %v1131_v14 = vld [vmem:[%s1405_s1 + $0x48] ss:$0 sps:$4 sm:$0x33] (!%p138_p3)  }
   0xa   : > { %v492_v15 = vsel (!%p138_p3), %vm490_vm2, %v491_v12, 0 }
   0xb   : > { %v494_v16 = vand.u32 (!%p138_p3), %v1131_v14, %v492_v15 }
   0xc   : > { %499 = vmatpush1.bf16.msra.mxu0 (!%p138_p3), %v1123_v2  ;;  %1087 = vmatpush1.bf16.msra.mxu1 (!%p138_p3), %v1123_v2 }
   0xd   : > { %500 = vmatprep.subr.bf16.mxu0 (!%p138_p3), %v1204_v1  ;;  %1078 = vmatprep.subr.bf16.mxu1 (!%p138_p3), %v1204_v1 }
   0xe   : > { %s1412_s19 = smov (!%p168_p4, %s946_s19), 63 }
   0xf   : > { %s1043_s22 = sshll.u32 %s1412_s19, 3  ;;  %s950_s13 = sshll.u32 %s1412_s19, 2 }
  0x10   : > { %501 = vmatpush1.bf16.msra.mxu0 %v1124_v3  ;;  %1088 = vmatpush1.bf16.msra.mxu1 %v1124_v3  ;;  %s1257_s25 = scalar_lea.vmem %s1404_s0, %s1043_s22  ;;  %s1329_s16 = scalar_lea.vmem %s1406_s2, %s950_s13 }
  0x11   : > { %502 = vmatprep.subr.bf16.mxu0 %v1204_v1  ;;  %1079 = vmatprep.subr.bf16.mxu1 %v1204_v1  ;;  %v1134_v6 = vld [vmem:[%s1257_s25 + $0x4] ss:$8 sps:$4 sm:$0xff]   ;;  %v1132_v17 = vld [vmem:[%s1257_s25] ss:$8 sps:$4 sm:$0xff]   ;;  %v1138_v19 = vld [vmem:[%s1257_s25 + $0x14] ss:$8 sps:$4 sm:$0xff]  }
  0x12   : > { %v1137_v7 = vld [vmem:[%s1257_s25 + $0x84] ss:$8 sps:$4 sm:$0xff]   ;;  %993 = vmatprep.mubr.msk.bf16.mxu0 %vm440_vm0, %v1134_v6  ;;  %v1135_v18 = vld [vmem:[%s1257_s25 + $0x80] ss:$8 sps:$4 sm:$0xff]   ;;  %v1140_v20 = vld [vmem:[%s1257_s25 + $0x94] ss:$8 sps:$4 sm:$0xff]  }
  0x13   : > { %1001 = vmatprep.mubr.msk.bf16.mxu1 %vm440_vm0, %v1137_v7  ;;  %v1142_v21 = vld [vmem:[%s1257_s25 + $0x10] ss:$8 sps:$4 sm:$0xff]   ;;  %v1144_v23 = vld [vmem:[%s1257_s25 + $0x24] ss:$8 sps:$4 sm:$0xff]   ;;  %v1148_v25 = vld [vmem:[%s1257_s25 + $0x20] ss:$8 sps:$4 sm:$0xff]  }
  0x14   : > { %503 = vmatpush1.bf16.msra.mxu0 %v1125_v4  ;;  %1089 = vmatpush1.bf16.msra.mxu1 %v1125_v4  ;;  %v1143_v22 = vld [vmem:[%s1257_s25 + $0x90] ss:$8 sps:$4 sm:$0xff]   ;;  %v1146_v24 = vld [vmem:[%s1257_s25 + $0xa4] ss:$8 sps:$4 sm:$0xff]   ;;  %v1149_v26 = vld [vmem:[%s1257_s25 + $0xa0] ss:$8 sps:$4 sm:$0xff]  }
  0x15   : > { %504 = vmatprep.subr.bf16.mxu0 %v1204_v1  ;;  %1080 = vmatprep.subr.bf16.mxu1 %v1204_v1  ;;  %v1150_v27 = vld [vmem:[%s1257_s25 + $0x34] ss:$8 sps:$4 sm:$0xff]   ;;  %v1154_v29 = vld [vmem:[%s1257_s25 + $0x30] ss:$8 sps:$4 sm:$0xff]   ;;  %v1156_v31 = vld [vmem:[%s1257_s25 + $0x44] ss:$8 sps:$4 sm:$0xff]  }
  0x16   : > { %v1152_v28 = vld [vmem:[%s1257_s25 + $0xb4] ss:$8 sps:$4 sm:$0xff]   ;;  %v1155_v30 = vld [vmem:[%s1257_s25 + $0xb0] ss:$8 sps:$4 sm:$0xff]   ;;  %v1158_v32 = vld [vmem:[%s1257_s25 + $0xc4] ss:$8 sps:$4 sm:$0xff]  }
  0x17   : > { %v1160_v33 = vld [vmem:[%s1257_s25 + $0x40] ss:$8 sps:$4 sm:$0xff]   ;;  %v1162_v35 = vld [vmem:[%s1257_s25 + $0x54] ss:$8 sps:$4 sm:$0xff]   ;;  %v1166_v37 = vld [vmem:[%s1257_s25 + $0x50] ss:$8 sps:$4 sm:$0xff]  }
  0x18   : > { %505 = vmatpush1.bf16.msra.mxu0 %v1126_v5  ;;  %1090 = vmatpush1.bf16.msra.mxu1 %v1126_v5  ;;  %v1161_v34 = vld [vmem:[%s1257_s25 + $0xc0] ss:$8 sps:$4 sm:$0xff]   ;;  %v1164_v36 = vld [vmem:[%s1257_s25 + $0xd4] ss:$8 sps:$4 sm:$0xff]   ;;  %v1167_v38 = vld [vmem:[%s1257_s25 + $0xd0] ss:$8 sps:$4 sm:$0xff]  }
  0x19   : > { %506 = vmatprep.subr.bf16.mxu0 %v1204_v1  ;;  %1081 = vmatprep.subr.bf16.mxu1 %v1204_v1  ;;  %v1168_v39 = vld [vmem:[%s1257_s25 + $0x64] ss:$8 sps:$4 sm:$0xff]   ;;  %v1172_v41 = vld [vmem:[%s1257_s25 + $0x60] ss:$8 sps:$4 sm:$0xff]   ;;  %v1174_v43 = vld [vmem:[%s1257_s25 + $0x74] ss:$8 sps:$4 sm:$0xff]  }
  0x1a   : > { %v1170_v40 = vld [vmem:[%s1257_s25 + $0xe4] ss:$8 sps:$4 sm:$0xff]   ;;  %v1173_v42 = vld [vmem:[%s1257_s25 + $0xe0] ss:$8 sps:$4 sm:$0xff]   ;;  %v1176_v44 = vld [vmem:[%s1257_s25 + $0xf4] ss:$8 sps:$4 sm:$0xff]  }
  0x1b   : > { %v1178_v45 = vld [vmem:[%s1257_s25 + $0x70] ss:$8 sps:$4 sm:$0xff]  }
  0x1c   : > { %507 = vmatpush1.bf16.msra.mxu0 %v1127_v8  ;;  %1091 = vmatpush1.bf16.msra.mxu1 %v1127_v8  ;;  %v1179_v46 = vld [vmem:[%s1257_s25 + $0xf0] ss:$8 sps:$4 sm:$0xff]  }
  0x1d   : > { %508 = vmatprep.subr.bf16.mxu0 %v1204_v1  ;;  %1082 = vmatprep.subr.bf16.mxu1 %v1204_v1 }
  0x20   : > { %509 = vmatpush1.bf16.msra.mxu0 %v1128_v9  ;;  %1092 = vmatpush1.bf16.msra.mxu1 %v1128_v9 }
  0x21   : > { %510 = vmatprep.subr.bf16.mxu0 %v1204_v1  ;;  %1083 = vmatprep.subr.bf16.mxu1 %v1204_v1 }
  0x24   : > { %511 = vmatpush1.bf16.msra.mxu0 %v1129_v10  ;;  %1093 = vmatpush1.bf16.msra.mxu1 %v1129_v10 }
  0x25   : > { %512 = vmatprep.subr.bf16.mxu0 %v1204_v1  ;;  %1084 = vmatprep.subr.bf16.mxu1 %v1204_v1 }
  0x28   : > { %513 = vmatpush1.bf16.msra.mxu0 %v1130_v13  ;;  %1094 = vmatpush1.bf16.msra.mxu1 %v1130_v13 }
  0x29   : > { %514 = vmatprep.subr.bf16.mxu0 %v1204_v1  ;;  %1085 = vmatprep.subr.bf16.mxu1 %v1204_v1 }
  0x2c   : > { %515 = vmatpush1.bf16.msra.mxu0 %v494_v16  ;;  %1095 = vmatpush1.bf16.msra.mxu1 %v494_v16 }
  0x2f   : > { %529 = vmatmul.mubr.bf16.vlgmr.msra.gmra.mrb[0].mxu0 %v1132_v17  ;;  %593 = vmatmul.mubr.bf16.vlgmr.msra.gmra.mrb[0].mxu1 %v1135_v18 }
  0x30   : > { %994 = vmatprep.mubr.msk.bf16.mxu0 %vm440_vm0, %v1138_v19  ;;  %1002 = vmatprep.mubr.msk.bf16.mxu1 %vm440_vm0, %v1140_v20 }
  0x37   : > { %537 = vmatmul.mubr.bf16.gmra.mrb[4].mxu0 %v1142_v21  ;;  %601 = vmatmul.mubr.bf16.gmra.mrb[4].mxu1 %v1143_v22 }
  0x38   : > { %995 = vmatprep.mubr.msk.bf16.mxu0 %vm440_vm0, %v1144_v23  ;;  %1003 = vmatprep.mubr.msk.bf16.mxu1 %vm440_vm0, %v1146_v24 }
  0x3f   : > { %545 = vmatmul.mubr.bf16.gmra.mrb[8].mxu0 %v1148_v25  ;;  %609 = vmatmul.mubr.bf16.gmra.mrb[8].mxu1 %v1149_v26 }
  0x40   : > { %996 = vmatprep.mubr.msk.bf16.mxu0 %vm440_vm0, %v1150_v27  ;;  %1004 = vmatprep.mubr.msk.bf16.mxu1 %vm440_vm0, %v1152_v28 }
  0x47   : > { %553 = vmatmul.mubr.bf16.gmra.mrb[12].mxu0 %v1154_v29  ;;  %617 = vmatmul.mubr.bf16.gmra.mrb[12].mxu1 %v1155_v30 }
  0x48   : > { %997 = vmatprep.mubr.msk.bf16.mxu0 %vm440_vm0, %v1156_v31  ;;  %1005 = vmatprep.mubr.msk.bf16.mxu1 %vm440_vm0, %v1158_v32 }
  0x4f   : > { %561 = vmatmul.mubr.bf16.gmra.mrb[16].mxu0 %v1160_v33  ;;  %625 = vmatmul.mubr.bf16.gmra.mrb[16].mxu1 %v1161_v34 }
  0x50   : > { %998 = vmatprep.mubr.msk.bf16.mxu0 %vm440_vm0, %v1162_v35  ;;  %1006 = vmatprep.mubr.msk.bf16.mxu1 %vm440_vm0, %v1164_v36 }
  0x57   : > { %569 = vmatmul.mubr.bf16.gmra.mrb[20].mxu0 %v1166_v37  ;;  %633 = vmatmul.mubr.bf16.gmra.mrb[20].mxu1 %v1167_v38 }
  0x58   : > { %999 = vmatprep.mubr.msk.bf16.mxu0 %vm440_vm0, %v1168_v39  ;;  %1007 = vmatprep.mubr.msk.bf16.mxu1 %vm440_vm0, %v1170_v40 }
  0x5f   : > { %577 = vmatmul.mubr.bf16.gmra.mrb[24].mxu0 %v1172_v41  ;;  %641 = vmatmul.mubr.bf16.gmra.mrb[24].mxu1 %v1173_v42 }
  0x60   : > { %1000 = vmatprep.mubr.msk.bf16.mxu0 %vm440_vm0, %v1174_v43  ;;  %1008 = vmatprep.mubr.msk.bf16.mxu1 %vm440_vm0, %v1176_v44 }
  0x67   : > { %585 = vmatmul.mubr.bf16.gmra.mrb[28].mxu0 %v1178_v45  ;;  %649 = vmatmul.mubr.bf16.gmra.mrb[28].mxu1 %v1179_v46 }
 0x102   : > { %v530_v47 = vpop.f32.mrb[0].mxu0  ;;  %v594_v48 = vpop.f32.mrb[0].mxu1 }
 0x103   : > { %v657_v49 = vmax.f32 %v530_v47, 0.0  ;;  %v673_v50 = vmax.f32 %v594_v48, 0.0  ;;  %v532_v51 = vpop.f32.mrb[1].mxu0  ;;  %v596_v52 = vpop.f32.mrb[1].mxu1 }
 0x104   : > { %v533_v53 = vpop.f32.mrb[2].mxu0  ;;  %v597_v54 = vpop.f32.mrb[2].mxu1 }
 0x105   : > { %v1044_v55 = vpack.c.bf16 %v657_v49, %v657_v49  ;;  %v1060_v56 = vpack.c.bf16 %v673_v50, %v673_v50  ;;  %v658_v57 = vmax.f32 %v533_v53, 0.0  ;;  %v674_v58 = vmax.f32 %v597_v54, 0.0  ;;  %v535_v59 = vpop.f32.mrb[3].mxu0  ;;  %v599_v60 = vpop.f32.mrb[3].mxu1 }
 0x107   : > { %818 = vst.msk [vmem:[%s1329_s16] sm:$0xf] %vm817_vm3, %v1044_v55  ;;  %834 = vst.msk [vmem:[%s1329_s16 + $0x40] sm:$0xf] %vm817_vm3, %v1060_v56  ;;  %v1045_v61 = vpack.c.bf16 %v658_v57, %v658_v57  ;;  %v1061_v62 = vpack.c.bf16 %v674_v58, %v674_v58 }
 0x109   : > { %819 = vst.msk [vmem:[%s1329_s16 + $0x4] sm:$0xf] %vm817_vm3, %v1045_v61  ;;  %835 = vst.msk [vmem:[%s1329_s16 + $0x44] sm:$0xf] %vm817_vm3, %v1061_v62 }
 0x10a   : > { %v538_v63 = vpop.f32.mrb[4].mxu0  ;;  %v602_v0 = vpop.f32.mrb[4].mxu1 }
 0x10b   : > { %v659_v1 = vmax.f32 %v538_v63, 0.0  ;;  %v675_v2 = vmax.f32 %v602_v0, 0.0  ;;  %v540_v3 = vpop.f32.mrb[5].mxu0  ;;  %v604_v4 = vpop.f32.mrb[5].mxu1 }
 0x10c   : > { %v541_v5 = vpop.f32.mrb[6].mxu0  ;;  %v605_v6 = vpop.f32.mrb[6].mxu1 }
 0x10d   : > { %v1046_v7 = vpack.c.bf16 %v659_v1, %v659_v1  ;;  %v1062_v8 = vpack.c.bf16 %v675_v2, %v675_v2  ;;  %v660_v9 = vmax.f32 %v541_v5, 0.0  ;;  %v676_v10 = vmax.f32 %v605_v6, 0.0  ;;  %v543_v11 = vpop.f32.mrb[7].mxu0  ;;  %v607_v12 = vpop.f32.mrb[7].mxu1 }
 0x10f   : > { %820 = vst.msk [vmem:[%s1329_s16 + $0x8] sm:$0xf] %vm817_vm3, %v1046_v7  ;;  %836 = vst.msk [vmem:[%s1329_s16 + $0x48] sm:$0xf] %vm817_vm3, %v1062_v8  ;;  %v1047_v13 = vpack.c.bf16 %v660_v9, %v660_v9  ;;  %v1063_v14 = vpack.c.bf16 %v676_v10, %v676_v10 }
 0x111   : > { %821 = vst.msk [vmem:[%s1329_s16 + $0xc] sm:$0xf] %vm817_vm3, %v1047_v13  ;;  %837 = vst.msk [vmem:[%s1329_s16 + $0x4c] sm:$0xf] %vm817_vm3, %v1063_v14 }
 0x112   : > { %v546_v15 = vpop.f32.mrb[8].mxu0  ;;  %v610_v16 = vpop.f32.mrb[8].mxu1 }
 0x113   : > { %v661_v17 = vmax.f32 %v546_v15, 0.0  ;;  %v677_v18 = vmax.f32 %v610_v16, 0.0  ;;  %v548_v19 = vpop.f32.mrb[9].mxu0  ;;  %v612_v20 = vpop.f32.mrb[9].mxu1 }
 0x114   : > { %v549_v21 = vpop.f32.mrb[10].mxu0  ;;  %v613_v22 = vpop.f32.mrb[10].mxu1 }
 0x115   : > { %v1048_v23 = vpack.c.bf16 %v661_v17, %v661_v17  ;;  %v1064_v24 = vpack.c.bf16 %v677_v18, %v677_v18  ;;  %v662_v25 = vmax.f32 %v549_v21, 0.0  ;;  %v678_v26 = vmax.f32 %v613_v22, 0.0  ;;  %v551_v27 = vpop.f32.mrb[11].mxu0  ;;  %v615_v28 = vpop.f32.mrb[11].mxu1 }
 0x117   : > { %822 = vst.msk [vmem:[%s1329_s16 + $0x10] sm:$0xf] %vm817_vm3, %v1048_v23  ;;  %838 = vst.msk [vmem:[%s1329_s16 + $0x50] sm:$0xf] %vm817_vm3, %v1064_v24  ;;  %v1049_v29 = vpack.c.bf16 %v662_v25, %v662_v25  ;;  %v1065_v30 = vpack.c.bf16 %v678_v26, %v678_v26 }
 0x119   : > { %823 = vst.msk [vmem:[%s1329_s16 + $0x14] sm:$0xf] %vm817_vm3, %v1049_v29  ;;  %839 = vst.msk [vmem:[%s1329_s16 + $0x54] sm:$0xf] %vm817_vm3, %v1065_v30 }
 0x11a   : > { %v554_v31 = vpop.f32.mrb[12].mxu0  ;;  %v618_v32 = vpop.f32.mrb[12].mxu1 }
 0x11b   : > { %v663_v33 = vmax.f32 %v554_v31, 0.0  ;;  %v679_v34 = vmax.f32 %v618_v32, 0.0  ;;  %v556_v35 = vpop.f32.mrb[13].mxu0  ;;  %v620_v36 = vpop.f32.mrb[13].mxu1 }
 0x11c   : > { %v557_v37 = vpop.f32.mrb[14].mxu0  ;;  %v621_v38 = vpop.f32.mrb[14].mxu1 }
 0x11d   : > { %v1050_v39 = vpack.c.bf16 %v663_v33, %v663_v33  ;;  %v1066_v40 = vpack.c.bf16 %v679_v34, %v679_v34  ;;  %v664_v41 = vmax.f32 %v557_v37, 0.0  ;;  %v680_v42 = vmax.f32 %v621_v38, 0.0  ;;  %v559_v43 = vpop.f32.mrb[15].mxu0  ;;  %v623_v44 = vpop.f32.mrb[15].mxu1 }
 0x11f   : > { %824 = vst.msk [vmem:[%s1329_s16 + $0x18] sm:$0xf] %vm817_vm3, %v1050_v39  ;;  %840 = vst.msk [vmem:[%s1329_s16 + $0x58] sm:$0xf] %vm817_vm3, %v1066_v40  ;;  %v1051_v45 = vpack.c.bf16 %v664_v41, %v664_v41  ;;  %v1067_v46 = vpack.c.bf16 %v680_v42, %v680_v42 }
 0x121   : > { %825 = vst.msk [vmem:[%s1329_s16 + $0x1c] sm:$0xf] %vm817_vm3, %v1051_v45  ;;  %841 = vst.msk [vmem:[%s1329_s16 + $0x5c] sm:$0xf] %vm817_vm3, %v1067_v46 }
 0x122   : > { %v562_v47 = vpop.f32.mrb[16].mxu0  ;;  %v626_v48 = vpop.f32.mrb[16].mxu1 }
 0x123   : > { %v665_v49 = vmax.f32 %v562_v47, 0.0  ;;  %v681_v50 = vmax.f32 %v626_v48, 0.0  ;;  %v564_v51 = vpop.f32.mrb[17].mxu0  ;;  %v628_v52 = vpop.f32.mrb[17].mxu1 }
 0x124   : > { %v565_v53 = vpop.f32.mrb[18].mxu0  ;;  %v629_v54 = vpop.f32.mrb[18].mxu1 }
 0x125   : > { %v1052_v55 = vpack.c.bf16 %v665_v49, %v665_v49  ;;  %v1068_v56 = vpack.c.bf16 %v681_v50, %v681_v50  ;;  %v666_v57 = vmax.f32 %v565_v53, 0.0  ;;  %v682_v58 = vmax.f32 %v629_v54, 0.0  ;;  %v567_v59 = vpop.f32.mrb[19].mxu0  ;;  %v631_v60 = vpop.f32.mrb[19].mxu1 }
 0x127   : > { %826 = vst.msk [vmem:[%s1329_s16 + $0x20] sm:$0xf] %vm817_vm3, %v1052_v55  ;;  %842 = vst.msk [vmem:[%s1329_s16 + $0x60] sm:$0xf] %vm817_vm3, %v1068_v56  ;;  %v1053_v61 = vpack.c.bf16 %v666_v57, %v666_v57  ;;  %v1069_v62 = vpack.c.bf16 %v682_v58, %v682_v58 }
 0x129   : > { %827 = vst.msk [vmem:[%s1329_s16 + $0x24] sm:$0xf] %vm817_vm3, %v1053_v61  ;;  %843 = vst.msk [vmem:[%s1329_s16 + $0x64] sm:$0xf] %vm817_vm3, %v1069_v62 }
 0x12a   : > { %v570_v63 = vpop.f32.mrb[20].mxu0  ;;  %v634_v0 = vpop.f32.mrb[20].mxu1 }
 0x12b   : > { %v667_v1 = vmax.f32 %v570_v63, 0.0  ;;  %v683_v2 = vmax.f32 %v634_v0, 0.0  ;;  %v572_v3 = vpop.f32.mrb[21].mxu0  ;;  %v636_v4 = vpop.f32.mrb[21].mxu1 }
 0x12c   : > { %v573_v5 = vpop.f32.mrb[22].mxu0  ;;  %v637_v6 = vpop.f32.mrb[22].mxu1 }
 0x12d   : > { %v1054_v7 = vpack.c.bf16 %v667_v1, %v667_v1  ;;  %v1070_v8 = vpack.c.bf16 %v683_v2, %v683_v2  ;;  %v668_v9 = vmax.f32 %v573_v5, 0.0  ;;  %v684_v10 = vmax.f32 %v637_v6, 0.0  ;;  %v575_v11 = vpop.f32.mrb[23].mxu0  ;;  %v639_v12 = vpop.f32.mrb[23].mxu1 }
 0x12f   : > { %828 = vst.msk [vmem:[%s1329_s16 + $0x28] sm:$0xf] %vm817_vm3, %v1054_v7  ;;  %844 = vst.msk [vmem:[%s1329_s16 + $0x68] sm:$0xf] %vm817_vm3, %v1070_v8  ;;  %v1055_v13 = vpack.c.bf16 %v668_v9, %v668_v9  ;;  %v1071_v14 = vpack.c.bf16 %v684_v10, %v684_v10 }
 0x131   : > { %829 = vst.msk [vmem:[%s1329_s16 + $0x2c] sm:$0xf] %vm817_vm3, %v1055_v13  ;;  %845 = vst.msk [vmem:[%s1329_s16 + $0x6c] sm:$0xf] %vm817_vm3, %v1071_v14 }
 0x132   : > { %v578_v15 = vpop.f32.mrb[24].mxu0  ;;  %v642_v16 = vpop.f32.mrb[24].mxu1 }
 0x133   : > { %v669_v17 = vmax.f32 %v578_v15, 0.0  ;;  %v685_v18 = vmax.f32 %v642_v16, 0.0  ;;  %v580_v19 = vpop.f32.mrb[25].mxu0  ;;  %v644_v20 = vpop.f32.mrb[25].mxu1 }
 0x134   : > { %v581_v21 = vpop.f32.mrb[26].mxu0  ;;  %v645_v22 = vpop.f32.mrb[26].mxu1 }
 0x135   : > { %v1056_v23 = vpack.c.bf16 %v669_v17, %v669_v17  ;;  %v1072_v24 = vpack.c.bf16 %v685_v18, %v685_v18  ;;  %v670_v25 = vmax.f32 %v581_v21, 0.0  ;;  %v686_v26 = vmax.f32 %v645_v22, 0.0  ;;  %v583_v27 = vpop.f32.mrb[27].mxu0  ;;  %v647_v28 = vpop.f32.mrb[27].mxu1 }
 0x137   : > { %830 = vst.msk [vmem:[%s1329_s16 + $0x30] sm:$0xf] %vm817_vm3, %v1056_v23  ;;  %846 = vst.msk [vmem:[%s1329_s16 + $0x70] sm:$0xf] %vm817_vm3, %v1072_v24  ;;  %v1057_v29 = vpack.c.bf16 %v670_v25, %v670_v25  ;;  %v1073_v30 = vpack.c.bf16 %v686_v26, %v686_v26 }
 0x139   : > { %831 = vst.msk [vmem:[%s1329_s16 + $0x34] sm:$0xf] %vm817_vm3, %v1057_v29  ;;  %847 = vst.msk [vmem:[%s1329_s16 + $0x74] sm:$0xf] %vm817_vm3, %v1073_v30 }
 0x13a   : > { %v586_v31 = vpop.f32.mrb[28].mxu0  ;;  %v650_v32 = vpop.f32.mrb[28].mxu1 }
 0x13b   : > { %v671_v33 = vmax.f32 %v586_v31, 0.0  ;;  %v687_v34 = vmax.f32 %v650_v32, 0.0  ;;  %v588_v35 = vpop.f32.mrb[29].mxu0  ;;  %v652_v36 = vpop.f32.mrb[29].mxu1 }
 0x13c   : > { %v589_v37 = vpop.f32.mrb[30].mxu0  ;;  %v653_v38 = vpop.f32.mrb[30].mxu1 }
 0x13d   : > { %v1058_v39 = vpack.c.bf16 %v671_v33, %v671_v33  ;;  %v1074_v40 = vpack.c.bf16 %v687_v34, %v687_v34  ;;  %v672_v41 = vmax.f32 %v589_v37, 0.0  ;;  %v688_v42 = vmax.f32 %v653_v38, 0.0  ;;  %v591_v43 = vpop.f32.mrb[31].mxu0  ;;  %v655_v44 = vpop.f32.mrb[31].mxu1 }
 0x13f   : > { %832 = vst.msk [vmem:[%s1329_s16 + $0x38] sm:$0xf] %vm817_vm3, %v1058_v39  ;;  %848 = vst.msk [vmem:[%s1329_s16 + $0x78] sm:$0xf] %vm817_vm3, %v1074_v40  ;;  %v1059_v45 = vpack.c.bf16 %v672_v41, %v672_v41  ;;  %v1075_v46 = vpack.c.bf16 %v688_v42, %v688_v42 }
 0x141   : > { %833 = vst.msk [vmem:[%s1329_s16 + $0x3c] sm:$0xf] %vm817_vm3, %v1059_v45  ;;  %849 = vst.msk [vmem:[%s1329_s16 + $0x7c] sm:$0xf] %vm817_vm3, %v1075_v46 }
 0x142 PF: > { %s12_s11 = sadd.s32 1, %s1202_s11   ;;  %s1407_s9 = smov %s1198_s10 }
 0x143   : > { %p9_p5 = scmp.ge.s32.totalorder %s12_s11, 4   ;;  %s1408_s10 = smov %s1410_s12 }
 0x145   :  { %11 = sbr.rel (!%p9_p5) target bundleno = 2 (0x2), region = 61 }

// kernel: resnet50_forward.57
= control target key start
LH: loop header
LB: loop body
LE: loop exit
PB: predicated region body
PF: predicated region fallthrough
CT: control target
= control target key end

     0   :  { %vm81_vm0 = vsmask.f32 3328  ;;  %vm82_vm1 = vsmask.f32 7440  ;;  %vm1014_vm3 = vcmask 519168   ;;  %s1930_s0 = inlined_call_operand.vmem [shape: bf16[2,9,9,64], index: 0, kind: input, shape index: {}]   ;;  %s1931_s1 = inlined_call_operand.vmem [shape: bf16[2,9,9,64], index: 1, kind: input, shape index: {}]   ;;  %s1932_s2 = inlined_call_operand.vmem [shape: bf16[2,9,9,64], index: 2, kind: input, shape index: {}]   ;;  %s1933_s3 = inlined_call_operand.vmem [shape: bf16[2,9,9,64], index: 3, kind: input, shape index: {}]   ;;  %s1934_s4 = inlined_call_operand.vmem [shape: bf16[2,8,8,64], index: 4, kind: output, shape index: {}]  }
   0x1   :  { %v17_v0 = vld [vmem:[%s1930_s0] sm:$0xf]  ;;  %v65_v1 = vld [vmem:[%s1930_s0 + $0x4] sm:$0x1]  ;;  %v1126_v13 = vld [vmem:[%s1930_s0 + $0x8] sm:$0xf] }
   0x2   :  { %v85_v2 = vshrl.u32 %v17_v0, 16  ;;  %v88_v3 = vshll.u32 %v17_v0, 16  ;;  %v94_v4 = vshll.u32 %v65_v1, 16  ;;  %v340_v5 = vld [vmem:[%s1932_s2] sm:$0xf]  ;;  %v759_v19 = vshrl.u32 %v1126_v13, 16  ;;  %vm1138_vm2 = vmor %vm81_vm0, %vm82_vm1 }
   0x3   :  { %v33_v6 = vld [vmem:[%s1931_s1] sm:$0xf]  ;;  %v404_v7 = vld [vmem:[%s1932_s2 + $0x4] sm:$0x1]  ;;  %v421_v8 = vshrl.u32 %v340_v5, 16  ;;  %v424_v9 = vshll.u32 %v340_v5, 16 }
   0x4   :  { %v87_v10 = vrot.slane %v85_v2, 4  ;;  %v90_v11 = vrot.slane %v88_v3, 5  ;;  %v430_v12 = vshll.u32 %v404_v7, 16  ;;  %v1067_v16 = vld [vmem:[%s1930_s0 + $0xc] sm:$0x1]  ;;  %v96_v18 = vrot.slane %v94_v4, 5 }
   0x5   :  { %v423_v14 = vrot.slane %v421_v8, 4  ;;  %v426_v15 = vrot.slane %v424_v9, 5  ;;  %v762_v20 = vshll.u32 %v1126_v13, 16  ;;  %v18_v21 = vld [vmem:[%s1930_s0 + $0x8] sm:$0xf]  ;;  %v49_v22 = vmax.bf16 %v33_v6, %v17_v0 }
   0x6   :  { %v91_v17 = vor.u32 %v90_v11, %v87_v10  ;;  %v768_v25 = vshll.u32 %v1067_v16, 16  ;;  %v34_v26 = vld [vmem:[%s1931_s1 + $0x8] sm:$0xf]  ;;  %v66_v27 = vld [vmem:[%s1930_s0 + $0xc] sm:$0x1]  ;;  %v99_v28 = vshrl.u32 %v18_v21, 16 }
   0x7   :  { %v427_v24 = vor.u32 %v426_v15, %v423_v14  ;;  %v432_v30 = vrot.slane %v430_v12, 5  ;;  %v761_v31 = vrot.slane %v759_v19, 4  ;;  %v764_v32 = vrot.slane %v762_v20, 5  ;;  %v1151_v33 = vld [vmem:[%s1932_s2 + $0x8] sm:$0xf] }
   0x8   :  { %v92_v29 = vrot.slane %v91_v17, 4  ;;  %v50_v35 = vmax.bf16 %v34_v26, %v18_v21  ;;  %v101_v36 = vrot.slane %v99_v28, 4  ;;  %v102_v37 = vshll.u32 %v18_v21, 16  ;;  %v405_v41 = vld [vmem:[%s1932_s2 + $0xc] sm:$0x1] }
   0x9   :  { %v428_v34 = vrot.slane %v427_v24, 4  ;;  %v765_v39 = vor.u32 %v764_v32, %v761_v31  ;;  %v108_v40 = vshll.u32 %v66_v27, 16  ;;  %v435_v42 = vshrl.u32 %v1151_v33, 16  ;;  %v1162_v43 = vld [vmem:[%s1930_s0 + $0x10] sm:$0xf] }
   0xa   :  { %v97_v38 = vsel %vm1138_vm2, %v92_v29, %v96_v18  ;;  %v770_v45 = vrot.slane %v768_v25, 5  ;;  %v104_v46 = vrot.slane %v102_v37, 5  ;;  %v438_v47 = vshll.u32 %v1151_v33, 16  ;;  %v1068_v48 = vld [vmem:[%s1930_s0 + $0x14] sm:$0x1] }
   0xb   :  { %v324_v44 = vmax.bf16 %v97_v38, %v49_v22  ;;  %v372_v49 = vld [vmem:[%s1933_s3] sm:$0xf]  ;;  %v766_v50 = vrot.slane %v765_v39, 4  ;;  %v110_v51 = vrot.slane %v108_v40, 5  ;;  %v437_v52 = vrot.slane %v435_v42, 4 }
   0xc   :  { %v444_v53 = vshll.u32 %v405_v41, 16  ;;  %v105_v55 = vor.u32 %v104_v46, %v101_v36  ;;  %v440_v56 = vrot.slane %v438_v47, 5  ;;  %v773_v57 = vshrl.u32 %v1162_v43, 16  ;;  %v1175_v58 = vld [vmem:[%s1930_s0 + $0x10] sm:$0xf] }
   0xd   :  { %v356_v54 = vmax.bf16 %v340_v5, %v324_v44  ;;  %v433_v59 = vsel %vm1138_vm2, %v428_v34, %v432_v30  ;;  %v776_v61 = vshll.u32 %v1162_v43, 16  ;;  %v782_v62 = vshll.u32 %v1068_v48, 16  ;;  %v67_v3 = vld [vmem:[%s1930_s0 + $0x14] sm:$0x1]  ;;  %v1191_v8 = vld [vmem:[%s1932_s2 + $0x10] sm:$0xf] }
   0xe   :  { %v446_v60 = vrot.slane %v444_v53, 5  ;;  %v106_v0 = vrot.slane %v105_v55, 4  ;;  %v441_v1 = vor.u32 %v440_v56, %v437_v52  ;;  %v775_v2 = vrot.slane %v773_v57, 4  ;;  %v1051_v10 = vld [vmem:[%s1931_s1 + $0x8] sm:$0xf] }
   0xf   :  { %v388_v63 = vmax.bf16 %v372_v49, %v356_v54  ;;  %v771_v4 = vsel %vm1138_vm2, %v766_v50, %v770_v45  ;;  %v778_v5 = vrot.slane %v776_v61, 5  ;;  %v1185_v6 = vrot.slane %v782_v62, 5  ;;  %v373_v16 = vld [vmem:[%s1933_s3 + $0x8] sm:$0xf]  ;;  %v406_v20 = vld [vmem:[%s1932_s2 + $0x14] sm:$0x1] }
  0x10   :  { %v113_v7 = vshrl.u32 %v1175_v58, 16  ;;  %v111_v11 = vsel %vm1138_vm2, %v106_v0, %v110_v51  ;;  %v442_v12 = vrot.slane %v441_v1, 4  ;;  %v116_v14 = vshll.u32 %v1175_v58, 16  ;;  %v35_v24 = vld [vmem:[%s1931_s1 + $0x10] sm:$0xf] }
  0x11   :  { %v660_v9 = vmax.bf16 %v433_v59, %v388_v63  ;;  %v325_v15 = vmax.bf16 %v111_v11, %v50_v35  ;;  %v779_v17 = vor.u32 %v778_v5, %v775_v2  ;;  %v122_v19 = vshll.u32 %v67_v3, 16  ;;  %v1215_v27 = vld [vmem:[%s1930_s0 + $0x18] sm:$0xf]  ;;  %v1069_v36 = vld [vmem:[%s1930_s0 + $0x1c] sm:$0x1] }
  0x12   :  { %v115_v18 = vrot.slane %v113_v7, 4  ;;  %v447_v22 = vsel %vm1138_vm2, %v442_v12, %v446_v60  ;;  %v118_v25 = vrot.slane %v116_v14, 5  ;;  %v449_v26 = vshrl.u32 %v1191_v8, 16  ;;  %v1236_v46 = vld [vmem:[%s1931_s1 + $0x18] sm:$0xf] }
  0x13   :  { %v693_v21 = vmax.bf16 %v1126_v13, %v660_v9  ;;  %v357_v28 = vmax.bf16 %v1151_v33, %v325_v15  ;;  %v780_v29 = vrot.slane %v779_v17, 4  ;;  %v124_v30 = vrot.slane %v122_v19, 5  ;;  %v1227_v33 = vld [vmem:[%s1930_s0 + $0x18] sm:$0xf]  ;;  %v1052_v48 = vld [vmem:[%s1931_s1 + $0x10] sm:$0xf] }
  0x14   :  { %v452_v13 = vshll.u32 %v1191_v8, 16  ;;  %v119_v32 = vor.u32 %v118_v25, %v115_v18  ;;  %v451_v34 = vrot.slane %v449_v26, 4  ;;  %v458_v35 = vshll.u32 %v406_v20, 16  ;;  %v68_v52 = vld [vmem:[%s1930_s0 + $0x1c] sm:$0x1] }
  0x15   :  { %v726_v31 = vmax.bf16 %v1051_v10, %v693_v21  ;;  %v389_v37 = vmax.bf16 %v373_v16, %v357_v28  ;;  %v51_v38 = vmax.bf16 %v35_v24, %v1175_v58  ;;  %v787_v40 = vshrl.u32 %v1215_v27, 16  ;;  %v1254_v57 = vld [vmem:[%s1932_s2 + $0x18] sm:$0xf]  ;;  %v374_v60 = vld [vmem:[%s1933_s3 + $0x10] sm:$0xf] }
  0x16   :  { %v454_v39 = vrot.slane %v452_v13, 5  ;;  %v785_v42 = vsel %vm1138_vm2, %v780_v29, %v1185_v6  ;;  %v120_v44 = vrot.slane %v119_v32, 4  ;;  %v790_v45 = vshll.u32 %v1215_v27, 16  ;;  %v407_v3 = vld [vmem:[%s1932_s2 + $0x1c] sm:$0x1] }
  0x17   :  { %v998_v41 = vmax.bf16 %v771_v4, %v726_v31  ;;  %v661_v47 = vmax.bf16 %v447_v22, %v389_v37  ;;  %v789_v50 = vrot.slane %v787_v40, 4  ;;  %v796_v51 = vshll.u32 %v1069_v36, 16  ;;  %v1271_v7 = vld [vmem:[%s1930_s0 + $0x20] sm:$0xf]  ;;  %v1070_v14 = vld [vmem:[%s1930_s0 + $0x24] sm:$0x1] }
  0x18   :  { %v455_v49 = vor.u32 %v454_v39, %v451_v34  ;;  %v125_v53 = vsel %vm1138_vm2, %v120_v44, %v124_v30  ;;  %v460_v54 = vrot.slane %v458_v35, 5  ;;  %v792_v55 = vrot.slane %v790_v45, 5  ;;  %v1283_v22 = vld [vmem:[%s1930_s0 + $0x20] sm:$0xf]  ;;  %v69_v29 = vld [vmem:[%s1930_s0 + $0x24] sm:$0x1] }
  0x19   :  { %1015 = vst.msk [vmem:[%s1934_s4] sm:$0xf] %vm1014_vm3, %v998_v41  ;;  %v127_v56 = vshrl.u32 %v1227_v33, 16  ;;  %v694_v58 = vmax.bf16 %v1162_v43, %v661_v47  ;;  %v326_v59 = vmax.bf16 %v125_v53, %v51_v38  ;;  %v52_v62 = vmax.bf16 %v1236_v46, %v1227_v33  ;;  %v1053_v30 = vld [vmem:[%s1931_s1 + $0x18] sm:$0xf] }
  0x1a   :  { %v456_v61 = vrot.slane %v455_v49, 4  ;;  %v793_v63 = vor.u32 %v792_v55, %v789_v50  ;;  %v130_v1 = vshll.u32 %v1227_v33, 16  ;;  %v136_v2 = vshll.u32 %v68_v52, 16  ;;  %v1305_v39 = vld [vmem:[%s1932_s2 + $0x20] sm:$0xf] }
  0x1b   :  { %v129_v0 = vrot.slane %v127_v56, 4  ;;  %v727_v4 = vmax.bf16 %v1052_v48, %v694_v58  ;;  %v358_v43 = vmax.bf16 %v1191_v8, %v326_v59  ;;  %v798_v5 = vrot.slane %v796_v51, 5  ;;  %v375_v33 = vld [vmem:[%s1933_s3 + $0x18] sm:$0xf]  ;;  %v408_v48 = vld [vmem:[%s1932_s2 + $0x24] sm:$0x1] }
  0x1c   :  { %v463_v6 = vshrl.u32 %v1254_v57, 16  ;;  %v461_v9 = vsel %vm1138_vm2, %v456_v61, %v460_v54  ;;  %v794_v10 = vrot.slane %v793_v63, 4  ;;  %v132_v11 = vrot.slane %v130_v1, 5  ;;  %v1319_v49 = vld [vmem:[%s1930_s0 + $0x28] sm:$0xf] }
  0x1d   :  { %v466_v12 = vshll.u32 %v1254_v57, 16  ;;  %v999_v8 = vmax.bf16 %v785_v42, %v727_v4  ;;  %v390_v15 = vmax.bf16 %v374_v60, %v358_v43  ;;  %v472_v17 = vshll.u32 %v407_v3, 16  ;;  %v37_v51 = vld [vmem:[%s1931_s1 + $0x20] sm:$0xf]  ;;  %v1071_v60 = vld [vmem:[%s1930_s0 + $0x2c] sm:$0x1] }
  0x1e   :  { %v465_v16 = vrot.slane %v463_v6, 4  ;;  %v133_v18 = vor.u32 %v132_v11, %v129_v0  ;;  %v138_v19 = vrot.slane %v136_v2, 5  ;;  %v801_v21 = vshrl.u32 %v1271_v7, 16  ;;  %v22_v4 = vld [vmem:[%s1930_s0 + $0x28] sm:$0xf] }
  0x1f   :  { %v468_v20 = vrot.slane %v466_v12, 5  ;;  %1016 = vst.msk [vmem:[%s1934_s4 + $0x4] sm:$0xf] %vm1014_vm3, %v999_v8  ;;  %v662_v24 = vmax.bf16 %v461_v9, %v390_v15  ;;  %v799_v25 = vsel %vm1138_vm2, %v794_v10, %v798_v5  ;;  %v804_v26 = vshll.u32 %v1271_v7, 16  ;;  %v70_v8 = vld [vmem:[%s1930_s0 + $0x2c] sm:$0x1] }
  0x20   :  { %v810_v28 = vshll.u32 %v1070_v14, 16  ;;  %v134_v13 = vrot.slane %v133_v18, 4  ;;  %v474_v32 = vrot.slane %v472_v17, 5  ;;  %v803_v34 = vrot.slane %v801_v21, 4  ;;  %v1351_v15 = vld [vmem:[%s1932_s2 + $0x28] sm:$0xf] }
  0x21   :  { %v469_v31 = vor.u32 %v468_v20, %v465_v16  ;;  %v695_v35 = vmax.bf16 %v1215_v27, %v662_v24  ;;  %v806_v36 = vrot.slane %v804_v26, 5  ;;  %v141_v38 = vshrl.u32 %v1283_v22, 16  ;;  %v1054_v16 = vld [vmem:[%s1931_s1 + $0x20] sm:$0xf] }
  0x22   :  { %v1299_v37 = vrot.slane %v810_v28, 5  ;;  %v139_v40 = vsel %vm1138_vm2, %v134_v13, %v138_v19  ;;  %v144_v27 = vshll.u32 %v1283_v22, 16  ;;  %v150_v42 = vshll.u32 %v69_v29, 16  ;;  %v376_v24 = vld [vmem:[%s1933_s3 + $0x20] sm:$0xf] }
  0x23   :  { %v470_v41 = vrot.slane %v469_v31, 4  ;;  %v728_v44 = vmax.bf16 %v1053_v30, %v695_v35  ;;  %v327_v45 = vmax.bf16 %v139_v40, %v52_v62  ;;  %v807_v46 = vor.u32 %v806_v36, %v803_v34  ;;  %v38_v28 = vld [vmem:[%s1931_s1 + $0x28] sm:$0xf]  ;;  %v409_v31 = vld [vmem:[%s1932_s2 + $0x2c] sm:$0x1] }
  0x24   :  { %v143_v47 = vrot.slane %v141_v38, 4  ;;  %v146_v52 = vrot.slane %v144_v27, 5  ;;  %v152_v53 = vrot.slane %v150_v42, 5  ;;  %v477_v54 = vshrl.u32 %v1305_v39, 16  ;;  %v1072_v27 = vld [vmem:[%s1930_s0 + $0x34] sm:$0x1] }
  0x25   :  { %v475_v50 = vsel %vm1138_vm2, %v470_v41, %v474_v32  ;;  %v1000_v55 = vmax.bf16 %v799_v25, %v728_v44  ;;  %v359_v56 = vmax.bf16 %v1254_v57, %v327_v45  ;;  %v808_v58 = vrot.slane %v807_v46, 4  ;;  %v1386_v46 = vld [vmem:[%s1930_s0 + $0x30] sm:$0xf] }
  0x26   :  { %v480_v59 = vshll.u32 %v1305_v39, 16  ;;  %v147_v61 = vor.u32 %v146_v52, %v143_v47  ;;  %v479_v62 = vrot.slane %v477_v54, 4  ;;  %v486_v63 = vshll.u32 %v408_v48, 16  ;;  %v1393_v52 = vld [vmem:[%s1931_s1 + $0x30] sm:$0xf] }
  0x27   :  { %v815_v0 = vshrl.u32 %v1319_v49, 16  ;;  %1017 = vst.msk [vmem:[%s1934_s4 + $0x8] sm:$0xf] %vm1014_vm3, %v1000_v55  ;;  %v391_v1 = vmax.bf16 %v375_v33, %v359_v56  ;;  %v53_v57 = vmax.bf16 %v37_v51, %v1283_v22  ;;  %v818_v3 = vshll.u32 %v1319_v49, 16 }
  0x28   :  { %v482_v2 = vrot.slane %v480_v59, 5  ;;  %v813_v43 = vsel %vm1138_vm2, %v808_v58, %v1299_v37  ;;  %v148_v5 = vrot.slane %v147_v61, 4  ;;  %v824_v9 = vshll.u32 %v1071_v60, 16  ;;  %v1377_v37 = vld [vmem:[%s1930_s0 + $0x30] sm:$0xf] }
  0x29   :  { %v817_v6 = vrot.slane %v815_v0, 4  ;;  %v663_v10 = vmax.bf16 %v475_v50, %v391_v1  ;;  %v488_v12 = vrot.slane %v486_v63, 5  ;;  %v820_v14 = vrot.slane %v818_v3, 5  ;;  %v71_v58 = vld [vmem:[%s1930_s0 + $0x34] sm:$0x1] }
  0x2a   :  { %v483_v11 = vor.u32 %v482_v2, %v479_v62  ;;  %v153_v17 = vsel %vm1138_vm2, %v148_v5, %v152_v53  ;;  %v1358_v18 = vrot.slane %v824_v9, 5  ;;  %v155_v19 = vshrl.u32 %v22_v4, 16  ;;  %v1055_v59 = vld [vmem:[%s1931_s1 + $0x28] sm:$0xf]  ;;  %v1413_v0 = vld [vmem:[%s1932_s2 + $0x30] sm:$0xf] }
  0x2b   :  { %v158_v20 = vshll.u32 %v22_v4, 16  ;;  %v696_v21 = vmax.bf16 %v1271_v7, %v663_v10  ;;  %v328_v22 = vmax.bf16 %v153_v17, %v53_v57  ;;  %v821_v26 = vor.u32 %v820_v14, %v817_v6 }
  0x2c   :  { %v484_v25 = vrot.slane %v483_v11, 4  ;;  %v157_v29 = vrot.slane %v155_v19, 4  ;;  %v164_v13 = vshll.u32 %v70_v8, 16  ;;  %v491_v7 = vshrl.u32 %v1351_v15, 16  ;;  %v1431_v8 = vld [vmem:[%s1930_s0 + $0x38] sm:$0xf] }
  0x2d   :  { %v160_v30 = vrot.slane %v158_v20, 5  ;;  %v729_v32 = vmax.bf16 %v1054_v16, %v696_v21  ;;  %v360_v34 = vmax.bf16 %v1305_v39, %v328_v22  ;;  %v822_v36 = vrot.slane %v821_v26, 4 }
  0x2e   :  { %v489_v35 = vsel %vm1138_vm2, %v484_v25, %v488_v12  ;;  %v166_v40 = vrot.slane %v164_v13, 5  ;;  %v493_v33 = vrot.slane %v491_v7, 4  ;;  %v494_v41 = vshll.u32 %v1351_v15, 16 }
  0x2f   :  { %v161_v38 = vor.u32 %v160_v30, %v157_v29  ;;  %v1001_v42 = vmax.bf16 %v813_v43, %v729_v32  ;;  %v392_v39 = vmax.bf16 %v376_v24, %v360_v34  ;;  %v54_v44 = vmax.bf16 %v38_v28, %v22_v4  ;;  %v377_v4 = vld [vmem:[%s1933_s3 + $0x28] sm:$0xf]  ;;  %v1443_v30 = vld [vmem:[%s1930_s0 + $0x38] sm:$0xf]  ;;  %v72_v34 = vld [vmem:[%s1930_s0 + $0x3c] sm:$0x1] }
  0x30   :  { %v500_v45 = vshll.u32 %v409_v31, 16  ;;  %v496_v48 = vrot.slane %v494_v41, 5  ;;  %v829_v50 = vshrl.u32 %v1377_v37, 16  ;;  %v832_v51 = vshll.u32 %v1377_v37, 16 }
  0x31   :  { %v162_v47 = vrot.slane %v161_v38, 4  ;;  %1018 = vst.msk [vmem:[%s1934_s4 + $0xc] sm:$0xf] %vm1014_vm3, %v1001_v42  ;;  %v664_v53 = vmax.bf16 %v489_v35, %v392_v39  ;;  %v827_v54 = vsel %vm1138_vm2, %v822_v36, %v1358_v18  ;;  %v838_v56 = vshll.u32 %v1072_v27, 16  ;;  %v1056_v35 = vld [vmem:[%s1931_s1 + $0x30] sm:$0xf] }
  0x32   :  { %v502_v55 = vrot.slane %v500_v45, 5  ;;  %v497_v61 = vor.u32 %v496_v48, %v493_v33  ;;  %v831_v62 = vrot.slane %v829_v50, 4  ;;  %v834_v63 = vrot.slane %v832_v51, 5 }
  0x33   :  { %v167_v60 = vsel %vm1138_vm2, %v162_v47, %v166_v40  ;;  %v697_v1 = vmax.bf16 %v1319_v49, %v664_v53  ;;  %v55_v2 = vmax.bf16 %v1393_v52, %v1386_v46  ;;  %v169_v3 = vshrl.u32 %v1386_v46, 16  ;;  %v410_v49 = vld [vmem:[%s1932_s2 + $0x34] sm:$0x1] }
  0x34   :  { %v329_v57 = vmax.bf16 %v167_v60, %v54_v44  ;;  %v498_v43 = vrot.slane %v497_v61, 4  ;;  %v835_v5 = vor.u32 %v834_v63, %v831_v62  ;;  %v172_v6 = vshll.u32 %v1386_v46, 16  ;;  %v1464_v44 = vld [vmem:[%s1932_s2 + $0x38] sm:$0xf]  ;;  %v378_v46 = vld [vmem:[%s1933_s3 + $0x30] sm:$0xf] }
  0x35   :  { %v178_v9 = vshll.u32 %v71_v58, 16  ;;  %v730_v10 = vmax.bf16 %v1055_v59, %v697_v1  ;;  %v171_v12 = vrot.slane %v169_v3, 4  ;;  %v505_v14 = vshrl.u32 %v1413_v0, 16  ;;  %v1483_v61 = vld [vmem:[%s1930_s0 + $0x40] sm:$0xf] }
  0x36   :  { %v361_v11 = vmax.bf16 %v1351_v15, %v329_v57  ;;  %v503_v16 = vsel %vm1138_vm2, %v498_v43, %v502_v55  ;;  %v836_v17 = vrot.slane %v835_v5, 4  ;;  %v840_v18 = vrot.slane %v838_v56, 5  ;;  %v1073_v15 = vld [vmem:[%s1930_s0 + $0x3c] sm:$0x1] }
  0x37   :  { %v174_v19 = vrot.slane %v172_v6, 5  ;;  %v1002_v20 = vmax.bf16 %v827_v54, %v730_v10  ;;  %v507_v22 = vrot.slane %v505_v14, 4  ;;  %v508_v24 = vshll.u32 %v1413_v0, 16  ;;  %v40_v54 = vld [vmem:[%s1931_s1 + $0x38] sm:$0xf] }
  0x38   :  { %v393_v21 = vmax.bf16 %v377_v4, %v361_v11  ;;  %v180_v26 = vrot.slane %v178_v9, 5  ;;  %v514_v28 = vshll.u32 %v410_v49, 16  ;;  %v843_v29 = vshrl.u32 %v1431_v8, 16  ;;  %v411_v55 = vld [vmem:[%s1932_s2 + $0x3c] sm:$0x1] }
  0x39   :  { %v175_v25 = vor.u32 %v174_v19, %v171_v12  ;;  %1019 = vst.msk [vmem:[%s1934_s4 + $0x10] sm:$0xf] %vm1014_vm3, %v1002_v20  ;;  %v510_v31 = vrot.slane %v508_v24, 5  ;;  %v846_v7 = vshll.u32 %v1431_v8, 16  ;;  %v852_v32 = vshll.u32 %v1073_v15, 16 }
  0x3a   :  { %v665_v13 = vmax.bf16 %v503_v16, %v393_v21  ;;  %v841_v36 = vsel %vm1138_vm2, %v836_v17, %v840_v18  ;;  %v516_v40 = vrot.slane %v514_v28, 5  ;;  %v845_v33 = vrot.slane %v843_v29, 4  ;;  %v1502_v11 = vld [vmem:[%s1930_s0 + $0x48] sm:$0xf]  ;;  %v73_v17 = vld [vmem:[%s1930_s0 + $0x4c] sm:$0x1] }
  0x3b   :  { %v176_v38 = vrot.slane %v175_v25, 4  ;;  %v511_v27 = vor.u32 %v510_v31, %v507_v22  ;;  %v848_v42 = vrot.slane %v846_v7, 5  ;;  %v1459_v39 = vrot.slane %v852_v32, 5  ;;  %v1513_v21 = vld [vmem:[%s1932_s2 + $0x48] sm:$0xf] }
  0x3c   :  { %v698_v41 = vmax.bf16 %v1377_v37, %v665_v13  ;;  %v183_v47 = vshrl.u32 %v1443_v30, 16  ;;  %v186_v37 = vshll.u32 %v1443_v30, 16  ;;  %v192_v48 = vshll.u32 %v72_v34, 16  ;;  %v1057_v22 = vld [vmem:[%s1931_s1 + $0x38] sm:$0xf] }
  0x3d   :  { %v181_v45 = vsel %vm1138_vm2, %v176_v38, %v180_v26  ;;  %v512_v52 = vrot.slane %v511_v27, 4  ;;  %v849_v53 = vor.u32 %v848_v42, %v845_v33  ;;  %v519_v60 = vshrl.u32 %v1464_v44, 16  ;;  %v41_v31 = vld [vmem:[%s1931_s1 + $0x48] sm:$0xf]  ;;  %v379_v32 = vld [vmem:[%s1933_s3 + $0x38] sm:$0xf] }
  0x3e   :  { %v731_v50 = vmax.bf16 %v1056_v35, %v698_v41  ;;  %v330_v51 = vmax.bf16 %v181_v45, %v55_v2  ;;  %v185_v56 = vrot.slane %v183_v47, 4  ;;  %v188_v58 = vrot.slane %v186_v37, 5  ;;  %v1074_v2 = vld [vmem:[%s1930_s0 + $0x44] sm:$0x1]  ;;  %v412_v27 = vld [vmem:[%s1932_s2 + $0x4c] sm:$0x1] }
  0x3f   :  { %v194_v59 = vrot.slane %v192_v48, 5  ;;  %v517_v1 = vsel %vm1138_vm2, %v512_v52, %v516_v40  ;;  %v850_v57 = vrot.slane %v849_v53, 4  ;;  %v521_v4 = vrot.slane %v519_v60, 4  ;;  %v1539_v42 = vld [vmem:[%s1930_s0 + $0x50] sm:$0xf] }
  0x40   :  { %v1003_v62 = vmax.bf16 %v841_v36, %v731_v50  ;;  %v362_v63 = vmax.bf16 %v1413_v0, %v330_v51  ;;  %v189_v3 = vor.u32 %v188_v58, %v185_v56  ;;  %v522_v43 = vshll.u32 %v1464_v44, 16  ;;  %v1551_v52 = vld [vmem:[%s1931_s1 + $0x50] sm:$0xf]  ;;  %v1058_v60 = vld [vmem:[%s1931_s1 + $0x40] sm:$0xf] }
  0x41   :  { %v528_v5 = vshll.u32 %v411_v55, 16  ;;  %v56_v0 = vmax.bf16 %v40_v54, %v1443_v30  ;;  %v857_v9 = vshrl.u32 %v1483_v61, 16  ;;  %v860_v10 = vshll.u32 %v1483_v61, 16  ;;  %v1558_v58 = vld [vmem:[%s1930_s0 + $0x50] sm:$0xf] }
  0x42   :  { %1020 = vst.msk [vmem:[%s1934_s4 + $0x14] sm:$0xf] %vm1014_vm3, %v1003_v62  ;;  %v394_v6 = vmax.bf16 %v378_v46, %v362_v63  ;;  %v855_v12 = vsel %vm1138_vm2, %v850_v57, %v1459_v39  ;;  %v190_v49 = vrot.slane %v189_v3, 4  ;;  %v524_v14 = vrot.slane %v522_v43, 5  ;;  %v74_v43 = vld [vmem:[%s1930_s0 + $0x54] sm:$0x1] }
  0x43   :  { %v866_v16 = vshll.u32 %v1074_v2, 16  ;;  %v530_v19 = vrot.slane %v528_v5, 5  ;;  %v859_v15 = vrot.slane %v857_v9, 4  ;;  %v862_v20 = vrot.slane %v860_v10, 5  ;;  %v1578_v5 = vld [vmem:[%s1932_s2 + $0x50] sm:$0xf] }
  0x44   :  { %v666_v18 = vmax.bf16 %v517_v1, %v394_v6  ;;  %v195_v24 = vsel %vm1138_vm2, %v190_v49, %v194_v59  ;;  %v525_v25 = vor.u32 %v524_v14, %v521_v4  ;;  %v197_v28 = vshrl.u32 %v1502_v11, 16 }
  0x45   :  { %v1520_v26 = vrot.slane %v866_v16, 5  ;;  %v331_v30 = vmax.bf16 %v195_v24, %v56_v0  ;;  %v863_v13 = vor.u32 %v862_v20, %v859_v15  ;;  %v200_v7 = vshll.u32 %v1502_v11, 16  ;;  %v1595_v20 = vld [vmem:[%s1930_s0 + $0x58] sm:$0xf] }
  0x46   :  { %v699_v29 = vmax.bf16 %v1431_v8, %v666_v18  ;;  %v526_v34 = vrot.slane %v525_v25, 4  ;;  %v199_v35 = vrot.slane %v197_v28, 4  ;;  %v206_v36 = vshll.u32 %v73_v17, 16  ;;  %v413_v17 = vld [vmem:[%s1932_s2 + $0x54] sm:$0x1] }
  0x47   :  { %v533_v38 = vshrl.u32 %v1513_v21, 16  ;;  %v363_v8 = vmax.bf16 %v1464_v44, %v331_v30  ;;  %v864_v33 = vrot.slane %v863_v13, 4  ;;  %v202_v41 = vrot.slane %v200_v7, 5  ;;  %v1075_v44 = vld [vmem:[%s1930_s0 + $0x54] sm:$0x1] }
  0x48   :  { %v732_v40 = vmax.bf16 %v1057_v22, %v699_v29  ;;  %v531_v39 = vsel %vm1138_vm2, %v526_v34, %v530_v19  ;;  %v57_v45 = vmax.bf16 %v41_v31, %v1502_v11  ;;  %v536_v47 = vshll.u32 %v1513_v21, 16  ;;  %v1076_v28 = vld [vmem:[%s1930_s0 + $0x5c] sm:$0x1] }
  0x49   :  { %v535_v46 = vrot.slane %v533_v38, 4  ;;  %v395_v48 = vmax.bf16 %v379_v32, %v363_v8  ;;  %v203_v50 = vor.u32 %v202_v41, %v199_v35  ;;  %v208_v51 = vrot.slane %v206_v36, 5  ;;  %v27_v8 = vld [vmem:[%s1930_s0 + $0x58] sm:$0xf]  ;;  %v1059_v41 = vld [vmem:[%s1931_s1 + $0x50] sm:$0xf] }
  0x4a   :  { %v1004_v37 = vmax.bf16 %v855_v12, %v732_v40  ;;  %v538_v53 = vrot.slane %v536_v47, 5  ;;  %v542_v54 = vshll.u32 %v412_v27, 16  ;;  %v871_v55 = vshrl.u32 %v1539_v42, 16  ;;  %v380_v12 = vld [vmem:[%s1933_s3 + $0x48] sm:$0xf] }
  0x4b   :  { %v874_v56 = vshll.u32 %v1539_v42, 16  ;;  %v667_v59 = vmax.bf16 %v531_v39, %v395_v48  ;;  %v869_v62 = vsel %vm1138_vm2, %v864_v33, %v1520_v26  ;;  %v204_v63 = vrot.slane %v203_v50, 4  ;;  %v1626_v50 = vld [vmem:[%s1932_s2 + $0x58] sm:$0xf] }
  0x4c   :  { %1021 = vst.msk [vmem:[%s1934_s4 + $0x18] sm:$0xf] %vm1014_vm3, %v1004_v37  ;;  %v880_v1 = vshll.u32 %v1075_v44, 16  ;;  %v539_v57 = vor.u32 %v538_v53, %v535_v46  ;;  %v873_v2 = vrot.slane %v871_v55, 4  ;;  %v58_v4 = vmax.bf16 %v1551_v52, %v1558_v58  ;;  %v75_v46 = vld [vmem:[%s1930_s0 + $0x5c] sm:$0x1] }
  0x4d   :  { %v876_v3 = vrot.slane %v874_v56, 5  ;;  %v700_v6 = vmax.bf16 %v1483_v61, %v667_v59  ;;  %v209_v0 = vsel %vm1138_vm2, %v204_v63, %v208_v51  ;;  %v544_v9 = vrot.slane %v542_v54, 5  ;;  %v381_v53 = vld [vmem:[%s1933_s3 + $0x50] sm:$0xf] }
  0x4e   :  { %v211_v10 = vshrl.u32 %v1558_v58, 16  ;;  %v332_v11 = vmax.bf16 %v209_v0, %v57_v45  ;;  %v540_v49 = vrot.slane %v539_v57, 4  ;;  %v214_v16 = vshll.u32 %v1558_v58, 16 }
  0x4f   :  { %v877_v14 = vor.u32 %v876_v3, %v873_v2  ;;  %v733_v61 = vmax.bf16 %v1058_v60, %v700_v6  ;;  %v220_v19 = vshll.u32 %v74_v43, 16  ;;  %v547_v15 = vshrl.u32 %v1578_v5, 16  ;;  %v43_v60 = vld [vmem:[%s1931_s1 + $0x58] sm:$0xf]  ;;  %v1644_v3 = vld [vmem:[%s1930_s0 + $0x60] sm:$0xf] }
  0x50   :  { %v213_v18 = vrot.slane %v211_v10, 4  ;;  %v364_v22 = vmax.bf16 %v1513_v21, %v332_v11  ;;  %v882_v25 = vrot.slane %v880_v1, 5  ;;  %v216_v26 = vrot.slane %v214_v16, 5 }
  0x51   :  { %v878_v24 = vrot.slane %v877_v14, 4  ;;  %v1005_v29 = vmax.bf16 %v869_v62, %v733_v61  ;;  %v545_v30 = vsel %vm1138_vm2, %v540_v49, %v544_v9  ;;  %v549_v13 = vrot.slane %v547_v15, 4  ;;  %v1077_v9 = vld [vmem:[%s1930_s0 + $0x64] sm:$0x1] }
  0x52   :  { %v550_v31 = vshll.u32 %v1578_v5, 16  ;;  %v396_v7 = vmax.bf16 %v380_v12, %v364_v22  ;;  %v217_v32 = vor.u32 %v216_v26, %v213_v18  ;;  %v222_v34 = vrot.slane %v220_v19, 5  ;;  %v28_v22 = vld [vmem:[%s1930_s0 + $0x60] sm:$0xf] }
  0x53   :  { %v556_v35 = vshll.u32 %v413_v17, 16  ;;  %1022 = vst.msk [vmem:[%s1934_s4 + $0x1c] sm:$0xf] %vm1014_vm3, %v1005_v29  ;;  %v885_v36 = vshrl.u32 %v1595_v20, 16  ;;  %v888_v38 = vshll.u32 %v1595_v20, 16  ;;  %v894_v40 = vshll.u32 %v1076_v28, 16 }
  0x54   :  { %v552_v21 = vrot.slane %v550_v31, 5  ;;  %v668_v33 = vmax.bf16 %v545_v30, %v396_v7  ;;  %v883_v27 = vsel %vm1138_vm2, %v878_v24, %v882_v25  ;;  %v218_v39 = vrot.slane %v217_v32, 4  ;;  %v76_v29 = vld [vmem:[%s1930_s0 + $0x64] sm:$0x1]  ;;  %v1671_v30 = vld [vmem:[%s1932_s2 + $0x60] sm:$0xf] }
  0x55   :  { %v558_v45 = vrot.slane %v556_v35, 5  ;;  %v887_v44 = vrot.slane %v885_v36, 4  ;;  %v890_v37 = vrot.slane %v888_v38, 5  ;;  %v1621_v48 = vrot.slane %v894_v40, 5  ;;  %v382_v36 = vld [vmem:[%s1933_s3 + $0x58] sm:$0xf] }
  0x56   :  { %v553_v47 = vor.u32 %v552_v21, %v549_v13  ;;  %v701_v51 = vmax.bf16 %v1539_v42, %v668_v33  ;;  %v223_v52 = vsel %vm1138_vm2, %v218_v39, %v222_v34  ;;  %v225_v54 = vshrl.u32 %v27_v8, 16  ;;  %v414_v42 = vld [vmem:[%s1932_s2 + $0x5c] sm:$0x1]  ;;  %v1060_v13 = vld [vmem:[%s1931_s1 + $0x58] sm:$0xf] }
  0x57   :  { %v228_v55 = vshll.u32 %v27_v8, 16  ;;  %v333_v56 = vmax.bf16 %v223_v52, %v58_v4  ;;  %v891_v59 = vor.u32 %v890_v37, %v887_v44  ;;  %v234_v62 = vshll.u32 %v75_v46, 16  ;;  %v415_v44 = vld [vmem:[%s1932_s2 + $0x64] sm:$0x1]  ;;  %v1695_v37 = vld [vmem:[%s1930_s0 + $0x68] sm:$0xf] }
  0x58   :  { %v554_v58 = vrot.slane %v553_v47, 4  ;;  %v734_v63 = vmax.bf16 %v1059_v41, %v701_v51  ;;  %v227_v1 = vrot.slane %v225_v54, 4  ;;  %v561_v2 = vshrl.u32 %v1626_v50, 16  ;;  %v44_v41 = vld [vmem:[%s1931_s1 + $0x60] sm:$0xf] }
  0x59   :  { %v230_v57 = vrot.slane %v228_v55, 5  ;;  %v365_v4 = vmax.bf16 %v1578_v5, %v333_v56  ;;  %v892_v6 = vrot.slane %v891_v59, 4  ;;  %v236_v0 = vrot.slane %v234_v62, 5  ;;  %v1061_v59 = vld [vmem:[%s1931_s1 + $0x60] sm:$0xf] }
  0x5a   :  { %v559_v43 = vsel %vm1138_vm2, %v554_v58, %v558_v45  ;;  %v1006_v10 = vmax.bf16 %v883_v27, %v734_v63  ;;  %v563_v12 = vrot.slane %v561_v2, 4  ;;  %v564_v49 = vshll.u32 %v1626_v50, 16 }
  0x5b   :  { %v231_v11 = vor.u32 %v230_v57, %v227_v1  ;;  %v397_v14 = vmax.bf16 %v381_v53, %v365_v4  ;;  %v59_v16 = vmax.bf16 %v43_v60, %v27_v8  ;;  %v570_v17 = vshll.u32 %v414_v42, 16  ;;  %v1711_v1 = vld [vmem:[%s1930_s0 + $0x68] sm:$0xf] }
  0x5c   :  { %v899_v61 = vshrl.u32 %v1644_v3, 16  ;;  %1023 = vst.msk [vmem:[%s1934_s4 + $0x20] sm:$0xf] %vm1014_vm3, %v1006_v10  ;;  %v566_v18 = vrot.slane %v564_v49, 5  ;;  %v902_v19 = vshll.u32 %v1644_v3, 16  ;;  %v908_v15 = vshll.u32 %v1077_v9, 16 }
  0x5d   :  { %v232_v5 = vrot.slane %v231_v11, 4  ;;  %v669_v24 = vmax.bf16 %v559_v43, %v397_v14  ;;  %v897_v25 = vsel %vm1138_vm2, %v892_v6, %v1621_v48  ;;  %v572_v26 = vrot.slane %v570_v17, 5  ;;  %v77_v6 = vld [vmem:[%s1930_s0 + $0x6c] sm:$0x1] }
  0x5e   :  { %v901_v28 = vrot.slane %v899_v61, 4  ;;  %v567_v7 = vor.u32 %v566_v18, %v563_v12  ;;  %v904_v32 = vrot.slane %v902_v19, 5  ;;  %v1678_v34 = vrot.slane %v908_v15, 5  ;;  %v1726_v12 = vld [vmem:[%s1932_s2 + $0x68] sm:$0xf] }
  0x5f   :  { %v237_v31 = vsel %vm1138_vm2, %v232_v5, %v236_v0  ;;  %v702_v35 = vmax.bf16 %v1595_v20, %v669_v24  ;;  %v239_v38 = vshrl.u32 %v28_v22, 16  ;;  %v242_v40 = vshll.u32 %v28_v22, 16  ;;  %v383_v5 = vld [vmem:[%s1933_s3 + $0x60] sm:$0xf]  ;;  %v45_v19 = vld [vmem:[%s1931_s1 + $0x68] sm:$0xf] }
  0x60   :  { %v334_v21 = vmax.bf16 %v237_v31, %v59_v16  ;;  %v568_v8 = vrot.slane %v567_v7, 4  ;;  %v905_v33 = vor.u32 %v904_v32, %v901_v28  ;;  %v248_v27 = vshll.u32 %v76_v29, 16  ;;  %v1749_v32 = vld [vmem:[%s1930_s0 + $0x70] sm:$0xf] }
  0x61   :  { %v575_v39 = vshrl.u32 %v1671_v30, 16  ;;  %v735_v45 = vmax.bf16 %v1060_v13, %v702_v35  ;;  %v241_v20 = vrot.slane %v239_v38, 4  ;;  %v244_v47 = vrot.slane %v242_v40, 5  ;;  %v1079_v38 = vld [vmem:[%s1930_s0 + $0x74] sm:$0x1] }
  0x62   :  { %v366_v46 = vmax.bf16 %v1626_v50, %v334_v21  ;;  %v573_v48 = vsel %vm1138_vm2, %v568_v8, %v572_v26  ;;  %v906_v51 = vrot.slane %v905_v33, 4  ;;  %v250_v52 = vrot.slane %v248_v27, 5  ;;  %v1078_v50 = vld [vmem:[%s1930_s0 + $0x6c] sm:$0x1]  ;;  %v1062_v27 = vld [vmem:[%s1931_s1 + $0x68] sm:$0xf] }
  0x63   :  { %v577_v53 = vrot.slane %v575_v39, 4  ;;  %v1007_v54 = vmax.bf16 %v897_v25, %v735_v45  ;;  %v245_v56 = vor.u32 %v244_v47, %v241_v20  ;;  %v578_v58 = vshll.u32 %v1671_v30, 16  ;;  %v416_v26 = vld [vmem:[%s1932_s2 + $0x6c] sm:$0x1]  ;;  %v30_v47 = vld [vmem:[%s1930_s0 + $0x70] sm:$0xf] }
  0x64   :  { %v398_v55 = vmax.bf16 %v382_v36, %v366_v46  ;;  %v60_v60 = vmax.bf16 %v44_v41, %v28_v22  ;;  %v584_v62 = vshll.u32 %v415_v44, 16  ;;  %v913_v42 = vshrl.u32 %v1695_v37, 16  ;;  %v1761_v41 = vld [vmem:[%s1931_s1 + $0x70] sm:$0xf] }
  0x65   :  { %v916_v63 = vshll.u32 %v1695_v37, 16  ;;  %1024 = vst.msk [vmem:[%s1934_s4 + $0x24] sm:$0xf] %vm1014_vm3, %v1007_v54  ;;  %v246_v2 = vrot.slane %v245_v56, 4  ;;  %v580_v4 = vrot.slane %v578_v58, 5  ;;  %v922_v43 = vshll.u32 %v1078_v50, 16 }
  0x66   :  { %v670_v57 = vmax.bf16 %v573_v48, %v398_v55  ;;  %v911_v0 = vsel %vm1138_vm2, %v906_v51, %v1678_v34  ;;  %v586_v9 = vrot.slane %v584_v62, 5  ;;  %v915_v10 = vrot.slane %v913_v42, 4  ;;  %v1785_v58 = vld [vmem:[%s1932_s2 + $0x70] sm:$0xf] }
  0x67   :  { %v918_v11 = vrot.slane %v916_v63, 5  ;;  %v251_v14 = vsel %vm1138_vm2, %v246_v2, %v250_v52  ;;  %v581_v16 = vor.u32 %v580_v4, %v577_v53  ;;  %v1731_v17 = vrot.slane %v922_v43, 5  ;;  %v78_v53 = vld [vmem:[%s1930_s0 + $0x74] sm:$0x1] }
  0x68   :  { %v703_v49 = vmax.bf16 %v1644_v3, %v670_v57  ;;  %v335_v61 = vmax.bf16 %v251_v14, %v60_v60  ;;  %v253_v15 = vshrl.u32 %v1711_v1, 16  ;;  %v256_v3 = vshll.u32 %v1711_v1, 16  ;;  %v417_v43 = vld [vmem:[%s1932_s2 + $0x74] sm:$0x1] }
  0x69   :  { %v919_v18 = vor.u32 %v918_v11, %v915_v10  ;;  %v582_v24 = vrot.slane %v581_v16, 4  ;;  %v262_v25 = vshll.u32 %v77_v6, 16  ;;  %v589_v28 = vshrl.u32 %v1726_v12, 16  ;;  %v1800_v10 = vld [vmem:[%s1930_s0 + $0x78] sm:$0xf] }
  0x6a   :  { %v736_v22 = vmax.bf16 %v1061_v59, %v703_v49  ;;  %v367_v29 = vmax.bf16 %v1671_v30, %v335_v61  ;;  %v255_v31 = vrot.slane %v253_v15, 4  ;;  %v258_v7 = vrot.slane %v256_v3, 5 }
  0x6b   :  { %v920_v13 = vrot.slane %v919_v18, 4  ;;  %v587_v35 = vsel %vm1138_vm2, %v582_v24, %v586_v9  ;;  %v61_v21 = vmax.bf16 %v45_v19, %v1711_v1  ;;  %v264_v36 = vrot.slane %v262_v25, 5  ;;  %v384_v1 = vld [vmem:[%s1933_s3 + $0x68] sm:$0xf] }
  0x6c   :  { %v1008_v34 = vmax.bf16 %v911_v0, %v736_v22  ;;  %v399_v30 = vmax.bf16 %v383_v5, %v367_v29  ;;  %v259_v40 = vor.u32 %v258_v7, %v255_v31  ;;  %v591_v8 = vrot.slane %v589_v28, 4  ;;  %v31_v29 = vld [vmem:[%s1930_s0 + $0x78] sm:$0xf]  ;;  %v1063_v31 = vld [vmem:[%s1931_s1 + $0x70] sm:$0xf] }
  0x6d   :  { %v592_v33 = vshll.u32 %v1726_v12, 16  ;;  %v925_v39 = vsel %vm1138_vm2, %v920_v13, %v1731_v17  ;;  %v598_v45 = vshll.u32 %v416_v26, 16  ;;  %v927_v46 = vshrl.u32 %v1749_v32, 16  ;;  %v1080_v17 = vld [vmem:[%s1930_s0 + $0x7c] sm:$0x1] }
  0x6e   :  { %1025 = vst.msk [vmem:[%s1934_s4 + $0x28] sm:$0xf] %vm1014_vm3, %v1008_v34  ;;  %v930_v20 = vshll.u32 %v1749_v32, 16  ;;  %v671_v44 = vmax.bf16 %v587_v35, %v399_v30  ;;  %v260_v48 = vrot.slane %v259_v40, 4  ;;  %v936_v52 = vshll.u32 %v1079_v38, 16 }
  0x6f   :  { %v594_v51 = vrot.slane %v592_v33, 5  ;;  %v600_v50 = vrot.slane %v598_v45, 5  ;;  %v929_v54 = vrot.slane %v927_v46, 4  ;;  %v62_v56 = vmax.bf16 %v1761_v41, %v30_v47 }
  0x70   :  { %v932_v55 = vrot.slane %v930_v20, 5  ;;  %v704_v59 = vmax.bf16 %v1695_v37, %v671_v44  ;;  %v265_v60 = vsel %vm1138_vm2, %v260_v48, %v264_v36  ;;  %v267_v42 = vshrl.u32 %v30_v47, 16  ;;  %v47_v44 = vld [vmem:[%s1931_s1 + $0x78] sm:$0xf] }
  0x71   :  { %v595_v62 = vor.u32 %v594_v51, %v591_v8  ;;  %v336_v63 = vmax.bf16 %v265_v60, %v61_v21  ;;  %v270_v2 = vshll.u32 %v30_v47, 16  ;;  %v276_v4 = vshll.u32 %v78_v53, 16  ;;  %v79_v21 = vld [vmem:[%s1930_s0 + $0x7c] sm:$0x1]  ;;  %v1831_v8 = vld [vmem:[%s1932_s2 + $0x78] sm:$0xf] }
  0x72   :  { %v933_v57 = vor.u32 %v932_v55, %v929_v54  ;;  %v737_v6 = vmax.bf16 %v1062_v27, %v704_v59  ;;  %v269_v37 = vrot.slane %v267_v42, 4  ;;  %v603_v9 = vshrl.u32 %v1785_v58, 16  ;;  %v385_v27 = vld [vmem:[%s1933_s3 + $0x70] sm:$0xf]  ;;  %v1849_v54 = vld [vmem:[%s1930_s0 + $0x80] sm:$0xf] }
  0x73   :  { %v596_v0 = vrot.slane %v595_v62, 4  ;;  %v368_v11 = vmax.bf16 %v1726_v12, %v336_v63  ;;  %v938_v14 = vrot.slane %v936_v52, 5  ;;  %v272_v16 = vrot.slane %v270_v2, 5 }
  0x74   :  { %v934_v49 = vrot.slane %v933_v57, 4  ;;  %v1009_v61 = vmax.bf16 %v925_v39, %v737_v6  ;;  %v605_v18 = vrot.slane %v603_v9, 4  ;;  %v606_v19 = vshll.u32 %v1785_v58, 16  ;;  %v1081_v57 = vld [vmem:[%s1930_s0 + $0x84] sm:$0x1] }
  0x75   :  { %v601_v5 = vsel %vm1138_vm2, %v596_v0, %v600_v50  ;;  %v400_v15 = vmax.bf16 %v384_v1, %v368_v11  ;;  %v273_v3 = vor.u32 %v272_v16, %v269_v37  ;;  %v278_v22 = vrot.slane %v276_v4, 5  ;;  %v48_v0 = vld [vmem:[%s1931_s1 + $0x80] sm:$0xf] }
  0x76   :  { %v612_v24 = vshll.u32 %v417_v43, 16  ;;  %1026 = vst.msk [vmem:[%s1934_s4 + $0x2c] sm:$0xf] %vm1014_vm3, %v1009_v61  ;;  %v608_v12 = vrot.slane %v606_v19, 5  ;;  %v941_v25 = vshrl.u32 %v1800_v10, 16  ;;  %v944_v26 = vshll.u32 %v1800_v10, 16 }
  0x77   :  { %v950_v28 = vshll.u32 %v1080_v17, 16  ;;  %v672_v13 = vmax.bf16 %v601_v5, %v400_v15  ;;  %v939_v7 = vsel %vm1138_vm2, %v934_v49, %v938_v14  ;;  %v274_v34 = vrot.slane %v273_v3, 4  ;;  %v80_v14 = vld [vmem:[%s1930_s0 + $0x84] sm:$0x1]  ;;  %v1064_v19 = vld [vmem:[%s1931_s1 + $0x78] sm:$0xf] }
  0x78   :  { %v614_v35 = vrot.slane %v612_v24, 5  ;;  %v609_v36 = vor.u32 %v608_v12, %v605_v18  ;;  %v943_v38 = vrot.slane %v941_v25, 4  ;;  %v946_v30 = vrot.slane %v944_v26, 5  ;;  %v355_v18 = vld [vmem:[%s1932_s2 + $0x80] sm:$0xf] }
  0x79   :  { %v1826_v40 = vrot.slane %v950_v28, 5  ;;  %v705_v33 = vmax.bf16 %v1749_v32, %v672_v13  ;;  %v279_v41 = vsel %vm1138_vm2, %v274_v34, %v278_v22  ;;  %v281_v39 = vshrl.u32 %v31_v29, 16  ;;  %v418_v32 = vld [vmem:[%s1932_s2 + $0x7c] sm:$0x1] }
  0x7a   :  { %v284_v45 = vshll.u32 %v31_v29, 16  ;;  %v337_v46 = vmax.bf16 %v279_v41, %v62_v56  ;;  %v610_v20 = vrot.slane %v609_v36, 4  ;;  %v947_v47 = vor.u32 %v946_v30, %v943_v38  ;;  %v1050_v30 = vld [vmem:[%s1930_s0 + $0x88] sm:$0xf] }
  0x7b   :  { %v290_v48 = vshll.u32 %v79_v21, 16  ;;  %v738_v51 = vmax.bf16 %v1063_v31, %v705_v33  ;;  %v283_v52 = vrot.slane %v281_v39, 4  ;;  %v617_v50 = vshrl.u32 %v1831_v8, 16 }
  0x7c   :  { %v286_v53 = vrot.slane %v284_v45, 5  ;;  %v369_v55 = vmax.bf16 %v1785_v58, %v337_v46  ;;  %v615_v56 = vsel %vm1138_vm2, %v610_v20, %v614_v35  ;;  %v948_v59 = vrot.slane %v947_v47, 4  ;;  %v32_v58 = vld [vmem:[%s1930_s0 + $0x80] sm:$0xf] }
  0x7d   :  { %v292_v60 = vrot.slane %v290_v48, 5  ;;  %v1010_v62 = vmax.bf16 %v939_v7, %v738_v51  ;;  %v619_v63 = vrot.slane %v617_v50, 4  ;;  %v620_v1 = vshll.u32 %v1831_v8, 16  ;;  %v1082_v50 = vld [vmem:[%s1930_s0 + $0x8c] sm:$0x1] }
  0x7e   :  { %v287_v42 = vor.u32 %v286_v53, %v283_v52  ;;  %v401_v2 = vmax.bf16 %v385_v27, %v369_v55  ;;  %v63_v4 = vmax.bf16 %v47_v44, %v31_v29  ;;  %v626_v43 = vshll.u32 %v418_v32, 16  ;;  %v386_v29 = vld [vmem:[%s1933_s3 + $0x78] sm:$0xf]  ;;  %v1065_v53 = vld [vmem:[%s1931_s1 + $0x80] sm:$0xf] }
  0x7f   :  { %v955_v6 = vshrl.u32 %v1849_v54, 16  ;;  %1027 = vst.msk [vmem:[%s1934_s4 + $0x30] sm:$0xf] %vm1014_vm3, %v1010_v62  ;;  %v953_v37 = vsel %vm1138_vm2, %v948_v59, %v1826_v40  ;;  %v622_v11 = vrot.slane %v620_v1, 5  ;;  %v958_v49 = vshll.u32 %v1849_v54, 16 }
  0x80   :  { %v288_v9 = vrot.slane %v287_v42, 4  ;;  %v673_v16 = vmax.bf16 %v615_v56, %v401_v2  ;;  %v628_v17 = vrot.slane %v626_v43, 5  ;;  %v964_v5 = vshll.u32 %v1081_v57, 16  ;;  %v387_v2 = vld [vmem:[%s1933_s3 + $0x80] sm:$0xf] }
  0x81   :  { %v957_v61 = vrot.slane %v955_v6, 4  ;;  %v623_v3 = vor.u32 %v622_v11, %v619_v63  ;;  %v960_v22 = vrot.slane %v958_v49, 5  ;;  %v64_v24 = vmax.bf16 %v48_v0, %v32_v58 }
  0x82   :  { %v293_v15 = vsel %vm1138_vm2, %v288_v9, %v292_v60  ;;  %v706_v12 = vmax.bf16 %v1800_v10, %v673_v16  ;;  %v295_v26 = vshrl.u32 %v32_v58, 16  ;;  %v298_v28 = vshll.u32 %v32_v58, 16  ;;  %v419_v10 = vld [vmem:[%s1932_s2 + $0x84] sm:$0x1] }
  0x83   :  { %v338_v25 = vmax.bf16 %v293_v15, %v63_v4  ;;  %v624_v13 = vrot.slane %v623_v3, 4  ;;  %v961_v31 = vor.u32 %v960_v22, %v957_v61  ;;  %v304_v7 = vshll.u32 %v80_v14, 16  ;;  %v1066_v14 = vld [vmem:[%s1931_s1 + $0x88] sm:$0xf] }
  0x84   :  { %v631_v34 = vshrl.u32 %v355_v18, 16  ;;  %v739_v35 = vmax.bf16 %v1064_v19, %v706_v12  ;;  %v297_v36 = vrot.slane %v295_v26, 4  ;;  %v300_v38 = vrot.slane %v298_v28, 5 }
  0x85   :  { %v370_v21 = vmax.bf16 %v1831_v8, %v338_v25  ;;  %v629_v40 = vsel %vm1138_vm2, %v624_v13, %v628_v17  ;;  %v966_v33 = vrot.slane %v964_v5, 5  ;;  %v306_v41 = vrot.slane %v304_v7, 5 }
  0x86   :  { %v633_v27 = vrot.slane %v631_v34, 4  ;;  %v1011_v39 = vmax.bf16 %v953_v37, %v739_v35  ;;  %v301_v46 = vor.u32 %v300_v38, %v297_v36  ;;  %v634_v8 = vshll.u32 %v355_v18, 16 }
  0x87   :  { %v402_v45 = vmax.bf16 %v386_v29, %v370_v21  ;;  %v962_v20 = vrot.slane %v961_v31, 4  ;;  %v640_v47 = vshll.u32 %v419_v10, 16  ;;  %v969_v44 = vshrl.u32 %v1050_v30, 16 }
  0x88   :  { %v972_v48 = vshll.u32 %v1050_v30, 16  ;;  %1028 = vst.msk [vmem:[%s1934_s4 + $0x34] sm:$0xf] %vm1014_vm3, %v1011_v39  ;;  %v302_v51 = vrot.slane %v301_v46, 4  ;;  %v636_v52 = vrot.slane %v634_v8, 5  ;;  %v978_v6 = vshll.u32 %v1082_v50, 16 }
  0x89   :  { %v674_v32 = vmax.bf16 %v629_v40, %v402_v45  ;;  %v971_v55 = vrot.slane %v969_v44, 4  ;;  %v642_v42 = vrot.slane %v640_v47, 5  ;;  %v967_v63 = vsel %vm1138_vm2, %v962_v20, %v966_v33 }
  0x8a   :  { %v974_v56 = vrot.slane %v972_v48, 5  ;;  %v307_v60 = vsel %vm1138_vm2, %v302_v51, %v306_v41  ;;  %v637_v62 = vor.u32 %v636_v52, %v633_v27  ;;  %v980_v11 = vrot.slane %v978_v6, 5 }
  0x8b   :  { %v707_v59 = vmax.bf16 %v1849_v54, %v674_v32  ;;  %v339_v1 = vmax.bf16 %v307_v60, %v64_v24 }
  0x8c   :  { %v638_v4 = vrot.slane %v637_v62, 4  ;;  %v975_v43 = vor.u32 %v974_v56, %v971_v55 }
  0x8d   :  { %v740_v57 = vmax.bf16 %v1065_v53, %v707_v59  ;;  %v371_v58 = vmax.bf16 %v355_v18, %v339_v1 }
  0x8e   :  { %v643_v54 = vsel %vm1138_vm2, %v638_v4, %v642_v42  ;;  %v976_v9 = vrot.slane %v975_v43, 4 }
  0x8f   :  { %v1012_v0 = vmax.bf16 %v967_v63, %v740_v57  ;;  %v403_v37 = vmax.bf16 %v387_v2, %v371_v58 }
  0x90   :  { %v981_v17 = vsel %vm1138_vm2, %v976_v9, %v980_v11 }
  0x91   :  { %1029 = vst.msk [vmem:[%s1934_s4 + $0x38] sm:$0xf] %vm1014_vm3, %v1012_v0  ;;  %v675_v49 = vmax.bf16 %v643_v54, %v403_v37 }
  0x93   :  { %v708_v16 = vmax.bf16 %v1050_v30, %v675_v49 }
  0x95   :  { %v741_v61 = vmax.bf16 %v1066_v14, %v708_v16 }
  0x97   :  { %v1013_v5 = vmax.bf16 %v981_v17, %v741_v61 }
  0x99   :  { %1030 = vst.msk [vmem:[%s1934_s4 + $0x3c] sm:$0xf] %vm1014_vm3, %v1013_v5 }

// kernel: resnet50_forward.69
= control target key start
LH: loop header
LB: loop body
LE: loop exit
PB: predicated region body
PF: predicated region fallthrough
CT: control target
= control target key end

     0   :  { %vm161_vm0 = vcmask 257024   ;;  %s285_s1 = inlined_call_operand.vmem [shape: bf16[128,32], index: 1, kind: input, shape index: {}]   ;;  %s286_s0 = inlined_call_operand.vmem [shape: bf16[32,128], index: 0, kind: input, shape index: {}]   ;;  %s287_s2 = inlined_call_operand.vmem [shape: bf16[32,32], index: 2, kind: output, shape index: {}]  }
   0x1   :  { %v218_v0 = vld [vmem:[%s285_s1] sm:$0xff]   ;;  %v219_v1 = vld [vmem:[%s285_s1 + $0x8] sm:$0xff]   ;;  %v220_v2 = vld [vmem:[%s285_s1 + $0x10] sm:$0xff]  }
   0x2   :  { %198 = vmatprep.subr.bf16.mxu0 %v218_v0  ;;  %v221_v3 = vld [vmem:[%s285_s1 + $0x18] sm:$0xff]   ;;  %v226_v4 = vld [vmem:[%s286_s0] sm:$0xff]   ;;  %v223_v6 = vld [vmem:[%s285_s1 + $0x28] sm:$0xff]  }
   0x3   :  { %199 = vmatpush3.bf16.msra.mxu0 %v218_v0  ;;  %214 = vmatprep.mubr.bf16.mxu0 %v226_v4  ;;  %v222_v5 = vld [vmem:[%s285_s1 + $0x20] sm:$0xff]   ;;  %v224_v7 = vld [vmem:[%s285_s1 + $0x30] sm:$0xff]   ;;  %v225_v8 = vld [vmem:[%s285_s1 + $0x38] sm:$0xff]  }
   0x4   :  { %200 = vmatprep.subr.bf16.mxu0 %v219_v1  ;;  %v227_v9 = vld [vmem:[%s286_s0 + $0x8] sm:$0xff]  }
   0x7   :  { %201 = vmatpush3.bf16.msra.mxu0 %v219_v1 }
   0x8   :  { %202 = vmatprep.subr.bf16.mxu0 %v220_v2 }
   0xb   :  { %203 = vmatpush3.bf16.msra.mxu0 %v220_v2 }
   0xc   :  { %204 = vmatprep.subr.bf16.mxu0 %v221_v3 }
   0xf   :  { %205 = vmatpush3.bf16.msra.mxu0 %v221_v3 }
  0x10   :  { %206 = vmatprep.subr.bf16.mxu0 %v222_v5 }
  0x13   :  { %207 = vmatpush3.bf16.msra.mxu0 %v222_v5 }
  0x14   :  { %208 = vmatprep.subr.bf16.mxu0 %v223_v6 }
  0x17   :  { %209 = vmatpush3.bf16.msra.mxu0 %v223_v6 }
  0x18   :  { %210 = vmatprep.subr.bf16.mxu0 %v224_v7 }
  0x1b   :  { %211 = vmatpush3.bf16.msra.mxu0 %v224_v7 }
  0x1c   :  { %212 = vmatprep.subr.bf16.mxu0 %v225_v8 }
  0x1f   :  { %213 = vmatpush3.bf16.msra.mxu0 %v225_v8 }
  0x22   :  { %215 = vmatmul.mubr.bf16.vlgmr.msra.gmra.mrb[0].mxu0 %v227_v9 }
  0xf5   :  { %v216_v10 = vpop.f32.mrb[0].mxu0 }
  0xf6   :  { %v143_v11 = vmax.f32 %v216_v10, 0.0  ;;  %v126_v12 = vpop.f32.mrb[1].mxu0 }
  0xf7   :  { %v141_v13 = vmax.f32 %v126_v12, 0.0  ;;  %v217_v14 = vpop.f32.mrb[2].mxu0 }
  0xf8   :  { %v186_v15 = vpack.c.bf16 %v143_v11, %v143_v11  ;;  %v144_v16 = vmax.f32 %v217_v14, 0.0  ;;  %v129_v17 = vpop.f32.mrb[3].mxu0 }
  0xf9   :  { %v184_v18 = vpack.c.bf16 %v141_v13, %v141_v13  ;;  %v142_v19 = vmax.f32 %v129_v17, 0.0 }
  0xfa   :  { %164 = vst.msk [vmem:[%s287_s2 + $0x8] sm:$0xf] %vm161_vm0, %v186_v15  ;;  %v187_v20 = vpack.c.bf16 %v144_v16, %v144_v16 }
  0xfb   :  { %162 = vst.msk [vmem:[%s287_s2] sm:$0xf] %vm161_vm0, %v184_v18  ;;  %v185_v21 = vpack.c.bf16 %v142_v19, %v142_v19 }
  0xfc   :  { %165 = vst.msk [vmem:[%s287_s2 + $0xc] sm:$0xf] %vm161_vm0, %v187_v20 }
  0xfd   :  { %163 = vst.msk [vmem:[%s287_s2 + $0x4] sm:$0xf] %vm161_vm0, %v185_v21 }

// kernel: resnet50_forward.68
= control target key start
LH: loop header
LB: loop body
LE: loop exit
PB: predicated region body
PF: predicated region fallthrough
CT: control target
= control target key end

     0   :  { %vm68_vm0 = vcmask 523264   ;;  %s247_s1 = inlined_call_operand.vmem [shape: bf16[64,128], index: 1, kind: input, shape index: {}]   ;;  %s248_s0 = inlined_call_operand.vmem [shape: bf16[32,64], index: 0, kind: input, shape index: {}]   ;;  %s249_s2 = inlined_call_operand.vmem [shape: f32[1,128], index: 2, kind: input, shape index: {}]   ;;  %s250_s3 = inlined_call_operand.vmem [shape: bf16[32,128], index: 3, kind: output, shape index: {}]  }
   0x1   :  { %v194_v0 = vld [vmem:[%s247_s1] sm:$0xff]   ;;  %v195_v1 = vld [vmem:[%s247_s1 + $0x8] sm:$0xff]   ;;  %v196_v2 = vld [vmem:[%s247_s1 + $0x10] sm:$0xff]  }
   0x2   :  { %182 = vmatprep.subr.bf16.mxu0 %v194_v0  ;;  %v198_v3 = vld [vmem:[%s248_s0] sm:$0xff]   ;;  %v197_v4 = vld [vmem:[%s247_s1 + $0x18] sm:$0xff]   ;;  %v199_v5 = vld [vmem:[%s248_s0 + $0x8] sm:$0xff]  }
   0x3   :  { %183 = vmatpush3.bf16.msra.mxu0 %v194_v0  ;;  %190 = vmatprep.mubr.msk.bf16.mxu0 %vm68_vm0, %v198_v3  ;;  %v148_v7 = vld [vmem:[%s249_s2] ss:$0 sm:$0xff] }
   0x4   :  { %184 = vmatprep.subr.bf16.mxu0 %v195_v1 }
   0x7   :  { %185 = vmatpush3.bf16.msra.mxu0 %v195_v1 }
   0x8   :  { %186 = vmatprep.subr.bf16.mxu0 %v196_v2 }
   0xb   :  { %187 = vmatpush3.bf16.msra.mxu0 %v196_v2 }
   0xc   :  { %188 = vmatprep.subr.bf16.mxu0 %v197_v4 }
   0xf   :  { %189 = vmatpush3.bf16.msra.mxu0 %v197_v4 }
  0x12   :  { %191 = vmatmul.mubr.msk.bf16.vlgmr.msra.gmra.mrb[0].mxu0 %vm68_vm0, %v199_v5 }
  0xe5   :  { %v192_v6 = vpop.f32.mrb[0].mxu0 }
  0xe6   :  { %v109_v8 = vpop.f32.mrb[1].mxu0  ;;  %v118_v10 = vadd.f32 %v192_v6, %v148_v7 }
  0xe7   :  { %v193_v9 = vpop.f32.mrb[2].mxu0  ;;  %v110_v13 = vadd.f32 %v148_v7, %v109_v8 }
  0xe8   :  { %v121_v11 = vadd.f32 %v193_v9, %v148_v7  ;;  %v112_v12 = vpop.f32.mrb[3].mxu0 }
  0xe9   :  { %v113_v14 = vadd.f32 %v148_v7, %v112_v12 }
  0xea   :  { %v173_v15 = vpack.c.bf16 %v121_v11, %v118_v10 }
  0xeb   :  { %v168_v16 = vpack.c.bf16 %v113_v14, %v110_v13 }
  0xec   :  { %175 = vst [vmem:[%s250_s3 + $0x8] sm:$0xff] %v173_v15  }
  0xed   :  { %169 = vst [vmem:[%s250_s3] sm:$0xff] %v168_v16  }

// kernel: resnet50_forward.61
= control target key start
LH: loop header
LB: loop body
LE: loop exit
PB: predicated region body
PF: predicated region fallthrough
CT: control target
= control target key end

     0   :  { %vm111_vm0 = vcmask 130048   ;;  %vm313_vm1 = vcmask 519168   ;;  %s619_s1 = inlined_call_operand.vmem [shape: bf16[16,64], index: 1, kind: input, shape index: {}]   ;;  %s620_s0 = inlined_call_operand.vmem [shape: bf16[128,16], index: 0, kind: input, shape index: {}]   ;;  %s621_s2 = inlined_call_operand.vmem [shape: bf16[128,64], index: 2, kind: input, shape index: {}]   ;;  %s622_s3 = inlined_call_operand.vmem [shape: bf16[128,64], index: 3, kind: output, shape index: {}]  }
   0x1   :  { %v451_v0 = vld [vmem:[%s619_s1] sm:$0xff]   ;;  %v454_v3 = vld [vmem:[%s620_s0 + $0x8] sm:$0xff]   ;;  %v456_v5 = vld [vmem:[%s620_s0 + $0x10] sm:$0xff]  }
   0x2   :  { %v452_v1 = vld [vmem:[%s620_s0] sm:$0xff]   ;;  %431 = vmatprep.subr.bf16.mxu0 %v451_v0  ;;  %449 = vmatprep.subr.bf16.mxu1 %v451_v0  ;;  %v455_v4 = vld [vmem:[%s620_s0 + $0x28] sm:$0xff]   ;;  %v457_v6 = vld [vmem:[%s620_s0 + $0x30] sm:$0xff]  }
   0x3   :  { %v453_v2 = vld [vmem:[%s620_s0 + $0x20] sm:$0xff]   ;;  %432 = vmatpush3.bf16.msra.mxu0 %v451_v0  ;;  %450 = vmatpush3.bf16.msra.mxu1 %v451_v0  ;;  %v458_v7 = vld [vmem:[%s620_s0 + $0x18] sm:$0xff]   ;;  %v415_v9 = vld [vmem:[%s621_s2 + $0x8] sm:$0xff]  }
   0x4   :  { %433 = vmatprep.mubr.msk.bf16.mxu0 %vm111_vm0, %v452_v1  ;;  %441 = vmatprep.mubr.msk.bf16.mxu1 %vm111_vm0, %v453_v2  ;;  %v459_v8 = vld [vmem:[%s620_s0 + $0x38] sm:$0xff]   ;;  %v419_v10 = vld [vmem:[%s621_s2 + $0x28] sm:$0xff]   ;;  %v384_v11 = vld [vmem:[%s621_s2] sm:$0xff]   ;;  %v389_v13 = vunpack.c.l.bf16 %v415_v9  ;;  %v390_v19 = vunpack.c.h.bf16 %v415_v9 }
   0x5   :  { %v418_v12 = vld [vmem:[%s621_s2 + $0x20] sm:$0xff]   ;;  %v405_v14 = vunpack.c.l.bf16 %v419_v10  ;;  %v385_v15 = vunpack.c.l.bf16 %v384_v11  ;;  %v530_v17 = vld [vmem:[%s621_s2 + $0x18] sm:$0xff]   ;;  %v406_v20 = vunpack.c.h.bf16 %v419_v10  ;;  %v540_v21 = vld [vmem:[%s621_s2 + $0x10] sm:$0xff]   ;;  %v386_v25 = vunpack.c.h.bf16 %v384_v11 }
   0x6   :  { %434 = vmatmul.mubr.msk.bf16.vlgmr.msra.gmra.mrb[0].mxu0 %vm111_vm0, %v454_v3  ;;  %442 = vmatmul.mubr.msk.bf16.vlgmr.msra.gmra.mrb[0].mxu1 %vm111_vm0, %v455_v4  ;;  %v401_v16 = vunpack.c.l.bf16 %v418_v12  ;;  %v535_v18 = vld [vmem:[%s621_s2 + $0x38] sm:$0xff]   ;;  %v545_v22 = vld [vmem:[%s621_s2 + $0x30] sm:$0xff]   ;;  %v402_v26 = vunpack.c.h.bf16 %v418_v12  ;;  %v397_v31 = vunpack.c.l.bf16 %v530_v17  ;;  %v393_v37 = vunpack.c.l.bf16 %v540_v21 }
   0x7   :  { %437 = vmatprep.mubr.msk.bf16.mxu0 %vm111_vm0, %v456_v5  ;;  %445 = vmatprep.mubr.msk.bf16.mxu1 %vm111_vm0, %v457_v6  ;;  %v413_v32 = vunpack.c.l.bf16 %v535_v18  ;;  %v409_v38 = vunpack.c.l.bf16 %v545_v22  ;;  %v398_v59 = vunpack.c.h.bf16 %v530_v17  ;;  %v414_v60 = vunpack.c.h.bf16 %v535_v18 }
   0x8   :  { %v394_v1 = vunpack.c.h.bf16 %v540_v21  ;;  %v410_v2 = vunpack.c.h.bf16 %v545_v22 }
   0xe   :  { %438 = vmatmul.mubr.msk.bf16.gmra.mrb[4].mxu0 %vm111_vm0, %v458_v7  ;;  %446 = vmatmul.mubr.msk.bf16.gmra.mrb[4].mxu1 %vm111_vm0, %v459_v8 }
  0xd9   :  { %v435_v23 = vpop.f32.mrb[0].mxu0  ;;  %v443_v24 = vpop.f32.mrb[0].mxu1 }
  0xda   :  { %v179_v27 = vadd.f32 %v435_v23, %v389_v13  ;;  %v211_v28 = vadd.f32 %v443_v24, %v405_v14  ;;  %v170_v29 = vpop.f32.mrb[1].mxu0  ;;  %v202_v30 = vpop.f32.mrb[1].mxu1 }
  0xdb   :  { %v171_v33 = vadd.f32 %v385_v15, %v170_v29  ;;  %v203_v34 = vadd.f32 %v401_v16, %v202_v30  ;;  %v436_v35 = vpop.f32.mrb[2].mxu0  ;;  %v444_v36 = vpop.f32.mrb[2].mxu1 }
  0xdc   :  { %v235_v39 = vmax.f32 %v179_v27, 0.0  ;;  %v243_v40 = vmax.f32 %v211_v28, 0.0  ;;  %v182_v41 = vadd.f32 %v436_v35, %v390_v19  ;;  %v214_v42 = vadd.f32 %v444_v36, %v406_v20  ;;  %v173_v43 = vpop.f32.mrb[3].mxu0  ;;  %v205_v44 = vpop.f32.mrb[3].mxu1 }
  0xdd   :  { %v233_v45 = vmax.f32 %v171_v33, 0.0  ;;  %v241_v46 = vmax.f32 %v203_v34, 0.0  ;;  %v174_v47 = vadd.f32 %v386_v25, %v173_v43  ;;  %v206_v48 = vadd.f32 %v402_v26, %v205_v44 }
  0xde   :  { %v369_v49 = vpack.c.bf16 %v235_v39, %v235_v39  ;;  %v377_v50 = vpack.c.bf16 %v243_v40, %v243_v40  ;;  %v236_v51 = vmax.f32 %v182_v41, 0.0  ;;  %v244_v52 = vmax.f32 %v214_v42, 0.0 }
  0xdf   :  { %v367_v53 = vpack.c.bf16 %v233_v45, %v233_v45  ;;  %v375_v54 = vpack.c.bf16 %v241_v46, %v241_v46  ;;  %v234_v55 = vmax.f32 %v174_v47, 0.0  ;;  %v242_v56 = vmax.f32 %v206_v48, 0.0 }
  0xe0   :  { %316 = vst.msk [vmem:[%s622_s3 + $0x8] sm:$0xf] %vm313_vm1, %v369_v49  ;;  %324 = vst.msk [vmem:[%s622_s3 + $0x28] sm:$0xf] %vm313_vm1, %v377_v50  ;;  %v370_v57 = vpack.c.bf16 %v236_v51, %v236_v51  ;;  %v378_v58 = vpack.c.bf16 %v244_v52, %v244_v52 }
  0xe1   :  { %314 = vst.msk [vmem:[%s622_s3] sm:$0xf] %vm313_vm1, %v367_v53  ;;  %322 = vst.msk [vmem:[%s622_s3 + $0x20] sm:$0xf] %vm313_vm1, %v375_v54  ;;  %v368_v61 = vpack.c.bf16 %v234_v55, %v234_v55  ;;  %v376_v62 = vpack.c.bf16 %v242_v56, %v242_v56  ;;  %v439_v63 = vpop.f32.mrb[4].mxu0  ;;  %v447_v0 = vpop.f32.mrb[4].mxu1 }
  0xe2   :  { %317 = vst.msk [vmem:[%s622_s3 + $0xc] sm:$0xf] %vm313_vm1, %v370_v57  ;;  %325 = vst.msk [vmem:[%s622_s3 + $0x2c] sm:$0xf] %vm313_vm1, %v378_v58  ;;  %v195_v3 = vadd.f32 %v439_v63, %v397_v31  ;;  %v227_v4 = vadd.f32 %v447_v0, %v413_v32  ;;  %v186_v5 = vpop.f32.mrb[5].mxu0  ;;  %v218_v6 = vpop.f32.mrb[5].mxu1 }
  0xe3   :  { %315 = vst.msk [vmem:[%s622_s3 + $0x4] sm:$0xf] %vm313_vm1, %v368_v61  ;;  %323 = vst.msk [vmem:[%s622_s3 + $0x24] sm:$0xf] %vm313_vm1, %v376_v62  ;;  %v187_v7 = vadd.f32 %v393_v37, %v186_v5  ;;  %v219_v8 = vadd.f32 %v409_v38, %v218_v6  ;;  %v440_v9 = vpop.f32.mrb[6].mxu0  ;;  %v448_v10 = vpop.f32.mrb[6].mxu1 }
  0xe4   :  { %v239_v11 = vmax.f32 %v195_v3, 0.0  ;;  %v247_v12 = vmax.f32 %v227_v4, 0.0  ;;  %v198_v13 = vadd.f32 %v440_v9, %v398_v59  ;;  %v230_v14 = vadd.f32 %v448_v10, %v414_v60  ;;  %v189_v15 = vpop.f32.mrb[7].mxu0  ;;  %v221_v16 = vpop.f32.mrb[7].mxu1 }
  0xe5   :  { %v237_v17 = vmax.f32 %v187_v7, 0.0  ;;  %v245_v18 = vmax.f32 %v219_v8, 0.0  ;;  %v190_v19 = vadd.f32 %v394_v1, %v189_v15  ;;  %v222_v20 = vadd.f32 %v410_v2, %v221_v16 }
  0xe6   :  { %v373_v21 = vpack.c.bf16 %v239_v11, %v239_v11  ;;  %v381_v22 = vpack.c.bf16 %v247_v12, %v247_v12  ;;  %v240_v23 = vmax.f32 %v198_v13, 0.0  ;;  %v248_v24 = vmax.f32 %v230_v14, 0.0 }
  0xe7   :  { %v371_v25 = vpack.c.bf16 %v237_v17, %v237_v17  ;;  %v379_v26 = vpack.c.bf16 %v245_v18, %v245_v18  ;;  %v238_v27 = vmax.f32 %v190_v19, 0.0  ;;  %v246_v28 = vmax.f32 %v222_v20, 0.0 }
  0xe8   :  { %320 = vst.msk [vmem:[%s622_s3 + $0x18] sm:$0xf] %vm313_vm1, %v373_v21  ;;  %328 = vst.msk [vmem:[%s622_s3 + $0x38] sm:$0xf] %vm313_vm1, %v381_v22  ;;  %v374_v29 = vpack.c.bf16 %v240_v23, %v240_v23  ;;  %v382_v30 = vpack.c.bf16 %v248_v24, %v248_v24 }
  0xe9   :  { %318 = vst.msk [vmem:[%s622_s3 + $0x10] sm:$0xf] %vm313_vm1, %v371_v25  ;;  %326 = vst.msk [vmem:[%s622_s3 + $0x30] sm:$0xf] %vm313_vm1, %v379_v26  ;;  %v372_v31 = vpack.c.bf16 %v238_v27, %v238_v27  ;;  %v380_v32 = vpack.c.bf16 %v246_v28, %v246_v28 }
  0xea   :  { %321 = vst.msk [vmem:[%s622_s3 + $0x1c] sm:$0xf] %vm313_vm1, %v374_v29  ;;  %329 = vst.msk [vmem:[%s622_s3 + $0x3c] sm:$0xf] %vm313_vm1, %v382_v30 }
  0xeb   :  { %319 = vst.msk [vmem:[%s622_s3 + $0x14] sm:$0xf] %vm313_vm1, %v372_v31  ;;  %327 = vst.msk [vmem:[%s622_s3 + $0x34] sm:$0xf] %vm313_vm1, %v380_v32 }

// kernel: resnet50_forward.71
= control target key start
LH: loop header
LB: loop body
LE: loop exit
PB: predicated region body
PF: predicated region fallthrough
CT: control target
= control target key end

     0   :  { %vm53_vm0 = vcmask 261120   ;;  %s231_s1 = inlined_call_operand.vmem [shape: bf16[32,128], index: 1, kind: input, shape index: {}]   ;;  %s232_s0 = inlined_call_operand.vmem [shape: bf16[32,32], index: 0, kind: input, shape index: {}]   ;;  %s233_s2 = inlined_call_operand.vmem [shape: bf16[32,128], index: 2, kind: input, shape index: {}]   ;;  %s234_s3 = inlined_call_operand.vmem [shape: bf16[32,128], index: 3, kind: output, shape index: {}]  }
   0x1   :  { %v183_v0 = vld [vmem:[%s231_s1] sm:$0xff]   ;;  %v184_v1 = vld [vmem:[%s231_s1 + $0x8] sm:$0xff]  }
   0x2   :  { %175 = vmatprep.subr.bf16.mxu0 %v183_v0  ;;  %v185_v2 = vld [vmem:[%s232_s0] sm:$0xff]   ;;  %v186_v3 = vld [vmem:[%s232_s0 + $0x8] sm:$0xff]  }
   0x3   :  { %176 = vmatpush3.bf16.msra.mxu0 %v183_v0  ;;  %179 = vmatprep.mubr.msk.bf16.mxu0 %vm53_vm0, %v185_v2  ;;  %v169_v4 = vld [vmem:[%s233_s2 + $0x8] sm:$0xff]   ;;  %v152_v5 = vld [vmem:[%s233_s2] sm:$0xff]  }
   0x4   :  { %177 = vmatprep.subr.bf16.mxu0 %v184_v1  ;;  %v157_v6 = vunpack.c.l.bf16 %v169_v4  ;;  %v153_v7 = vunpack.c.l.bf16 %v152_v5  ;;  %v158_v8 = vunpack.c.h.bf16 %v169_v4  ;;  %v154_v10 = vunpack.c.h.bf16 %v152_v5 }
   0x7   :  { %178 = vmatpush3.bf16.msra.mxu0 %v184_v1 }
   0xa   :  { %180 = vmatmul.mubr.msk.bf16.vlgmr.msra.gmra.mrb[0].mxu0 %vm53_vm0, %v186_v3 }
  0xdd   :  { %v181_v9 = vpop.f32.mrb[0].mxu0 }
  0xde   :  { %v103_v11 = vadd.f32 %v181_v9, %v157_v6  ;;  %v94_v12 = vpop.f32.mrb[1].mxu0 }
  0xdf   :  { %v95_v13 = vadd.f32 %v153_v7, %v94_v12  ;;  %v182_v14 = vpop.f32.mrb[2].mxu0 }
  0xe0   :  { %v106_v15 = vadd.f32 %v182_v14, %v158_v8  ;;  %v97_v16 = vpop.f32.mrb[3].mxu0  ;;  %v111_v18 = vmax.f32 %v103_v11, 0.0 }
  0xe1   :  { %v98_v17 = vadd.f32 %v154_v10, %v97_v16  ;;  %v109_v20 = vmax.f32 %v95_v13, 0.0 }
  0xe2   :  { %v112_v19 = vmax.f32 %v106_v15, 0.0 }
  0xe3   :  { %v110_v21 = vmax.f32 %v98_v17, 0.0 }
  0xe4   :  { %v167_v22 = vpack.c.bf16 %v112_v19, %v111_v18 }
  0xe5   :  { %v162_v23 = vpack.c.bf16 %v110_v21, %v109_v20 }
  0xe6   :  { %170 = vst [vmem:[%s234_s3 + $0x8] sm:$0xff] %v167_v22  }
  0xe7   :  { %163 = vst [vmem:[%s234_s3] sm:$0xff] %v162_v23  }

// kernel: resnet50_forward.81
= control target key start
LH: loop header
LB: loop body
LE: loop exit
PB: predicated region body
PF: predicated region fallthrough
CT: control target
= control target key end

     0   :  { %v221_v1 = vmov 0   ;;  %v34_v18 = vlaneseq  ;;  %s299_s1 = inlined_call_operand.vmem [shape: bf16[128,256], index: 1, kind: input, shape index: {}]   ;;  %s300_s0 = inlined_call_operand.vmem [shape: bf16[8,128], index: 0, kind: input, shape index: {}]   ;;  %s301_s2 = inlined_call_operand.vmem [shape: f32[1,256], index: 2, kind: input, shape index: {}]   ;;  %s302_s3 = inlined_call_operand.vmem [shape: bf16[8,256], index: 3, kind: output, shape index: {}]  }
   0x1   :  { %v197_v0 = vld [vmem:[%s299_s1 + $0x4] ss:$8 sps:$4 sm:$0xff]   ;;  %156 = vmatprep.mubr.bf16.mxu0 %v221_v1  ;;  %v199_v2 = vld [vmem:[%s299_s1] ss:$8 sps:$4 sm:$0xff]   ;;  %v200_v3 = vld [vmem:[%s299_s1 + $0x14] ss:$8 sps:$4 sm:$0xff]  }
   0x2   :  { %124 = vmatprep.subr.bf16.mxu0 %v197_v0  ;;  %v202_v4 = vld [vmem:[%s299_s1 + $0x10] ss:$8 sps:$4 sm:$0xff]   ;;  %v203_v5 = vld [vmem:[%s299_s1 + $0x24] ss:$8 sps:$4 sm:$0xff]   ;;  %v205_v6 = vld [vmem:[%s299_s1 + $0x20] ss:$8 sps:$4 sm:$0xff]  }
   0x3   :  { %125 = vmatpush1.bf16.msra.mxu0 %v199_v2  ;;  %v206_v7 = vld [vmem:[%s299_s1 + $0x34] ss:$8 sps:$4 sm:$0xff]   ;;  %v208_v8 = vld [vmem:[%s299_s1 + $0x30] ss:$8 sps:$4 sm:$0xff]   ;;  %v209_v9 = vld [vmem:[%s299_s1 + $0x44] ss:$8 sps:$4 sm:$0xff]  }
   0x4   :  { %126 = vmatprep.subr.bf16.mxu0 %v200_v3  ;;  %v211_v10 = vld [vmem:[%s299_s1 + $0x40] ss:$8 sps:$4 sm:$0xff]   ;;  %v212_v11 = vld [vmem:[%s299_s1 + $0x54] ss:$8 sps:$4 sm:$0xff]   ;;  %v214_v12 = vld [vmem:[%s299_s1 + $0x50] ss:$8 sps:$4 sm:$0xff]  }
   0x5   :  { %v215_v13 = vld [vmem:[%s299_s1 + $0x64] ss:$8 sps:$4 sm:$0xff]   ;;  %v217_v14 = vld [vmem:[%s299_s1 + $0x60] ss:$8 sps:$4 sm:$0xff]   ;;  %v218_v15 = vld [vmem:[%s299_s1 + $0x74] ss:$8 sps:$4 sm:$0xff]  }
   0x6   :  { %v220_v16 = vld [vmem:[%s299_s1 + $0x70] ss:$8 sps:$4 sm:$0xff]   ;;  %v15_v17 = vld [vmem:[%s300_s0] sm:$0xf]  ;;  %v35_v19 = vshrl.u32 %v34_v18, 7 }
   0x7   :  { %127 = vmatpush1.bf16.msra.mxu0 %v202_v4  ;;  %v32_v21 = vld [vmem:[%s301_s2] sm:$0x3] }
   0x8   :  { %128 = vmatprep.subr.bf16.mxu0 %v203_v5  ;;  %v36_v20 = vsub.s32 0, %v35_v19  ;;  %v40_v22 = vsub.s32 1, %v35_v19 }
   0xa   :  { %v37_v23 = vrot.slane %v32_v21, %v36_v20  ;;  %v41_v24 = vrot.slane %v32_v21, %v40_v22 }
   0xb   :  { %129 = vmatpush1.bf16.msra.mxu0 %v205_v6 }
   0xc   :  { %130 = vmatprep.subr.bf16.mxu0 %v206_v7 }
   0xf   :  { %131 = vmatpush1.bf16.msra.mxu0 %v208_v8 }
  0x10   :  { %132 = vmatprep.subr.bf16.mxu0 %v209_v9 }
  0x13   :  { %133 = vmatpush1.bf16.msra.mxu0 %v211_v10 }
  0x14   :  { %134 = vmatprep.subr.bf16.mxu0 %v212_v11 }
  0x17   :  { %135 = vmatpush1.bf16.msra.mxu0 %v214_v12 }
  0x18   :  { %136 = vmatprep.subr.bf16.mxu0 %v215_v13 }
  0x1b   :  { %137 = vmatpush1.bf16.msra.mxu0 %v217_v14 }
  0x1c   :  { %138 = vmatprep.subr.bf16.mxu0 %v218_v15 }
  0x1f   :  { %139 = vmatpush1.bf16.msra.mxu0 %v220_v16 }
  0x22   :  { %157 = vmatmul.mubr.bf16.vlgmr.msra.gmra.mrb[0].mxu0 %v15_v17 }
  0xf5   :  { %v158_v25 = vpop.f32.mrb[0].mxu0 }
  0xf6   :  { %v159_v26 = vadd.f32 %v158_v25, %v37_v23  ;;  %v160_v27 = vpop.f32.mrb[1].mxu0 }
  0xf7   :  { %v161_v28 = vadd.f32 %v160_v27, %v41_v24  ;;  %v162_v29 = vpop.f32.mrb[2].mxu0 }
  0xf8   :  { %v163_v30 = vpop.f32.mrb[3].mxu0 }
  0xf9   :  { %v195_v31 = vpack.c.bf16 %v161_v28, %v159_v26 }
  0xfb   :  { %173 = vst [vmem:[%s302_s3] sm:$0xff] %v195_v31 }

// kernel: resnet50_forward.60
= control target key start
LH: loop header
LB: loop body
LE: loop exit
PB: predicated region body
PF: predicated region fallthrough
CT: control target
= control target key end

     0   :  { %v4047_v0 = vmov 0.0   ;;  %vm108_vm0 = vsmask.f32 7424  ;;  %vm4048_vm1 = vmmov 0   ;;  %vm218_vm2 = vcmask 130048   ;;  %s5082_s1 = inlined_call_operand.vmem [shape: bf16[9,16,16], index: 1, kind: input, shape index: {}]   ;;  %s5083_s0 = inlined_call_operand.vmem [shape: bf16[222,16], index: 0, kind: input, shape index: {}]   ;;  %s5084_s2 = inlined_call_operand.vmem [shape: bf16[200,16], index: 2, kind: output, shape index: {}]  }
   0x1   :  { %3326 = vmatprep.subr.bf16.mxu0 %v4047_v0  ;;  %3110 = vmatprep.subr.bf16.mxu1 %v4047_v0  ;;  %v3989_v1 = vld [vmem:[%s5082_s1 + $0x20] sm:$0xff]   ;;  %v3990_v2 = vld [vmem:[%s5082_s1 + $0x8] sm:$0xff]   ;;  %vm1135_vm3 = vsmask.f32 6400  ;;  %v4116_v14 = vld [vmem:[%s5083_s0 + $0x10] sm:$0xff]   ;;  %vm1465_vm4 = vcmask 1045504  }
   0x2   :  { %3112 = vmatprep.mubr.msk.bf16.mxu1 %vm4048_vm1, %v4047_v0  ;;  %3328 = vmatprep.mubr.msk.bf16.mxu0 %vm4048_vm1, %v4047_v0  ;;  %v12_v3 = vld [vmem:[%s5083_s0] sm:$0xf]  ;;  %v4082_v4 = vld [vmem:[%s5083_s0 + $0x4] sm:$0xf]  ;;  %v4091_v6 = vld [vmem:[%s5083_s0 + $0x8] sm:$0xff]   ;;  %v125_v22 = vshll.u32 %v4116_v14, 16 }
   0x3   :  { %3327 = vmatpush3.bf16.msra.mxu0 %v3989_v1  ;;  %3111 = vmatpush3.bf16.msra.mxu1 %v3990_v2  ;;  %v4086_v5 = vcombine.low %v12_v3, %v4082_v4  ;;  %v803_v7 = vld [vmem:[%s5083_s0 + $0x4] sm:$0xe]  ;;  %v4099_v8 = vld [vmem:[%s5083_s0 + $0x8] sm:$0xf]  ;;  %v117_v11 = vshll.u32 %v4091_v6, 16  ;;  %v4111_v13 = vld [vmem:[%s5083_s0 + $0xc] sm:$0xff]  }
   0x4   :  { %3380 = vmatprep.subr.bf16.mxu0 %v4047_v0  ;;  %3164 = vmatprep.subr.bf16.mxu1 %v4047_v0  ;;  %v4106_v12 = vcombine.low %v803_v7, %v4099_v8  ;;  %v1145_v19 = vshrl.u32 %v4111_v13, 16  ;;  %v1148_v20 = vshll.u32 %v4111_v13, 16  ;;  %v121_v21 = vshrl.u32 %v4091_v6, 16  ;;  %v3997_v28 = vld [vmem:[%s5082_s1] sm:$0xff]   ;;  %v4131_v31 = vld [vmem:[%s5083_s0 + $0x14] sm:$0xff]   ;;  %v3995_v33 = vld [vmem:[%s5082_s1 + $0x28] sm:$0xff]  }
   0x5   :  { %v110_v9 = vshrl.u32 %v4086_v5, 16  ;;  %v112_v10 = vshll.u32 %v4086_v5, 16  ;;  %v119_v16 = vrot.slane %v117_v11, 1  ;;  %v127_v34 = vrot.slane %v125_v22, 1  ;;  %v4144_v38 = vld [vmem:[%s5083_s0 + $0x18] sm:$0xff]   ;;  %v4167_v52 = vld [vmem:[%s5083_s0 + $0x24] sm:$0xff]  }
   0x6   :  { %v1137_v17 = vshrl.u32 %v4106_v12, 16  ;;  %v1140_v18 = vshll.u32 %v4106_v12, 16  ;;  %v1147_v26 = vrot.slane %v1145_v19, 1  ;;  %v1150_v27 = vrot.slane %v1148_v20, 2  ;;  %v4149_v39 = vld [vmem:[%s5083_s0 + $0x1c] sm:$0xff]   ;;  %v4187_v62 = vld [vmem:[%s5083_s0 + $0x2c] sm:$0xff]  }
   0x7   :  { %v114_v15 = vrot.slane %v112_v10, 1  ;;  %v123_v35 = vor.u32 %v121_v21, %v119_v16  ;;  %v1154_v36 = vshrl.u32 %v4131_v31, 16  ;;  %v1157_v37 = vshll.u32 %v4131_v31, 16  ;;  %v4174_v55 = vld [vmem:[%s5083_s0 + $0x20] sm:$0xff]   ;;  %v4209_v19 = vld [vmem:[%s5083_s0 + $0x30] sm:$0xff]  }
   0x8   :  { %v1139_v24 = vrot.slane %v1137_v17, 1  ;;  %v1142_v25 = vrot.slane %v1140_v18, 2  ;;  %v1151_v32 = vor.u32 %v1150_v27, %v1147_v26  ;;  %v1163_v43 = vshrl.u32 %v4149_v39, 16  ;;  %v4214_v20 = vld [vmem:[%s5083_s0 + $0x34] sm:$0xff]  }
   0x9   :  { %v115_v23 = vor.u32 %v114_v15, %v110_v9  ;;  %v1156_v41 = vrot.slane %v1154_v36, 1  ;;  %v1159_v42 = vrot.slane %v1157_v37, 2  ;;  %v1166_v44 = vshll.u32 %v4149_v39, 16  ;;  %v4196_v9 = vld [vmem:[%s5083_s0 + $0x28] sm:$0xff]   ;;  %v4237_v36 = vld [vmem:[%s5083_s0 + $0x3c] sm:$0xff]  }
   0xa   :  { %v1143_v30 = vor.u32 %v1142_v25, %v1139_v24  ;;  %v128_v45 = vsel %vm108_vm0, %v123_v35, %v127_v34  ;;  %v129_v47 = vshrl.u32 %v4116_v14, 16  ;;  %v133_v48 = vshll.u32 %v4144_v38, 16 }
   0xb   :  { %v120_v29 = vsel %vm108_vm0, %v115_v23, %v119_v16  ;;  %v1160_v46 = vor.u32 %v1159_v42, %v1156_v41  ;;  %v1165_v50 = vrot.slane %v1163_v43, 1  ;;  %v1168_v51 = vrot.slane %v1166_v44, 2 }
   0xc   :  { %3113 = vmatmul.mubr.msk.bf16.vlgmr.msra.gmra.mrb[0].mxu1 %vm218_vm2, %v120_v29  ;;  %v1152_v40 = vsel %vm1135_vm3, %v1143_v30, %v1151_v32  ;;  %v131_v53 = vor.u32 %v129_v47, %v127_v34  ;;  %v135_v54 = vrot.slane %v133_v48, 1  ;;  %v1172_v57 = vshrl.u32 %v4167_v52, 16  ;;  %v4229_v30 = vld [vmem:[%s5083_s0 + $0x38] sm:$0xff]  }
   0xd   :  { %3116 = vmatprep.mubr.msk.bf16.mxu1 %vm4048_vm1, %v4047_v0  ;;  %3165 = vmatpush3.bf16.msra.mxu1 %v3997_v28  ;;  %v1161_v49 = vsel %vm1135_vm3, %v1151_v32, %v1160_v46  ;;  %v1169_v56 = vor.u32 %v1168_v51, %v1165_v50  ;;  %v1175_v58 = vshll.u32 %v4167_v52, 16  ;;  %v137_v60 = vshrl.u32 %v4144_v38, 16 }
   0xe   :  { %3218 = vmatprep.subr.bf16.mxu1 %v4047_v0  ;;  %3329 = vmatmul.mubr.msk.bf16.vlgmr.msra.gmra.mrb[0].mxu0 %vm218_vm2, %v1152_v40  ;;  %v136_v59 = vsel %vm108_vm0, %v131_v53, %v135_v54  ;;  %v141_v61 = vshll.u32 %v4174_v55, 16  ;;  %v1174_v1 = vrot.slane %v1172_v57, 1  ;;  %v1181_v11 = vshrl.u32 %v4187_v62, 16 }
   0xf   :  { %3381 = vmatpush3.bf16.msra.mxu0 %v3995_v33  ;;  %3332 = vmatprep.mubr.msk.bf16.mxu0 %vm4048_vm1, %v4047_v0  ;;  %v1170_v63 = vsel %vm1135_vm3, %v1160_v46, %v1169_v56  ;;  %v1177_v2 = vrot.slane %v1175_v58, 2  ;;  %v139_v3 = vor.u32 %v137_v60, %v135_v54  ;;  %v1184_v15 = vshll.u32 %v4187_v62, 16  ;;  %v4257_v54 = vld [vmem:[%s5083_s0 + $0x40] sm:$0xff]  }
  0x10   :  { %3434 = vmatprep.subr.bf16.mxu0 %v4047_v0  ;;  %v143_v7 = vrot.slane %v141_v61, 1  ;;  %v145_v17 = vshrl.u32 %v4174_v55, 16  ;;  %v149_v18 = vshll.u32 %v4196_v9, 16  ;;  %v1183_v22 = vrot.slane %v1181_v11, 1  ;;  %v1458_v60 = vld [vmem:[%s5083_s0 + $0x4] sm:$0xc] }
  0x11   :  { %v1178_v10 = vor.u32 %v1177_v2, %v1174_v1  ;;  %v1186_v23 = vrot.slane %v1184_v15, 2  ;;  %v157_v26 = vshll.u32 %v4209_v19, 16  ;;  %v1190_v28 = vshrl.u32 %v4214_v20, 16 }
  0x12   :  { %v144_v16 = vsel %vm108_vm0, %v139_v3, %v143_v7  ;;  %v147_v24 = vor.u32 %v145_v17, %v143_v7  ;;  %v151_v25 = vrot.slane %v149_v18, 1  ;;  %v1193_v29 = vshll.u32 %v4214_v20, 16  ;;  %v4279_v3 = vld [vmem:[%s5083_s0 + $0x48] sm:$0xff]   ;;  %v4011_v17 = vld [vmem:[%s5082_s1 + $0x30] sm:$0xff]  }
  0x13   :  { %v1179_v21 = vsel %vm1135_vm3, %v1169_v56, %v1178_v10  ;;  %v1187_v27 = vor.u32 %v1186_v23, %v1183_v22  ;;  %v153_v33 = vshrl.u32 %v4196_v9, 16  ;;  %v161_v34 = vshrl.u32 %v4209_v19, 16 }
  0x14   :  { %3117 = vmatmul.mubr.msk.bf16.gmra.mrb[4].mxu1 %vm218_vm2, %v128_v45  ;;  %v152_v32 = vsel %vm108_vm0, %v147_v24, %v151_v25  ;;  %v159_v35 = vrot.slane %v157_v26, 1  ;;  %v1192_v40 = vrot.slane %v1190_v28, 1  ;;  %v1195_v41 = vrot.slane %v1193_v29, 2 }
  0x15   :  { %3120 = vmatprep.mubr.msk.bf16.mxu1 %vm4048_vm1, %v4047_v0  ;;  %v1188_v37 = vsel %vm1135_vm3, %v1178_v10, %v1187_v27  ;;  %v165_v42 = vshll.u32 %v4229_v30, 16  ;;  %v155_v43 = vor.u32 %v153_v33, %v151_v25  ;;  %v1199_v44 = vshrl.u32 %v4237_v36, 16 }
  0x16   :  { %3333 = vmatmul.mubr.msk.bf16.gmra.mrb[4].mxu0 %vm218_vm2, %v1161_v49  ;;  %v1202_v45 = vshll.u32 %v4237_v36, 16  ;;  %v1196_v46 = vor.u32 %v1195_v41, %v1192_v40  ;;  %v163_v51 = vor.u32 %v161_v34, %v159_v35  ;;  %v169_v58 = vshrl.u32 %v4229_v30, 16 }
  0x17   :  { %3336 = vmatprep.mubr.msk.bf16.mxu0 %vm4048_vm1, %v4047_v0  ;;  %v160_v47 = vsel %vm108_vm0, %v155_v43, %v159_v35  ;;  %v1201_v49 = vrot.slane %v1199_v44, 1  ;;  %v167_v53 = vrot.slane %v165_v42, 1  ;;  %v1467_v10 = vrot.slane %v4111_v13, 2  ;;  %v4327_v35 = vld [vmem:[%s5083_s0 + $0x60] sm:$0xf] }
  0x18   :  { %v1197_v48 = vsel %vm1135_vm3, %v1187_v27, %v1196_v46  ;;  %v1204_v50 = vrot.slane %v1202_v45, 2  ;;  %v177_v11 = vshrl.u32 %v4257_v54, 16  ;;  %v181_v15 = vshll.u32 %v4279_v3, 16 }
  0x19   :  { %v168_v57 = vsel %vm108_vm0, %v163_v51, %v167_v53  ;;  %v171_v1 = vor.u32 %v169_v58, %v167_v53  ;;  %v1469_v22 = vrot.slane %v4131_v31, 2  ;;  %v185_v24 = vshrl.u32 %v4279_v3, 16  ;;  %v4315_v31 = vld [vmem:[%s5083_s0 + $0x58] sm:$0xff]  }
  0x1a   :  { %v4262_v56 = vor.u32 %v1204_v50, %v1201_v49  ;;  %v183_v13 = vrot.slane %v181_v15, 1  ;;  %v1471_v29 = vrot.slane %v4149_v39, 2  ;;  %v197_v34 = vshll.u32 %v4315_v31, 16  ;;  %v4410_v15 = vld [vmem:[%s5083_s0 + $0x54] sm:$0xff]  }
  0x1b   :  { %v1470_v26 = vsel %vm1465_vm4, %v1467_v10, %v1469_v22  ;;  %v1473_v43 = vrot.slane %v4167_v52, 2  ;;  %v201_v45 = vshrl.u32 %v4315_v31, 16  ;;  %v1475_v50 = vrot.slane %v4187_v62, 2 }
  0x1c   :  { %3121 = vmatmul.mubr.msk.bf16.gmra.mrb[8].mxu1 %vm218_vm2, %v136_v59  ;;  %v173_v59 = vshll.u32 %v4257_v54, 16  ;;  %v1206_v61 = vsel %vm1135_vm3, %v1196_v46, %v4262_v56  ;;  %v187_v27 = vor.u32 %v185_v24, %v183_v13  ;;  %v1472_v40 = vsel %vm1465_vm4, %v1469_v22, %v1471_v29  ;;  %v4435_v22 = vld [vmem:[%s5083_s0 + $0x64] sm:$0xf] }
  0x1d   :  { %3124 = vmatprep.mubr.msk.bf16.mxu1 %vm4048_vm1, %v4047_v0  ;;  %v199_v41 = vrot.slane %v197_v34, 1  ;;  %v1476_v53 = vsel %vm1465_vm4, %v1473_v43, %v1475_v50  ;;  %vm571_vm5 = vcmask 1046528   ;;  %vm2029_vm6 = vsmask.f32 5376 }
  0x1e   :  { %3337 = vmatmul.mubr.msk.bf16.gmra.mrb[8].mxu0 %vm218_vm2, %v1170_v63  ;;  %v2856_v63 = vcombine.low %v1458_v60, %v4099_v8  ;;  %v175_v2 = vrot.slane %v173_v59, 1  ;;  %v1477_v59 = vrot.slane %v4214_v20, 2  ;;  %vm2359_vm7 = vcmask 1044480  }
  0x1f   :  { %3340 = vmatprep.mubr.msk.bf16.mxu0 %vm4048_vm1, %v4047_v0  ;;  %vm2717_vm8 = vcmask 125952  }
  0x20   :  { %v1466_v7 = vrot.slane %v2856_v63, 2  ;;  %v176_v8 = vsel %vm108_vm0, %v171_v1, %v175_v2  ;;  %v179_v18 = vor.u32 %v177_v11, %v175_v2  ;;  %v1478_v60 = vsel %vm1465_vm4, %v1475_v50, %v1477_v59  ;;  %v4016_v63 = vld [vmem:[%s5082_s1 + $0x10] sm:$0xff]   ;;  %v4381_v2 = vld [vmem:[%s5083_s0 + $0x44] sm:$0xff]  }
  0x22   :  { %v184_v23 = vsel %vm108_vm0, %v179_v18, %v183_v13  ;;  %v4424_v18 = vld [vmem:[%s5083_s0 + $0x5c] sm:$0xff]  }
  0x23   :  { %v1487_v13 = vrot.slane %v4424_v18, 2 }
  0x24   :  { %3125 = vmatmul.mubr.msk.bf16.gmra.mrb[12].mxu1 %vm218_vm2, %v144_v16  ;;  %v1468_v16 = vsel %vm1465_vm4, %v1466_v7, %v1467_v10  ;;  %v4396_v10 = vld [vmem:[%s5083_s0 + $0x4c] sm:$0xff]  }
  0x25   :  { %3128 = vmatprep.mubr.msk.bf16.mxu1 %vm4048_vm1, %v4047_v0 }
  0x26   :  { %3341 = vmatmul.mubr.msk.bf16.gmra.mrb[12].mxu0 %vm218_vm2, %v1179_v21  ;;  %v4298_v21 = vld [vmem:[%s5083_s0 + $0x50] sm:$0xff]  }
  0x27   :  { %3344 = vmatprep.mubr.msk.bf16.mxu0 %vm4048_vm1, %v4047_v0  ;;  %v189_v25 = vshll.u32 %v4298_v21, 16  ;;  %v193_v33 = vshrl.u32 %v4298_v21, 16 }
  0x29   :  { %v191_v28 = vrot.slane %v189_v25, 1 }
  0x2b   :  { %v195_v39 = vor.u32 %v193_v33, %v191_v28  ;;  %v4476_v33 = vld [vmem:[%s5083_s0 + $0x10] sm:$0xff]  }
  0x2c   :  { %3129 = vmatmul.mubr.msk.bf16.gmra.mrb[16].mxu1 %vm218_vm2, %v152_v32  ;;  %v192_v32 = vsel %vm108_vm0, %v187_v27, %v191_v28  ;;  %v1697_v28 = vld [vmem:[%s5083_s0 + $0x8] sm:$0xc] }
  0x2d   :  { %3132 = vmatprep.mubr.msk.bf16.mxu1 %vm4048_vm1, %v4047_v0  ;;  %v200_v44 = vsel %vm108_vm0, %v195_v39, %v199_v41  ;;  %v4024_v39 = vld [vmem:[%s5082_s1 + $0x38] sm:$0xff]  }
  0x2e   :  { %3345 = vmatmul.mubr.msk.bf16.gmra.mrb[16].mxu0 %vm218_vm2, %v1188_v37  ;;  %v39_v37 = vld [vmem:[%s5083_s0 + $0x64] sm:$0x1] }
  0x2f   :  { %3348 = vmatprep.mubr.msk.bf16.mxu0 %vm4048_vm1, %v4047_v0  ;;  %v4337_v42 = vcombine.low %v4327_v35, %v39_v37  ;;  %v1792_v37 = vrot.slane %v4476_v33, 2 }
  0x31   :  { %v205_v46 = vshll.u32 %v4337_v42, 16 }
  0x33   :  { %v207_v49 = vrot.slane %v205_v46, 1 }
  0x34   :  { %3133 = vmatmul.mubr.msk.bf16.gmra.mrb[20].mxu1 %vm218_vm2, %v160_v47  ;;  %v1474_v47 = vsel %vm1465_vm4, %v1471_v29, %v1473_v43  ;;  %v4466_v29 = vld [vmem:[%s5083_s0 + $0xc] sm:$0xf] }
  0x35   :  { %3136 = vmatprep.mubr.msk.bf16.mxu1 %vm4048_vm1, %v4047_v0 }
  0x36   :  { %3349 = vmatmul.mubr.msk.bf16.gmra.mrb[20].mxu0 %vm218_vm2, %v1197_v48  ;;  %v203_v48 = vor.u32 %v201_v45, %v199_v41  ;;  %v4494_v41 = vld [vmem:[%s5083_s0 + $0x18] sm:$0xff]   ;;  %v4509_v45 = vld [vmem:[%s5083_s0 + $0x20] sm:$0xff]  }
  0x37   :  { %3352 = vmatprep.mubr.msk.bf16.mxu0 %vm4048_vm1, %v4047_v0  ;;  %v1794_v43 = vrot.slane %v4494_v41, 2  ;;  %v1796_v46 = vrot.slane %v4509_v45, 2 }
  0x38   :  { %v208_v51 = vsel %vm108_vm0, %v203_v48, %v207_v49  ;;  %v4523_v48 = vld [vmem:[%s5083_s0 + $0x28] sm:$0xff]  }
  0x3c   :  { %3137 = vmatmul.mubr.msk.bf16.gmra.mrb[24].mxu1 %vm218_vm2, %v168_v57  ;;  %v209_v57 = vshrl.u32 %v4337_v42, 16 }
  0x3d   :  { %3140 = vmatprep.mubr.msk.bf16.mxu1 %vm4048_vm1, %v4047_v0 }
  0x3e   :  { %3353 = vmatmul.mubr.msk.bf16.gmra.mrb[24].mxu0 %vm218_vm2, %v1206_v61  ;;  %v211_v58 = vor.u32 %v209_v57, %v207_v49  ;;  %v1479_v61 = vrot.slane %v4237_v36, 2  ;;  %v1798_v49 = vrot.slane %v4523_v48, 2 }
  0x3f   :  { %3382 = vmatprep.mubr.msk.bf16.mxu0 %vm4048_vm1, %v4047_v0 }
  0x40   :  { %v1480_v1 = vsel %vm1465_vm4, %v1477_v59, %v1479_v61  ;;  %v1799_v50 = vsel %vm1465_vm4, %v1796_v46, %v1798_v49  ;;  %v564_v59 = vld [vmem:[%s5083_s0] sm:$0xe] }
  0x44   :  { %3141 = vmatmul.mubr.msk.bf16.gmra.mrb[28].mxu1 %vm218_vm2, %v176_v8  ;;  %v1483_v8 = vrot.slane %v4396_v10, 2 }
  0x45   :  { %3144 = vmatprep.mubr.msk.bf16.mxu1 %vm4048_vm1, %v4047_v0 }
  0x46   :  { %3383 = vmatmul.mubr.msk.bf16.vlgmr.msra.gmra.mrb[0].mxu0 %vm218_vm2, %v1468_v16  ;;  %v1485_v16 = vrot.slane %v4410_v15, 2 }
  0x47   :  { %3435 = vmatpush3.bf16.msra.mxu0 %v4011_v17  ;;  %3386 = vmatprep.mubr.msk.bf16.mxu0 %vm4048_vm1, %v4047_v0 }
  0x48   :  { %3488 = vmatprep.subr.bf16.mxu0 %v4047_v0  ;;  %v1486_v17 = vsel %vm1465_vm4, %v1483_v8, %v1485_v16  ;;  %v1488_v24 = vsel %vm1465_vm4, %v1485_v16, %v1487_v13 }
  0x4c   :  { %3145 = vmatmul.mubr.msk.bf16.gmra.mrb[32].mxu1 %vm218_vm2, %v184_v23  ;;  %v1128_v23 = vld [vmem:[%s5083_s0 + $0x68] sm:$0x3] }
  0x4d   :  { %3148 = vmatprep.mubr.msk.bf16.mxu1 %vm4048_vm1, %v4047_v0  ;;  %v4444_v25 = vcombine.low %v4435_v22, %v1128_v23 }
  0x4e   :  { %3387 = vmatmul.mubr.msk.bf16.gmra.mrb[4].mxu0 %vm218_vm2, %v1470_v26 }
  0x4f   :  { %3390 = vmatprep.mubr.msk.bf16.mxu0 %vm4048_vm1, %v4047_v0  ;;  %v1489_v26 = vrot.slane %v4444_v25, 2 }
  0x51   :  { %v1490_v27 = vsel %vm1465_vm4, %v1487_v13, %v1489_v26 }
  0x54   :  { %3149 = vmatmul.mubr.msk.bf16.gmra.mrb[36].mxu1 %vm218_vm2, %v192_v32  ;;  %v4471_v32 = vcombine.low %v1697_v28, %v4466_v29 }
  0x55   :  { %3152 = vmatprep.mubr.msk.bf16.mxu1 %vm4048_vm1, %v4047_v0 }
  0x56   :  { %3391 = vmatmul.mubr.msk.bf16.gmra.mrb[8].mxu0 %vm218_vm2, %v1472_v40  ;;  %v1791_v34 = vrot.slane %v4471_v32, 2 }
  0x57   :  { %3394 = vmatprep.mubr.msk.bf16.mxu0 %vm4048_vm1, %v4047_v0 }
  0x58   :  { %v1793_v40 = vsel %vm1465_vm4, %v1791_v34, %v1792_v37 }
  0x5c   :  { %3153 = vmatmul.mubr.msk.bf16.gmra.mrb[40].mxu1 %vm218_vm2, %v200_v44  ;;  %v1795_v44 = vsel %vm1465_vm4, %v1792_v37, %v1794_v43  ;;  %v4619_v37 = vld [vmem:[%s5083_s0 + $0x58] sm:$0xff]  }
  0x5d   :  { %3156 = vmatprep.mubr.msk.bf16.mxu1 %vm4048_vm1, %v4047_v0 }
  0x5e   :  { %3395 = vmatmul.mubr.msk.bf16.gmra.mrb[12].mxu0 %vm218_vm2, %v1474_v47  ;;  %v1797_v47 = vsel %vm1465_vm4, %v1794_v43, %v1796_v46 }
  0x5f   :  { %3398 = vmatprep.mubr.msk.bf16.mxu0 %vm4048_vm1, %v4047_v0 }
  0x64   :  { %3157 = vmatmul.mubr.msk.bf16.gmra.mrb[44].mxu1 %vm218_vm2, %v208_v51  ;;  %v4537_v51 = vld [vmem:[%s5083_s0 + $0x30] sm:$0xff]  }
  0x65   :  { %3160 = vmatprep.mubr.msk.bf16.mxu1 %vm4048_vm1, %v4047_v0 }
  0x66   :  { %3399 = vmatmul.mubr.msk.bf16.gmra.mrb[16].mxu0 %vm218_vm2, %v1476_v53  ;;  %v1800_v53 = vrot.slane %v4537_v51, 2 }
  0x67   :  { %3402 = vmatprep.mubr.msk.bf16.mxu0 %vm4048_vm1, %v4047_v0 }
  0x68   :  { %v1801_v57 = vsel %vm1465_vm4, %v1798_v49, %v1800_v53  ;;  %v4647_v49 = vld [vmem:[%s5083_s0 + $0x68] sm:$0xf] }
  0x6c   :  { %3161 = vmatmul.mubr.msk.bf16.gmra.mrb[48].mxu1 %vm218_vm2, %v211_v58  ;;  %v4551_v58 = vld [vmem:[%s5083_s0 + $0x38] sm:$0xff]  }
  0x6d   :  { %3166 = vmatprep.mubr.msk.bf16.mxu1 %vm4048_vm1, %v4047_v0 }
  0x6e   :  { %3403 = vmatmul.mubr.msk.bf16.gmra.mrb[20].mxu0 %vm218_vm2, %v1478_v60  ;;  %v2776_v60 = vcombine.low %v4327_v35, %v4327_v35 }
  0x6f   :  { %3406 = vmatprep.mubr.msk.bf16.mxu0 %vm4048_vm1, %v4047_v0 }
  0x74   :  { %3167 = vmatmul.mubr.msk.bf16.vlgmr.msra.gmra.mrb[0].mxu1 %vm218_vm2, %v4086_v5  ;;  %v1481_v5 = vrot.slane %v4381_v2, 2 }
  0x75   :  { %3170 = vmatprep.mubr.msk.bf16.mxu1 %vm4048_vm1, %v4047_v0  ;;  %3219 = vmatpush3.bf16.msra.mxu1 %v4016_v63  ;;  %v2793_v63 = vcombine.low %v564_v59, %v4082_v4 }
  0x76   :  { %3272 = vmatprep.subr.bf16.mxu1 %v4047_v0  ;;  %3407 = vmatmul.mubr.msk.bf16.gmra.mrb[24].mxu0 %vm218_vm2, %v1480_v1  ;;  %v1482_v7 = vsel %vm1465_vm4, %v1479_v61, %v1481_v5  ;;  %v1484_v11 = vsel %vm1465_vm4, %v1481_v5, %v1483_v8  ;;  %v1802_v61 = vrot.slane %v4551_v58, 2  ;;  %v4570_v5 = vld [vmem:[%s5083_s0 + $0x40] sm:$0xff]   ;;  %v573_v8 = vrot.slane %v4091_v6, 1 }
  0x77   :  { %3410 = vmatprep.mubr.msk.bf16.mxu0 %vm4048_vm1, %v4047_v0  ;;  %v1804_v4 = vrot.slane %v4570_v5, 2 }
  0x78   :  { %v1803_v1 = vsel %vm1465_vm4, %v1800_v53, %v1802_v61 }
  0x79   :  { %v1805_v16 = vsel %vm1465_vm4, %v1802_v61, %v1804_v4 }
  0x7c   :  { %3171 = vmatmul.mubr.msk.bf16.gmra.mrb[4].mxu1 %vm218_vm2, %v4091_v6  ;;  %v4588_v6 = vld [vmem:[%s5083_s0 + $0x48] sm:$0xff]  }
  0x7d   :  { %3174 = vmatprep.mubr.msk.bf16.mxu1 %vm4048_vm1, %v4047_v0  ;;  %v1806_v13 = vrot.slane %v4588_v6, 2 }
  0x7e   :  { %3411 = vmatmul.mubr.msk.bf16.gmra.mrb[28].mxu0 %vm218_vm2, %v1482_v7  ;;  %v572_v7 = vrot.slane %v2793_v63, 1  ;;  %v585_v63 = vrot.slane %v4229_v30, 1 }
  0x7f   :  { %3414 = vmatprep.mubr.msk.bf16.mxu0 %vm4048_vm1, %v4047_v0 }
  0x80   :  { %v574_v35 = vsel %vm571_vm5, %v572_v7, %v573_v8  ;;  %v2039_v7 = vshrl.u32 %v4476_v33, 16 }
  0x84   :  { %3175 = vmatmul.mubr.msk.bf16.gmra.mrb[8].mxu1 %vm218_vm2, %v4116_v14 }
  0x85   :  { %3178 = vmatprep.mubr.msk.bf16.mxu1 %vm4048_vm1, %v4047_v0 }
  0x86   :  { %3415 = vmatmul.mubr.msk.bf16.gmra.mrb[32].mxu0 %vm218_vm2, %v1484_v11  ;;  %v4033_v11 = vld [vmem:[%s5082_s1 + $0x18] sm:$0xff]  }
  0x87   :  { %3418 = vmatprep.mubr.msk.bf16.mxu0 %vm4048_vm1, %v4047_v0 }
  0x8c   :  { %3179 = vmatmul.mubr.msk.bf16.gmra.mrb[12].mxu1 %vm218_vm2, %v4144_v38 }
  0x8d   :  { %3182 = vmatprep.mubr.msk.bf16.mxu1 %vm4048_vm1, %v4047_v0 }
  0x8e   :  { %3419 = vmatmul.mubr.msk.bf16.gmra.mrb[36].mxu0 %vm218_vm2, %v1486_v17  ;;  %v575_v17 = vrot.slane %v4116_v14, 1  ;;  %v4604_v14 = vld [vmem:[%s5083_s0 + $0x50] sm:$0xff]  }
  0x8f   :  { %3422 = vmatprep.mubr.msk.bf16.mxu0 %vm4048_vm1, %v4047_v0 }
  0x90   :  { %v576_v23 = vsel %vm571_vm5, %v573_v8, %v575_v17  ;;  %v2042_v8 = vshll.u32 %v4476_v33, 16 }
  0x94   :  { %3183 = vmatmul.mubr.msk.bf16.gmra.mrb[16].mxu1 %vm218_vm2, %v4174_v55 }
  0x95   :  { %3186 = vmatprep.mubr.msk.bf16.mxu1 %vm4048_vm1, %v4047_v0 }
  0x96   :  { %3423 = vmatmul.mubr.msk.bf16.gmra.mrb[40].mxu0 %vm218_vm2, %v1488_v24  ;;  %v1807_v24 = vsel %vm1465_vm4, %v1804_v4, %v1806_v13 }
  0x97   :  { %3426 = vmatprep.mubr.msk.bf16.mxu0 %vm4048_vm1, %v4047_v0 }
  0x9c   :  { %3187 = vmatmul.mubr.msk.bf16.gmra.mrb[20].mxu1 %vm218_vm2, %v4196_v9 }
  0x9d   :  { %3190 = vmatprep.mubr.msk.bf16.mxu1 %vm4048_vm1, %v4047_v0 }
  0x9e   :  { %3427 = vmatmul.mubr.msk.bf16.gmra.mrb[44].mxu0 %vm218_vm2, %v1490_v27  ;;  %v1808_v27 = vrot.slane %v4604_v14, 2 }
  0x9f   :  { %3430 = vmatprep.mubr.msk.bf16.mxu0 %vm4048_vm1, %v4047_v0 }
  0xa0   :  { %v1809_v34 = vsel %vm1465_vm4, %v1806_v13, %v1808_v27 }
  0xa4   :  { %3191 = vmatmul.mubr.msk.bf16.gmra.mrb[24].mxu1 %vm218_vm2, %v4209_v19 }
  0xa5   :  { %3194 = vmatprep.mubr.msk.bf16.mxu1 %vm4048_vm1, %v4047_v0 }
  0xa6   :  { %3431 = vmatmul.mubr.msk.bf16.gmra.mrb[48].mxu0 %vm218_vm2, %v1489_v26  ;;  %v577_v26 = vrot.slane %v4144_v38, 1  ;;  %v579_v38 = vrot.slane %v4174_v55, 1  ;;  %v581_v55 = vrot.slane %v4196_v9, 1 }
  0xa7   :  { %3436 = vmatprep.mubr.msk.bf16.mxu0 %vm4048_vm1, %v4047_v0 }
  0xa8   :  { %v578_v28 = vsel %vm571_vm5, %v575_v17, %v577_v26  ;;  %v587_v17 = vrot.slane %v4257_v54, 1 }
  0xac   :  { %3195 = vmatmul.mubr.msk.bf16.gmra.mrb[28].mxu1 %vm218_vm2, %v4229_v30  ;;  %v2041_v30 = vrot.slane %v2039_v7, 2  ;;  %v2078_v7 = vshll.u32 %v4537_v51, 16 }
  0xad   :  { %3198 = vmatprep.mubr.msk.bf16.mxu1 %vm4048_vm1, %v4047_v0 }
  0xae   :  { %3437 = vmatmul.mubr.msk.bf16.vlgmr.msra.gmra.mrb[0].mxu0 %vm218_vm2, %v1793_v40  ;;  %v1810_v40 = vrot.slane %v4619_v37, 2 }
  0xaf   :  { %3489 = vmatpush3.bf16.msra.mxu0 %v4024_v39  ;;  %3440 = vmatprep.mubr.msk.bf16.mxu0 %vm4048_vm1, %v4047_v0  ;;  %v580_v39 = vsel %vm571_vm5, %v577_v26, %v579_v38  ;;  %v588_v26 = vsel %vm571_vm5, %v585_v63, %v587_v17 }
  0xb0   :  { %3542 = vmatprep.subr.bf16.mxu0 %v4047_v0  ;;  %v1811_v43 = vsel %vm1465_vm4, %v1808_v27, %v1810_v40 }
  0xb4   :  { %3199 = vmatmul.mubr.msk.bf16.gmra.mrb[32].mxu1 %vm218_vm2, %v4257_v54  ;;  %v4040_v54 = vld [vmem:[%s5082_s1 + $0x40] sm:$0xff]  }
  0xb5   :  { %3202 = vmatprep.mubr.msk.bf16.mxu1 %vm4048_vm1, %v4047_v0 }
  0xb6   :  { %3441 = vmatmul.mubr.msk.bf16.gmra.mrb[4].mxu0 %vm218_vm2, %v1795_v44  ;;  %v4634_v44 = vld [vmem:[%s5083_s0 + $0x60] sm:$0xff]  }
  0xb7   :  { %3444 = vmatprep.mubr.msk.bf16.mxu0 %vm4048_vm1, %v4047_v0  ;;  %v1812_v46 = vrot.slane %v4634_v44, 2 }
  0xb9   :  { %v1813_v9 = vsel %vm1465_vm4, %v1810_v40, %v1812_v46 }
  0xbc   :  { %3203 = vmatmul.mubr.msk.bf16.gmra.mrb[36].mxu1 %vm218_vm2, %v4279_v3 }
  0xbd   :  { %3206 = vmatprep.mubr.msk.bf16.mxu1 %vm4048_vm1, %v4047_v0 }
  0xbe   :  { %3445 = vmatmul.mubr.msk.bf16.gmra.mrb[8].mxu0 %vm218_vm2, %v1797_v47  ;;  %v582_v47 = vsel %vm571_vm5, %v579_v38, %v581_v55  ;;  %v589_v38 = vrot.slane %v4279_v3, 1  ;;  %v591_v3 = vrot.slane %v4298_v21, 1 }
  0xbf   :  { %3448 = vmatprep.mubr.msk.bf16.mxu0 %vm4048_vm1, %v4047_v0 }
  0xc4   :  { %3207 = vmatmul.mubr.msk.bf16.gmra.mrb[40].mxu1 %vm218_vm2, %v4298_v21  ;;  %v593_v21 = vrot.slane %v4315_v31, 1 }
  0xc5   :  { %3210 = vmatprep.mubr.msk.bf16.mxu1 %vm4048_vm1, %v4047_v0 }
  0xc6   :  { %3449 = vmatmul.mubr.msk.bf16.gmra.mrb[12].mxu0 %vm218_vm2, %v1799_v50  ;;  %v1722_v50 = vld [vmem:[%s5083_s0 + $0x6c] sm:$0x3] }
  0xc7   :  { %3452 = vmatprep.mubr.msk.bf16.mxu0 %vm4048_vm1, %v4047_v0  ;;  %v2885_v53 = vcombine.low %v4647_v49, %v1722_v50 }
  0xc9   :  { %v1814_v59 = vrot.slane %v2885_v53, 2  ;;  %v2066_v53 = vshrl.u32 %v4523_v48, 16 }
  0xcb   :  { %v1815_v61 = vsel %vm1465_vm4, %v1812_v46, %v1814_v59 }
  0xcc   :  { %3211 = vmatmul.mubr.msk.bf16.gmra.mrb[44].mxu1 %vm218_vm2, %v4315_v31  ;;  %v595_v31 = vrot.slane %v4337_v42, 1 }
  0xcd   :  { %3214 = vmatprep.mubr.msk.bf16.mxu1 %vm4048_vm1, %v4047_v0 }
  0xce   :  { %3453 = vmatmul.mubr.msk.bf16.gmra.mrb[16].mxu0 %vm218_vm2, %v1801_v57  ;;  %v583_v57 = vrot.slane %v4209_v19, 1  ;;  %v2031_v19 = vshrl.u32 %v4471_v32, 16 }
  0xcf   :  { %3456 = vmatprep.mubr.msk.bf16.mxu0 %vm4048_vm1, %v4047_v0 }
  0xd0   :  { %v586_v4 = vsel %vm571_vm5, %v583_v57, %v585_v63 }
  0xd4   :  { %3215 = vmatmul.mubr.msk.bf16.gmra.mrb[48].mxu1 %vm218_vm2, %v2776_v60  ;;  %v584_v60 = vsel %vm571_vm5, %v581_v55, %v583_v57  ;;  %v590_v55 = vsel %vm571_vm5, %v587_v17, %v589_v38  ;;  %v2069_v57 = vshll.u32 %v4523_v48, 16  ;;  %v2087_v17 = vshll.u32 %v4551_v58, 16 }
  0xd5   :  { %3220 = vmatprep.mubr.msk.bf16.mxu1 %vm4048_vm1, %v4047_v0 }
  0xd6   :  { %3457 = vmatmul.mubr.msk.bf16.gmra.mrb[20].mxu0 %vm218_vm2, %v1803_v1  ;;  %v2034_v1 = vshll.u32 %v4471_v32, 16  ;;  %v2071_v63 = vrot.slane %v2069_v57, 3  ;;  %v4045_v57 = vld [vmem:[%s5082_s1 + $0x20] sm:$0xff]  }
  0xd7   :  { %3460 = vmatprep.mubr.msk.bf16.mxu0 %vm4048_vm1, %v4047_v0 }
  0xdc   :  { %3221 = vmatmul.mubr.msk.bf16.vlgmr.msra.gmra.mrb[0].mxu1 %vm218_vm2, %v574_v35  ;;  %v2033_v35 = vrot.slane %v2031_v19, 2 }
  0xdd   :  { %3224 = vmatprep.mubr.msk.bf16.mxu1 %vm4048_vm1, %v4047_v0  ;;  %3273 = vmatpush3.bf16.msra.mxu1 %v4033_v11  ;;  %v2036_v11 = vrot.slane %v2034_v1, 3  ;;  %v2075_v1 = vshrl.u32 %v4537_v51, 16 }
  0xde   :  { %3596 = vmatprep.subr.bf16.mxu1 %v4047_v0  ;;  %3461 = vmatmul.mubr.msk.bf16.gmra.mrb[24].mxu0 %vm218_vm2, %v1805_v16  ;;  %v2044_v16 = vrot.slane %v2042_v8, 3  ;;  %v594_v8 = vsel %vm571_vm5, %v591_v3, %v593_v21 }
  0xdf   :  { %3464 = vmatprep.mubr.msk.bf16.mxu0 %vm4048_vm1, %v4047_v0  ;;  %v2037_v32 = vor.u32 %v2036_v11, %v2033_v35  ;;  %v2077_v35 = vrot.slane %v2075_v1, 2  ;;  %v2080_v11 = vrot.slane %v2078_v7, 3  ;;  %v4046_v7 = vld [vmem:[%s5083_s0 + $0x1c] sm:$0xff]  }
  0xe0   :  { %v2045_v13 = vor.u32 %v2044_v16, %v2041_v30  ;;  %v2084_v16 = vshrl.u32 %v4551_v58, 16 }
  0xe1   :  { %v2081_v30 = vor.u32 %v2080_v11, %v2077_v35  ;;  %v2120_v35 = vshrl.u32 %v4619_v37, 16  ;;  %v2123_v11 = vshll.u32 %v4619_v37, 16 }
  0xe2   :  { %v2046_v27 = vsel %vm2029_vm6, %v2037_v32, %v2045_v13  ;;  %v596_v32 = vsel %vm571_vm5, %v593_v21, %v595_v31 }
  0xe4   :  { %3225 = vmatmul.mubr.msk.bf16.gmra.mrb[4].mxu1 %vm218_vm2, %v576_v23  ;;  %v2048_v23 = vshrl.u32 %v4494_v41, 16 }
  0xe5   :  { %3228 = vmatprep.mubr.msk.bf16.mxu1 %vm4048_vm1, %v4047_v0 }
  0xe6   :  { %3465 = vmatmul.mubr.msk.bf16.gmra.mrb[28].mxu0 %vm218_vm2, %v1807_v24  ;;  %v2051_v24 = vshll.u32 %v4494_v41, 16 }
  0xe7   :  { %3468 = vmatprep.mubr.msk.bf16.mxu0 %vm4048_vm1, %v4047_v0 }
  0xec   :  { %3229 = vmatmul.mubr.msk.bf16.gmra.mrb[8].mxu1 %vm218_vm2, %v578_v28  ;;  %v2050_v28 = vrot.slane %v2048_v23, 2  ;;  %v2086_v23 = vrot.slane %v2084_v16, 2  ;;  %v2122_v16 = vrot.slane %v2120_v35, 2 }
  0xed   :  { %3232 = vmatprep.mubr.msk.bf16.mxu1 %vm4048_vm1, %v4047_v0 }
  0xee   :  { %3469 = vmatmul.mubr.msk.bf16.gmra.mrb[32].mxu0 %vm218_vm2, %v1809_v34  ;;  %v2053_v34 = vrot.slane %v2051_v24, 3  ;;  %v2089_v24 = vrot.slane %v2087_v17, 3  ;;  %v2125_v17 = vrot.slane %v2123_v11, 3 }
  0xef   :  { %3472 = vmatprep.mubr.msk.bf16.mxu0 %vm4048_vm1, %v4047_v0 }
  0xf0   :  { %v2054_v40 = vor.u32 %v2053_v34, %v2050_v28  ;;  %v2090_v42 = vor.u32 %v2089_v24, %v2086_v23  ;;  %v2129_v23 = vshrl.u32 %v4634_v44, 16  ;;  %v2132_v24 = vshll.u32 %v4634_v44, 16 }
  0xf2   :  { %v2055_v46 = vsel %vm2029_vm6, %v2045_v13, %v2054_v40 }
  0xf4   :  { %3233 = vmatmul.mubr.msk.bf16.gmra.mrb[12].mxu1 %vm218_vm2, %v580_v39  ;;  %v2057_v39 = vshrl.u32 %v4509_v45, 16 }
  0xf5   :  { %3236 = vmatprep.mubr.msk.bf16.mxu1 %vm4048_vm1, %v4047_v0 }
  0xf6   :  { %3473 = vmatmul.mubr.msk.bf16.gmra.mrb[36].mxu0 %vm218_vm2, %v1811_v43  ;;  %v2060_v43 = vshll.u32 %v4509_v45, 16 }
  0xf7   :  { %3476 = vmatprep.mubr.msk.bf16.mxu0 %vm4048_vm1, %v4047_v0 }
  0xf8   :  { %v2062_v50 = vrot.slane %v2060_v43, 3 }
  0xfc   :  { %3237 = vmatmul.mubr.msk.bf16.gmra.mrb[16].mxu1 %vm218_vm2, %v582_v47  ;;  %v2059_v47 = vrot.slane %v2057_v39, 2 }
  0xfd   :  { %3240 = vmatprep.mubr.msk.bf16.mxu1 %vm4048_vm1, %v4047_v0 }
  0xfe   :  { %3477 = vmatmul.mubr.msk.bf16.gmra.mrb[40].mxu0 %vm218_vm2, %v1813_v9  ;;  %v2063_v9 = vor.u32 %v2062_v50, %v2059_v47 }
  0xff   :  { %3480 = vmatprep.mubr.msk.bf16.mxu0 %vm4048_vm1, %v4047_v0 }
 0x104   :  { %3241 = vmatmul.mubr.msk.bf16.gmra.mrb[20].mxu1 %vm218_vm2, %v584_v60  ;;  %v2064_v60 = vsel %vm2029_vm6, %v2054_v40, %v2063_v9  ;;  %v4043_v40 = vld [vmem:[%s5083_s0 + $0xc] sm:$0xff]  }
 0x105   :  { %3244 = vmatprep.mubr.msk.bf16.mxu1 %vm4048_vm1, %v4047_v0  ;;  %v898_v39 = vrot.slane %v4043_v40, 1 }
 0x106   :  { %3481 = vmatmul.mubr.msk.bf16.gmra.mrb[44].mxu0 %vm218_vm2, %v1815_v61  ;;  %v2068_v61 = vrot.slane %v2066_v53, 2 }
 0x107   :  { %3484 = vmatprep.mubr.msk.bf16.mxu0 %vm4048_vm1, %v4047_v0 }
 0x108   :  { %v2072_v19 = vor.u32 %v2071_v63, %v2068_v61  ;;  %v2114_v61 = vshll.u32 %v4604_v14, 16 }
 0x10a   :  { %v2082_v13 = vsel %vm2029_vm6, %v2072_v19, %v2081_v30  ;;  %v2116_v1 = vrot.slane %v2114_v61, 3  ;;  %v914_v61 = vrot.slane %v4396_v10, 1 }
 0x10c   :  { %3245 = vmatmul.mubr.msk.bf16.gmra.mrb[24].mxu1 %vm218_vm2, %v586_v4  ;;  %v2073_v4 = vsel %vm2029_vm6, %v2063_v9, %v2072_v19  ;;  %v4044_v9 = vld [vmem:[%s5083_s0 + $0x14] sm:$0xff]  }
 0x10d   :  { %3248 = vmatprep.mubr.msk.bf16.mxu1 %vm4048_vm1, %v4047_v0  ;;  %v900_v53 = vrot.slane %v4044_v9, 1  ;;  %v2352_v9 = vld [vmem:[%s5083_s0 + $0x8] sm:$0x8] }
 0x10e   :  { %3485 = vmatmul.mubr.msk.bf16.gmra.mrb[48].mxu0 %vm218_vm2, %v1814_v59  ;;  %v592_v59 = vsel %vm571_vm5, %v589_v38, %v591_v3  ;;  %v897_v38 = vrot.slane %v4106_v12, 1 }
 0x10f   :  { %3490 = vmatprep.mubr.msk.bf16.mxu0 %vm4048_vm1, %v4047_v0  ;;  %v901_v63 = vsel %vm571_vm5, %v898_v39, %v900_v53 }
 0x110   :  { %v899_v47 = vsel %vm571_vm5, %v897_v38, %v898_v39 }
 0x114   :  { %3249 = vmatmul.mubr.msk.bf16.gmra.mrb[28].mxu1 %vm218_vm2, %v588_v26  ;;  %v2093_v26 = vshrl.u32 %v4570_v5, 16 }
 0x115   :  { %3252 = vmatprep.mubr.msk.bf16.mxu1 %vm4048_vm1, %v4047_v0 }
 0x116   :  { %3491 = vmatmul.mubr.msk.bf16.vlgmr.msra.gmra.mrb[0].mxu0 %vm218_vm2, %v2046_v27  ;;  %v2096_v27 = vshll.u32 %v4570_v5, 16  ;;  %v2095_v28 = vrot.slane %v2093_v26, 2 }
 0x117   :  { %3543 = vmatpush3.bf16.msra.mxu0 %v4040_v54  ;;  %3494 = vmatprep.mubr.msk.bf16.mxu0 %vm4048_vm1, %v4047_v0  ;;  %v2091_v54 = vsel %vm2029_vm6, %v2081_v30, %v2090_v42 }
 0x118   :  { %v2098_v34 = vrot.slane %v2096_v27, 3 }
 0x11a   :  { %v2099_v43 = vor.u32 %v2098_v34, %v2095_v28  ;;  %v2134_v28 = vrot.slane %v2132_v24, 3  ;;  %v906_v34 = vrot.slane %v4187_v62, 1  ;;  %v908_v62 = vrot.slane %v4214_v20, 1 }
 0x11c   :  { %3253 = vmatmul.mubr.msk.bf16.gmra.mrb[32].mxu1 %vm218_vm2, %v590_v55  ;;  %v2102_v55 = vshrl.u32 %v4588_v6, 16  ;;  %v2100_v12 = vsel %vm2029_vm6, %v2090_v42, %v2099_v43  ;;  %v2022_v42 = vld [vmem:[%s5083_s0 + $0x6c] sm:$0x7] }
 0x11d   :  { %3256 = vmatprep.mubr.msk.bf16.mxu1 %vm4048_vm1, %v4047_v0  ;;  %v4799_v27 = vcombine.low %v4647_v49, %v2022_v42 }
 0x11e   :  { %3495 = vmatmul.mubr.msk.bf16.gmra.mrb[4].mxu0 %vm218_vm2, %v2055_v46  ;;  %v2105_v46 = vshll.u32 %v4588_v6, 16  ;;  %v2104_v50 = vrot.slane %v2102_v55, 2 }
 0x11f   :  { %3498 = vmatprep.mubr.msk.bf16.mxu0 %vm4048_vm1, %v4047_v0  ;;  %v2138_v49 = vshrl.u32 %v4799_v27, 16  ;;  %v2141_v40 = vshll.u32 %v4799_v27, 16 }
 0x120   :  { %v2107_v3 = vrot.slane %v2105_v46, 3 }
 0x121   :  { %v2140_v55 = vrot.slane %v2138_v49, 2  ;;  %v2143_v46 = vrot.slane %v2141_v40, 3  ;;  %v1229_v49 = vshll.u32 %v4410_v15, 16 }
 0x124   :  { %3257 = vmatmul.mubr.msk.bf16.gmra.mrb[36].mxu1 %vm218_vm2, %v592_v59  ;;  %v2108_v59 = vor.u32 %v2107_v3, %v2104_v50  ;;  %v910_v3 = vrot.slane %v4237_v36, 1  ;;  %v912_v36 = vrot.slane %v4381_v2, 1 }
 0x125   :  { %3260 = vmatprep.mubr.msk.bf16.mxu1 %vm4048_vm1, %v4047_v0 }
 0x126   :  { %3499 = vmatmul.mubr.msk.bf16.gmra.mrb[8].mxu0 %vm218_vm2, %v2064_v60  ;;  %v2111_v60 = vshrl.u32 %v4604_v14, 16  ;;  %v2109_v21 = vsel %vm2029_vm6, %v2099_v43, %v2108_v59  ;;  %v911_v20 = vsel %vm571_vm5, %v908_v62, %v910_v3 }
 0x127   :  { %3502 = vmatprep.mubr.msk.bf16.mxu0 %vm4048_vm1, %v4047_v0 }
 0x128   :  { %v2113_v19 = vrot.slane %v2111_v60, 2  ;;  %v913_v60 = vsel %vm571_vm5, %v910_v3, %v912_v36 }
 0x12c   :  { %3261 = vmatmul.mubr.msk.bf16.gmra.mrb[40].mxu1 %vm218_vm2, %v594_v8  ;;  %v902_v8 = vrot.slane %v4046_v7, 1 }
 0x12d   :  { %3264 = vmatprep.mubr.msk.bf16.mxu1 %vm4048_vm1, %v4047_v0 }
 0x12e   :  { %3503 = vmatmul.mubr.msk.bf16.gmra.mrb[12].mxu0 %vm218_vm2, %v2073_v4  ;;  %v2117_v4 = vor.u32 %v2116_v1, %v2113_v19  ;;  %v916_v19 = vrot.slane %v4410_v15, 1  ;;  %v2365_v1 = vrot.slane %v4509_v45, 3  ;;  %v2367_v45 = vrot.slane %v4523_v48, 3 }
 0x12f   :  { %3506 = vmatprep.mubr.msk.bf16.mxu0 %vm4048_vm1, %v4047_v0 }
 0x130   :  { %v2118_v30 = vsel %vm2029_vm6, %v2108_v59, %v2117_v4  ;;  %v2361_v59 = vrot.slane %v4476_v33, 3  ;;  %v915_v33 = vsel %vm571_vm5, %v912_v36, %v914_v61 }
 0x134   :  { %3265 = vmatmul.mubr.msk.bf16.gmra.mrb[44].mxu1 %vm218_vm2, %v596_v32  ;;  %v904_v32 = vrot.slane %v4167_v52, 1 }
 0x135   :  { %3268 = vmatprep.mubr.msk.bf16.mxu1 %vm4048_vm1, %v4047_v0 }
 0x136   :  { %3507 = vmatmul.mubr.msk.bf16.gmra.mrb[16].mxu0 %vm218_vm2, %v2082_v13  ;;  %v2126_v13 = vor.u32 %v2125_v17, %v2122_v16  ;;  %v905_v26 = vsel %vm571_vm5, %v902_v8, %v904_v32  ;;  %v907_v39 = vsel %vm571_vm5, %v904_v32, %v906_v34  ;;  %v2369_v16 = vrot.slane %v4537_v51, 3 }
 0x137   :  { %3510 = vmatprep.mubr.msk.bf16.mxu0 %vm4048_vm1, %v4047_v0  ;;  %v1208_v17 = vshrl.u32 %v4381_v2, 16  ;;  %v1211_v32 = vshll.u32 %v4381_v2, 16  ;;  %v2371_v51 = vrot.slane %v4551_v58, 3  ;;  %v1220_v2 = vshll.u32 %v4396_v10, 16 }
 0x138   :  { %v2127_v52 = vsel %vm2029_vm6, %v2117_v4, %v2126_v13  ;;  %v828_v4 = vld [vmem:[%s5083_s0 + $0x68] sm:$0x1]  ;;  %v2373_v58 = vrot.slane %v4570_v5, 3 }
 0x139   :  { %v2822_v11 = vcombine.low %v4435_v22, %v828_v4  ;;  %v2370_v22 = vsel %vm2359_vm7, %v2367_v45, %v2369_v16  ;;  %v2372_v24 = vsel %vm2359_vm7, %v2369_v16, %v2371_v51 }
 0x13c   :  { %3269 = vmatmul.mubr.msk.bf16.gmra.mrb[48].mxu1 %vm218_vm2, %v595_v31  ;;  %v903_v31 = vsel %vm571_vm5, %v900_v53, %v902_v8  ;;  %v2919_v53 = vcombine.low %v2352_v9, %v4466_v29  ;;  %v918_v8 = vrot.slane %v4424_v18, 1 }
 0x13d   :  { %3274 = vmatprep.mubr.msk.bf16.mxu1 %vm4048_vm1, %v4047_v0 }
 0x13e   :  { %3511 = vmatmul.mubr.msk.bf16.gmra.mrb[20].mxu0 %vm218_vm2, %v2091_v54  ;;  %v2131_v54 = vrot.slane %v2129_v23, 2  ;;  %v919_v35 = vsel %vm571_vm5, %v916_v19, %v918_v8  ;;  %v1213_v23 = vrot.slane %v1211_v32, 2 }
 0x13f   :  { %3514 = vmatprep.mubr.msk.bf16.mxu0 %vm4048_vm1, %v4047_v0 }
 0x140   :  { %v2135_v38 = vor.u32 %v2134_v28, %v2131_v54  ;;  %v1222_v28 = vrot.slane %v1220_v2, 2 }
 0x142   :  { %v2136_v43 = vsel %vm2029_vm6, %v2126_v13, %v2135_v38  ;;  %v1210_v13 = vrot.slane %v1208_v17, 1 }
 0x144   :  { %3275 = vmatmul.mubr.msk.bf16.vlgmr.msra.gmra.mrb[0].mxu1 %vm218_vm2, %v899_v47  ;;  %v2144_v47 = vor.u32 %v2143_v46, %v2140_v55  ;;  %v1214_v42 = vor.u32 %v1213_v23, %v1210_v13  ;;  %v1238_v46 = vshll.u32 %v4424_v18, 16 }
 0x145   :  { %3278 = vmatprep.mubr.msk.bf16.mxu1 %vm4048_vm1, %v4047_v0  ;;  %3597 = vmatpush3.bf16.msra.mxu1 %v4045_v57  ;;  %v2360_v57 = vrot.slane %v2919_v53, 3 }
 0x146   :  { %3515 = vmatmul.mubr.msk.bf16.gmra.mrb[24].mxu0 %vm218_vm2, %v2100_v12  ;;  %v909_v12 = vsel %vm571_vm5, %v906_v34, %v908_v62  ;;  %v2145_v50 = vsel %vm2029_vm6, %v2135_v38, %v2144_v47  ;;  %v2374_v34 = vsel %vm2359_vm7, %v2371_v51, %v2373_v58  ;;  %v1226_v38 = vshrl.u32 %v4410_v15, 16 }
 0x147   :  { %3518 = vmatprep.mubr.msk.bf16.mxu0 %vm4048_vm1, %v4047_v0  ;;  %v2362_v29 = vsel %vm2359_vm7, %v2360_v57, %v2361_v59  ;;  %v1235_v15 = vshrl.u32 %v4424_v18, 16  ;;  %v1244_v18 = vshrl.u32 %v4444_v25, 16 }
 0x148   :  { %v1228_v40 = vrot.slane %v1226_v38, 1 }
 0x149   :  { %v1246_v53 = vrot.slane %v1244_v18, 1 }
 0x14c   :  { %3279 = vmatmul.mubr.msk.bf16.gmra.mrb[4].mxu1 %vm218_vm2, %v901_v63  ;;  %v2363_v63 = vrot.slane %v4494_v41, 3  ;;  %v917_v41 = vsel %vm571_vm5, %v914_v61, %v916_v19 }
 0x14d   :  { %3282 = vmatprep.mubr.msk.bf16.mxu1 %vm4048_vm1, %v4047_v0 }
 0x14e   :  { %3519 = vmatmul.mubr.msk.bf16.gmra.mrb[28].mxu0 %vm218_vm2, %v2109_v21  ;;  %v2364_v21 = vsel %vm2359_vm7, %v2361_v59, %v2363_v63  ;;  %v2366_v7 = vsel %vm2359_vm7, %v2363_v63, %v2365_v1 }
 0x14f   :  { %3522 = vmatprep.mubr.msk.bf16.mxu0 %vm4048_vm1, %v4047_v0 }
 0x154   :  { %3283 = vmatmul.mubr.msk.bf16.gmra.mrb[8].mxu1 %vm218_vm2, %v903_v31  ;;  %v2368_v31 = vsel %vm2359_vm7, %v2365_v1, %v2367_v45 }
 0x155   :  { %3286 = vmatprep.mubr.msk.bf16.mxu1 %vm4048_vm1, %v4047_v0 }
 0x156   :  { %3523 = vmatmul.mubr.msk.bf16.gmra.mrb[32].mxu0 %vm218_vm2, %v2118_v30  ;;  %v920_v30 = vrot.slane %v2822_v11, 1 }
 0x157   :  { %3526 = vmatprep.mubr.msk.bf16.mxu0 %vm4048_vm1, %v4047_v0 }
 0x158   :  { %v921_v48 = vsel %vm571_vm5, %v918_v8, %v920_v30 }
 0x15c   :  { %3287 = vmatmul.mubr.msk.bf16.gmra.mrb[12].mxu1 %vm218_vm2, %v905_v26  ;;  %v1217_v26 = vshrl.u32 %v4396_v10, 16 }
 0x15d   :  { %3290 = vmatprep.mubr.msk.bf16.mxu1 %vm4048_vm1, %v4047_v0 }
 0x15e   :  { %3527 = vmatmul.mubr.msk.bf16.gmra.mrb[36].mxu0 %vm218_vm2, %v2127_v52  ;;  %v1215_v52 = vsel %vm1135_vm3, %v4262_v56, %v1214_v42  ;;  %v1219_v54 = vrot.slane %v1217_v26, 1  ;;  %v2375_v56 = vrot.slane %v4588_v6, 3  ;;  %v2377_v6 = vrot.slane %v4604_v14, 3 }
 0x15f   :  { %3530 = vmatprep.mubr.msk.bf16.mxu0 %vm4048_vm1, %v4047_v0  ;;  %v2379_v14 = vrot.slane %v4619_v37, 3 }
 0x160   :  { %v1223_v10 = vor.u32 %v1222_v28, %v1219_v54 }
 0x161   :  { %v2380_v57 = vsel %vm2359_vm7, %v2377_v6, %v2379_v14 }
 0x162   :  { %v1224_v5 = vsel %vm1135_vm3, %v1214_v42, %v1223_v10 }
 0x164   :  { %3291 = vmatmul.mubr.msk.bf16.gmra.mrb[16].mxu1 %vm218_vm2, %v907_v39  ;;  %v1231_v39 = vrot.slane %v1229_v49, 2 }
 0x165   :  { %3294 = vmatprep.mubr.msk.bf16.mxu1 %vm4048_vm1, %v4047_v0 }
 0x166   :  { %3531 = vmatmul.mubr.msk.bf16.gmra.mrb[40].mxu0 %vm218_vm2, %v2136_v43  ;;  %v2376_v43 = vsel %vm2359_vm7, %v2373_v58, %v2375_v56  ;;  %v1232_v55 = vor.u32 %v1231_v39, %v1228_v40 }
 0x167   :  { %3534 = vmatprep.mubr.msk.bf16.mxu0 %vm4048_vm1, %v4047_v0 }
 0x168   :  { %v1233_v62 = vsel %vm1135_vm3, %v1223_v10, %v1232_v55 }
 0x16c   :  { %3295 = vmatmul.mubr.msk.bf16.gmra.mrb[20].mxu1 %vm218_vm2, %v909_v12  ;;  %v1240_v12 = vrot.slane %v1238_v46, 2 }
 0x16d   :  { %3298 = vmatprep.mubr.msk.bf16.mxu1 %vm4048_vm1, %v4047_v0 }
 0x16e   :  { %3535 = vmatmul.mubr.msk.bf16.gmra.mrb[44].mxu0 %vm218_vm2, %v2145_v50  ;;  %v2378_v50 = vsel %vm2359_vm7, %v2375_v56, %v2377_v6 }
 0x16f   :  { %3538 = vmatprep.mubr.msk.bf16.mxu0 %vm4048_vm1, %v4047_v0 }
 0x174   :  { %3299 = vmatmul.mubr.msk.bf16.gmra.mrb[24].mxu1 %vm218_vm2, %v911_v20  ;;  %v1247_v20 = vshll.u32 %v4444_v25, 16  ;;  %v2381_v25 = vrot.slane %v4634_v44, 3 }
 0x175   :  { %3302 = vmatprep.mubr.msk.bf16.mxu1 %vm4048_vm1, %v4047_v0 }
 0x176   :  { %3539 = vmatmul.mubr.msk.bf16.gmra.mrb[48].mxu0 %vm218_vm2, %v2144_v47  ;;  %v1237_v47 = vrot.slane %v1235_v15, 1  ;;  %v1249_v36 = vrot.slane %v1247_v20, 2 }
 0x177   :  { %3544 = vmatprep.mubr.msk.bf16.mxu0 %vm4048_vm1, %v4047_v0 }
 0x178   :  { %v1241_v3 = vor.u32 %v1240_v12, %v1237_v47  ;;  %v1250_v59 = vor.u32 %v1249_v36, %v1246_v53 }
 0x17a   :  { %v1242_v9 = vsel %vm1135_vm3, %v1232_v55, %v1241_v3  ;;  %v1251_v37 = vsel %vm1135_vm3, %v1241_v3, %v1250_v59 }
 0x17c   :  { %3303 = vmatmul.mubr.msk.bf16.gmra.mrb[28].mxu1 %vm218_vm2, %v913_v60  ;;  %v2382_v60 = vsel %vm2359_vm7, %v2379_v14, %v2381_v25 }
 0x17d   :  { %3306 = vmatprep.mubr.msk.bf16.mxu1 %vm4048_vm1, %v4047_v0 }
 0x17e   :  { %3545 = vmatmul.mubr.msk.bf16.vlgmr.msra.gmra.mrb[0].mxu0 %vm218_vm2, %v2362_v29  ;;  %v2383_v29 = vrot.slane %v4799_v27, 3 }
 0x17f   :  { %3548 = vmatprep.mubr.msk.bf16.mxu0 %vm4048_vm1, %v4047_v0 }
 0x180   :  { %v2384_v44 = vsel %vm2359_vm7, %v2381_v25, %v2383_v29 }
 0x184   :  { %3307 = vmatmul.mubr.msk.bf16.gmra.mrb[32].mxu1 %vm218_vm2, %v915_v33 }
 0x185   :  { %3310 = vmatprep.mubr.msk.bf16.mxu1 %vm4048_vm1, %v4047_v0 }
 0x186   :  { %3549 = vmatmul.mubr.msk.bf16.gmra.mrb[4].mxu0 %vm218_vm2, %v2364_v21 }
 0x187   :  { %3552 = vmatprep.mubr.msk.bf16.mxu0 %vm4048_vm1, %v4047_v0 }
 0x18c   :  { %3311 = vmatmul.mubr.msk.bf16.gmra.mrb[36].mxu1 %vm218_vm2, %v917_v41 }
 0x18d   :  { %3314 = vmatprep.mubr.msk.bf16.mxu1 %vm4048_vm1, %v4047_v0 }
 0x18e   :  { %3553 = vmatmul.mubr.msk.bf16.gmra.mrb[8].mxu0 %vm218_vm2, %v2366_v7 }
 0x18f   :  { %3556 = vmatprep.mubr.msk.bf16.mxu0 %vm4048_vm1, %v4047_v0 }
 0x194   :  { %3315 = vmatmul.mubr.msk.bf16.gmra.mrb[40].mxu1 %vm218_vm2, %v919_v35 }
 0x195   :  { %3318 = vmatprep.mubr.msk.bf16.mxu1 %vm4048_vm1, %v4047_v0 }
 0x196   :  { %3557 = vmatmul.mubr.msk.bf16.gmra.mrb[12].mxu0 %vm218_vm2, %v2368_v31 }
 0x197   :  { %3560 = vmatprep.mubr.msk.bf16.mxu0 %vm4048_vm1, %v4047_v0 }
 0x19c   :  { %3319 = vmatmul.mubr.msk.bf16.gmra.mrb[44].mxu1 %vm218_vm2, %v921_v48 }
 0x19d   :  { %3322 = vmatprep.mubr.msk.bf16.mxu1 %vm4048_vm1, %v4047_v0 }
 0x19e   :  { %3561 = vmatmul.mubr.msk.bf16.gmra.mrb[16].mxu0 %vm218_vm2, %v2370_v22 }
 0x19f   :  { %3564 = vmatprep.mubr.msk.bf16.mxu0 %vm4048_vm1, %v4047_v0 }
 0x1a4   :  { %3323 = vmatmul.mubr.msk.bf16.gmra.mrb[48].mxu1 %vm218_vm2, %v920_v30 }
 0x1a5   :  { %3356 = vmatprep.mubr.msk.bf16.mxu1 %vm4048_vm1, %v4047_v0 }
 0x1a6   :  { %3565 = vmatmul.mubr.msk.bf16.gmra.mrb[20].mxu0 %vm218_vm2, %v2372_v24 }
 0x1a7   :  { %3568 = vmatprep.mubr.msk.bf16.mxu0 %vm4048_vm1, %v4047_v0 }
 0x1ac   :  { %3357 = vmatmul.mubr.msk.bf16.vlgmr.msra.gmra.mrb[28].mxu1 %vm218_vm2, %v1215_v52 }
 0x1ad   :  { %3360 = vmatprep.mubr.msk.bf16.mxu1 %vm4048_vm1, %v4047_v0 }
 0x1ae   :  { %3569 = vmatmul.mubr.msk.bf16.gmra.mrb[24].mxu0 %vm218_vm2, %v2374_v34 }
 0x1af   :  { %3572 = vmatprep.mubr.msk.bf16.mxu0 %vm4048_vm1, %v4047_v0 }
 0x1b4   :  { %3361 = vmatmul.mubr.msk.bf16.gmra.mrb[32].mxu1 %vm218_vm2, %v1224_v5 }
 0x1b5   :  { %3364 = vmatprep.mubr.msk.bf16.mxu1 %vm4048_vm1, %v4047_v0 }
 0x1b6   :  { %3573 = vmatmul.mubr.msk.bf16.gmra.mrb[28].mxu0 %vm218_vm2, %v2376_v43 }
 0x1b7   :  { %3576 = vmatprep.mubr.msk.bf16.mxu0 %vm4048_vm1, %v4047_v0 }
 0x1bc   :  { %3365 = vmatmul.mubr.msk.bf16.gmra.mrb[36].mxu1 %vm218_vm2, %v1233_v62 }
 0x1bd   :  { %3368 = vmatprep.mubr.msk.bf16.mxu1 %vm4048_vm1, %v4047_v0 }
 0x1be   :  { %3577 = vmatmul.mubr.msk.bf16.gmra.mrb[32].mxu0 %vm218_vm2, %v2378_v50 }
 0x1bf   :  { %3580 = vmatprep.mubr.msk.bf16.mxu0 %vm4048_vm1, %v4047_v0 }
 0x1c4   :  { %3369 = vmatmul.mubr.msk.bf16.gmra.mrb[40].mxu1 %vm218_vm2, %v1242_v9 }
 0x1c5   :  { %3372 = vmatprep.mubr.msk.bf16.mxu1 %vm4048_vm1, %v4047_v0 }
 0x1c6   :  { %3581 = vmatmul.mubr.msk.bf16.gmra.mrb[36].mxu0 %vm218_vm2, %v2380_v57 }
 0x1c7   :  { %3584 = vmatprep.mubr.msk.bf16.mxu0 %vm4048_vm1, %v4047_v0 }
 0x1cc   :  { %3373 = vmatmul.mubr.msk.bf16.gmra.mrb[44].mxu1 %vm218_vm2, %v1251_v37 }
 0x1cd   :  { %3376 = vmatprep.mubr.msk.bf16.mxu1 %vm4048_vm1, %v4047_v0 }
 0x1ce   :  { %3585 = vmatmul.mubr.msk.bf16.gmra.mrb[40].mxu0 %vm218_vm2, %v2382_v60 }
 0x1cf   :  { %3588 = vmatprep.mubr.msk.bf16.mxu0 %vm4048_vm1, %v4047_v0 }
 0x1d4   :  { %3377 = vmatmul.mubr.msk.bf16.gmra.mrb[48].mxu1 %vm218_vm2, %v1250_v59 }
 0x1d6   :  { %3589 = vmatmul.mubr.msk.bf16.gmra.mrb[44].mxu0 %vm218_vm2, %v2384_v44 }
 0x1d7   :  { %3592 = vmatprep.mubr.msk.bf16.mxu0 %vm4048_vm1, %v4047_v0 }
 0x1de   :  { %3593 = vmatmul.mubr.msk.bf16.gmra.mrb[48].mxu0 %vm218_vm2, %v2383_v29 }
 0x217   :  { %v1001_v61 = vpop.f32.mrb[0].mxu1 }
 0x218   :  { %v3276_v63 = vpop.f32.mrb[1].mxu1 }
 0x219   :  { %v1004_v33 = vpop.f32.mrb[2].mxu1 }
 0x21a   :  { %v3277_v21 = vpop.f32.mrb[3].mxu1 }
 0x21f   :  { %v1009_v19 = vpop.f32.mrb[4].mxu1 }
 0x220   :  { %v3280_v1 = vpop.f32.mrb[5].mxu1 }
 0x221   :  { %v1012_v41 = vpop.f32.mrb[6].mxu1 }
 0x222   :  { %v3281_v7 = vpop.f32.mrb[7].mxu1 }
 0x227   :  { %v1017_v27 = vpop.f32.mrb[8].mxu1 }
 0x228   :  { %v3284_v8 = vpop.f32.mrb[9].mxu1 }
 0x229   :  { %v1020_v4 = vpop.f32.mrb[10].mxu1 }
 0x22a   :  { %v3285_v45 = vpop.f32.mrb[11].mxu1 }
 0x22f   :  { %v1025_v35 = vpop.f32.mrb[12].mxu1 }
 0x230   :  { %v3288_v11 = vpop.f32.mrb[13].mxu1 }
 0x231   :  { %v1028_v31 = vpop.f32.mrb[14].mxu1 }
 0x232   :  { %v3289_v30 = vpop.f32.mrb[15].mxu1 }
 0x237   :  { %v4964_v16 = vpop.f32.mrb[16].mxu1 }
 0x238   :  { %v3292_v0 = vpop.f32.mrb[17].mxu1 }
 0x239   :  { %v4966_v48 = vpop.f32.mrb[18].mxu1 }
 0x23a   :  { %v3293_v22 = vpop.f32.mrb[19].mxu1 }
 0x23f   :  { %v4968_v17 = vpop.f32.mrb[20].mxu1 }
 0x240   :  { %v3296_v32 = vpop.f32.mrb[21].mxu1 }
 0x241   :  { %v4970_v51 = vpop.f32.mrb[22].mxu1 }
 0x242   :  { %v3297_v13 = vpop.f32.mrb[23].mxu1 }
 0x247   :  { %v4972_v23 = vpop.f32.mrb[24].mxu1 }
 0x248   :  { %v3300_v24 = vpop.f32.mrb[25].mxu1 }
 0x249   :  { %v4974_v42 = vpop.f32.mrb[26].mxu1 }
 0x24a   :  { %v3301_v26 = vpop.f32.mrb[27].mxu1 }
 0x251   :  { %v2464_v2 = vpop.f32.mrb[0].mxu0 }
 0x252   :  { %v3598_v58 = vadd.f32 %v2464_v2, %v1001_v61  ;;  %v3546_v52 = vpop.f32.mrb[1].mxu0 }
 0x253   :  { %v2467_v54 = vpop.f32.mrb[2].mxu0 }
 0x254   :  { %v2591_v28 = vmax.f32 %v3598_v58, 0.0  ;;  %v3599_v34 = vadd.f32 %v2467_v54, %v1004_v33  ;;  %v3547_v10 = vpop.f32.mrb[3].mxu0 }
 0x256   :  { %v2959_v38 = vpack.c.bf16 %v2591_v28, %v2591_v28  ;;  %v2592_v49 = vmax.f32 %v3599_v34, 0.0 }
 0x258   :  { %2718 = vst.msk [vmem:[%s5084_s2] sm:$0xf] %vm2717_vm8, %v2959_v38  ;;  %v2960_v56 = vpack.c.bf16 %v2592_v49, %v2592_v49 }
 0x259   :  { %v2472_v5 = vpop.f32.mrb[4].mxu0 }
 0x25a   :  { %2719 = vst.msk [vmem:[%s5084_s2 + $0x4] sm:$0xf] %vm2717_vm8, %v2960_v56  ;;  %v3600_v40 = vadd.f32 %v2472_v5, %v1009_v19  ;;  %v3550_v39 = vpop.f32.mrb[5].mxu0 }
 0x25b   :  { %v2475_v43 = vpop.f32.mrb[6].mxu0 }
 0x25c   :  { %v2593_v55 = vmax.f32 %v3600_v40, 0.0  ;;  %v3601_v15 = vadd.f32 %v2475_v43, %v1012_v41  ;;  %v3551_v46 = vpop.f32.mrb[7].mxu0 }
 0x25e   :  { %v2961_v6 = vpack.c.bf16 %v2593_v55, %v2593_v55  ;;  %v2594_v62 = vmax.f32 %v3601_v15, 0.0 }
 0x260   :  { %2720 = vst.msk [vmem:[%s5084_s2 + $0x8] sm:$0xf] %vm2717_vm8, %v2961_v6  ;;  %v2962_v47 = vpack.c.bf16 %v2594_v62, %v2594_v62 }
 0x261   :  { %v2480_v12 = vpop.f32.mrb[8].mxu0 }
 0x262   :  { %2721 = vst.msk [vmem:[%s5084_s2 + $0xc] sm:$0xf] %vm2717_vm8, %v2962_v47  ;;  %v3602_v50 = vadd.f32 %v2480_v12, %v1017_v27  ;;  %v3554_v3 = vpop.f32.mrb[9].mxu0 }
 0x263   :  { %v2483_v18 = vpop.f32.mrb[10].mxu0 }
 0x264   :  { %v2595_v20 = vmax.f32 %v3602_v50, 0.0  ;;  %v3603_v14 = vadd.f32 %v2483_v18, %v1020_v4  ;;  %v3555_v9 = vpop.f32.mrb[11].mxu0 }
 0x266   :  { %v2963_v53 = vpack.c.bf16 %v2595_v20, %v2595_v20  ;;  %v2596_v36 = vmax.f32 %v3603_v14, 0.0 }
 0x268   :  { %2722 = vst.msk [vmem:[%s5084_s2 + $0x10] sm:$0xf] %vm2717_vm8, %v2963_v53  ;;  %v2964_v57 = vpack.c.bf16 %v2596_v36, %v2596_v36 }
 0x269   :  { %v2488_v59 = vpop.f32.mrb[12].mxu0 }
 0x26a   :  { %2723 = vst.msk [vmem:[%s5084_s2 + $0x14] sm:$0xf] %vm2717_vm8, %v2964_v57  ;;  %v3604_v25 = vadd.f32 %v2488_v59, %v1025_v35  ;;  %v3558_v37 = vpop.f32.mrb[13].mxu0 }
 0x26b   :  { %v2491_v60 = vpop.f32.mrb[14].mxu0 }
 0x26c   :  { %v2597_v29 = vmax.f32 %v3604_v25, 0.0  ;;  %v3605_v44 = vadd.f32 %v2491_v60, %v1028_v31  ;;  %v3559_v61 = vpop.f32.mrb[15].mxu0 }
 0x26e   :  { %v2965_v63 = vpack.c.bf16 %v2597_v29, %v2597_v29  ;;  %v2598_v33 = vmax.f32 %v3605_v44, 0.0 }
 0x270   :  { %2724 = vst.msk [vmem:[%s5084_s2 + $0x18] sm:$0xf] %vm2717_vm8, %v2965_v63  ;;  %v2966_v21 = vpack.c.bf16 %v2598_v33, %v2598_v33 }
 0x271   :  { %v2496_v19 = vpop.f32.mrb[16].mxu0 }
 0x272   :  { %2725 = vst.msk [vmem:[%s5084_s2 + $0x1c] sm:$0xf] %vm2717_vm8, %v2966_v21  ;;  %v3606_v1 = vadd.f32 %v2496_v19, %v4964_v16  ;;  %v3562_v41 = vpop.f32.mrb[17].mxu0 }
 0x273   :  { %v2499_v7 = vpop.f32.mrb[18].mxu0 }
 0x274   :  { %v2599_v27 = vmax.f32 %v3606_v1, 0.0  ;;  %v3607_v8 = vadd.f32 %v2499_v7, %v4966_v48  ;;  %v3563_v4 = vpop.f32.mrb[19].mxu0 }
 0x276   :  { %v2967_v45 = vpack.c.bf16 %v2599_v27, %v2599_v27  ;;  %v2600_v35 = vmax.f32 %v3607_v8, 0.0 }
 0x278   :  { %2726 = vst.msk [vmem:[%s5084_s2 + $0x20] sm:$0xf] %vm2717_vm8, %v2967_v45  ;;  %v2968_v11 = vpack.c.bf16 %v2600_v35, %v2600_v35 }
 0x279   :  { %v2504_v31 = vpop.f32.mrb[20].mxu0 }
 0x27a   :  { %2727 = vst.msk [vmem:[%s5084_s2 + $0x24] sm:$0xf] %vm2717_vm8, %v2968_v11  ;;  %v3608_v30 = vadd.f32 %v2504_v31, %v4968_v17  ;;  %v3566_v16 = vpop.f32.mrb[21].mxu0 }
 0x27b   :  { %v2507_v0 = vpop.f32.mrb[22].mxu0 }
 0x27c   :  { %v2601_v48 = vmax.f32 %v3608_v30, 0.0  ;;  %v3609_v22 = vadd.f32 %v2507_v0, %v4970_v51  ;;  %v3567_v32 = vpop.f32.mrb[23].mxu0 }
 0x27e   :  { %v2969_v13 = vpack.c.bf16 %v2601_v48, %v2601_v48  ;;  %v2602_v24 = vmax.f32 %v3609_v22, 0.0 }
 0x27f   :  { %v1387_v26 = vpop.f32.mrb[28].mxu1 }
 0x280   :  { %v3358_v2 = vpop.f32.mrb[29].mxu1  ;;  %2728 = vst.msk [vmem:[%s5084_s2 + $0x28] sm:$0xf] %vm2717_vm8, %v2969_v13  ;;  %v2970_v58 = vpack.c.bf16 %v2602_v24, %v2602_v24 }
 0x281   :  { %v1390_v52 = vpop.f32.mrb[30].mxu1  ;;  %v2512_v54 = vpop.f32.mrb[24].mxu0 }
 0x282   :  { %v3359_v28 = vpop.f32.mrb[31].mxu1  ;;  %2729 = vst.msk [vmem:[%s5084_s2 + $0x2c] sm:$0xf] %vm2717_vm8, %v2970_v58  ;;  %v3610_v17 = vadd.f32 %v2512_v54, %v4972_v23  ;;  %v3570_v51 = vpop.f32.mrb[25].mxu0 }
 0x283   :  { %v2515_v34 = vpop.f32.mrb[26].mxu0 }
 0x284   :  { %v2603_v10 = vmax.f32 %v3610_v17, 0.0  ;;  %v3611_v38 = vadd.f32 %v2515_v34, %v4974_v42  ;;  %v3571_v49 = vpop.f32.mrb[27].mxu0 }
 0x286   :  { %v2971_v56 = vpack.c.bf16 %v2603_v10, %v2603_v10  ;;  %v2604_v5 = vmax.f32 %v3611_v38, 0.0 }
 0x287   :  { %v1395_v40 = vpop.f32.mrb[32].mxu1 }
 0x288   :  { %v3362_v39 = vpop.f32.mrb[33].mxu1  ;;  %2730 = vst.msk [vmem:[%s5084_s2 + $0x30] sm:$0xf] %vm2717_vm8, %v2971_v56  ;;  %v2972_v43 = vpack.c.bf16 %v2604_v5, %v2604_v5 }
 0x289   :  { %v1398_v55 = vpop.f32.mrb[34].mxu1  ;;  %v2520_v15 = vpop.f32.mrb[28].mxu0 }
 0x28a   :  { %v3363_v46 = vpop.f32.mrb[35].mxu1  ;;  %2731 = vst.msk [vmem:[%s5084_s2 + $0x34] sm:$0xf] %vm2717_vm8, %v2972_v43  ;;  %v3612_v23 = vadd.f32 %v2520_v15, %v1387_v26  ;;  %v3574_v42 = vpop.f32.mrb[29].mxu0 }
 0x28b   :  { %v2523_v6 = vpop.f32.mrb[30].mxu0 }
 0x28c   :  { %v2605_v62 = vmax.f32 %v3612_v23, 0.0  ;;  %v3613_v47 = vadd.f32 %v2523_v6, %v1390_v52  ;;  %v3575_v12 = vpop.f32.mrb[31].mxu0 }
 0x28e   :  { %v2973_v50 = vpack.c.bf16 %v2605_v62, %v2605_v62  ;;  %v2606_v3 = vmax.f32 %v3613_v47, 0.0 }
 0x28f   :  { %v1403_v18 = vpop.f32.mrb[36].mxu1 }
 0x290   :  { %v3366_v20 = vpop.f32.mrb[37].mxu1  ;;  %2732 = vst.msk [vmem:[%s5084_s2 + $0x38] sm:$0xf] %vm2717_vm8, %v2973_v50  ;;  %v2974_v14 = vpack.c.bf16 %v2606_v3, %v2606_v3 }
 0x291   :  { %v1406_v9 = vpop.f32.mrb[38].mxu1  ;;  %v2528_v53 = vpop.f32.mrb[32].mxu0 }
 0x292   :  { %v3367_v36 = vpop.f32.mrb[39].mxu1  ;;  %2733 = vst.msk [vmem:[%s5084_s2 + $0x3c] sm:$0xf] %vm2717_vm8, %v2974_v14  ;;  %v3614_v57 = vadd.f32 %v2528_v53, %v1395_v40  ;;  %v3578_v59 = vpop.f32.mrb[33].mxu0 }
 0x293   :  { %v2531_v25 = vpop.f32.mrb[34].mxu0 }
 0x294   :  { %v2607_v37 = vmax.f32 %v3614_v57, 0.0  ;;  %v3615_v60 = vadd.f32 %v2531_v25, %v1398_v55  ;;  %v3579_v29 = vpop.f32.mrb[35].mxu0 }
 0x296   :  { %v2975_v44 = vpack.c.bf16 %v2607_v37, %v2607_v37  ;;  %v2608_v61 = vmax.f32 %v3615_v60, 0.0 }
 0x297   :  { %v1411_v63 = vpop.f32.mrb[40].mxu1 }
 0x298   :  { %v3370_v33 = vpop.f32.mrb[41].mxu1  ;;  %2734 = vst.msk [vmem:[%s5084_s2 + $0x40] sm:$0xf] %vm2717_vm8, %v2975_v44  ;;  %v2976_v21 = vpack.c.bf16 %v2608_v61, %v2608_v61 }
 0x299   :  { %v1414_v19 = vpop.f32.mrb[42].mxu1  ;;  %v2536_v1 = vpop.f32.mrb[36].mxu0 }
 0x29a   :  { %v3371_v41 = vpop.f32.mrb[43].mxu1  ;;  %2735 = vst.msk [vmem:[%s5084_s2 + $0x44] sm:$0xf] %vm2717_vm8, %v2976_v21  ;;  %v3616_v7 = vadd.f32 %v2536_v1, %v1403_v18  ;;  %v3582_v27 = vpop.f32.mrb[37].mxu0 }
 0x29b   :  { %v2539_v8 = vpop.f32.mrb[38].mxu0 }
 0x29c   :  { %v2609_v4 = vmax.f32 %v3616_v7, 0.0  ;;  %v3617_v45 = vadd.f32 %v2539_v8, %v1406_v9  ;;  %v3583_v35 = vpop.f32.mrb[39].mxu0 }
 0x29e   :  { %v2977_v11 = vpack.c.bf16 %v2609_v4, %v2609_v4  ;;  %v2610_v31 = vmax.f32 %v3617_v45, 0.0 }
 0x29f   :  { %v1419_v30 = vpop.f32.mrb[44].mxu1 }
 0x2a0   :  { %v3374_v16 = vpop.f32.mrb[45].mxu1  ;;  %2736 = vst.msk [vmem:[%s5084_s2 + $0x48] sm:$0xf] %vm2717_vm8, %v2977_v11  ;;  %v2978_v0 = vpack.c.bf16 %v2610_v31, %v2610_v31 }
 0x2a1   :  { %v1422_v48 = vpop.f32.mrb[46].mxu1  ;;  %v2544_v22 = vpop.f32.mrb[40].mxu0 }
 0x2a2   :  { %v3375_v32 = vpop.f32.mrb[47].mxu1  ;;  %2737 = vst.msk [vmem:[%s5084_s2 + $0x4c] sm:$0xf] %vm2717_vm8, %v2978_v0  ;;  %v3618_v13 = vadd.f32 %v2544_v22, %v1411_v63  ;;  %v3586_v24 = vpop.f32.mrb[41].mxu0 }
 0x2a3   :  { %v2547_v26 = vpop.f32.mrb[42].mxu0 }
 0x2a4   :  { %v2611_v2 = vmax.f32 %v3618_v13, 0.0  ;;  %v3619_v58 = vadd.f32 %v2547_v26, %v1414_v19  ;;  %v3587_v52 = vpop.f32.mrb[43].mxu0 }
 0x2a6   :  { %v2979_v54 = vpack.c.bf16 %v2611_v2, %v2611_v2  ;;  %v2612_v28 = vmax.f32 %v3619_v58, 0.0 }
 0x2a7   :  { %v1427_v17 = vpop.f32.mrb[48].mxu1 }
 0x2a8   :  { %v3378_v51 = vpop.f32.mrb[49].mxu1  ;;  %2738 = vst.msk [vmem:[%s5084_s2 + $0x50] sm:$0xf] %vm2717_vm8, %v2979_v54  ;;  %v2980_v34 = vpack.c.bf16 %v2612_v28, %v2612_v28 }
 0x2a9   :  { %v1430_v10 = vpop.f32.mrb[50].mxu1  ;;  %v2552_v38 = vpop.f32.mrb[44].mxu0 }
 0x2aa   :  { %v3379_v49 = vpop.f32.mrb[51].mxu1  ;;  %2739 = vst.msk [vmem:[%s5084_s2 + $0x54] sm:$0xf] %vm2717_vm8, %v2980_v34  ;;  %v3620_v56 = vadd.f32 %v2552_v38, %v1419_v30  ;;  %v3590_v5 = vpop.f32.mrb[45].mxu0 }
 0x2ab   :  { %v2555_v40 = vpop.f32.mrb[46].mxu0 }
 0x2ac   :  { %v2613_v39 = vmax.f32 %v3620_v56, 0.0  ;;  %v3621_v43 = vadd.f32 %v2555_v40, %v1422_v48  ;;  %v3591_v55 = vpop.f32.mrb[47].mxu0 }
 0x2ae   :  { %v2981_v15 = vpack.c.bf16 %v2613_v39, %v2613_v39  ;;  %v2614_v46 = vmax.f32 %v3621_v43, 0.0 }
 0x2b0   :  { %2740 = vst.msk [vmem:[%s5084_s2 + $0x58] sm:$0xf] %vm2717_vm8, %v2981_v15  ;;  %v2982_v23 = vpack.c.bf16 %v2614_v46, %v2614_v46 }
 0x2b1   :  { %v2560_v42 = vpop.f32.mrb[48].mxu0 }
 0x2b2   :  { %2741 = vst.msk [vmem:[%s5084_s2 + $0x5c] sm:$0xf] %vm2717_vm8, %v2982_v23  ;;  %v3622_v6 = vadd.f32 %v2560_v42, %v1427_v17  ;;  %v3594_v62 = vpop.f32.mrb[49].mxu0 }
 0x2b3   :  { %v2563_v47 = vpop.f32.mrb[50].mxu0 }
 0x2b4   :  { %v2615_v12 = vmax.f32 %v3622_v6, 0.0  ;;  %v3595_v50 = vpop.f32.mrb[51].mxu0 }
 0x2b6   :  { %v2983_v3 = vpack.c.bf16 %v2615_v12, %v2615_v12 }
 0x2b8   :  { %2742 = vst.msk [vmem:[%s5084_s2 + $0x60] sm:$0xf] %vm2717_vm8, %v2983_v3 }

// kernel: resnet50_forward.82
= control target key start
LH: loop header
LB: loop body
LE: loop exit
PB: predicated region body
PF: predicated region fallthrough
CT: control target
= control target key end

     0   :  { %vm190_vm0 = vcmask 519168   ;;  %s323_s1 = inlined_call_operand.vmem [shape: bf16[256,64], index: 1, kind: input, shape index: {}]   ;;  %s324_s0 = inlined_call_operand.vmem [shape: bf16[8,256], index: 0, kind: input, shape index: {}]   ;;  %s325_s2 = inlined_call_operand.vmem [shape: bf16[8,64], index: 2, kind: output, shape index: {}]  }
   0x1   :  { %v236_v0 = vld [vmem:[%s323_s1 + $0x40] sm:$0xff]   ;;  %v238_v2 = vld [vmem:[%s323_s1 + $0x48] sm:$0xff]   ;;  %v240_v4 = vld [vmem:[%s323_s1 + $0x50] sm:$0xff]  }
   0x2   :  { %v237_v1 = vld [vmem:[%s323_s1] sm:$0xff]   ;;  %214 = vmatprep.subr.bf16.mxu0 %v236_v0  ;;  %v239_v3 = vld [vmem:[%s323_s1 + $0x8] sm:$0xff]   ;;  %v241_v5 = vld [vmem:[%s323_s1 + $0x10] sm:$0xff]  }
   0x3   :  { %215 = vmatpush3.bf16.msra.mxu0 %v237_v1  ;;  %v242_v6 = vld [vmem:[%s323_s1 + $0x58] sm:$0xff]   ;;  %v244_v8 = vld [vmem:[%s323_s1 + $0x60] sm:$0xff]   ;;  %v246_v10 = vld [vmem:[%s323_s1 + $0x68] sm:$0xff]  }
   0x4   :  { %216 = vmatprep.subr.bf16.mxu0 %v238_v2  ;;  %v243_v7 = vld [vmem:[%s323_s1 + $0x18] sm:$0xff]   ;;  %v245_v9 = vld [vmem:[%s323_s1 + $0x20] sm:$0xff]   ;;  %v247_v13 = vld [vmem:[%s323_s1 + $0x28] sm:$0xff]  }
   0x5   :  { %v12_v11 = vld [vmem:[%s324_s0] sm:$0xff]  ;;  %v248_v14 = vld [vmem:[%s323_s1 + $0x70] sm:$0xff]   ;;  %v250_v16 = vld [vmem:[%s323_s1 + $0x78] sm:$0xff]  }
   0x6   :  { %v197_v12 = vcombine.high %v12_v11, %v12_v11  ;;  %v249_v15 = vld [vmem:[%s323_s1 + $0x30] sm:$0xff]   ;;  %v251_v17 = vld [vmem:[%s323_s1 + $0x38] sm:$0xff]   ;;  %v196_v18 = vcombine.low %v12_v11, %v12_v11 }
   0x7   :  { %217 = vmatpush3.bf16.msra.mxu0 %v239_v3 }
   0x8   :  { %218 = vmatprep.subr.bf16.mxu0 %v240_v4  ;;  %180 = vmatprep.mubr.bf16.mxu0 %v197_v12 }
   0xb   :  { %219 = vmatpush3.bf16.msra.mxu0 %v241_v5 }
   0xc   :  { %220 = vmatprep.subr.bf16.mxu0 %v242_v6 }
   0xf   :  { %221 = vmatpush3.bf16.msra.mxu0 %v243_v7 }
  0x10   :  { %222 = vmatprep.subr.bf16.mxu0 %v244_v8 }
  0x13   :  { %223 = vmatpush3.bf16.msra.mxu0 %v245_v9 }
  0x14   :  { %224 = vmatprep.subr.bf16.mxu0 %v246_v10 }
  0x17   :  { %225 = vmatpush3.bf16.msra.mxu0 %v247_v13 }
  0x18   :  { %226 = vmatprep.subr.bf16.mxu0 %v248_v14 }
  0x1b   :  { %227 = vmatpush3.bf16.msra.mxu0 %v249_v15 }
  0x1c   :  { %228 = vmatprep.subr.bf16.mxu0 %v250_v16 }
  0x1f   :  { %229 = vmatpush3.bf16.msra.mxu0 %v251_v17 }
  0x22   :  { %181 = vmatmul.mubr.bf16.vlgmr.msra.gmra.mrb[0].mxu0 %v196_v18 }
  0xf5   :  { %v230_v19 = vpop.f32.mrb[0].mxu0 }
  0xf6   :  { %v231_v20 = vpop.f32.mrb[1].mxu0 }
  0xf7   :  { %v232_v21 = vadd.f32 %v231_v20, %v230_v19  ;;  %v233_v22 = vpop.f32.mrb[2].mxu0 }
  0xf8   :  { %v234_v23 = vpop.f32.mrb[3].mxu0 }
  0xf9   :  { %v188_v24 = vmax.f32 %v232_v21, 0.0 }
  0xfb   :  { %v189_v25 = vpack.c.bf16 %v188_v24, %v188_v24 }
  0xfd   :  { %191 = vst.msk [vmem:[%s325_s2] sm:$0xf] %vm190_vm0, %v189_v25 }

// kernel: resnet50_forward.70
= control target key start
LH: loop header
LB: loop body
LE: loop exit
PB: predicated region body
PF: predicated region fallthrough
CT: control target
= control target key end

     0   :  { %v1930_v0 = vmov 0.0   ;;  %vm1931_vm0 = vmmov 0   ;;  %vm56_vm1 = vsmask.f32 7424  ;;  %vm108_vm2 = vcmask 261120   ;;  %s2450_s1 = inlined_call_operand.vmem [shape: bf16[9,32,32], index: 1, kind: input, shape index: {}]   ;;  %s2451_s0 = inlined_call_operand.vmem [shape: bf16[86,32], index: 0, kind: input, shape index: {}]   ;;  %s2452_s2 = inlined_call_operand.vmem [shape: bf16[72,32], index: 2, kind: output, shape index: {}]  }
   0x1   :  { %1519 = vmatprep.subr.bf16.mxu1 %v1930_v0  ;;  %1615 = vmatprep.subr.bf16.mxu0 %v1930_v0  ;;  %v1890_v1 = vld [vmem:[%s2450_s1 + $0x10] sm:$0xff]   ;;  %v1955_v2 = vld [vmem:[%s2450_s1 + $0x40] sm:$0xff]   ;;  %v1892_v3 = vld [vmem:[%s2450_s1 + $0x18] sm:$0xff]   ;;  %vm559_vm3 = vsmask.f32 4352  ;;  %vm301_vm4 = vcmask 1046528  }
   0x2   :  { %1523 = vmatprep.mubr.msk.bf16.mxu1 %vm1931_vm0, %v1930_v0  ;;  %1619 = vmatprep.mubr.msk.bf16.mxu0 %vm1931_vm0, %v1930_v0  ;;  %v1969_v4 = vld [vmem:[%s2450_s1 + $0x48] sm:$0xff]   ;;  %v12_v5 = vld [vmem:[%s2451_s0] sm:$0xf]  ;;  %v1978_v6 = vld [vmem:[%s2451_s0 + $0x4] sm:$0xf]  ;;  %vm432_vm5 = vcmask 1044480  }
   0x3   :  { %1520 = vmatpush3.bf16.msra.mxu1 %v1890_v1  ;;  %1616 = vmatpush3.bf16.msra.mxu0 %v1955_v2  ;;  %v1983_v7 = vld [vmem:[%s2451_s0 + $0x8] sm:$0xf]  ;;  %v1988_v8 = vld [vmem:[%s2451_s0 + $0xc] sm:$0xf]  ;;  %v1991_v9 = vcombine.low %v12_v5, %v1978_v6  ;;  %v419_v10 = vld [vmem:[%s2451_s0] sm:$0x8] }
   0x4   :  { %1521 = vmatprep.subr.bf16.mxu1 %v1930_v0  ;;  %1617 = vmatprep.subr.bf16.mxu0 %v1930_v0  ;;  %v1998_v11 = vcombine.low %v1983_v7, %v1988_v8  ;;  %v2001_v12 = vcombine.low %v419_v10, %v1978_v6  ;;  %v2009_v15 = vld [vmem:[%s2451_s0 + $0x10] sm:$0xf]  ;;  %v2014_v16 = vld [vmem:[%s2451_s0 + $0x14] sm:$0xf]  ;;  %v1899_v31 = vld [vmem:[%s2450_s1] sm:$0xff]   ;;  %vm855_vm6 = vcmask 1045504  }
   0x5   :  { %v58_v13 = vshrl.u32 %v1991_v9, 16  ;;  %v60_v14 = vshll.u32 %v1991_v9, 16  ;;  %v2024_v22 = vcombine.low %v2009_v15, %v2014_v16  ;;  %v2034_v32 = vld [vmem:[%s2451_s0 + $0x18] sm:$0xf]  ;;  %v2039_v34 = vld [vmem:[%s2451_s0 + $0x1c] sm:$0xf] }
   0x6   :  { %v65_v17 = vshll.u32 %v1998_v11, 16  ;;  %v69_v18 = vshrl.u32 %v1998_v11, 16  ;;  %v561_v19 = vshrl.u32 %v2001_v12, 16  ;;  %v564_v20 = vshll.u32 %v2001_v12, 16  ;;  %v1897_v37 = vld [vmem:[%s2450_s1 + $0x50] sm:$0xff]   ;;  %v1905_v44 = vld [vmem:[%s2450_s1 + $0x8] sm:$0xff]  }
   0x7   :  { %1522 = vmatpush3.bf16.msra.mxu1 %v1892_v3  ;;  %1618 = vmatpush3.bf16.msra.mxu0 %v1969_v4  ;;  %v62_v21 = vrot.slane %v60_v14, 1  ;;  %v73_v29 = vshll.u32 %v2024_v22, 16  ;;  %v77_v30 = vshrl.u32 %v2024_v22, 16  ;;  %v2048_v40 = vcombine.low %v2034_v32, %v2039_v34  ;;  %v1900_v46 = vld [vmem:[%s2450_s1 + $0x58] sm:$0xff]   ;;  %v2069_v49 = vld [vmem:[%s2451_s0 + $0x20] sm:$0xf] }
   0x8   :  { %1543 = vmatprep.subr.bf16.mxu1 %v1930_v0  ;;  %1639 = vmatprep.subr.bf16.mxu0 %v1930_v0  ;;  %v67_v23 = vrot.slane %v65_v17, 1  ;;  %v563_v24 = vrot.slane %v561_v19, 3  ;;  %v566_v25 = vrot.slane %v564_v20, 4  ;;  %v568_v26 = vrot.slane %v69_v18, 3  ;;  %v2074_v50 = vld [vmem:[%s2451_s0 + $0x24] sm:$0xf] }
   0x9   :  { %v63_v27 = vor.u32 %v62_v21, %v58_v13  ;;  %v569_v28 = vrot.slane %v65_v17, 4  ;;  %v572_v38 = vrot.slane %v77_v30, 3  ;;  %v573_v39 = vrot.slane %v73_v29, 4  ;;  %v25_v52 = vld [vmem:[%s2451_s0 + $0x24] sm:$0x1] }
   0xa   :  { %v567_v33 = vor.u32 %v566_v25, %v563_v24  ;;  %v71_v42 = vor.u32 %v69_v18, %v67_v23  ;;  %v75_v43 = vrot.slane %v73_v29, 1  ;;  %v81_v47 = vshll.u32 %v2048_v40, 16  ;;  %v292_v60 = vld [vmem:[%s2451_s0] sm:$0xe]  ;;  %v420_v29 = vld [vmem:[%s2451_s0 + $0x24] sm:$0x7] }
   0xb   :  { %v68_v35 = vsel %vm56_vm1, %v63_v27, %v67_v23  ;;  %v570_v36 = vor.u32 %v569_v28, %v568_v26  ;;  %v574_v45 = vor.u32 %v573_v39, %v572_v38  ;;  %v85_v48 = vshrl.u32 %v2048_v40, 16  ;;  %v816_v39 = vld [vmem:[%s2451_s0 + $0x8] sm:$0xf] }
   0xc   :  { %1524 = vmatmul.mubr.msk.bf16.vlgmr.msra.gmra.mrb[0].mxu1 %vm108_vm2, %v68_v35  ;;  %v76_v51 = vsel %vm56_vm1, %v71_v42, %v75_v43  ;;  %v1374_v53 = vcombine.low %v2069_v49, %v2074_v50  ;;  %v577_v56 = vrot.slane %v81_v47, 4  ;;  %v79_v57 = vor.u32 %v77_v30, %v75_v43  ;;  %v1135_v35 = vld [vmem:[%s2451_s0 + $0x4] sm:$0x8]  ;;  %v2150_v42 = vld [vmem:[%s2451_s0 + $0x14] sm:$0xff]  }
   0xd   :  { %v571_v41 = vsel %vm559_vm3, %v567_v33, %v570_v36  ;;  %1527 = vmatprep.mubr.msk.bf16.mxu1 %vm1931_vm0, %v1930_v0  ;;  %1544 = vmatpush3.bf16.msra.mxu1 %v1899_v31  ;;  %v575_v54 = vsel %vm559_vm3, %v570_v36, %v574_v45  ;;  %v576_v55 = vrot.slane %v85_v48, 3  ;;  %v83_v58 = vrot.slane %v81_v47, 1  ;;  %v1904_v36 = vld [vmem:[%s2450_s1 + $0x60] sm:$0xff]  }
   0xe   :  { %1620 = vmatmul.mubr.msk.bf16.vlgmr.msra.gmra.mrb[0].mxu0 %vm108_vm2, %v571_v41  ;;  %1545 = vmatprep.subr.bf16.mxu1 %v1930_v0  ;;  %v2089_v59 = vcombine.low %v2069_v49, %v25_v52  ;;  %v1349_v61 = vcombine.low %v292_v60, %v1978_v6  ;;  %v303_v62 = vrot.slane %v1998_v11, 1  ;;  %v305_v1 = vrot.slane %v2024_v22, 1  ;;  %v2145_v41 = vld [vmem:[%s2451_s0 + $0xc] sm:$0xff]   ;;  %v2190_v60 = vld [vmem:[%s2451_s0 + $0x1c] sm:$0xff]  }
   0xf   :  { %1640 = vmatpush3.bf16.msra.mxu0 %v1897_v37  ;;  %1623 = vmatprep.mubr.msk.bf16.mxu0 %vm1931_vm0, %v1930_v0  ;;  %v578_v63 = vor.u32 %v577_v56, %v576_v55  ;;  %v84_v5 = vsel %vm56_vm1, %v79_v57, %v83_v58  ;;  %v307_v17 = vrot.slane %v2048_v40, 1  ;;  %v87_v21 = vor.u32 %v85_v48, %v83_v58 }
  0x10   :  { %1641 = vmatprep.subr.bf16.mxu0 %v1930_v0  ;;  %v302_v3 = vrot.slane %v1349_v61, 1  ;;  %v89_v10 = vshll.u32 %v2089_v59, 16  ;;  %v2102_v13 = vsel %vm301_vm4, %v303_v62, %v305_v1  ;;  %v309_v19 = vrot.slane %v2089_v59, 1 }
  0x11   :  { %1546 = vmatpush3.bf16.msra.mxu1 %v1905_v44  ;;  %v579_v18 = vsel %vm559_vm3, %v574_v45, %v578_v63  ;;  %v2110_v20 = vsel %vm301_vm4, %v305_v1, %v307_v17  ;;  %v581_v25 = vshrl.u32 %v1374_v53, 16  ;;  %v584_v26 = vshll.u32 %v1374_v53, 16  ;;  %v1908_v53 = vld [vmem:[%s2450_s1 + $0x68] sm:$0xff]  }
  0x12   :  { %1567 = vmatprep.subr.bf16.mxu1 %v1930_v0  ;;  %v2104_v14 = vsel %vm301_vm4, %v302_v3, %v303_v62  ;;  %v91_v23 = vrot.slane %v89_v10, 1  ;;  %v2116_v24 = vsel %vm301_vm4, %v307_v17, %v309_v19  ;;  %v433_v27 = vrot.slane %v2001_v12, 3 }
  0x13   :  { %1642 = vmatpush3.bf16.msra.mxu0 %v1900_v46  ;;  %v434_v28 = vrot.slane %v1998_v11, 3  ;;  %v436_v33 = vrot.slane %v2024_v22, 3  ;;  %v1386_v12 = vcombine.low %v1978_v6, %v1983_v7  ;;  %v583_v37 = vrot.slane %v581_v25, 3 }
  0x14   :  { %1528 = vmatmul.mubr.msk.bf16.gmra.mrb[4].mxu1 %vm108_vm2, %v76_v51  ;;  %1663 = vmatprep.subr.bf16.mxu0 %v1930_v0  ;;  %v92_v30 = vsel %vm56_vm1, %v87_v21, %v91_v23  ;;  %v586_v38 = vrot.slane %v584_v26, 4  ;;  %v438_v7 = vrot.slane %v2048_v40, 3  ;;  %v1362_v43 = vcombine.low %v2069_v49, %v420_v29  ;;  %v1921_v26 = vld [vmem:[%s2450_s1 + $0x78] sm:$0xff]   ;;  %v1924_v29 = vld [vmem:[%s2450_s1 + $0x30] sm:$0xff]  }
  0x15   :  { %1531 = vmatprep.mubr.msk.bf16.mxu1 %vm1931_vm0, %v1930_v0  ;;  %v2128_v31 = vsel %vm432_vm5, %v433_v27, %v434_v28  ;;  %v2153_v6 = vsel %vm432_vm5, %v434_v28, %v436_v33  ;;  %v93_v44 = vshrl.u32 %v2089_v59, 16  ;;  %v1430_v45 = vcombine.low %v1135_v35, %v816_v39  ;;  %v1926_v35 = vld [vmem:[%s2450_s1 + $0x38] sm:$0xff]  }
  0x16   :  { %1624 = vmatmul.mubr.msk.bf16.gmra.mrb[4].mxu0 %vm108_vm2, %v575_v54  ;;  %v2162_v46 = vsel %vm432_vm5, %v436_v33, %v438_v7  ;;  %v2164_v47 = vrot.slane %v1362_v43, 3  ;;  %v1145_v48 = vrot.slane %v2145_v41, 3  ;;  %v1147_v51 = vrot.slane %v2150_v42, 3 }
  0x17   :  { %1627 = vmatprep.mubr.msk.bf16.mxu0 %vm1931_vm0, %v1930_v0  ;;  %v1144_v52 = vrot.slane %v1430_v45, 3  ;;  %v2181_v56 = vor.u32 %v586_v38, %v583_v37  ;;  %v95_v57 = vor.u32 %v93_v44, %v91_v23  ;;  %v1387_v62 = vcombine.low %v1988_v8, %v2009_v15  ;;  %v823_v8 = vld [vmem:[%s2451_s0 + $0x24] sm:$0xf] }
  0x18   :  { %v2176_v54 = vsel %vm432_vm5, %v438_v7, %v2164_v47  ;;  %v2179_v55 = vsel %vm432_vm5, %v1145_v48, %v1147_v51  ;;  %v1149_v1 = vrot.slane %v2190_v60, 3  ;;  %v1910_v15 = vld [vmem:[%s2450_s1 + $0x20] sm:$0xff]   ;;  %v1388_v10 = vcombine.low %v2014_v16, %v2034_v32 }
  0x19   :  { %v2185_v58 = vsel %vm432_vm5, %v1144_v52, %v1145_v48  ;;  %v2194_v61 = vsel %vm559_vm3, %v578_v63, %v2181_v56  ;;  %v973_v63 = vld [vmem:[%s2451_s0 + $0x28] sm:$0x7]  ;;  %v815_v16 = vld [vmem:[%s2451_s0 + $0x4] sm:$0xc]  ;;  %v1390_v32 = vcombine.low %v2074_v50, %v2074_v50  ;;  %v857_v23 = vrot.slane %v2145_v41, 2  ;;  %v1915_v50 = vld [vmem:[%s2450_s1 + $0x70] sm:$0xff]  }
  0x1a   :  { %v2204_v3 = vsel %vm432_vm5, %v1147_v51, %v1149_v1  ;;  %v1337_v27 = vcombine.low %v2069_v49, %v2069_v49  ;;  %v861_v28 = vrot.slane %v2190_v60, 2  ;;  %v992_v38 = vshrl.u32 %v2145_v41, 16 }
  0x1b   :  { %v1001_v51 = vshrl.u32 %v2150_v42, 16  ;;  %vm982_vm7 = vsmask.f32 5376  ;;  %vm1307_vm8 = vcmask 257024  }
  0x1c   :  { %1532 = vmatmul.mubr.msk.bf16.gmra.mrb[8].mxu1 %vm108_vm2, %v84_v5  ;;  %v2218_v5 = vcombine.low %v823_v8, %v973_v63  ;;  %v994_v44 = vrot.slane %v992_v38, 2  ;;  %v1927_v63 = vld [vmem:[%s2450_s1 + $0x88] sm:$0xff]  }
  0x1d   :  { %1535 = vmatprep.mubr.msk.bf16.mxu1 %vm1931_vm0, %v1930_v0 }
  0x1e   :  { %1628 = vmatmul.mubr.msk.bf16.gmra.mrb[8].mxu0 %vm108_vm2, %v579_v18  ;;  %v1151_v17 = vrot.slane %v2218_v5, 3  ;;  %v1916_v18 = vld [vmem:[%s2450_s1 + $0x28] sm:$0xff]  }
  0x1f   :  { %1643 = vmatprep.mubr.msk.bf16.mxu0 %vm1931_vm0, %v1930_v0 }
  0x20   :  { %v2233_v21 = vsel %vm432_vm5, %v1149_v1, %v1151_v17  ;;  %v1013_v1 = vshll.u32 %v2190_v60, 16 }
  0x24   :  { %1536 = vmatmul.mubr.msk.bf16.gmra.mrb[12].mxu1 %vm108_vm2, %v92_v30 }
  0x25   :  { %1539 = vmatprep.mubr.msk.bf16.mxu1 %vm1931_vm0, %v1930_v0 }
  0x26   :  { %1644 = vmatmul.mubr.msk.bf16.vlgmr.msra.gmra.mrb[0].mxu0 %vm108_vm2, %v1386_v12 }
  0x27   :  { %1664 = vmatpush3.bf16.msra.mxu0 %v1904_v36  ;;  %1647 = vmatprep.mubr.msk.bf16.mxu0 %vm1931_vm0, %v1930_v0 }
  0x28   :  { %1665 = vmatprep.subr.bf16.mxu0 %v1930_v0 }
  0x2b   :  { %1666 = vmatpush3.bf16.msra.mxu0 %v1908_v53  ;;  %v1003_v53 = vrot.slane %v1001_v51, 2 }
  0x2c   :  { %1540 = vmatmul.mubr.msk.bf16.gmra.mrb[16].mxu1 %vm108_vm2, %v95_v57  ;;  %1687 = vmatprep.subr.bf16.mxu0 %v1930_v0 }
  0x2d   :  { %1547 = vmatprep.mubr.msk.bf16.mxu1 %vm1931_vm0, %v1930_v0 }
  0x2e   :  { %1648 = vmatmul.mubr.msk.bf16.gmra.mrb[4].mxu0 %vm108_vm2, %v1387_v62  ;;  %v1010_v62 = vshrl.u32 %v2190_v60, 16 }
  0x2f   :  { %1651 = vmatprep.mubr.msk.bf16.mxu0 %vm1931_vm0, %v1930_v0 }
  0x34   :  { %1548 = vmatmul.mubr.msk.bf16.vlgmr.msra.gmra.mrb[0].mxu1 %vm108_vm2, %v1991_v9  ;;  %v1389_v9 = vcombine.low %v2039_v34, %v2069_v49  ;;  %v1402_v34 = vcombine.low %v815_v16, %v816_v39  ;;  %v824_v49 = vld [vmem:[%s2451_s0 + $0x28] sm:$0x3]  ;;  %v995_v39 = vshll.u32 %v2145_v41, 16  ;;  %v1004_v41 = vshll.u32 %v2150_v42, 16 }
  0x35   :  { %1551 = vmatprep.mubr.msk.bf16.mxu1 %vm1931_vm0, %v1930_v0  ;;  %1568 = vmatpush3.bf16.msra.mxu1 %v1910_v15  ;;  %v1406_v33 = vcombine.low %v823_v8, %v824_v49  ;;  %v1012_v8 = vrot.slane %v1010_v62, 2  ;;  %v1015_v15 = vrot.slane %v1013_v1, 3 }
  0x36   :  { %1652 = vmatmul.mubr.msk.bf16.gmra.mrb[8].mxu0 %vm108_vm2, %v1388_v10  ;;  %1569 = vmatprep.subr.bf16.mxu1 %v1930_v0  ;;  %v984_v36 = vshrl.u32 %v1402_v34, 16  ;;  %v987_v37 = vshll.u32 %v1402_v34, 16  ;;  %v997_v45 = vrot.slane %v995_v39, 3  ;;  %v1006_v57 = vrot.slane %v1004_v41, 3 }
  0x37   :  { %1655 = vmatprep.mubr.msk.bf16.mxu0 %vm1931_vm0, %v1930_v0  ;;  %v863_v12 = vrot.slane %v1406_v33, 2  ;;  %v1016_v60 = vor.u32 %v1015_v15, %v1012_v8  ;;  %v1019_v10 = vshrl.u32 %v2218_v5, 16 }
  0x38   :  { %v986_v7 = vrot.slane %v984_v36, 2  ;;  %v989_v43 = vrot.slane %v987_v37, 3  ;;  %v998_v48 = vor.u32 %v997_v45, %v994_v44 }
  0x39   :  { %1570 = vmatpush3.bf16.msra.mxu1 %v1916_v18  ;;  %v1022_v18 = vshll.u32 %v2218_v5, 16  ;;  %v1021_v16 = vrot.slane %v1019_v10, 2 }
  0x3a   :  { %1591 = vmatprep.subr.bf16.mxu1 %v1930_v0 }
  0x3c   :  { %1552 = vmatmul.mubr.msk.bf16.gmra.mrb[4].mxu1 %vm108_vm2, %v1998_v11  ;;  %v856_v11 = vrot.slane %v1402_v34, 2 }
  0x3d   :  { %1555 = vmatprep.mubr.msk.bf16.mxu1 %vm1931_vm0, %v1930_v0 }
  0x3e   :  { %1656 = vmatmul.mubr.msk.bf16.gmra.mrb[12].mxu0 %vm108_vm2, %v1389_v9  ;;  %v858_v25 = vsel %vm855_vm6, %v856_v11, %v857_v23 }
  0x3f   :  { %1659 = vmatprep.mubr.msk.bf16.mxu0 %vm1931_vm0, %v1930_v0 }
  0x44   :  { %1556 = vmatmul.mubr.msk.bf16.gmra.mrb[8].mxu1 %vm108_vm2, %v2024_v22  ;;  %v859_v22 = vrot.slane %v2150_v42, 2  ;;  %v1007_v42 = vor.u32 %v1006_v57, %v1003_v53 }
  0x45   :  { %1559 = vmatprep.mubr.msk.bf16.mxu1 %vm1931_vm0, %v1930_v0 }
  0x46   :  { %1660 = vmatmul.mubr.msk.bf16.gmra.mrb[16].mxu0 %vm108_vm2, %v1390_v32  ;;  %v862_v30 = vsel %vm855_vm6, %v859_v22, %v861_v28  ;;  %v1017_v9 = vsel %vm982_vm7, %v1007_v42, %v1016_v60  ;;  %v1024_v32 = vrot.slane %v1022_v18, 3 }
  0x47   :  { %1667 = vmatprep.mubr.msk.bf16.mxu0 %vm1931_vm0, %v1930_v0 }
  0x48   :  { %v1025_v59 = vor.u32 %v1024_v32, %v1021_v16 }
  0x4c   :  { %1560 = vmatmul.mubr.msk.bf16.gmra.mrb[12].mxu1 %vm108_vm2, %v2048_v40  ;;  %v860_v40 = vsel %vm855_vm6, %v857_v23, %v859_v22 }
  0x4d   :  { %1563 = vmatprep.mubr.msk.bf16.mxu1 %vm1931_vm0, %v1930_v0 }
  0x4e   :  { %1668 = vmatmul.mubr.msk.bf16.vlgmr.msra.gmra.mrb[0].mxu0 %vm108_vm2, %v858_v25 }
  0x4f   :  { %1688 = vmatpush3.bf16.msra.mxu0 %v1915_v50  ;;  %1671 = vmatprep.mubr.msk.bf16.mxu0 %vm1931_vm0, %v1930_v0 }
  0x50   :  { %1689 = vmatprep.subr.bf16.mxu0 %v1930_v0 }
  0x53   :  { %1690 = vmatpush3.bf16.msra.mxu0 %v1921_v26 }
  0x54   :  { %1564 = vmatmul.mubr.msk.bf16.gmra.mrb[16].mxu1 %vm108_vm2, %v1337_v27  ;;  %1711 = vmatprep.subr.bf16.mxu0 %v1930_v0 }
  0x55   :  { %1571 = vmatprep.mubr.msk.bf16.mxu1 %vm1931_vm0, %v1930_v0 }
  0x56   :  { %1672 = vmatmul.mubr.msk.bf16.gmra.mrb[4].mxu0 %vm108_vm2, %v860_v40 }
  0x57   :  { %1675 = vmatprep.mubr.msk.bf16.mxu0 %vm1931_vm0, %v1930_v0 }
  0x5c   :  { %1572 = vmatmul.mubr.msk.bf16.vlgmr.msra.gmra.mrb[0].mxu1 %vm108_vm2, %v2104_v14  ;;  %v864_v14 = vsel %vm855_vm6, %v861_v28, %v863_v12 }
  0x5d   :  { %1575 = vmatprep.mubr.msk.bf16.mxu1 %vm1931_vm0, %v1930_v0  ;;  %1592 = vmatpush3.bf16.msra.mxu1 %v1924_v29 }
  0x5e   :  { %1676 = vmatmul.mubr.msk.bf16.gmra.mrb[8].mxu0 %vm108_vm2, %v862_v30  ;;  %1593 = vmatprep.subr.bf16.mxu1 %v1930_v0 }
  0x5f   :  { %1679 = vmatprep.mubr.msk.bf16.mxu0 %vm1931_vm0, %v1930_v0 }
  0x61   :  { %1594 = vmatpush3.bf16.msra.mxu1 %v1926_v35 }
  0x62   :  { %1735 = vmatprep.subr.bf16.mxu1 %v1930_v0 }
  0x64   :  { %1576 = vmatmul.mubr.msk.bf16.gmra.mrb[4].mxu1 %vm108_vm2, %v2102_v13  ;;  %v990_v13 = vor.u32 %v989_v43, %v986_v7 }
  0x65   :  { %1579 = vmatprep.mubr.msk.bf16.mxu1 %vm1931_vm0, %v1930_v0 }
  0x66   :  { %1680 = vmatmul.mubr.msk.bf16.gmra.mrb[12].mxu0 %vm108_vm2, %v864_v14  ;;  %v999_v52 = vsel %vm982_vm7, %v990_v13, %v998_v48 }
  0x67   :  { %1683 = vmatprep.mubr.msk.bf16.mxu0 %vm1931_vm0, %v1930_v0 }
  0x6c   :  { %1580 = vmatmul.mubr.msk.bf16.gmra.mrb[8].mxu1 %vm108_vm2, %v2110_v20  ;;  %v1925_v20 = vld [vmem:[%s2450_s1 + $0x80] sm:$0xff]  }
  0x6d   :  { %1583 = vmatprep.mubr.msk.bf16.mxu1 %vm1931_vm0, %v1930_v0 }
  0x6e   :  { %1684 = vmatmul.mubr.msk.bf16.gmra.mrb[16].mxu0 %vm108_vm2, %v863_v12 }
  0x6f   :  { %1691 = vmatprep.mubr.msk.bf16.mxu0 %vm1931_vm0, %v1930_v0 }
  0x74   :  { %1584 = vmatmul.mubr.msk.bf16.gmra.mrb[12].mxu1 %vm108_vm2, %v2116_v24  ;;  %v1008_v24 = vsel %vm982_vm7, %v998_v48, %v1007_v42 }
  0x75   :  { %1587 = vmatprep.mubr.msk.bf16.mxu1 %vm1931_vm0, %v1930_v0 }
  0x76   :  { %1692 = vmatmul.mubr.msk.bf16.vlgmr.msra.gmra.mrb[0].mxu0 %vm108_vm2, %v999_v52 }
  0x77   :  { %1712 = vmatpush3.bf16.msra.mxu0 %v1925_v20  ;;  %1695 = vmatprep.mubr.msk.bf16.mxu0 %vm1931_vm0, %v1930_v0 }
  0x78   :  { %1713 = vmatprep.subr.bf16.mxu0 %v1930_v0 }
  0x7b   :  { %1714 = vmatpush3.bf16.msra.mxu0 %v1927_v63 }
  0x7c   :  { %1588 = vmatmul.mubr.msk.bf16.gmra.mrb[16].mxu1 %vm108_vm2, %v309_v19  ;;  %v1026_v19 = vsel %vm982_vm7, %v1016_v60, %v1025_v59 }
  0x7d   :  { %1595 = vmatprep.mubr.msk.bf16.mxu1 %vm1931_vm0, %v1930_v0 }
  0x7e   :  { %1696 = vmatmul.mubr.msk.bf16.gmra.mrb[4].mxu0 %vm108_vm2, %v1008_v24 }
  0x7f   :  { %1699 = vmatprep.mubr.msk.bf16.mxu0 %vm1931_vm0, %v1930_v0 }
  0x84   :  { %1596 = vmatmul.mubr.msk.bf16.vlgmr.msra.gmra.mrb[0].mxu1 %vm108_vm2, %v2128_v31 }
  0x85   :  { %1599 = vmatprep.mubr.msk.bf16.mxu1 %vm1931_vm0, %v1930_v0  ;;  %1737 = vmatpush3.bf16.msra.mxu1 %v1955_v2 }
  0x86   :  { %1700 = vmatmul.mubr.msk.bf16.gmra.mrb[8].mxu0 %vm108_vm2, %v1017_v9  ;;  %1736 = vmatprep.subr.bf16.mxu1 %v1930_v0 }
  0x87   :  { %1703 = vmatprep.mubr.msk.bf16.mxu0 %vm1931_vm0, %v1930_v0 }
  0x89   :  { %1738 = vmatpush3.bf16.msra.mxu1 %v1969_v4 }
  0x8c   :  { %1600 = vmatmul.mubr.msk.bf16.gmra.mrb[4].mxu1 %vm108_vm2, %v2153_v6 }
  0x8d   :  { %1603 = vmatprep.mubr.msk.bf16.mxu1 %vm1931_vm0, %v1930_v0 }
  0x8e   :  { %1704 = vmatmul.mubr.msk.bf16.gmra.mrb[12].mxu0 %vm108_vm2, %v1026_v19 }
  0x8f   :  { %1707 = vmatprep.mubr.msk.bf16.mxu0 %vm1931_vm0, %v1930_v0 }
  0x94   :  { %1604 = vmatmul.mubr.msk.bf16.gmra.mrb[8].mxu1 %vm108_vm2, %v2162_v46 }
  0x95   :  { %1607 = vmatprep.mubr.msk.bf16.mxu1 %vm1931_vm0, %v1930_v0 }
  0x96   :  { %1708 = vmatmul.mubr.msk.bf16.gmra.mrb[16].mxu0 %vm108_vm2, %v1025_v59 }
  0x97   :  { %1715 = vmatprep.mubr.msk.bf16.mxu0 %vm1931_vm0, %v1930_v0 }
  0x9c   :  { %1608 = vmatmul.mubr.msk.bf16.gmra.mrb[12].mxu1 %vm108_vm2, %v2176_v54 }
  0x9d   :  { %1611 = vmatprep.mubr.msk.bf16.mxu1 %vm1931_vm0, %v1930_v0 }
  0x9e   :  { %1716 = vmatmul.mubr.msk.bf16.vlgmr.msra.gmra.mrb[0].mxu0 %vm108_vm2, %v2185_v58 }
  0x9f   :  { %1719 = vmatprep.mubr.msk.bf16.mxu0 %vm1931_vm0, %v1930_v0 }
  0xa4   :  { %1612 = vmatmul.mubr.msk.bf16.gmra.mrb[16].mxu1 %vm108_vm2, %v2164_v47 }
  0xa5   :  { %1631 = vmatprep.mubr.msk.bf16.mxu1 %vm1931_vm0, %v1930_v0 }
  0xa6   :  { %1720 = vmatmul.mubr.msk.bf16.gmra.mrb[4].mxu0 %vm108_vm2, %v2179_v55 }
  0xa7   :  { %1723 = vmatprep.mubr.msk.bf16.mxu0 %vm1931_vm0, %v1930_v0 }
  0xac   :  { %1632 = vmatmul.mubr.msk.bf16.vlgmr.msra.gmra.mrb[12].mxu1 %vm108_vm2, %v2194_v61 }
  0xad   :  { %1635 = vmatprep.mubr.msk.bf16.mxu1 %vm1931_vm0, %v1930_v0 }
  0xae   :  { %1724 = vmatmul.mubr.msk.bf16.gmra.mrb[8].mxu0 %vm108_vm2, %v2204_v3 }
  0xaf   :  { %1727 = vmatprep.mubr.msk.bf16.mxu0 %vm1931_vm0, %v1930_v0 }
  0xb4   :  { %1636 = vmatmul.mubr.msk.bf16.gmra.mrb[16].mxu1 %vm108_vm2, %v2181_v56 }
  0xb6   :  { %1728 = vmatmul.mubr.msk.bf16.gmra.mrb[12].mxu0 %vm108_vm2, %v2233_v21 }
  0xb7   :  { %1731 = vmatprep.mubr.msk.bf16.mxu0 %vm1931_vm0, %v1930_v0 }
  0xbe   :  { %1732 = vmatmul.mubr.msk.bf16.gmra.mrb[16].mxu0 %vm108_vm2, %v1151_v17 }
 0x157   :  { %v503_v2 = vpop.f32.mrb[0].mxu1 }
 0x158   :  { %v1597_v4 = vpop.f32.mrb[1].mxu1 }
 0x159   :  { %v506_v31 = vpop.f32.mrb[2].mxu1 }
 0x15a   :  { %v1598_v6 = vpop.f32.mrb[3].mxu1 }
 0x15f   :  { %v511_v46 = vpop.f32.mrb[4].mxu1 }
 0x160   :  { %v1601_v47 = vpop.f32.mrb[5].mxu1 }
 0x161   :  { %v514_v54 = vpop.f32.mrb[6].mxu1 }
 0x162   :  { %v1602_v55 = vpop.f32.mrb[7].mxu1 }
 0x167   :  { %v519_v58 = vpop.f32.mrb[8].mxu1 }
 0x168   :  { %v1605_v56 = vpop.f32.mrb[9].mxu1 }
 0x169   :  { %v522_v61 = vpop.f32.mrb[10].mxu1 }
 0x16a   :  { %v1606_v3 = vpop.f32.mrb[11].mxu1 }
 0x171   :  { %v1214_v21 = vpop.f32.mrb[0].mxu0 }
 0x172   :  { %v1739_v34 = vadd.f32 %v1214_v21, %v503_v2  ;;  %v1717_v11 = vpop.f32.mrb[1].mxu0 }
 0x173   :  { %v1217_v0 = vpop.f32.mrb[2].mxu0 }
 0x174   :  { %v1261_v23 = vmax.f32 %v1739_v34, 0.0  ;;  %v1740_v5 = vadd.f32 %v1217_v0, %v506_v31  ;;  %v1718_v25 = vpop.f32.mrb[3].mxu0 }
 0x176   :  { %v1447_v17 = vpack.c.bf16 %v1261_v23, %v1261_v23  ;;  %v1262_v50 = vmax.f32 %v1740_v5, 0.0 }
 0x178   :  { %1308 = vst.msk [vmem:[%s2452_s2] sm:$0xf] %vm1307_vm8, %v1447_v17  ;;  %v1448_v22 = vpack.c.bf16 %v1262_v50, %v1262_v50 }
 0x179   :  { %v1222_v26 = vpop.f32.mrb[4].mxu0 }
 0x17a   :  { %1309 = vst.msk [vmem:[%s2452_s2 + $0x4] sm:$0xf] %vm1307_vm8, %v1448_v22  ;;  %v1741_v27 = vadd.f32 %v1222_v26, %v511_v46  ;;  %v1721_v40 = vpop.f32.mrb[5].mxu0 }
 0x17b   :  { %v1225_v28 = vpop.f32.mrb[6].mxu0 }
 0x17c   :  { %v1263_v49 = vmax.f32 %v1741_v27, 0.0  ;;  %v1742_v29 = vadd.f32 %v1225_v28, %v514_v54  ;;  %v1722_v30 = vpop.f32.mrb[7].mxu0 }
 0x17e   :  { %v1449_v33 = vpack.c.bf16 %v1263_v49, %v1263_v49  ;;  %v1264_v35 = vmax.f32 %v1742_v29, 0.0 }
 0x17f   :  { %v674_v12 = vpop.f32.mrb[12].mxu1 }
 0x180   :  { %1310 = vst.msk [vmem:[%s2452_s2 + $0x8] sm:$0xf] %vm1307_vm8, %v1449_v33  ;;  %v1450_v14 = vpack.c.bf16 %v1264_v35, %v1264_v35  ;;  %v1633_v36 = vpop.f32.mrb[13].mxu1 }
 0x181   :  { %v1230_v37 = vpop.f32.mrb[8].mxu0  ;;  %v677_v38 = vpop.f32.mrb[14].mxu1 }
 0x182   :  { %1311 = vst.msk [vmem:[%s2452_s2 + $0xc] sm:$0xf] %vm1307_vm8, %v1450_v14  ;;  %v1743_v39 = vadd.f32 %v1230_v37, %v519_v58  ;;  %v1725_v7 = vpop.f32.mrb[9].mxu0  ;;  %v1634_v43 = vpop.f32.mrb[15].mxu1 }
 0x183   :  { %v1233_v44 = vpop.f32.mrb[10].mxu0 }
 0x184   :  { %v1265_v45 = vmax.f32 %v1743_v39, 0.0  ;;  %v1744_v13 = vadd.f32 %v1233_v44, %v522_v61  ;;  %v1726_v48 = vpop.f32.mrb[11].mxu0 }
 0x186   :  { %v1451_v51 = vpack.c.bf16 %v1265_v45, %v1265_v45  ;;  %v1266_v41 = vmax.f32 %v1744_v13, 0.0 }
 0x187   :  { %v682_v52 = vpop.f32.mrb[16].mxu1 }
 0x188   :  { %1312 = vst.msk [vmem:[%s2452_s2 + $0x10] sm:$0xf] %vm1307_vm8, %v1451_v51  ;;  %v1452_v20 = vpack.c.bf16 %v1266_v41, %v1266_v41  ;;  %v1637_v53 = vpop.f32.mrb[17].mxu1 }
 0x189   :  { %v1238_v57 = vpop.f32.mrb[12].mxu0  ;;  %v685_v42 = vpop.f32.mrb[18].mxu1 }
 0x18a   :  { %1313 = vst.msk [vmem:[%s2452_s2 + $0x14] sm:$0xf] %vm1307_vm8, %v1452_v20  ;;  %v1745_v62 = vadd.f32 %v1238_v57, %v674_v12  ;;  %v1729_v1 = vpop.f32.mrb[13].mxu0  ;;  %v1638_v63 = vpop.f32.mrb[19].mxu1 }
 0x18b   :  { %v1241_v24 = vpop.f32.mrb[14].mxu0 }
 0x18c   :  { %v1267_v8 = vmax.f32 %v1745_v62, 0.0  ;;  %v1746_v15 = vadd.f32 %v1241_v24, %v677_v38  ;;  %v1730_v60 = vpop.f32.mrb[15].mxu0 }
 0x18e   :  { %v1453_v10 = vpack.c.bf16 %v1267_v8, %v1267_v8  ;;  %v1268_v18 = vmax.f32 %v1746_v15, 0.0 }
 0x190   :  { %1314 = vst.msk [vmem:[%s2452_s2 + $0x18] sm:$0xf] %vm1307_vm8, %v1453_v10  ;;  %v1454_v9 = vpack.c.bf16 %v1268_v18, %v1268_v18 }
 0x191   :  { %v1246_v16 = vpop.f32.mrb[16].mxu0 }
 0x192   :  { %1315 = vst.msk [vmem:[%s2452_s2 + $0x1c] sm:$0xf] %vm1307_vm8, %v1454_v9  ;;  %v1747_v32 = vadd.f32 %v1246_v16, %v682_v52  ;;  %v1733_v59 = vpop.f32.mrb[17].mxu0 }
 0x193   :  { %v1249_v19 = vpop.f32.mrb[18].mxu0 }
 0x194   :  { %v1269_v2 = vmax.f32 %v1747_v32, 0.0  ;;  %v1734_v4 = vpop.f32.mrb[19].mxu0 }
 0x196   :  { %v1455_v31 = vpack.c.bf16 %v1269_v2, %v1269_v2 }
 0x198   :  { %1316 = vst.msk [vmem:[%s2452_s2 + $0x20] sm:$0xf] %vm1307_vm8, %v1455_v31 }

// kernel: resnet50_forward.100
= control target key start
LH: loop header
LB: loop body
LE: loop exit
PB: predicated region body
PF: predicated region fallthrough
CT: control target
= control target key end

     0   :  { %s985_s12 = smov 0   ;;  %s987_s13 = smov 0   ;;  %s1173_s0 = inlined_call_operand.vmem [shape: bf16[2,256], index: 0, kind: input, shape index: {}]   ;;  %s1174_s1 = inlined_call_operand.vmem [shape: bf16[256,512], index: 1, kind: input, shape index: {}]   ;;  %s1175_s2 = inlined_call_operand.vmem [shape: f32[1,512], index: 2, kind: input, shape index: {}]   ;;  %s1176_s3 = inlined_call_operand.vmem [shape: bf16[2,512], index: 3, kind: output, shape index: {}]  }
   0x1   :  { %s989_s14 = smov 0   ;;  %s991_s15 = smov 0  }
   0x2   :  { %s993_s16 = smov 0  }
   0x3 LB: > { %s22_s17 = sadd.s32 1, %s958_s15  ;;  %p65_p1 = scmp.ne.s32.totalorder %s950_s13, %s946_s12  ;;  %s962_s16 = sphi %s993_s16, %s13_s16   ;;  %s958_s15 = sphi %s991_s15, %s1180_s15   ;;  %s954_s14 = sphi %s989_s14, %s1179_s14   ;;  %s950_s13 = sphi %s987_s13, %s1178_s13   ;;  %s946_s12 = sphi %s985_s12, %s1177_s12  }
   0x4   : > { %p23_p0 = scmp.ge.s32.totalorder %s22_s17, 2  ;;  %p66_p2 = scmp.eq.s32.totalorder %s962_s16, 0 }
   0x5   : > { %s58_s19 = sadd.s32 1, %s950_s13  ;;  %p789_p5 = scmp.ge.s32.totalorder %s962_s16, 2 }
   0x6   : > { %s1182_s17 = smov (%p23_p0, %s22_s17), 0  ;;  %p67_p3 = por %p66_p2, %p65_p1 }
   0x7   : > { %s55_s18 = ssub.s32 %s958_s15, %s1182_s17  ;;  %152 = sbr.rel (%p789_p5) target bundleno = 34 (0x22), region = 20 }
   0x8   : > { %p56_p4 = scmp.eq.s32.totalorder %s55_s18, 0 }
   0xa   : > { %s1020_s20 = scalar_select %p56_p4, %s950_s13, %s58_s19  }
   0xe   : > { %155 = sbr.rel (!%p67_p3) target bundleno = 34 (0x22), region = 24  ;;  %s157_s21 = sand.u32 (%p67_p3), 1, %s950_s13  }
   0xf   : > { %s834_s22 = sshll.u32 (%p67_p3), %s958_s15, 3  ;;  %s790_s23 = sshll.u32 (%p67_p3), %s157_s21, 8 }
  0x10   : > { %s1028_s26 = scalar_lea.vmem (%p67_p3), %s1174_s1, %s834_s22  ;;  %s1033_s27 = scalar_lea.vmem (%p67_p3), [#allocation2], %s790_s23 }
  0x11   : > { %v252_v0 = vld [vmem:[%s1028_s26] sm:$0xff] (%p67_p3)  ;;  %v254_v1 = vld [vmem:[%s1028_s26 + $0x10] sm:$0xff] (%p67_p3) }
  0x12   : > { %v256_v2 = vld [vmem:[%s1028_s26 + $0x20] sm:$0xff] (%p67_p3)  ;;  %253 = vst [vmem:[%s1033_s27] sm:$0xff] (%p67_p3), %v252_v0  ;;  %255 = vst [vmem:[%s1033_s27 + $0x8] sm:$0xff] (%p67_p3), %v254_v1  ;;  %v258_v3 = vld [vmem:[%s1028_s26 + $0x30] sm:$0xff] (%p67_p3) }
  0x13   : > { %257 = vst [vmem:[%s1033_s27 + $0x10] sm:$0xff] (%p67_p3), %v256_v2  ;;  %v260_v4 = vld [vmem:[%s1028_s26 + $0x40] sm:$0xff] (%p67_p3)  ;;  %v262_v5 = vld [vmem:[%s1028_s26 + $0x50] sm:$0xff] (%p67_p3)  ;;  %259 = vst [vmem:[%s1033_s27 + $0x18] sm:$0xff] (%p67_p3), %v258_v3 }
  0x14   : > { %261 = vst [vmem:[%s1033_s27 + $0x20] sm:$0xff] (%p67_p3), %v260_v4  ;;  %263 = vst [vmem:[%s1033_s27 + $0x28] sm:$0xff] (%p67_p3), %v262_v5  ;;  %v264_v6 = vld [vmem:[%s1028_s26 + $0x60] sm:$0xff] (%p67_p3)  ;;  %v266_v7 = vld [vmem:[%s1028_s26 + $0x70] sm:$0xff] (%p67_p3) }
  0x15   : > { %v268_v8 = vld [vmem:[%s1028_s26 + $0x80] sm:$0xff]  ;;  %265 = vst [vmem:[%s1033_s27 + $0x30] sm:$0xff] %v264_v6  ;;  %267 = vst [vmem:[%s1033_s27 + $0x38] sm:$0xff] %v266_v7  ;;  %v270_v9 = vld [vmem:[%s1028_s26 + $0x90] sm:$0xff] }
  0x16   : > { %269 = vst [vmem:[%s1033_s27 + $0x40] sm:$0xff] %v268_v8  ;;  %v272_v10 = vld [vmem:[%s1028_s26 + $0xa0] sm:$0xff]  ;;  %v274_v11 = vld [vmem:[%s1028_s26 + $0xb0] sm:$0xff]  ;;  %271 = vst [vmem:[%s1033_s27 + $0x48] sm:$0xff] %v270_v9 }
  0x17   : > { %273 = vst [vmem:[%s1033_s27 + $0x50] sm:$0xff] %v272_v10  ;;  %275 = vst [vmem:[%s1033_s27 + $0x58] sm:$0xff] %v274_v11  ;;  %v276_v12 = vld [vmem:[%s1028_s26 + $0xc0] sm:$0xff]  ;;  %v278_v13 = vld [vmem:[%s1028_s26 + $0xd0] sm:$0xff] }
  0x18   : > { %v280_v14 = vld [vmem:[%s1028_s26 + $0xe0] sm:$0xff]  ;;  %277 = vst [vmem:[%s1033_s27 + $0x60] sm:$0xff] %v276_v12  ;;  %279 = vst [vmem:[%s1033_s27 + $0x68] sm:$0xff] %v278_v13  ;;  %v282_v15 = vld [vmem:[%s1028_s26 + $0xf0] sm:$0xff] }
  0x19   : > { %281 = vst [vmem:[%s1033_s27 + $0x70] sm:$0xff] %v280_v14  ;;  %v284_v16 = vld [vmem:[%s1028_s26 + $0x100] sm:$0xff]  ;;  %v286_v17 = vld [vmem:[%s1028_s26 + $0x110] sm:$0xff]  ;;  %283 = vst [vmem:[%s1033_s27 + $0x78] sm:$0xff] %v282_v15 }
  0x1a   : > { %285 = vst [vmem:[%s1033_s27 + $0x80] sm:$0xff] %v284_v16  ;;  %287 = vst [vmem:[%s1033_s27 + $0x88] sm:$0xff] %v286_v17  ;;  %v288_v18 = vld [vmem:[%s1028_s26 + $0x120] sm:$0xff]  ;;  %v290_v19 = vld [vmem:[%s1028_s26 + $0x130] sm:$0xff] }
  0x1b   : > { %v292_v20 = vld [vmem:[%s1028_s26 + $0x140] sm:$0xff]  ;;  %289 = vst [vmem:[%s1033_s27 + $0x90] sm:$0xff] %v288_v18  ;;  %291 = vst [vmem:[%s1033_s27 + $0x98] sm:$0xff] %v290_v19  ;;  %v294_v21 = vld [vmem:[%s1028_s26 + $0x150] sm:$0xff] }
  0x1c   : > { %293 = vst [vmem:[%s1033_s27 + $0xa0] sm:$0xff] %v292_v20  ;;  %v296_v22 = vld [vmem:[%s1028_s26 + $0x160] sm:$0xff]  ;;  %v298_v23 = vld [vmem:[%s1028_s26 + $0x170] sm:$0xff]  ;;  %295 = vst [vmem:[%s1033_s27 + $0xa8] sm:$0xff] %v294_v21 }
  0x1d   : > { %297 = vst [vmem:[%s1033_s27 + $0xb0] sm:$0xff] %v296_v22  ;;  %299 = vst [vmem:[%s1033_s27 + $0xb8] sm:$0xff] %v298_v23  ;;  %v300_v24 = vld [vmem:[%s1028_s26 + $0x180] sm:$0xff]  ;;  %v302_v25 = vld [vmem:[%s1028_s26 + $0x190] sm:$0xff] }
  0x1e   : > { %v304_v26 = vld [vmem:[%s1028_s26 + $0x1a0] sm:$0xff]  ;;  %301 = vst [vmem:[%s1033_s27 + $0xc0] sm:$0xff] %v300_v24  ;;  %303 = vst [vmem:[%s1033_s27 + $0xc8] sm:$0xff] %v302_v25  ;;  %v306_v27 = vld [vmem:[%s1028_s26 + $0x1b0] sm:$0xff] }
  0x1f   : > { %305 = vst [vmem:[%s1033_s27 + $0xd0] sm:$0xff] %v304_v26  ;;  %v308_v28 = vld [vmem:[%s1028_s26 + $0x1c0] sm:$0xff]  ;;  %v310_v29 = vld [vmem:[%s1028_s26 + $0x1d0] sm:$0xff]  ;;  %307 = vst [vmem:[%s1033_s27 + $0xd8] sm:$0xff] %v306_v27 }
  0x20   : > { %309 = vst [vmem:[%s1033_s27 + $0xe0] sm:$0xff] %v308_v28  ;;  %311 = vst [vmem:[%s1033_s27 + $0xe8] sm:$0xff] %v310_v29  ;;  %v312_v30 = vld [vmem:[%s1028_s26 + $0x1e0] sm:$0xff]  ;;  %v314_v31 = vld [vmem:[%s1028_s26 + $0x1f0] sm:$0xff] }
  0x21   : > { %313 = vst [vmem:[%s1033_s27 + $0xf0] sm:$0xff] %v312_v30  ;;  %315 = vst [vmem:[%s1033_s27 + $0xf8] sm:$0xff] %v314_v31 }
  0x22 PF: > { %p793_p6 = scmp.ge.s32.totalorder %s962_s16, 1  ;;  %p328_p7 = scmp.lt.s32.totalorder %s962_s16, 3 }
  0x24   : > { %p329_p8 = pnand %p793_p6, %p328_p7 }
  0x25   : > { %s335_s28 = sand.u32 (!%p329_p8), 1, %s946_s12   ;;  %v1102_v32 = vld.sshfl [vmem:[%s1173_s0] sm:$0x11 pattern:$0x75316420] (!%p329_p8)  ;;  %v423_v33 = vlaneseq (!%p329_p8)  ;;  %s795_s6 = sshll.u32 (!%p329_p8), %s954_s14, 1 }
  0x26   : > { %332 = sbr.rel (%p329_p8) target bundleno = 325 (0x145), region = 66  ;;  %s794_s4 = sshll.u32 (!%p329_p8), %s335_s28, 8  ;;  %v964_v35 = vmov (!%p329_p8), 1966171168   ;;  %v441_v39 = vcombine.high (!%p329_p8), %v1102_v32, %v1102_v32 }
  0x27   : > { %v1104_v34 = vshrl.u32 (!%p329_p8), %v423_v33, 7  ;;  %v443_v36 = vunpack.c.l.s4 (!%p329_p8), %v964_v35  ;;  %s1106_s5 = scalar_lea.vmem (!%p329_p8), [#allocation2], %s794_s4  ;;  %p375_p9 = scmp.lt.s32.totalorder (!%p329_p8), %s795_s6, 3 }
  0x28   : > { %v876_v37 = vld [vmem:[%s1106_s5 + $0x4] ss:$8 sps:$4 sm:$0xff] (!%p329_p8)   ;;  %v878_v38 = vld [vmem:[%s1106_s5] ss:$8 sps:$4 sm:$0xff] (!%p329_p8)   ;;  %v879_v41 = vld [vmem:[%s1106_s5 + $0x14] ss:$8 sps:$4 sm:$0xff] (!%p329_p8)  }
  0x29   : > { %v444_v40 = vunpack.c.0.s8 (!%p329_p8), %v443_v36  ;;  %618 = vmatprep.subr.bf16.mxu0 (!%p329_p8), %v876_v37  ;;  %v881_v42 = vld [vmem:[%s1106_s5 + $0x10] ss:$8 sps:$4 sm:$0xff] (!%p329_p8)   ;;  %v882_v44 = vld [vmem:[%s1106_s5 + $0x24] ss:$8 sps:$4 sm:$0xff] (!%p329_p8)   ;;  %v884_v46 = vld [vmem:[%s1106_s5 + $0x20] ss:$8 sps:$4 sm:$0xff] (!%p329_p8)  }
  0x2a   : > { %619 = vmatpush1.bf16.msra.mxu0 (!%p329_p8), %v878_v38  ;;  %v885_v47 = vld [vmem:[%s1106_s5 + $0x34] ss:$8 sps:$4 sm:$0xff] (!%p329_p8)   ;;  %v887_v48 = vld [vmem:[%s1106_s5 + $0x30] ss:$8 sps:$4 sm:$0xff] (!%p329_p8)   ;;  %v888_v49 = vld [vmem:[%s1106_s5 + $0x44] ss:$8 sps:$4 sm:$0xff] (!%p329_p8)  }
  0x2b   : > { %v1115_v43 = vsub.s32 (!%p329_p8), %v444_v40, %v1104_v34  ;;  %620 = vmatprep.subr.bf16.mxu0 (!%p329_p8), %v879_v41  ;;  %v890_v50 = vld [vmem:[%s1106_s5 + $0x40] ss:$8 sps:$4 sm:$0xff] (!%p329_p8)   ;;  %v891_v51 = vld [vmem:[%s1106_s5 + $0x54] ss:$8 sps:$4 sm:$0xff] (!%p329_p8)   ;;  %v893_v52 = vld [vmem:[%s1106_s5 + $0x50] ss:$8 sps:$4 sm:$0xff] (!%p329_p8)  }
  0x2c   : > { %v894_v53 = vld [vmem:[%s1106_s5 + $0x64] ss:$8 sps:$4 sm:$0xff] (!%p329_p8)   ;;  %v896_v54 = vld [vmem:[%s1106_s5 + $0x60] ss:$8 sps:$4 sm:$0xff] (!%p329_p8)   ;;  %v897_v55 = vld [vmem:[%s1106_s5 + $0x74] ss:$8 sps:$4 sm:$0xff] (!%p329_p8)  }
  0x2d   : > { %v455_v45 = vrot.slane %v441_v39, %v1115_v43  ;;  %v899_v56 = vld [vmem:[%s1106_s5 + $0x70] ss:$8 sps:$4 sm:$0xff]   ;;  %v900_v57 = vld [vmem:[%s1106_s5 + $0x84] ss:$8 sps:$4 sm:$0xff]   ;;  %v902_v58 = vld [vmem:[%s1106_s5 + $0x80] ss:$8 sps:$4 sm:$0xff]   ;;  %v448_v9 = vrot.slane %v1102_v32, %v1115_v43 }
  0x2e   : > { %621 = vmatpush1.bf16.msra.mxu0 %v881_v42  ;;  %v903_v59 = vld [vmem:[%s1106_s5 + $0x94] ss:$8 sps:$4 sm:$0xff]   ;;  %v905_v60 = vld [vmem:[%s1106_s5 + $0x90] ss:$8 sps:$4 sm:$0xff]   ;;  %v906_v61 = vld [vmem:[%s1106_s5 + $0xa4] ss:$8 sps:$4 sm:$0xff]  }
  0x2f   : > { %650 = vmatprep.mubr.bf16.mxu0 %v455_v45  ;;  %622 = vmatprep.subr.bf16.mxu0 %v882_v44  ;;  %v908_v62 = vld [vmem:[%s1106_s5 + $0xa0] ss:$8 sps:$4 sm:$0xff]   ;;  %v909_v63 = vld [vmem:[%s1106_s5 + $0xb4] ss:$8 sps:$4 sm:$0xff]   ;;  %v911_v0 = vld [vmem:[%s1106_s5 + $0xb0] ss:$8 sps:$4 sm:$0xff]  }
  0x30   : > { %v912_v1 = vld [vmem:[%s1106_s5 + $0xc4] ss:$8 sps:$4 sm:$0xff]   ;;  %v914_v2 = vld [vmem:[%s1106_s5 + $0xc0] ss:$8 sps:$4 sm:$0xff]   ;;  %v915_v3 = vld [vmem:[%s1106_s5 + $0xd4] ss:$8 sps:$4 sm:$0xff]  }
  0x31   : > { %v917_v4 = vld [vmem:[%s1106_s5 + $0xd0] ss:$8 sps:$4 sm:$0xff]   ;;  %v918_v5 = vld [vmem:[%s1106_s5 + $0xe4] ss:$8 sps:$4 sm:$0xff]   ;;  %v920_v6 = vld [vmem:[%s1106_s5 + $0xe0] ss:$8 sps:$4 sm:$0xff]  }
  0x32   : > { %623 = vmatpush1.bf16.msra.mxu0 %v884_v46  ;;  %v921_v7 = vld [vmem:[%s1106_s5 + $0xf4] ss:$8 sps:$4 sm:$0xff]   ;;  %v923_v8 = vld [vmem:[%s1106_s5 + $0xf0] ss:$8 sps:$4 sm:$0xff]   ;;  %s1184_s6 = smov (!%p375_p9, %s795_s6), 3  ;;  %v425_v10 = vsub.s32 0, %v1104_v34 }
  0x33   : > { %624 = vmatprep.subr.bf16.mxu0 %v885_v47  ;;  %s377_s9 = scalar_lea.vmem %s1175_s2, %s1184_s6  ;;  %v429_v12 = vsub.s32 1, %v1104_v34  ;;  %s386_s12 = scalar_lea.vmem %s1176_s3, %s1184_s6 }
  0x34   : > { %v421_v11 = vld [vmem:[%s377_s9] sm:$0x3] }
  0x35   : > { %v426_v13 = vrot.slane %v421_v11, %v425_v10  ;;  %v430_v14 = vrot.slane %v421_v11, %v429_v12 }
  0x36   : > { %625 = vmatpush1.bf16.msra.mxu0 %v887_v48 }
  0x37   : > { %626 = vmatprep.subr.bf16.mxu0 %v888_v49 }
  0x3a   : > { %627 = vmatpush1.bf16.msra.mxu0 %v890_v50 }
  0x3b   : > { %628 = vmatprep.subr.bf16.mxu0 %v891_v51 }
  0x3e   : > { %629 = vmatpush1.bf16.msra.mxu0 %v893_v52 }
  0x3f   : > { %630 = vmatprep.subr.bf16.mxu0 %v894_v53 }
  0x42   : > { %631 = vmatpush1.bf16.msra.mxu0 %v896_v54 }
  0x43   : > { %632 = vmatprep.subr.bf16.mxu0 %v897_v55 }
  0x46   : > { %633 = vmatpush1.bf16.msra.mxu0 %v899_v56 }
  0x47   : > { %634 = vmatprep.subr.bf16.mxu0 %v900_v57 }
  0x4a   : > { %635 = vmatpush1.bf16.msra.mxu0 %v902_v58 }
  0x4b   : > { %636 = vmatprep.subr.bf16.mxu0 %v903_v59 }
  0x4e   : > { %637 = vmatpush1.bf16.msra.mxu0 %v905_v60 }
  0x4f   : > { %638 = vmatprep.subr.bf16.mxu0 %v906_v61 }
  0x52   : > { %639 = vmatpush1.bf16.msra.mxu0 %v908_v62 }
  0x53   : > { %640 = vmatprep.subr.bf16.mxu0 %v909_v63 }
  0x56   : > { %641 = vmatpush1.bf16.msra.mxu0 %v911_v0 }
  0x57   : > { %642 = vmatprep.subr.bf16.mxu0 %v912_v1 }
  0x5a   : > { %643 = vmatpush1.bf16.msra.mxu0 %v914_v2 }
  0x5b   : > { %644 = vmatprep.subr.bf16.mxu0 %v915_v3 }
  0x5e   : > { %645 = vmatpush1.bf16.msra.mxu0 %v917_v4 }
  0x5f   : > { %646 = vmatprep.subr.bf16.mxu0 %v918_v5 }
  0x62   : > { %647 = vmatpush1.bf16.msra.mxu0 %v920_v6 }
  0x63   : > { %648 = vmatprep.subr.bf16.mxu0 %v921_v7 }
  0x66   : > { %649 = vmatpush1.bf16.msra.mxu0 %v923_v8 }
  0x69   : > { %651 = vmatmul.mubr.bf16.vlgmr.msra.gmra.mrb[0].mxu0 %v448_v9 }
 0x13c   : > { %v652_v15 = vpop.f32.mrb[0].mxu0 }
 0x13d   : > { %v653_v16 = vadd.f32 %v652_v15, %v426_v13  ;;  %v654_v17 = vpop.f32.mrb[1].mxu0 }
 0x13e   : > { %v655_v18 = vadd.f32 %v654_v17, %v430_v14  ;;  %v656_v19 = vpop.f32.mrb[2].mxu0 }
 0x13f   : > { %v657_v20 = vpop.f32.mrb[3].mxu0 }
 0x140   : > { %v830_v21 = vpack.c.bf16 %v655_v18, %v653_v16 }
 0x142   : > { %v670_v22 = vrot.slane %v830_v21, %v1115_v43 }
 0x144   : > { %831 = vst.sshfl [vmem:[%s386_s12] sm:$0x5 pattern:$0x73625140] %v670_v22 }
 0x145 PF: > { %s13_s16 = sadd.s32 1, %s962_s16   ;;  %s1177_s12 = smov %s950_s13 }
 0x146   : > { %p10_p10 = scmp.ge.s32.totalorder %s13_s16, 4   ;;  %s1178_s13 = smov %s1020_s20 }
 0x147   : > { %s1179_s14 = smov %s958_s15  ;;  %s1180_s15 = smov %s1182_s17 }
 0x148   :  { %12 = sbr.rel (!%p10_p10) target bundleno = 3 (0x3), region = 111 }

// kernel: resnet50_forward.84
= control target key start
LH: loop header
LB: loop body
LE: loop exit
PB: predicated region body
PF: predicated region fallthrough
CT: control target
= control target key end

     0   :  { %v151_v1 = vmov 0   ;;  %vm67_vm0 = vcmask 523264   ;;  %s205_s1 = inlined_call_operand.vmem [shape: bf16[64,256], index: 1, kind: input, shape index: {}]   ;;  %s206_s0 = inlined_call_operand.vmem [shape: bf16[8,64], index: 0, kind: input, shape index: {}]   ;;  %s207_s2 = inlined_call_operand.vmem [shape: bf16[8,256], index: 2, kind: input, shape index: {}]   ;;  %s208_s3 = inlined_call_operand.vmem [shape: bf16[8,256], index: 3, kind: output, shape index: {}]  }
   0x1   :  { %v139_v0 = vld [vmem:[%s205_s1 + $0x4] ss:$8 sps:$4 sm:$0xff]   ;;  %103 = vmatprep.mubr.bf16.mxu0 %v151_v1  ;;  %v141_v2 = vld [vmem:[%s205_s1] ss:$8 sps:$4 sm:$0xff]   ;;  %v142_v3 = vld [vmem:[%s205_s1 + $0x14] ss:$8 sps:$4 sm:$0xff]  }
   0x2   :  { %71 = vmatprep.subr.bf16.mxu0 %v139_v0  ;;  %v144_v4 = vld [vmem:[%s205_s1 + $0x10] ss:$8 sps:$4 sm:$0xff]   ;;  %v145_v5 = vld [vmem:[%s205_s1 + $0x24] ss:$8 sps:$4 sm:$0xff]   ;;  %v147_v6 = vld [vmem:[%s205_s1 + $0x20] ss:$8 sps:$4 sm:$0xff]  }
   0x3   :  { %72 = vmatpush1.bf16.msra.mxu0 %v141_v2  ;;  %v148_v7 = vld [vmem:[%s205_s1 + $0x34] ss:$8 sps:$4 sm:$0xff]   ;;  %v150_v8 = vld [vmem:[%s205_s1 + $0x30] ss:$8 sps:$4 sm:$0xff]   ;;  %v15_v9 = vld [vmem:[%s206_s0] sm:$0xf] }
   0x4   :  { %73 = vmatprep.subr.bf16.mxu0 %v142_v3  ;;  %v24_v10 = vld [vmem:[%s207_s2] sm:$0xff] }
   0x5   :  { %v25_v11 = vunpack.c.l.bf16 %v24_v10  ;;  %v26_v12 = vunpack.c.h.bf16 %v24_v10 }
   0x7   :  { %74 = vmatpush1.bf16.msra.mxu0 %v144_v4 }
   0x8   :  { %75 = vmatprep.subr.bf16.mxu0 %v145_v5 }
   0xb   :  { %76 = vmatpush1.bf16.msra.mxu0 %v147_v6 }
   0xc   :  { %77 = vmatprep.subr.bf16.mxu0 %v148_v7 }
   0xf   :  { %78 = vmatpush1.bf16.msra.mxu0 %v150_v8 }
  0x12   :  { %135 = vmatmul.mubr.msk.bf16.vlgmr.msra.gmra.mrb[0].mxu0 %vm67_vm0, %v15_v9 }
  0xe5   :  { %v105_v13 = vpop.f32.mrb[0].mxu0 }
  0xe6   :  { %v106_v14 = vadd.f32 %v105_v13, %v25_v11  ;;  %v107_v15 = vpop.f32.mrb[1].mxu0 }
  0xe7   :  { %v108_v16 = vadd.f32 %v107_v15, %v26_v12  ;;  %v109_v17 = vpop.f32.mrb[2].mxu0 }
  0xe8   :  { %v112_v18 = vmax.f32 %v106_v14, 0.0  ;;  %v110_v19 = vpop.f32.mrb[3].mxu0 }
  0xe9   :  { %v113_v20 = vmax.f32 %v108_v16, 0.0 }
  0xeb   :  { %v137_v21 = vpack.c.bf16 %v113_v20, %v112_v18 }
  0xed   :  { %122 = vst [vmem:[%s208_s3] sm:$0xff] %v137_v21 }

// kernel: resnet50_forward.83
= control target key start
LH: loop header
LB: loop body
LE: loop exit
PB: predicated region body
PF: predicated region fallthrough
CT: control target
= control target key end

     0   :  { %vm47_vm0 = vsmask.f32 7424  ;;  %vm92_vm1 = vcmask 523264   ;;  %vm446_vm2 = vsmask.f32 5376  ;;  %vm564_vm3 = vcmask 1044480   ;;  %s1655_s1 = inlined_call_operand.vmem [shape: bf16[9,64,64], index: 1, kind: input, shape index: {}]   ;;  %s1656_s0 = inlined_call_operand.vmem [shape: bf16[42,64], index: 0, kind: input, shape index: {}]   ;;  %s1657_s2 = inlined_call_operand.vmem [shape: bf16[32,64], index: 2, kind: output, shape index: {}]  }
   0x1   :  { %v1344_v0 = vld [vmem:[%s1655_s1 + $0x20] sm:$0xff]   ;;  %v1346_v2 = vld [vmem:[%s1655_s1 + $0x28] sm:$0xff]   ;;  %v1348_v4 = vld [vmem:[%s1655_s1 + $0x30] sm:$0xff]   ;;  %vm238_vm4 = vcmask 1046528   ;;  %vm344_vm5 = vcmask 1045504   ;;  %vm1001_vm6 = vcmask 519168  }
   0x2   :  { %v1345_v1 = vld [vmem:[%s1655_s1 + $0x80] sm:$0xff]   ;;  %1204 = vmatprep.subr.bf16.mxu1 %v1344_v0  ;;  %v1347_v3 = vld [vmem:[%s1655_s1 + $0x88] sm:$0xff]   ;;  %v1349_v5 = vld [vmem:[%s1655_s1 + $0x90] sm:$0xff]  }
   0x3   :  { %1252 = vmatprep.subr.bf16.mxu0 %v1345_v1  ;;  %1205 = vmatpush3.bf16.msra.mxu1 %v1344_v0  ;;  %v1350_v6 = vld [vmem:[%s1655_s1 + $0x38] sm:$0xff]   ;;  %v12_v8 = vld [vmem:[%s1656_s0] sm:$0xf]  ;;  %v1439_v9 = vld [vmem:[%s1656_s0 + $0x4] sm:$0xf] }
   0x4   :  { %1253 = vmatpush3.bf16.msra.mxu0 %v1345_v1  ;;  %1206 = vmatprep.subr.bf16.mxu1 %v1346_v2  ;;  %v1351_v7 = vld [vmem:[%s1655_s1 + $0x98] sm:$0xff]   ;;  %v1444_v10 = vld [vmem:[%s1656_s0 + $0x8] sm:$0xf]  ;;  %v1449_v11 = vld [vmem:[%s1656_s0 + $0xc] sm:$0xf]  ;;  %v1018_v12 = vcombine.low %v12_v8, %v1439_v9 }
   0x5   :  { %1254 = vmatprep.subr.bf16.mxu0 %v1347_v3  ;;  %v1454_v13 = vcombine.low %v1444_v10, %v1449_v11  ;;  %v327_v14 = vld [vmem:[%s1656_s0] sm:$0xc]  ;;  %v1475_v25 = vld [vmem:[%s1656_s0 + $0x10] ss:$0 sps:$4 sm:$0x11]   ;;  %v1359_v41 = vld [vmem:[%s1655_s1 + $0x8] sm:$0xff]  }
   0x6   :  { %v49_v15 = vshrl.u32 %v1018_v12, 16  ;;  %v51_v16 = vshll.u32 %v1018_v12, 16  ;;  %v1354_v17 = vld [vmem:[%s1655_s1] sm:$0xff]   ;;  %v1463_v18 = vcombine.low %v327_v14, %v1439_v9  ;;  %v1480_v29 = vld [vmem:[%s1656_s0 + $0x10] ss:$0 sps:$4 sm:$0x77]  }
   0x7   :  { %1207 = vmatpush3.bf16.msra.mxu1 %v1346_v2  ;;  %v1356_v19 = vld [vmem:[%s1655_s1 + $0xa0] sm:$0xff]   ;;  %v56_v20 = vshll.u32 %v1454_v13, 16  ;;  %v60_v21 = vshrl.u32 %v1454_v13, 16  ;;  %v64_v33 = vshll.u32 %v1475_v25, 16  ;;  %v460_v36 = vshrl.u32 %v1480_v29, 16  ;;  %v1360_v47 = vld [vmem:[%s1655_s1 + $0xa8] sm:$0xff]  }
   0x8   :  { %1255 = vmatpush3.bf16.msra.mxu0 %v1347_v3  ;;  %1208 = vmatprep.subr.bf16.mxu1 %v1348_v4  ;;  %v53_v22 = vrot.slane %v51_v16, 1  ;;  %v448_v23 = vshrl.u32 %v1463_v18, 16  ;;  %v451_v24 = vshll.u32 %v1463_v18, 16  ;;  %v463_v37 = vshll.u32 %v1480_v29, 16  ;;  %v1361_v49 = vld [vmem:[%s1655_s1 + $0x10] sm:$0xff]   ;;  %v1363_v55 = vld [vmem:[%s1655_s1 + $0x18] sm:$0xff]  }
   0x9   :  { %1256 = vmatprep.subr.bf16.mxu0 %v1349_v5  ;;  %v58_v26 = vrot.slane %v56_v20, 1  ;;  %v455_v27 = vrot.slane %v60_v21, 2  ;;  %v456_v28 = vrot.slane %v56_v20, 3  ;;  %v66_v40 = vrot.slane %v64_v33, 1  ;;  %v551_v50 = vld [vmem:[%s1656_s0] sm:$0x8] }
   0xa   :  { %v54_v30 = vor.u32 %v53_v22, %v49_v15  ;;  %v450_v31 = vrot.slane %v448_v23, 2  ;;  %v453_v32 = vrot.slane %v451_v24, 3  ;;  %v462_v42 = vrot.slane %v460_v36, 2  ;;  %v1362_v53 = vld [vmem:[%s1655_s1 + $0xb0] sm:$0xff]   ;;  %v1364_v57 = vld [vmem:[%s1655_s1 + $0xb8] sm:$0xff]   ;;  %v1365_v58 = vld [vmem:[%s1655_s1 + $0x40] sm:$0xff]  }
   0xb   :  { %1209 = vmatpush3.bf16.msra.mxu1 %v1348_v4  ;;  %v62_v34 = vor.u32 %v60_v21, %v58_v26  ;;  %v457_v35 = vor.u32 %v456_v28, %v455_v27  ;;  %v465_v43 = vrot.slane %v463_v37, 3  ;;  %v1087_v51 = vcombine.low %v551_v50, %v1439_v9  ;;  %v225_v59 = vld [vmem:[%s1656_s0] sm:$0xe]  ;;  %v1368_v1 = vld [vmem:[%s1655_s1 + $0x48] sm:$0xff]   ;;  %v750_v8 = vld [vmem:[%s1656_s0 + $0x4] sm:$0xf] }
   0xc   :  { %1257 = vmatpush3.bf16.msra.mxu0 %v1349_v5  ;;  %1210 = vmatprep.subr.bf16.mxu1 %v1350_v6  ;;  %v59_v38 = vsel %vm47_vm0, %v54_v30, %v58_v26  ;;  %v454_v39 = vor.u32 %v453_v32, %v450_v31  ;;  %v566_v52 = vrot.slane %v1454_v13, 3  ;;  %v1041_v60 = vcombine.low %v225_v59, %v1439_v9  ;;  %v1367_v63 = vld [vmem:[%s1655_s1 + $0xc0] sm:$0xff]   ;;  %v1369_v5 = vld [vmem:[%s1655_s1 + $0xc8] sm:$0xff]   ;;  %v1381_v33 = vld [vmem:[%s1655_s1 + $0x70] sm:$0xff]  }
   0xd   :  { %1258 = vmatprep.subr.bf16.mxu0 %v1351_v7  ;;  %1212 = vmatprep.mubr.msk.bf16.mxu1 %vm92_vm1, %v59_v38  ;;  %v67_v45 = vsel %vm47_vm0, %v62_v34, %v66_v40  ;;  %v466_v46 = vor.u32 %v465_v43, %v462_v42  ;;  %v565_v54 = vrot.slane %v1087_v51, 3  ;;  %v240_v61 = vrot.slane %v1454_v13, 1  ;;  %v1567_v14 = vld [vmem:[%s1656_s0 + $0xc] sm:$0xff]   ;;  %v1375_v22 = vld [vmem:[%s1655_s1 + $0x60] sm:$0xff]   ;;  %v1383_v36 = vld [vmem:[%s1655_s1 + $0x78] sm:$0xff]  }
   0xe   :  { %v458_v44 = vsel %vm446_vm2, %v454_v39, %v457_v35  ;;  %v568_v62 = vrot.slane %v1480_v29, 3  ;;  %v239_v0 = vrot.slane %v1041_v60, 1  ;;  %v1102_v4 = vcombine.low %v1439_v9, %v1444_v10  ;;  %v1558_v9 = vld [vmem:[%s1656_s0 + $0x8] sm:$0xf]  ;;  %v1372_v10 = vld [vmem:[%s1655_s1 + $0x58] sm:$0xff]   ;;  %v1377_v26 = vld [vmem:[%s1655_s1 + $0xe0] sm:$0xff]  }
   0xf   :  { %1211 = vmatpush3.bf16.msra.mxu1 %v1350_v6  ;;  %1260 = vmatprep.mubr.msk.bf16.mxu0 %vm92_vm1, %v458_v44  ;;  %v467_v48 = vsel %vm446_vm2, %v457_v35, %v466_v46  ;;  %v567_v56 = vsel %vm564_vm3, %v565_v54, %v566_v52  ;;  %v1370_v6 = vld [vmem:[%s1655_s1 + $0x50] sm:$0xff]   ;;  %v242_v16 = vrot.slane %v1475_v25, 1  ;;  %v785_v21 = vshll.u32 %v1567_v14, 16  ;;  %v1380_v31 = vld [vmem:[%s1655_s1 + $0xe8] sm:$0xff]   ;;  %v880_v37 = vld [vmem:[%s1656_s0 + $0x4] sm:$0xe] }
  0x10   :  { %1259 = vmatpush3.bf16.msra.mxu0 %v1351_v7  ;;  %1216 = vmatprep.subr.bf16.mxu1 %v1354_v17  ;;  %v241_v2 = vsel %vm238_vm4, %v239_v0, %v240_v61  ;;  %v569_v3 = vsel %vm564_vm3, %v566_v52, %v568_v62  ;;  %v1371_v7 = vld [vmem:[%s1655_s1 + $0xd0] sm:$0xff]   ;;  %v345_v23 = vrot.slane %v1463_v18, 2  ;;  %v346_v24 = vrot.slane %v1454_v13, 2  ;;  %v1384_v40 = vld [vmem:[%s1655_s1 + $0xf8] sm:$0xff]   ;;  %v1388_v46 = vld [vmem:[%s1655_s1 + $0x100] sm:$0xff]  }
  0x11   :  { %1264 = vmatprep.subr.bf16.mxu0 %v1356_v19  ;;  %v653_v25 = vld [vmem:[%s1656_s0 + $0x10] sm:$0xf]  ;;  %v243_v27 = vsel %vm238_vm4, %v240_v61, %v242_v16  ;;  %v787_v29 = vrot.slane %v785_v21, 1  ;;  %v789_v38 = vshrl.u32 %v1567_v14, 16  ;;  %v1135_v42 = vcombine.low %v880_v37, %v1558_v9  ;;  %v1390_v50 = vld [vmem:[%s1655_s1 + $0x108] sm:$0xff]  }
  0x12   :  { %1213 = vmatmul.mubr.msk.bf16.vlgmr.msra.gmra.mrb[0].mxu1 %vm92_vm1, %v67_v45  ;;  %v1103_v18 = vcombine.low %v1449_v11, %v653_v25  ;;  %v347_v30 = vsel %vm344_vm5, %v345_v23, %v346_v24  ;;  %v1389_v11 = vld [vmem:[%s1656_s0 + $0x14] ss:$0 sps:$4 sm:$0x11]   ;;  %v1385_v35 = vld [vmem:[%s1656_s0 + $0x10] ss:$0 sps:$4 sm:$0x33]  }
  0x13   :  { %1217 = vmatpush3.bf16.msra.mxu1 %v1354_v17  ;;  %1224 = vmatprep.mubr.msk.bf16.mxu1 %vm92_vm1, %v1018_v12  ;;  %v1118_v12 = vcombine.low %v750_v8, %v1558_v9  ;;  %v1373_v17 = vld [vmem:[%s1655_s1 + $0xd8] sm:$0xff]   ;;  %v1382_v34 = vld [vmem:[%s1655_s1 + $0xf0] sm:$0xff]   ;;  %v793_v39 = vshll.u32 %v1389_v11, 16  ;;  %v791_v43 = vor.u32 %v789_v38, %v787_v29  ;;  %v896_v54 = vrot.slane %v1389_v11, 1 }
  0x14   :  { %1218 = vmatprep.subr.bf16.mxu1 %v1359_v41  ;;  %1261 = vmatmul.mubr.msk.bf16.vlgmr.msra.gmra.mrb[0].mxu0 %vm92_vm1, %v467_v48  ;;  %v894_v48 = vrot.slane %v1567_v14, 1  ;;  %v1391_v52 = vld [vmem:[%s1655_s1 + $0x110] sm:$0xff]  }
  0x15   :  { %1265 = vmatpush3.bf16.msra.mxu0 %v1356_v19  ;;  %1272 = vmatprep.mubr.msk.bf16.mxu0 %vm92_vm1, %v567_v56  ;;  %v780_v15 = vshll.u32 %v1118_v12, 16  ;;  %v778_v19 = vshrl.u32 %v1118_v12, 16  ;;  %v795_v44 = vrot.slane %v793_v39, 1 }
  0x16   :  { %1266 = vmatprep.subr.bf16.mxu0 %v1360_v47 }
  0x17   :  { %1219 = vmatpush3.bf16.msra.mxu1 %v1359_v41  ;;  %v782_v20 = vrot.slane %v780_v15, 1  ;;  %v348_v41 = vrot.slane %v1385_v35, 2 }
  0x18   :  { %1220 = vmatprep.subr.bf16.mxu1 %v1361_v49 }
  0x19   :  { %1267 = vmatpush3.bf16.msra.mxu0 %v1360_v47  ;;  %v783_v28 = vor.u32 %v782_v20, %v778_v19  ;;  %v349_v45 = vsel %vm344_vm5, %v346_v24, %v348_v41  ;;  %v893_v47 = vrot.slane %v1135_v42, 1 }
  0x1a   :  { %1268 = vmatprep.subr.bf16.mxu0 %v1362_v53 }
  0x1b   :  { %1221 = vmatpush3.bf16.msra.mxu1 %v1361_v49  ;;  %v788_v32 = vsel %vm47_vm0, %v783_v28, %v787_v29  ;;  %v796_v49 = vsel %vm47_vm0, %v791_v43, %v795_v44  ;;  %v895_v51 = vsel %vm238_vm4, %v893_v47, %v894_v48 }
  0x1c   :  { %1222 = vmatprep.subr.bf16.mxu1 %v1363_v55 }
  0x1d   :  { %1269 = vmatpush3.bf16.msra.mxu0 %v1362_v53  ;;  %v1392_v53 = vld [vmem:[%s1655_s1 + $0x118] sm:$0xff]  }
  0x1e   :  { %1270 = vmatprep.subr.bf16.mxu0 %v1364_v57 }
  0x1f   :  { %1223 = vmatpush3.bf16.msra.mxu1 %v1363_v55  ;;  %v897_v55 = vsel %vm238_vm4, %v894_v48, %v896_v54 }
  0x20   :  { %1228 = vmatprep.subr.bf16.mxu1 %v1365_v58 }
  0x21   :  { %1271 = vmatpush3.bf16.msra.mxu0 %v1364_v57 }
  0x22   :  { %1225 = vmatmul.mubr.msk.bf16.vlgmr.msra.gmra.mrb[0].mxu1 %vm92_vm1, %v1454_v13  ;;  %1276 = vmatprep.subr.bf16.mxu0 %v1367_v63  ;;  %v1379_v13 = vld [vmem:[%s1655_s1 + $0x68] sm:$0xff]  }
  0x23   :  { %1229 = vmatpush3.bf16.msra.mxu1 %v1365_v58  ;;  %1236 = vmatprep.mubr.msk.bf16.mxu1 %vm92_vm1, %v241_v2 }
  0x24   :  { %1230 = vmatprep.subr.bf16.mxu1 %v1368_v1  ;;  %1273 = vmatmul.mubr.msk.bf16.vlgmr.msra.gmra.mrb[0].mxu0 %vm92_vm1, %v569_v3 }
  0x25   :  { %1277 = vmatpush3.bf16.msra.mxu0 %v1367_v63  ;;  %1284 = vmatprep.mubr.msk.bf16.mxu0 %vm92_vm1, %v1102_v4 }
  0x26   :  { %1278 = vmatprep.subr.bf16.mxu0 %v1369_v5 }
  0x27   :  { %1231 = vmatpush3.bf16.msra.mxu1 %v1368_v1 }
  0x28   :  { %1232 = vmatprep.subr.bf16.mxu1 %v1370_v6 }
  0x29   :  { %1279 = vmatpush3.bf16.msra.mxu0 %v1369_v5 }
  0x2a   :  { %1280 = vmatprep.subr.bf16.mxu0 %v1371_v7 }
  0x2b   :  { %1233 = vmatpush3.bf16.msra.mxu1 %v1370_v6 }
  0x2c   :  { %1234 = vmatprep.subr.bf16.mxu1 %v1372_v10 }
  0x2d   :  { %1281 = vmatpush3.bf16.msra.mxu0 %v1371_v7 }
  0x2e   :  { %1282 = vmatprep.subr.bf16.mxu0 %v1373_v17 }
  0x2f   :  { %1235 = vmatpush3.bf16.msra.mxu1 %v1372_v10 }
  0x30   :  { %1240 = vmatprep.subr.bf16.mxu1 %v1375_v22 }
  0x31   :  { %1283 = vmatpush3.bf16.msra.mxu0 %v1373_v17 }
  0x32   :  { %1237 = vmatmul.mubr.msk.bf16.vlgmr.msra.gmra.mrb[0].mxu1 %vm92_vm1, %v243_v27  ;;  %1288 = vmatprep.subr.bf16.mxu0 %v1377_v26 }
  0x33   :  { %1241 = vmatpush3.bf16.msra.mxu1 %v1375_v22  ;;  %1248 = vmatprep.mubr.msk.bf16.mxu1 %vm92_vm1, %v347_v30 }
  0x34   :  { %1242 = vmatprep.subr.bf16.mxu1 %v1379_v13  ;;  %1285 = vmatmul.mubr.msk.bf16.vlgmr.msra.gmra.mrb[0].mxu0 %vm92_vm1, %v1103_v18 }
  0x35   :  { %1289 = vmatpush3.bf16.msra.mxu0 %v1377_v26  ;;  %1296 = vmatprep.mubr.msk.bf16.mxu0 %vm92_vm1, %v788_v32 }
  0x36   :  { %1290 = vmatprep.subr.bf16.mxu0 %v1380_v31 }
  0x37   :  { %1243 = vmatpush3.bf16.msra.mxu1 %v1379_v13 }
  0x38   :  { %1244 = vmatprep.subr.bf16.mxu1 %v1381_v33 }
  0x39   :  { %1291 = vmatpush3.bf16.msra.mxu0 %v1380_v31 }
  0x3a   :  { %1292 = vmatprep.subr.bf16.mxu0 %v1382_v34 }
  0x3b   :  { %1245 = vmatpush3.bf16.msra.mxu1 %v1381_v33 }
  0x3c   :  { %1246 = vmatprep.subr.bf16.mxu1 %v1383_v36 }
  0x3d   :  { %1293 = vmatpush3.bf16.msra.mxu0 %v1382_v34 }
  0x3e   :  { %1294 = vmatprep.subr.bf16.mxu0 %v1384_v40 }
  0x3f   :  { %1247 = vmatpush3.bf16.msra.mxu1 %v1383_v36 }
  0x41   :  { %1295 = vmatpush3.bf16.msra.mxu0 %v1384_v40 }
  0x42   :  { %1249 = vmatmul.mubr.msk.bf16.vlgmr.msra.gmra.mrb[0].mxu1 %vm92_vm1, %v349_v45  ;;  %1300 = vmatprep.subr.bf16.mxu0 %v1388_v46 }
  0x44   :  { %1297 = vmatmul.mubr.msk.bf16.vlgmr.msra.gmra.mrb[0].mxu0 %vm92_vm1, %v796_v49 }
  0x45   :  { %1301 = vmatpush3.bf16.msra.mxu0 %v1388_v46  ;;  %1308 = vmatprep.mubr.msk.bf16.mxu0 %vm92_vm1, %v895_v51 }
  0x46   :  { %1302 = vmatprep.subr.bf16.mxu0 %v1390_v50 }
  0x49   :  { %1303 = vmatpush3.bf16.msra.mxu0 %v1390_v50 }
  0x4a   :  { %1304 = vmatprep.subr.bf16.mxu0 %v1391_v52 }
  0x4d   :  { %1305 = vmatpush3.bf16.msra.mxu0 %v1391_v52 }
  0x4e   :  { %1306 = vmatprep.subr.bf16.mxu0 %v1392_v53 }
  0x51   :  { %1307 = vmatpush3.bf16.msra.mxu0 %v1392_v53 }
  0x54   :  { %1309 = vmatmul.mubr.msk.bf16.vlgmr.msra.gmra.mrb[0].mxu0 %vm92_vm1, %v897_v55 }
 0x115   :  { %v1250_v56 = vpop.f32.mrb[0].mxu1 }
 0x116   :  { %v414_v57 = vpop.f32.mrb[1].mxu1 }
 0x117   :  { %v1251_v58 = vpop.f32.mrb[2].mxu1 }
 0x118   :  { %v417_v59 = vpop.f32.mrb[3].mxu1 }
 0x127   :  { %v1310_v60 = vpop.f32.mrb[0].mxu0 }
 0x128   :  { %v1312_v61 = vadd.f32 %v1310_v60, %v1250_v56  ;;  %v962_v62 = vpop.f32.mrb[1].mxu0 }
 0x129   :  { %v1313_v63 = vadd.f32 %v962_v62, %v414_v57  ;;  %v1311_v0 = vpop.f32.mrb[2].mxu0 }
 0x12a   :  { %v983_v1 = vmax.f32 %v1312_v61, 0.0  ;;  %v1314_v2 = vadd.f32 %v1311_v0, %v1251_v58  ;;  %v965_v3 = vpop.f32.mrb[3].mxu0 }
 0x12b   :  { %v981_v4 = vmax.f32 %v1313_v63, 0.0  ;;  %v1315_v5 = vadd.f32 %v965_v3, %v417_v59 }
 0x12c   :  { %v1148_v6 = vpack.c.bf16 %v983_v1, %v983_v1  ;;  %v984_v7 = vmax.f32 %v1314_v2, 0.0 }
 0x12d   :  { %v1146_v8 = vpack.c.bf16 %v981_v4, %v981_v4  ;;  %v982_v9 = vmax.f32 %v1315_v5, 0.0 }
 0x12e   :  { %1004 = vst.msk [vmem:[%s1657_s2 + $0x8] sm:$0xf] %vm1001_vm6, %v1148_v6  ;;  %v1149_v10 = vpack.c.bf16 %v984_v7, %v984_v7 }
 0x12f   :  { %1002 = vst.msk [vmem:[%s1657_s2] sm:$0xf] %vm1001_vm6, %v1146_v8  ;;  %v1147_v12 = vpack.c.bf16 %v982_v9, %v982_v9 }
 0x130   :  { %1005 = vst.msk [vmem:[%s1657_s2 + $0xc] sm:$0xf] %vm1001_vm6, %v1149_v10 }
 0x131   :  { %1003 = vst.msk [vmem:[%s1657_s2 + $0x4] sm:$0xf] %vm1001_vm6, %v1147_v12 }

// kernel: resnet50_forward.101
= control target key start
LH: loop header
LB: loop body
LE: loop exit
PB: predicated region body
PF: predicated region fallthrough
CT: control target
= control target key end

     0   :  { %v495_v22 = vmov 1966171168   ;;  %v89_v24 = vlaneseq  ;;  %s613_s1 = inlined_call_operand.vmem [shape: bf16[512,128], index: 1, kind: input, shape index: {}]   ;;  %s614_s0 = inlined_call_operand.vmem [shape: bf16[2,512], index: 0, kind: input, shape index: {}]   ;;  %s615_s2 = inlined_call_operand.vmem [shape: bf16[2,128], index: 2, kind: output, shape index: {}]  }
   0x1   :  { %v463_v0 = vld [vmem:[%s613_s1 + $0x40] sm:$0xff]   ;;  %v467_v4 = vld [vmem:[%s613_s1 + $0x48] sm:$0xff]   ;;  %v471_v8 = vld [vmem:[%s613_s1 + $0x50] sm:$0xff]   ;;  %v87_v23 = vunpack.c.l.s4 %v495_v22 }
   0x2   :  { %v464_v1 = vld [vmem:[%s613_s1 + $0xc0] sm:$0xff]   ;;  %418 = vmatprep.subr.bf16.mxu0 %v463_v0  ;;  %v468_v5 = vld [vmem:[%s613_s1 + $0xc8] sm:$0xff]   ;;  %v472_v9 = vld [vmem:[%s613_s1 + $0xd0] sm:$0xff]   ;;  %v90_v30 = vshrl.u32 %v89_v24, 7 }
   0x3   :  { %v465_v2 = vld [vmem:[%s613_s1] sm:$0xff]   ;;  %440 = vmatprep.subr.bf16.mxu1 %v464_v1  ;;  %v469_v6 = vld [vmem:[%s613_s1 + $0x8] sm:$0xff]   ;;  %v473_v10 = vld [vmem:[%s613_s1 + $0x10] sm:$0xff]   ;;  %v88_v29 = vunpack.c.0.s8 %v87_v23 }
   0x4   :  { %v466_v3 = vld [vmem:[%s613_s1 + $0x80] sm:$0xff]   ;;  %419 = vmatpush3.bf16.msra.mxu0 %v465_v2  ;;  %v470_v7 = vld [vmem:[%s613_s1 + $0x88] sm:$0xff]   ;;  %v474_v11 = vld [vmem:[%s613_s1 + $0x90] sm:$0xff]  }
   0x5   :  { %441 = vmatpush3.bf16.msra.mxu1 %v466_v3  ;;  %420 = vmatprep.subr.bf16.mxu0 %v467_v4  ;;  %v475_v12 = vld [vmem:[%s613_s1 + $0x58] sm:$0xff]   ;;  %v479_v16 = vld [vmem:[%s613_s1 + $0x60] sm:$0xff]   ;;  %v483_v20 = vld [vmem:[%s613_s1 + $0x68] sm:$0xff]   ;;  %v91_v35 = vsub.s32 %v88_v29, %v90_v30 }
   0x6   :  { %442 = vmatprep.subr.bf16.mxu1 %v468_v5  ;;  %v476_v13 = vld [vmem:[%s613_s1 + $0xd8] sm:$0xff]   ;;  %v480_v17 = vld [vmem:[%s613_s1 + $0xe0] sm:$0xff]   ;;  %v484_v21 = vld [vmem:[%s613_s1 + $0xe8] sm:$0xff]  }
   0x7   :  { %v477_v14 = vld [vmem:[%s613_s1 + $0x18] sm:$0xff]   ;;  %v481_v18 = vld [vmem:[%s613_s1 + $0x20] sm:$0xff]   ;;  %v485_v25 = vld [vmem:[%s613_s1 + $0x28] sm:$0xff]  }
   0x8   :  { %421 = vmatpush3.bf16.msra.mxu0 %v469_v6  ;;  %v478_v15 = vld [vmem:[%s613_s1 + $0x98] sm:$0xff]   ;;  %v482_v19 = vld [vmem:[%s613_s1 + $0xa0] sm:$0xff]   ;;  %v486_v26 = vld [vmem:[%s613_s1 + $0xa8] sm:$0xff]  }
   0x9   :  { %443 = vmatpush3.bf16.msra.mxu1 %v470_v7  ;;  %422 = vmatprep.subr.bf16.mxu0 %v471_v8  ;;  %v487_v27 = vld [vmem:[%s613_s1 + $0x70] sm:$0xff]   ;;  %v491_v33 = vld [vmem:[%s613_s1 + $0x78] sm:$0xff]   ;;  %v385_v38 = vld.sshfl [vmem:[%s614_s0] sm:$0x33 pattern:$0x75316420] }
   0xa   :  { %444 = vmatprep.subr.bf16.mxu1 %v472_v9  ;;  %v488_v28 = vld [vmem:[%s613_s1 + $0xf0] sm:$0xff]   ;;  %v492_v34 = vld [vmem:[%s613_s1 + $0xf8] sm:$0xff]   ;;  %v85_v39 = vcombine.high %v385_v38, %v385_v38  ;;  %v92_v40 = vrot.slane %v385_v38, %v91_v35 }
   0xb   :  { %v489_v31 = vld [vmem:[%s613_s1 + $0x30] sm:$0xff]   ;;  %v493_v36 = vld [vmem:[%s613_s1 + $0x38] sm:$0xff]  }
   0xc   :  { %423 = vmatpush3.bf16.msra.mxu0 %v473_v10  ;;  %v490_v32 = vld [vmem:[%s613_s1 + $0xb0] sm:$0xff]   ;;  %v494_v37 = vld [vmem:[%s613_s1 + $0xb8] sm:$0xff]   ;;  %v99_v41 = vrot.slane %v85_v39, %v91_v35  ;;  %v100_v42 = vcombine.high %v92_v40, %v92_v40 }
   0xd   :  { %445 = vmatpush3.bf16.msra.mxu1 %v474_v11  ;;  %424 = vmatprep.subr.bf16.mxu0 %v475_v12 }
   0xe   :  { %446 = vmatprep.subr.bf16.mxu1 %v476_v13  ;;  %330 = vmatprep.mubr.bf16.mxu0 %v99_v41  ;;  %v101_v43 = vcombine.high %v99_v41, %v99_v41 }
  0x10   :  { %425 = vmatpush3.bf16.msra.mxu0 %v477_v14  ;;  %370 = vmatprep.mubr.bf16.mxu1 %v101_v43 }
  0x11   :  { %447 = vmatpush3.bf16.msra.mxu1 %v478_v15  ;;  %426 = vmatprep.subr.bf16.mxu0 %v479_v16 }
  0x12   :  { %448 = vmatprep.subr.bf16.mxu1 %v480_v17 }
  0x14   :  { %427 = vmatpush3.bf16.msra.mxu0 %v481_v18 }
  0x15   :  { %449 = vmatpush3.bf16.msra.mxu1 %v482_v19  ;;  %428 = vmatprep.subr.bf16.mxu0 %v483_v20 }
  0x16   :  { %450 = vmatprep.subr.bf16.mxu1 %v484_v21 }
  0x18   :  { %429 = vmatpush3.bf16.msra.mxu0 %v485_v25 }
  0x19   :  { %451 = vmatpush3.bf16.msra.mxu1 %v486_v26  ;;  %430 = vmatprep.subr.bf16.mxu0 %v487_v27 }
  0x1a   :  { %452 = vmatprep.subr.bf16.mxu1 %v488_v28 }
  0x1c   :  { %431 = vmatpush3.bf16.msra.mxu0 %v489_v31 }
  0x1d   :  { %453 = vmatpush3.bf16.msra.mxu1 %v490_v32  ;;  %432 = vmatprep.subr.bf16.mxu0 %v491_v33 }
  0x1e   :  { %454 = vmatprep.subr.bf16.mxu1 %v492_v34 }
  0x20   :  { %433 = vmatpush3.bf16.msra.mxu0 %v493_v36 }
  0x21   :  { %455 = vmatpush3.bf16.msra.mxu1 %v494_v37 }
  0x23   :  { %331 = vmatmul.mubr.bf16.vlgmr.msra.gmra.mrb[0].mxu0 %v92_v40 }
  0x24   :  { %371 = vmatmul.mubr.bf16.vlgmr.msra.gmra.mrb[0].mxu1 %v100_v42 }
  0xf6   :  { %v434_v44 = vpop.f32.mrb[0].mxu0 }
  0xf7   :  { %v435_v45 = vpop.f32.mrb[1].mxu0  ;;  %v456_v46 = vpop.f32.mrb[0].mxu1 }
  0xf8   :  { %v436_v47 = vadd.f32 %v435_v45, %v434_v44  ;;  %v437_v48 = vpop.f32.mrb[2].mxu0  ;;  %v457_v49 = vpop.f32.mrb[1].mxu1 }
  0xf9   :  { %v438_v50 = vpop.f32.mrb[3].mxu0  ;;  %v458_v51 = vadd.f32 %v457_v49, %v456_v46  ;;  %v459_v52 = vpop.f32.mrb[2].mxu1 }
  0xfa   :  { %v460_v53 = vpop.f32.mrb[3].mxu1 }
  0xfb   :  { %v373_v54 = vadd.f32 %v458_v51, %v436_v47 }
  0xfd   :  { %v378_v55 = vmax.f32 %v373_v54, 0.0 }
  0xff   :  { %v379_v56 = vpack.c.bf16 %v378_v55, %v378_v55 }
 0x101   :  { %380 = vst [vmem:[%s615_s2] sm:$0x1] %v379_v56 }

// kernel: resnet50_forward.103
= control target key start
LH: loop header
LB: loop body
LE: loop exit
PB: predicated region body
PF: predicated region fallthrough
CT: control target
= control target key end

     0   :  { %s781_s12 = smov 0   ;;  %s783_s13 = smov 0   ;;  %s870_s0 = inlined_call_operand.vmem [shape: bf16[2,128], index: 0, kind: input, shape index: {}]   ;;  %s871_s1 = inlined_call_operand.vmem [shape: bf16[128,512], index: 1, kind: input, shape index: {}]   ;;  %s872_s2 = inlined_call_operand.vmem [shape: bf16[2,512], index: 2, kind: input, shape index: {}]   ;;  %s873_s3 = inlined_call_operand.vmem [shape: bf16[2,512], index: 3, kind: output, shape index: {}]  }
   0x1   :  { %s785_s14 = smov 0   ;;  %s787_s15 = smov 0  }
   0x2   :  { %s789_s16 = smov 0  }
   0x3 LB: > { %s22_s17 = sadd.s32 1, %s752_s15  ;;  %p65_p1 = scmp.ne.s32.totalorder %s744_s13, %s740_s12  ;;  %s756_s16 = sphi %s789_s16, %s13_s16   ;;  %s752_s15 = sphi %s787_s15, %s877_s15   ;;  %s748_s14 = sphi %s785_s14, %s876_s14   ;;  %s744_s13 = sphi %s783_s13, %s875_s13   ;;  %s740_s12 = sphi %s781_s12, %s874_s12  }
   0x4   : > { %p23_p0 = scmp.ge.s32.totalorder %s22_s17, 2  ;;  %p66_p2 = scmp.eq.s32.totalorder %s756_s16, 0 }
   0x5   : > { %s58_s19 = sadd.s32 1, %s744_s13  ;;  %p622_p5 = scmp.ge.s32.totalorder %s756_s16, 2 }
   0x6   : > { %s879_s17 = smov (%p23_p0, %s22_s17), 0  ;;  %p67_p3 = por %p66_p2, %p65_p1 }
   0x7   : > { %s55_s18 = ssub.s32 %s752_s15, %s879_s17  ;;  %153 = sbr.rel (%p622_p5) target bundleno = 26 (0x1a), region = 20 }
   0x8   : > { %p56_p4 = scmp.eq.s32.totalorder %s55_s18, 0 }
   0xa   : > { %s816_s20 = scalar_select %p56_p4, %s744_s13, %s58_s19  }
   0xe   : > { %156 = sbr.rel (!%p67_p3) target bundleno = 26 (0x1a), region = 24  ;;  %s158_s21 = sand.u32 (%p67_p3), 1, %s744_s13  }
   0xf   : > { %s650_s22 = sshll.u32 (%p67_p3), %s752_s15, 3  ;;  %s623_s23 = sshll.u32 (%p67_p3), %s158_s21, 7 }
  0x10   : > { %s824_s26 = scalar_lea.vmem (%p67_p3), %s871_s1, %s650_s22  ;;  %s160_s27 = scalar_lea.vmem (%p67_p3), [#allocation2], %s623_s23 }
  0x11   : > { %v221_v0 = vld [vmem:[%s824_s26] sm:$0xff] (%p67_p3)  ;;  %v223_v1 = vld [vmem:[%s824_s26 + $0x10] sm:$0xff] (%p67_p3) }
  0x12   : > { %v225_v2 = vld [vmem:[%s824_s26 + $0x20] sm:$0xff] (%p67_p3)  ;;  %222 = vst [vmem:[%s160_s27] sm:$0xff] (%p67_p3), %v221_v0  ;;  %224 = vst [vmem:[%s160_s27 + $0x8] sm:$0xff] (%p67_p3), %v223_v1  ;;  %v227_v3 = vld [vmem:[%s824_s26 + $0x30] sm:$0xff] (%p67_p3) }
  0x13   : > { %226 = vst [vmem:[%s160_s27 + $0x10] sm:$0xff] (%p67_p3), %v225_v2  ;;  %v229_v4 = vld [vmem:[%s824_s26 + $0x40] sm:$0xff] (%p67_p3)  ;;  %v231_v5 = vld [vmem:[%s824_s26 + $0x50] sm:$0xff] (%p67_p3)  ;;  %228 = vst [vmem:[%s160_s27 + $0x18] sm:$0xff] (%p67_p3), %v227_v3 }
  0x14   : > { %230 = vst [vmem:[%s160_s27 + $0x20] sm:$0xff] (%p67_p3), %v229_v4  ;;  %232 = vst [vmem:[%s160_s27 + $0x28] sm:$0xff] (%p67_p3), %v231_v5  ;;  %v233_v6 = vld [vmem:[%s824_s26 + $0x60] sm:$0xff] (%p67_p3)  ;;  %v235_v7 = vld [vmem:[%s824_s26 + $0x70] sm:$0xff] (%p67_p3) }
  0x15   : > { %v237_v8 = vld [vmem:[%s824_s26 + $0x80] sm:$0xff]  ;;  %234 = vst [vmem:[%s160_s27 + $0x30] sm:$0xff] %v233_v6  ;;  %236 = vst [vmem:[%s160_s27 + $0x38] sm:$0xff] %v235_v7  ;;  %v239_v9 = vld [vmem:[%s824_s26 + $0x90] sm:$0xff] }
  0x16   : > { %238 = vst [vmem:[%s160_s27 + $0x40] sm:$0xff] %v237_v8  ;;  %v241_v10 = vld [vmem:[%s824_s26 + $0xa0] sm:$0xff]  ;;  %v243_v11 = vld [vmem:[%s824_s26 + $0xb0] sm:$0xff]  ;;  %240 = vst [vmem:[%s160_s27 + $0x48] sm:$0xff] %v239_v9 }
  0x17   : > { %242 = vst [vmem:[%s160_s27 + $0x50] sm:$0xff] %v241_v10  ;;  %244 = vst [vmem:[%s160_s27 + $0x58] sm:$0xff] %v243_v11  ;;  %v245_v12 = vld [vmem:[%s824_s26 + $0xc0] sm:$0xff]  ;;  %v247_v13 = vld [vmem:[%s824_s26 + $0xd0] sm:$0xff] }
  0x18   : > { %v249_v14 = vld [vmem:[%s824_s26 + $0xe0] sm:$0xff]  ;;  %246 = vst [vmem:[%s160_s27 + $0x60] sm:$0xff] %v245_v12  ;;  %248 = vst [vmem:[%s160_s27 + $0x68] sm:$0xff] %v247_v13  ;;  %v251_v15 = vld [vmem:[%s824_s26 + $0xf0] sm:$0xff] }
  0x19   : > { %250 = vst [vmem:[%s160_s27 + $0x70] sm:$0xff] %v249_v14  ;;  %252 = vst [vmem:[%s160_s27 + $0x78] sm:$0xff] %v251_v15 }
  0x1a PF: > { %p626_p6 = scmp.ge.s32.totalorder %s756_s16, 1  ;;  %p269_p7 = scmp.lt.s32.totalorder %s756_s16, 3 }
  0x1c   : > { %p270_p8 = pnand %p626_p6, %p269_p7 }
  0x1d   : > { %s276_s28 = sand.u32 (!%p270_p8), 1, %s740_s12   ;;  %v758_v16 = vmov (!%p270_p8), 0   ;;  %v336_v33 = vld [vmem:[%s870_s0] sm:$0x1] (!%p270_p8)  ;;  %s628_s6 = sshll.u32 (!%p270_p8), %s748_s14, 1  ;;  %v439_v36 = vlaneseq (!%p270_p8) }
  0x1e   : > { %273 = sbr.rel (%p270_p8) target bundleno = 287 (0x11f), region = 66  ;;  %s627_s29 = sshll.u32 (!%p270_p8), %s276_s28, 7  ;;  %478 = vmatprep.mubr.bf16.mxu0 (!%p270_p8), %v758_v16  ;;  %v759_v34 = vmov (!%p270_p8), 1983009808   ;;  %v760_v43 = vmov (!%p270_p8), 1966171168  }
  0x1f   : > { %s278_s30 = scalar_lea.vmem (!%p270_p8), [#allocation2], %s627_s29  ;;  %p320_p9 = scmp.lt.s32.totalorder (!%p270_p8), %s628_s6, 3  ;;  %v437_v35 = vunpack.c.l.s4 (!%p270_p8), %v759_v34  ;;  %v440_v38 = vshrl.u32 (!%p270_p8), %v439_v36, 7  ;;  %v495_v44 = vunpack.c.l.s4 (!%p270_p8), %v760_v43 }
  0x20   : > { %v694_v17 = vld [vmem:[%s278_s30 + $0x4] ss:$8 sps:$4 sm:$0xff] (!%p270_p8)   ;;  %v696_v18 = vld [vmem:[%s278_s30] ss:$8 sps:$4 sm:$0xff] (!%p270_p8)   ;;  %v697_v19 = vld [vmem:[%s278_s30 + $0x14] ss:$8 sps:$4 sm:$0xff] (!%p270_p8)  }
  0x21   : > { %446 = vmatprep.subr.bf16.mxu0 (!%p270_p8), %v694_v17  ;;  %v699_v20 = vld [vmem:[%s278_s30 + $0x10] ss:$8 sps:$4 sm:$0xff] (!%p270_p8)   ;;  %v700_v21 = vld [vmem:[%s278_s30 + $0x24] ss:$8 sps:$4 sm:$0xff] (!%p270_p8)   ;;  %v702_v22 = vld [vmem:[%s278_s30 + $0x20] ss:$8 sps:$4 sm:$0xff] (!%p270_p8)   ;;  %v438_v37 = vunpack.c.0.s8 (!%p270_p8), %v437_v35  ;;  %v496_v47 = vunpack.c.0.s8 (!%p270_p8), %v495_v44 }
  0x22   : > { %447 = vmatpush1.bf16.msra.mxu0 (!%p270_p8), %v696_v18  ;;  %v703_v23 = vld [vmem:[%s278_s30 + $0x34] ss:$8 sps:$4 sm:$0xff] (!%p270_p8)   ;;  %v705_v24 = vld [vmem:[%s278_s30 + $0x30] ss:$8 sps:$4 sm:$0xff] (!%p270_p8)   ;;  %v706_v25 = vld [vmem:[%s278_s30 + $0x44] ss:$8 sps:$4 sm:$0xff] (!%p270_p8)  }
  0x23   : > { %448 = vmatprep.subr.bf16.mxu0 (!%p270_p8), %v697_v19  ;;  %v708_v26 = vld [vmem:[%s278_s30 + $0x40] ss:$8 sps:$4 sm:$0xff] (!%p270_p8)   ;;  %v709_v27 = vld [vmem:[%s278_s30 + $0x54] ss:$8 sps:$4 sm:$0xff] (!%p270_p8)   ;;  %v711_v28 = vld [vmem:[%s278_s30 + $0x50] ss:$8 sps:$4 sm:$0xff] (!%p270_p8)   ;;  %v441_v41 = vsub.s32 (!%p270_p8), %v438_v37, %v440_v38  ;;  %v499_v55 = vsub.s32 (!%p270_p8), %v496_v47, %v440_v38 }
  0x24   : > { %v712_v29 = vld [vmem:[%s278_s30 + $0x64] ss:$8 sps:$4 sm:$0xff] (!%p270_p8)   ;;  %v714_v30 = vld [vmem:[%s278_s30 + $0x60] ss:$8 sps:$4 sm:$0xff] (!%p270_p8)   ;;  %v715_v31 = vld [vmem:[%s278_s30 + $0x74] ss:$8 sps:$4 sm:$0xff] (!%p270_p8)  }
  0x25   : > { %v717_v32 = vld [vmem:[%s278_s30 + $0x70] ss:$8 sps:$4 sm:$0xff]   ;;  %s881_s6 = smov (!%p320_p9, %s628_s6), 3 }
  0x26   : > { %449 = vmatpush1.bf16.msra.mxu0 %v699_v20  ;;  %s324_s9 = scalar_lea.vmem %s872_s2, %s881_s6  ;;  %s333_s12 = scalar_lea.vmem %s873_s3, %s881_s6 }
  0x27   : > { %450 = vmatprep.subr.bf16.mxu0 %v700_v21  ;;  %v353_v39 = vld [vmem:[%s324_s9] sm:$0x3] }
  0x28   : > { %v354_v40 = vunpack.c.l.bf16 %v353_v39 }
  0x2a   : > { %451 = vmatpush1.bf16.msra.mxu0 %v702_v22  ;;  %v442_v42 = vrot.slane %v354_v40, %v441_v41 }
  0x2b   : > { %452 = vmatprep.subr.bf16.mxu0 %v703_v23 }
  0x2c   : > { %v443_v45 = vcombine.high %v442_v42, %v442_v42 }
  0x2e   : > { %453 = vmatpush1.bf16.msra.mxu0 %v705_v24 }
  0x2f   : > { %454 = vmatprep.subr.bf16.mxu0 %v706_v25 }
  0x32   : > { %455 = vmatpush1.bf16.msra.mxu0 %v708_v26 }
  0x33   : > { %456 = vmatprep.subr.bf16.mxu0 %v709_v27 }
  0x36   : > { %457 = vmatpush1.bf16.msra.mxu0 %v711_v28 }
  0x37   : > { %458 = vmatprep.subr.bf16.mxu0 %v712_v29 }
  0x3a   : > { %459 = vmatpush1.bf16.msra.mxu0 %v714_v30 }
  0x3b   : > { %460 = vmatprep.subr.bf16.mxu0 %v715_v31 }
  0x3e   : > { %461 = vmatpush1.bf16.msra.mxu0 %v717_v32 }
  0x41   : > { %479 = vmatmul.mubr.bf16.vlgmr.msra.gmra.mrb[0].mxu0 %v336_v33 }
 0x114   : > { %v480_v46 = vpop.f32.mrb[0].mxu0 }
 0x115   : > { %v481_v48 = vadd.f32 %v480_v46, %v442_v42  ;;  %v482_v49 = vpop.f32.mrb[1].mxu0 }
 0x116   : > { %v483_v50 = vadd.f32 %v482_v49, %v443_v45  ;;  %v484_v51 = vpop.f32.mrb[2].mxu0 }
 0x117   : > { %v487_v52 = vmax.f32 %v481_v48, 0.0  ;;  %v485_v53 = vpop.f32.mrb[3].mxu0 }
 0x118   : > { %v488_v54 = vmax.f32 %v483_v50, 0.0 }
 0x11a   : > { %v646_v56 = vpack.c.bf16 %v488_v54, %v487_v52 }
 0x11c   : > { %v500_v57 = vrot.slane %v646_v56, %v499_v55 }
 0x11e   : > { %647 = vst.sshfl [vmem:[%s333_s12] sm:$0x5 pattern:$0x73625140] %v500_v57 }
 0x11f PF: > { %s13_s16 = sadd.s32 1, %s756_s16   ;;  %s874_s12 = smov %s744_s13 }
 0x120   : > { %p10_p10 = scmp.ge.s32.totalorder %s13_s16, 4   ;;  %s875_s13 = smov %s816_s20 }
 0x121   : > { %s876_s14 = smov %s752_s15  ;;  %s877_s15 = smov %s879_s17 }
 0x122   :  { %12 = sbr.rel (!%p10_p10) target bundleno = 3 (0x3), region = 111 }

// kernel: resnet50_forward.110
= control target key start
LH: loop header
LB: loop body
LE: loop exit
PB: predicated region body
PF: predicated region fallthrough
CT: control target
= control target key end

     0   :  { %v16_v0 = vlaneseq  ;;  %v222_v2 = vmov 1966171168   ;;  %v223_v13 = vmov 1935823168   ;;  %vm173_vm0 = vcmask 1041409   ;;  %s240_s0 = inlined_call_operand.vmem [shape: bf16[2,1,512], index: 0, kind: input, shape index: {}]   ;;  %s241_s1 = inlined_call_operand.vmem [shape: bf16[2,512], index: 1, kind: output, shape index: {}]  }
   0x1   :  { %v217_v1 = vld [vmem:[%s240_s0] sm:$0xff]   ;;  %v75_v3 = vunpack.c.l.s4 %v222_v2  ;;  %v121_v14 = vunpack.c.l.s4 %v223_v13 }
   0x2   :  { %v218_v4 = vunpack.c.l.bf16 %v217_v1  ;;  %v17_v5 = vshrl.u32 %v16_v0, 7  ;;  %v219_v6 = vunpack.c.h.bf16 %v217_v1 }
   0x3   :  { %v76_v7 = vunpack.c.0.s8 %v75_v3  ;;  %v122_v27 = vunpack.c.0.s8 %v121_v14 }
   0x4   :  { %v18_v8 = vsub.s32 0, %v17_v5  ;;  %v22_v9 = vsub.s32 2, %v17_v5  ;;  %v26_v10 = vsub.s32 4, %v17_v5  ;;  %v30_v11 = vsub.s32 6, %v17_v5 }
   0x5   :  { %v79_v12 = vsub.s32 %v76_v7, %v17_v5  ;;  %v125_v34 = vsub.s32 %v122_v27, %v17_v5 }
   0x6   :  { %v19_v15 = vrot.slane %v218_v4, %v18_v8  ;;  %v23_v16 = vrot.slane %v218_v4, %v22_v9  ;;  %v27_v17 = vrot.slane %v218_v4, %v26_v10  ;;  %v31_v18 = vrot.slane %v218_v4, %v30_v11 }
   0x7   :  { %v35_v19 = vrot.slane %v219_v6, %v18_v8  ;;  %v39_v20 = vrot.slane %v219_v6, %v22_v9  ;;  %v43_v21 = vrot.slane %v219_v6, %v26_v10  ;;  %v47_v22 = vrot.slane %v219_v6, %v30_v11 }
   0x8   :  { %v211_v23 = vpack.c.bf16 %v23_v16, %v19_v15  ;;  %v212_v24 = vpack.c.bf16 %v31_v18, %v27_v17 }
   0x9   :  { %v213_v25 = vpack.c.bf16 %v39_v20, %v35_v19  ;;  %v214_v26 = vpack.c.bf16 %v47_v22, %v43_v21 }
   0xa   :  { %v80_v28 = vrot.slane %v211_v23, %v79_v12  ;;  %v87_v29 = vrot.slane %v212_v24, %v79_v12 }
   0xb   :  { %v104_v30 = vrot.slane %v213_v25, %v79_v12  ;;  %v111_v31 = vrot.slane %v214_v26, %v79_v12 }
   0xc   :  { %v88_v32 = vcombine.low %v80_v28, %v87_v29 }
   0xd   :  { %v112_v33 = vcombine.low %v104_v30, %v111_v31 }
   0xe   :  { %v95_v35 = vrot.slane %v88_v32, %v79_v12 }
   0xf   :  { %v119_v36 = vrot.slane %v112_v33, %v79_v12 }
  0x10   :  { %v126_v37 = vrot.slane %v95_v35, %v125_v34 }
  0x11   :  { %v148_v38 = vrot.slane %v119_v36, %v125_v34 }
  0x12   :  { %v127_v39 = vcombine.high %v126_v37, %v126_v37  ;;  %v134_v40 = vrot.slane %v126_v37, %v125_v34 }
  0x13   :  { %v149_v41 = vcombine.high %v148_v38, %v148_v38  ;;  %v156_v42 = vrot.slane %v148_v38, %v125_v34 }
  0x14   :  { %v141_v43 = vrot.slane %v127_v39, %v125_v34  ;;  %v164_v44 = vunpack.c.l.b16 %v134_v40  ;;  %v165_v46 = vunpack.c.h.b16 %v134_v40 }
  0x15   :  { %v163_v45 = vrot.slane %v149_v41, %v125_v34  ;;  %v168_v47 = vunpack.c.l.b16 %v156_v42  ;;  %v169_v48 = vunpack.c.h.b16 %v156_v42 }
  0x16   :  { %v166_v49 = vunpack.c.l.b16 %v141_v43  ;;  %v167_v50 = vunpack.c.h.b16 %v141_v43 }
  0x17   :  { %v170_v51 = vunpack.c.l.b16 %v163_v45  ;;  %v171_v52 = vunpack.c.h.b16 %v163_v45  ;;  %v172_v53 = vrot.slane %v168_v47, 7  ;;  %v175_v54 = vrot.slane %v169_v48, 7 }
  0x19   :  { %v174_v55 = vsel %vm173_vm0, %v172_v53, %v164_v44  ;;  %v176_v56 = vsel %vm173_vm0, %v175_v54, %v165_v46  ;;  %v177_v57 = vrot.slane %v170_v51, 7  ;;  %v179_v58 = vrot.slane %v171_v52, 7 }
  0x1a   :  { %v181_v59 = vpack.c.b16 %v176_v56, %v174_v55 }
  0x1b   :  { %v178_v60 = vsel %vm173_vm0, %v177_v57, %v166_v49  ;;  %v180_v61 = vsel %vm173_vm0, %v179_v58, %v167_v50 }
  0x1c   :  { %v182_v62 = vpack.c.b16 %v180_v61, %v178_v60  ;;  %v189_v63 = vrot.slane %v181_v59, %v79_v12 }
  0x1e   :  { %v196_v0 = vrot.slane %v182_v62, %v79_v12 }
  0x20   :  { %v197_v1 = vcombine.low %v189_v63, %v196_v0 }
  0x22   :  { %215 = vst.sshfl [vmem:[%s241_s1] sm:$0x55 pattern:$0x73625140] %v197_v1 }

// kernel: resnet50_forward.111
= control target key start
LH: loop header
LB: loop body
LE: loop exit
PB: predicated region body
PF: predicated region fallthrough
CT: control target
= control target key end

     0   :  { %v100_v30 = vlaneseq  ;;  %v541_v34 = vmov 1966171168   ;;  %s677_s0 = inlined_call_operand.vmem [shape: bf16[2,512], index: 0, kind: input, shape index: {}]   ;;  %s678_s1 = inlined_call_operand.vmem [shape: bf16[512,10], index: 1, kind: input, shape index: {}]   ;;  %s679_s2 = inlined_call_operand.vmem [shape: f32[1,10], index: 2, kind: input, shape index: {}]   ;;  %s680_s3 = inlined_call_operand.hbm [shape: f32[2,10], index: 3, kind: output, shape index: {}]  }
   0x1   :  { %v485_v0 = vld [vmem:[%s678_s1 + $0x40] sm:$0xff]   ;;  %v489_v4 = vld [vmem:[%s678_s1 + $0x48] sm:$0xff]   ;;  %v493_v8 = vld [vmem:[%s678_s1 + $0x50] sm:$0xff]   ;;  %v98_v35 = vunpack.c.l.s4 %v541_v34 }
   0x2   :  { %v486_v1 = vld [vmem:[%s678_s1 + $0xc0] sm:$0xff]   ;;  %439 = vmatprep.subr.bf16.mxu0 %v485_v0  ;;  %v490_v5 = vld [vmem:[%s678_s1 + $0xc8] sm:$0xff]   ;;  %v494_v9 = vld [vmem:[%s678_s1 + $0xd0] sm:$0xff]   ;;  %v101_v36 = vshrl.u32 %v100_v30, 7 }
   0x3   :  { %v487_v2 = vld [vmem:[%s678_s1] sm:$0xff]   ;;  %461 = vmatprep.subr.bf16.mxu1 %v486_v1  ;;  %v491_v6 = vld [vmem:[%s678_s1 + $0x8] sm:$0xff]   ;;  %v495_v10 = vld [vmem:[%s678_s1 + $0x10] sm:$0xff]  }
   0x4   :  { %v488_v3 = vld [vmem:[%s678_s1 + $0x80] sm:$0xff]   ;;  %440 = vmatpush3.bf16.msra.mxu0 %v487_v2  ;;  %v492_v7 = vld [vmem:[%s678_s1 + $0x88] sm:$0xff]   ;;  %v496_v11 = vld [vmem:[%s678_s1 + $0x90] sm:$0xff]  }
   0x5   :  { %462 = vmatpush3.bf16.msra.mxu1 %v488_v3  ;;  %441 = vmatprep.subr.bf16.mxu0 %v489_v4  ;;  %v497_v12 = vld [vmem:[%s678_s1 + $0x58] sm:$0xff]   ;;  %v501_v16 = vld [vmem:[%s678_s1 + $0x60] sm:$0xff]   ;;  %v505_v20 = vld [vmem:[%s678_s1 + $0x68] sm:$0xff]  }
   0x6   :  { %463 = vmatprep.subr.bf16.mxu1 %v490_v5  ;;  %v498_v13 = vld [vmem:[%s678_s1 + $0xd8] sm:$0xff]   ;;  %v502_v17 = vld [vmem:[%s678_s1 + $0xe0] sm:$0xff]   ;;  %v506_v21 = vld [vmem:[%s678_s1 + $0xe8] sm:$0xff]  }
   0x7   :  { %v499_v14 = vld [vmem:[%s678_s1 + $0x18] sm:$0xff]   ;;  %v503_v18 = vld [vmem:[%s678_s1 + $0x20] sm:$0xff]   ;;  %v507_v22 = vld [vmem:[%s678_s1 + $0x28] sm:$0xff]  }
   0x8   :  { %442 = vmatpush3.bf16.msra.mxu0 %v491_v6  ;;  %v500_v15 = vld [vmem:[%s678_s1 + $0x98] sm:$0xff]   ;;  %v504_v19 = vld [vmem:[%s678_s1 + $0xa0] sm:$0xff]   ;;  %v508_v23 = vld [vmem:[%s678_s1 + $0xa8] sm:$0xff]  }
   0x9   :  { %464 = vmatpush3.bf16.msra.mxu1 %v492_v7  ;;  %443 = vmatprep.subr.bf16.mxu0 %v493_v8  ;;  %v509_v24 = vld [vmem:[%s678_s1 + $0x70] sm:$0xff]   ;;  %v513_v28 = vld [vmem:[%s678_s1 + $0x78] sm:$0xff]   ;;  %v406_v33 = vld.sshfl [vmem:[%s677_s0] sm:$0x33 pattern:$0x75316420] }
   0xa   :  { %465 = vmatprep.subr.bf16.mxu1 %v494_v9  ;;  %v510_v25 = vld [vmem:[%s678_s1 + $0xf0] sm:$0xff]   ;;  %v514_v29 = vld [vmem:[%s678_s1 + $0xf8] sm:$0xff]  }
   0xb   :  { %v511_v26 = vld [vmem:[%s678_s1 + $0x30] sm:$0xff]   ;;  %v515_v31 = vld [vmem:[%s678_s1 + $0x38] sm:$0xff]  }
   0xc   :  { %444 = vmatpush3.bf16.msra.mxu0 %v495_v10  ;;  %v512_v27 = vld [vmem:[%s678_s1 + $0xb0] sm:$0xff]   ;;  %v516_v32 = vld [vmem:[%s678_s1 + $0xb8] sm:$0xff]  }
   0xd   :  { %466 = vmatpush3.bf16.msra.mxu1 %v496_v11  ;;  %445 = vmatprep.subr.bf16.mxu0 %v497_v12 }
   0xe   :  { %467 = vmatprep.subr.bf16.mxu1 %v498_v13 }
  0x10   :  { %446 = vmatpush3.bf16.msra.mxu0 %v499_v14 }
  0x11   :  { %468 = vmatpush3.bf16.msra.mxu1 %v500_v15  ;;  %447 = vmatprep.subr.bf16.mxu0 %v501_v16 }
  0x12   :  { %469 = vmatprep.subr.bf16.mxu1 %v502_v17 }
  0x14   :  { %448 = vmatpush3.bf16.msra.mxu0 %v503_v18 }
  0x15   :  { %470 = vmatpush3.bf16.msra.mxu1 %v504_v19  ;;  %449 = vmatprep.subr.bf16.mxu0 %v505_v20 }
  0x16   :  { %471 = vmatprep.subr.bf16.mxu1 %v506_v21 }
  0x18   :  { %450 = vmatpush3.bf16.msra.mxu0 %v507_v22 }
  0x19   :  { %472 = vmatpush3.bf16.msra.mxu1 %v508_v23  ;;  %451 = vmatprep.subr.bf16.mxu0 %v509_v24 }
  0x1a   :  { %473 = vmatprep.subr.bf16.mxu1 %v510_v25 }
  0x1c   :  { %452 = vmatpush3.bf16.msra.mxu0 %v511_v26 }
  0x1d   :  { %474 = vmatpush3.bf16.msra.mxu1 %v512_v27  ;;  %453 = vmatprep.subr.bf16.mxu0 %v513_v28 }
  0x1e   :  { %475 = vmatprep.subr.bf16.mxu1 %v514_v29 }
  0x20   :  { %454 = vmatpush3.bf16.msra.mxu0 %v515_v31 }
  0x21   :  { %476 = vmatpush3.bf16.msra.mxu1 %v516_v32 }
  0x22   :  { %8 = vsyncpa [#allocation3], 0  ;;  %v96_v37 = vcombine.high %v406_v33, %v406_v33  ;;  %v99_v38 = vunpack.c.0.s8 %v98_v35  ;;  %v405_v45 = vld [vmem:[%s679_s2] ss:$0 sm:$0xff]  ;;  %s542_s0 = smov [#allocation2]   ;;  %vm389_vm0 = vcmask 74752  }
  0x23   :  { %s397_s25 = sshll.u32 %s542_s0, 4  ;;  %s398_s25 = int_to_ptr.vmem [resolvable:$true] %s397_s25 }
  0x24   :  { %v102_v39 = vsub.s32 %v99_v38, %v101_v36  ;;  %s517_s26 = scalar_lea.vmem %s398_s25, 32  ;;  %p522_p1 = scmp.lt.s32.totalorder %s398_s25, %s398_s25 }
  0x25   :  { %p518_p0 = scmp.ne.s32.totalorder %s398_s25, %s517_s26  ;;  %p523_p2 = scmp.lt.s32.totalorder %s517_s26, %s517_s26 }
  0x26   :  { %v110_v40 = vrot.slane %v96_v37, %v102_v39  ;;  %v103_v41 = vrot.slane %v406_v33, %v102_v39 }
  0x27   :  { %p524_p3 = por %p523_p2, %p522_p1 }
  0x28   :  { %341 = vmatprep.mubr.bf16.mxu0 %v110_v40  ;;  %v112_v42 = vcombine.high %v110_v40, %v110_v40  ;;  %v111_v43 = vcombine.high %v103_v41, %v103_v41 }
  0x29   :  { %342 = vmatmul.mubr.bf16.vlgmr.msra.gmra.mrb[0].mxu0 %v103_v41  ;;  %p525_p4 = pnand %p524_p3, %p518_p0 }
  0x2a   :  { %381 = vmatprep.mubr.bf16.mxu1 %v112_v42 }
  0x2b   :  { %382 = vmatmul.mubr.bf16.vlgmr.msra.gmra.mrb[0].mxu1 %v111_v43 }
  0xfc   :  { %v455_v44 = vpop.f32.mrb[0].mxu0 }
  0xfd   :  { %v456_v46 = vpop.f32.mrb[1].mxu0 }
  0xfe   :  { %v477_v47 = vpop.f32.mrb[0].mxu1  ;;  %v457_v48 = vadd.f32 %v456_v46, %v455_v44  ;;  %v458_v49 = vpop.f32.mrb[2].mxu0 }
  0xff   :  { %v478_v50 = vpop.f32.mrb[1].mxu1  ;;  %v459_v51 = vpop.f32.mrb[3].mxu0 }
 0x100   :  { %v344_v52 = vadd.f32 %v457_v48, %v405_v45  ;;  %v479_v53 = vadd.f32 %v478_v50, %v477_v47  ;;  %v480_v54 = vpop.f32.mrb[2].mxu1 }
 0x101   :  { %v481_v55 = vpop.f32.mrb[3].mxu1 }
 0x102   :  { %v384_v56 = vadd.f32 %v479_v53, %v344_v52 }
 0x104   :  { %390 = vst.msk [vmem:[#allocation2] sm:$0x3] %vm389_vm0, %v384_v56 }
 0x105   :  { %528 = shalt.err (!%p525_p4)
}
 0x106   :  { %s529_s28 = scalar_lea.hbm %s680_s3, 32 }
 0x107   :  { %p530_p5 = scmp.ne.s32.totalorder %s680_s3, %s529_s28  ;;  %p533_p6 = scmp.lt.u32.totalorder %s529_s28, %s680_s3 }
 0x109   :  { %p535_p7 = pnand %p533_p6, %p530_p5 }
 0x10b   :  { %538 = shalt.err (!%p535_p7)
}
 0x10c   :  { %400 = dma.vmem_to_hbm [thread:$0]  %s398_s25, 32, %s680_s3, [#allocation3]  }
 0x10d   :  { %539 = dma.done.wait [#allocation3], 32  }
 0x10e   :  { %540 = vsyncadd [#allocation3], 4294967264 }
 0x10f   :  { %404 = vsyncpa [#allocation3], 1 }

// kernel: resnet50_forward.102
= control target key start
LH: loop header
LB: loop body
LE: loop exit
PB: predicated region body
PF: predicated region fallthrough
CT: control target
= control target key end

     0   :  { %vm559_vm0 = vcmask 1045504   ;;  %vm57_vm1 = vsmask.f32 7424  ;;  %vm685_vm2 = vsmask.f32 5376  ;;  %vm293_vm3 = vcmask 1046528   ;;  %s2155_s1 = inlined_call_operand.vmem [shape: bf16[9,128,128], index: 1, kind: input, shape index: {}]   ;;  %s2156_s0 = inlined_call_operand.vmem [shape: bf16[26,128], index: 0, kind: input, shape index: {}]   ;;  %s2157_s2 = inlined_call_operand.vmem [shape: bf16[18,128], index: 2, kind: output, shape index: {}]  }
   0x1   :  { %v1747_v0 = vld [vmem:[%s2155_s1 + $0x40] sm:$0xff]   ;;  %v1749_v2 = vld [vmem:[%s2155_s1 + $0x48] sm:$0xff]   ;;  %v1751_v4 = vld [vmem:[%s2155_s1 + $0x50] sm:$0xff]   ;;  %vm825_vm4 = vcmask 1044480   ;;  %vm419_vm5 = vsmask.f32 6400 }
   0x2   :  { %v1748_v1 = vld [vmem:[%s2155_s1 + $0x100] sm:$0xff]   ;;  %1536 = vmatprep.subr.bf16.mxu1 %v1747_v0  ;;  %v1750_v3 = vld [vmem:[%s2155_s1 + $0x108] sm:$0xff]   ;;  %v1752_v5 = vld [vmem:[%s2155_s1 + $0x110] sm:$0xff]   ;;  %vm961_vm6 = vsmask.f32 4352 }
   0x3   :  { %1616 = vmatprep.subr.bf16.mxu0 %v1748_v1  ;;  %1537 = vmatpush3.bf16.msra.mxu1 %v1747_v0  ;;  %v1753_v6 = vld [vmem:[%s2155_s1 + $0x58] sm:$0xff]   ;;  %v1755_v8 = vld [vmem:[%s2155_s1 + $0x60] sm:$0xff]   ;;  %v1757_v10 = vld [vmem:[%s2155_s1 + $0x68] sm:$0xff]  }
   0x4   :  { %1617 = vmatpush3.bf16.msra.mxu0 %v1748_v1  ;;  %1538 = vmatprep.subr.bf16.mxu1 %v1749_v2  ;;  %v1754_v7 = vld [vmem:[%s2155_s1 + $0x118] sm:$0xff]   ;;  %v1756_v9 = vld [vmem:[%s2155_s1 + $0x120] sm:$0xff]   ;;  %v1758_v13 = vld [vmem:[%s2155_s1 + $0x128] sm:$0xff]  }
   0x5   :  { %1618 = vmatprep.subr.bf16.mxu0 %v1750_v3  ;;  %v12_v11 = vld [vmem:[%s2156_s0] sm:$0xf]  ;;  %v1885_v12 = vld [vmem:[%s2156_s0 + $0x4] sm:$0xf]  ;;  %v1759_v16 = vld [vmem:[%s2155_s1 + $0x70] sm:$0xff]  }
   0x6   :  { %v1239_v14 = vcombine.low %v12_v11, %v1885_v12  ;;  %v1894_v15 = vld [vmem:[%s2156_s0 + $0x8] ss:$0 sps:$4 sm:$0x33]   ;;  %v538_v17 = vld [vmem:[%s2156_s0] sm:$0xc]  ;;  %v1760_v23 = vld [vmem:[%s2155_s1 + $0x130] sm:$0xff]  }
   0x7   :  { %1539 = vmatpush3.bf16.msra.mxu1 %v1749_v2  ;;  %v66_v20 = vshll.u32 %v1894_v15, 16  ;;  %v1906_v21 = vld [vmem:[%s2156_s0 + $0x8] ss:$0 sps:$4 sm:$0x77]   ;;  %v1324_v22 = vcombine.low %v538_v17, %v1885_v12  ;;  %v1761_v30 = vld [vmem:[%s2155_s1 + $0x78] sm:$0xff]   ;;  %v70_v33 = vshrl.u32 %v1894_v15, 16 }
   0x8   :  { %1619 = vmatpush3.bf16.msra.mxu0 %v1750_v3  ;;  %1540 = vmatprep.subr.bf16.mxu1 %v1751_v4  ;;  %v59_v18 = vshrl.u32 %v1239_v14, 16  ;;  %v61_v19 = vshll.u32 %v1239_v14, 16  ;;  %v561_v27 = vrot.slane %v1906_v21, 2  ;;  %v1762_v31 = vld [vmem:[%s2155_s1 + $0x138] sm:$0xff]   ;;  %v1765_v34 = vld [vmem:[%s2155_s1] sm:$0xff]   ;;  %v1769_v38 = vld [vmem:[%s2155_s1 + $0x8] sm:$0xff]  }
   0x9   :  { %1620 = vmatprep.subr.bf16.mxu0 %v1752_v5  ;;  %v68_v25 = vrot.slane %v66_v20, 1  ;;  %v560_v26 = vrot.slane %v1324_v22, 2  ;;  %v1768_v35 = vld [vmem:[%s2155_s1 + $0x140] sm:$0xff]   ;;  %v687_v37 = vshrl.u32 %v1324_v22, 16  ;;  %v690_v39 = vshll.u32 %v1324_v22, 16  ;;  %v1770_v40 = vld [vmem:[%s2155_s1 + $0x148] sm:$0xff]  }
   0xa   :  { %v63_v24 = vrot.slane %v61_v19, 1  ;;  %v1771_v41 = vld [vmem:[%s2155_s1 + $0x10] sm:$0xff]   ;;  %v1941_v45 = vld [vmem:[%s2156_s0 + $0x8] ss:$0 sps:$4 sm:$0xff]   ;;  %v1773_v48 = vld [vmem:[%s2155_s1 + $0x18] sm:$0xff]  }
   0xb   :  { %1541 = vmatpush3.bf16.msra.mxu1 %v1751_v4  ;;  %v562_v29 = vsel %vm559_vm0, %v560_v26, %v561_v27  ;;  %v72_v36 = vor.u32 %v70_v33, %v68_v25  ;;  %v689_v42 = vrot.slane %v687_v37, 2  ;;  %v1772_v43 = vld [vmem:[%s2155_s1 + $0x150] sm:$0xff]   ;;  %v692_v44 = vrot.slane %v690_v39, 3  ;;  %v1774_v49 = vld [vmem:[%s2155_s1 + $0x158] sm:$0xff]   ;;  %v1775_v54 = vld [vmem:[%s2155_s1 + $0x20] sm:$0xff]  }
   0xc   :  { %1621 = vmatpush3.bf16.msra.mxu0 %v1752_v5  ;;  %1542 = vmatprep.subr.bf16.mxu1 %v1753_v6  ;;  %v64_v28 = vor.u32 %v63_v24, %v59_v18  ;;  %v695_v46 = vshrl.u32 %v1941_v45, 16  ;;  %v698_v47 = vshll.u32 %v1941_v45, 16  ;;  %v1776_v55 = vld [vmem:[%s2155_s1 + $0x160] sm:$0xff]   ;;  %v1777_v57 = vld [vmem:[%s2155_s1 + $0x28] sm:$0xff]   ;;  %v1779_v59 = vld [vmem:[%s2155_s1 + $0x30] sm:$0xff]  }
   0xd   :  { %1622 = vmatprep.subr.bf16.mxu0 %v1754_v7  ;;  %1632 = vmatprep.mubr.bf16.mxu0 %v562_v29  ;;  %v693_v50 = vor.u32 %v692_v44, %v689_v42  ;;  %v1778_v58 = vld [vmem:[%s2155_s1 + $0x168] sm:$0xff]   ;;  %v1780_v60 = vld [vmem:[%s2155_s1 + $0x170] sm:$0xff]   ;;  %v1781_v61 = vld [vmem:[%s2155_s1 + $0x38] sm:$0xff]  }
   0xe   :  { %v69_v32 = vsel %vm57_vm1, %v64_v28, %v68_v25  ;;  %v697_v51 = vrot.slane %v695_v46, 2  ;;  %v700_v52 = vrot.slane %v698_v47, 3  ;;  %v272_v62 = vld [vmem:[%s2156_s0] sm:$0xe]  ;;  %v1782_v0 = vld [vmem:[%s2155_s1 + $0x178] sm:$0xff]   ;;  %v1788_v11 = vld [vmem:[%s2155_s1 + $0x188] sm:$0xff]  }
   0xf   :  { %1543 = vmatpush3.bf16.msra.mxu1 %v1753_v6  ;;  %1552 = vmatprep.mubr.bf16.mxu1 %v69_v32  ;;  %v804_v63 = vld [vmem:[%s2156_s0] sm:$0x8]  ;;  %v1983_v1 = vcombine.low %v272_v62, %v1885_v12  ;;  %v1786_v4 = vld [vmem:[%s2156_s0 + $0x8] ss:$0 sps:$4 sm:$0x11]   ;;  %v1791_v17 = vld [vmem:[%s2155_s1 + $0x98] sm:$0xff]  }
  0x10   :  { %1623 = vmatpush3.bf16.msra.mxu0 %v1754_v7  ;;  %1544 = vmatprep.subr.bf16.mxu1 %v1755_v8  ;;  %v701_v53 = vor.u32 %v700_v52, %v697_v51  ;;  %v1374_v2 = vcombine.low %v804_v63, %v1885_v12  ;;  %v1783_v3 = vld [vmem:[%s2155_s1 + $0x80] sm:$0xff]   ;;  %v295_v7 = vrot.slane %v1894_v15, 1  ;;  %v1792_v18 = vld [vmem:[%s2155_s1 + $0x198] sm:$0xff]   ;;  %v1795_v22 = vld [vmem:[%s2155_s1 + $0xa8] sm:$0xff]  }
  0x11   :  { %1624 = vmatprep.subr.bf16.mxu0 %v1756_v9  ;;  %v1785_v5 = vld [vmem:[%s2155_s1 + $0x180] sm:$0xff]   ;;  %v294_v6 = vrot.slane %v1983_v1, 1  ;;  %v2040_v25 = vld [vmem:[%s2156_s0 + $0x8] sm:$0xf]  ;;  %v2045_v26 = vld [vmem:[%s2156_s0 + $0xc] sm:$0x1] }
  0x12   :  { %v702_v56 = vsel %vm685_vm2, %v693_v50, %v701_v53  ;;  %v1793_v19 = vld [vmem:[%s2155_s1 + $0xa0] sm:$0xff]   ;;  %v1400_v29 = vcombine.low %v2040_v25, %v2045_v26  ;;  %v421_v32 = vshrl.u32 %v1983_v1, 16  ;;  %v424_v33 = vshll.u32 %v1983_v1, 16  ;;  %v1809_v15 = vld [vmem:[%s2155_s1 + $0xd8] sm:$0xff]   ;;  %v1814_v1 = vld [vmem:[%s2155_s1 + $0x1e8] sm:$0xff]  }
  0x13   :  { %1545 = vmatpush3.bf16.msra.mxu1 %v1755_v8  ;;  %v826_v8 = vrot.slane %v1374_v2, 3  ;;  %v296_v12 = vsel %vm293_vm3, %v294_v6, %v295_v7  ;;  %v1794_v20 = vld [vmem:[%s2155_s1 + $0x1a0] sm:$0xff]   ;;  %v1815_v2 = vld [vmem:[%s2155_s1 + $0xf0] sm:$0xff]  }
  0x14   :  { %1625 = vmatpush3.bf16.msra.mxu0 %v1756_v9  ;;  %1546 = vmatprep.subr.bf16.mxu1 %v1757_v10  ;;  %v827_v9 = vrot.slane %v1941_v45, 3  ;;  %v2035_v24 = vld [vmem:[%s2156_s0 + $0x4] sm:$0xf]  ;;  %v974_v39 = vshll.u32 %v1400_v29, 16  ;;  %v423_v42 = vrot.slane %v421_v32, 1  ;;  %v1810_v45 = vld [vmem:[%s2155_s1 + $0x1d8] sm:$0xff]  }
  0x15   :  { %1626 = vmatprep.subr.bf16.mxu0 %v1758_v13  ;;  %v1802_v50 = vld [vmem:[%s2155_s1 + $0xc0] sm:$0xff]  }
  0x16   :  { %v1804_v51 = vld [vmem:[%s2155_s1 + $0x1c0] sm:$0xff]  }
  0x17   :  { %1547 = vmatpush3.bf16.msra.mxu1 %v1757_v10  ;;  %v1787_v10 = vld [vmem:[%s2155_s1 + $0x88] sm:$0xff]   ;;  %v1811_v62 = vld [vmem:[%s2155_s1 + $0xe0] sm:$0xff]  }
  0x18   :  { %1627 = vmatpush3.bf16.msra.mxu0 %v1758_v13  ;;  %1548 = vmatprep.subr.bf16.mxu1 %v1759_v16  ;;  %v828_v13 = vsel %vm825_vm4, %v826_v8, %v827_v9  ;;  %v1812_v63 = vld [vmem:[%s2155_s1 + $0x1e0] sm:$0xff]   ;;  %v1822_v8 = vld [vmem:[%s2155_s1 + $0x208] sm:$0xff]  }
  0x19   :  { %1628 = vmatprep.subr.bf16.mxu0 %v1760_v23  ;;  %v1821_v6 = vld [vmem:[%s2155_s1 + $0x200] sm:$0xff]  }
  0x1b   :  { %1549 = vmatpush3.bf16.msra.mxu1 %v1759_v16  ;;  %v1790_v16 = vld [vmem:[%s2155_s1 + $0x190] sm:$0xff]  }
  0x1c   :  { %1629 = vmatpush3.bf16.msra.mxu0 %v1760_v23  ;;  %1550 = vmatprep.subr.bf16.mxu1 %v1761_v30  ;;  %v930_v23 = vld [vmem:[%s2156_s0] sm:$0x8] }
  0x1d   :  { %1630 = vmatprep.subr.bf16.mxu0 %v1762_v31  ;;  %v1399_v28 = vcombine.low %v930_v23, %v2035_v24 }
  0x1f   :  { %1551 = vmatpush3.bf16.msra.mxu1 %v1761_v30  ;;  %v1797_v30 = vld [vmem:[%s2155_s1 + $0xb0] sm:$0xff]   ;;  %v966_v37 = vshll.u32 %v1399_v28, 16 }
  0x20   :  { %1631 = vmatpush3.bf16.msra.mxu0 %v1762_v31  ;;  %1556 = vmatprep.subr.bf16.mxu1 %v1765_v34  ;;  %v1798_v31 = vld [vmem:[%s2155_s1 + $0x1b0] sm:$0xff]  }
  0x21   :  { %1636 = vmatprep.subr.bf16.mxu0 %v1768_v35  ;;  %v968_v47 = vrot.slane %v966_v37, 4 }
  0x22   :  { %1553 = vmatmul.mubr.bf16.vlgmr.msra.gmra.mrb[0].mxu1 %v72_v36  ;;  %v963_v36 = vshrl.u32 %v1399_v28, 16 }
  0x23   :  { %1557 = vmatpush3.bf16.msra.mxu1 %v1765_v34  ;;  %1633 = vmatmul.mubr.bf16.vlgmr.msra.gmra.mrb[0].mxu0 %v561_v27  ;;  %v1796_v27 = vld [vmem:[%s2155_s1 + $0x1a8] sm:$0xff]   ;;  %v429_v34 = vshrl.u32 %v1906_v21, 16 }
  0x24   :  { %1637 = vmatpush3.bf16.msra.mxu0 %v1768_v35  ;;  %1558 = vmatprep.subr.bf16.mxu1 %v1769_v38  ;;  %v432_v35 = vshll.u32 %v1906_v21, 16  ;;  %v965_v46 = vrot.slane %v963_v36, 3 }
  0x25   :  { %1638 = vmatprep.subr.bf16.mxu0 %v1770_v40  ;;  %1572 = vmatprep.mubr.bf16.mxu1 %v1239_v14  ;;  %v1789_v14 = vld [vmem:[%s2155_s1 + $0x90] sm:$0xff]   ;;  %v431_v44 = vrot.slane %v429_v34, 1 }
  0x26   :  { %1652 = vmatprep.mubr.bf16.mxu0 %v702_v56  ;;  %v434_v21 = vrot.slane %v432_v35, 2  ;;  %v1805_v56 = vld [vmem:[%s2155_s1 + $0xc8] sm:$0xff]  }
  0x27   :  { %1559 = vmatpush3.bf16.msra.mxu1 %v1769_v38  ;;  %v971_v38 = vshrl.u32 %v1400_v29, 16 }
  0x28   :  { %1639 = vmatpush3.bf16.msra.mxu0 %v1770_v40  ;;  %1560 = vmatprep.subr.bf16.mxu1 %v1771_v41  ;;  %v1799_v40 = vld [vmem:[%s2155_s1 + $0xb8] sm:$0xff]  }
  0x29   :  { %1640 = vmatprep.subr.bf16.mxu0 %v1772_v43 }
  0x2b   :  { %1561 = vmatpush3.bf16.msra.mxu1 %v1771_v41  ;;  %v1800_v41 = vld [vmem:[%s2155_s1 + $0x1b8] sm:$0xff]  }
  0x2c   :  { %1641 = vmatpush3.bf16.msra.mxu0 %v1772_v43  ;;  %1562 = vmatprep.subr.bf16.mxu1 %v1773_v48  ;;  %v426_v43 = vrot.slane %v424_v33, 2 }
  0x2d   :  { %1642 = vmatprep.subr.bf16.mxu0 %v1774_v49 }
  0x2e   :  { %v427_v52 = vor.u32 %v426_v43, %v423_v42 }
  0x2f   :  { %1563 = vmatpush3.bf16.msra.mxu1 %v1773_v48  ;;  %v973_v48 = vrot.slane %v971_v38, 3 }
  0x30   :  { %1643 = vmatpush3.bf16.msra.mxu0 %v1774_v49  ;;  %1564 = vmatprep.subr.bf16.mxu1 %v1775_v54  ;;  %v976_v49 = vrot.slane %v974_v39, 4 }
  0x31   :  { %1644 = vmatprep.subr.bf16.mxu0 %v1776_v55 }
  0x33   :  { %1565 = vmatpush3.bf16.msra.mxu1 %v1775_v54  ;;  %v969_v54 = vor.u32 %v968_v47, %v965_v46 }
  0x34   :  { %1645 = vmatpush3.bf16.msra.mxu0 %v1776_v55  ;;  %1566 = vmatprep.subr.bf16.mxu1 %v1777_v57  ;;  %v977_v55 = vor.u32 %v976_v49, %v973_v48 }
  0x35   :  { %1646 = vmatprep.subr.bf16.mxu0 %v1778_v58 }
  0x37   :  { %1567 = vmatpush3.bf16.msra.mxu1 %v1777_v57  ;;  %v1806_v57 = vld [vmem:[%s2155_s1 + $0x1c8] sm:$0xff]  }
  0x38   :  { %1647 = vmatpush3.bf16.msra.mxu0 %v1778_v58  ;;  %1568 = vmatprep.subr.bf16.mxu1 %v1779_v59 }
  0x39   :  { %1648 = vmatprep.subr.bf16.mxu0 %v1780_v60 }
  0x3b   :  { %1569 = vmatpush3.bf16.msra.mxu1 %v1779_v59  ;;  %v978_v59 = vsel %vm961_vm6, %v969_v54, %v977_v55 }
  0x3c   :  { %1649 = vmatpush3.bf16.msra.mxu0 %v1780_v60  ;;  %1570 = vmatprep.subr.bf16.mxu1 %v1781_v61  ;;  %v1807_v60 = vld [vmem:[%s2155_s1 + $0xd0] sm:$0xff]  }
  0x3d   :  { %1650 = vmatprep.subr.bf16.mxu0 %v1782_v0 }
  0x3f   :  { %1571 = vmatpush3.bf16.msra.mxu1 %v1781_v61  ;;  %v1808_v61 = vld [vmem:[%s2155_s1 + $0x1d0] sm:$0xff]  }
  0x40   :  { %1651 = vmatpush3.bf16.msra.mxu0 %v1782_v0  ;;  %1576 = vmatprep.subr.bf16.mxu1 %v1783_v3  ;;  %v1813_v0 = vld [vmem:[%s2155_s1 + $0xe8] sm:$0xff]  }
  0x41   :  { %1656 = vmatprep.subr.bf16.mxu0 %v1785_v5 }
  0x42   :  { %1573 = vmatmul.mubr.bf16.vlgmr.msra.gmra.mrb[0].mxu1 %v1786_v4  ;;  %v1817_v4 = vld [vmem:[%s2155_s1 + $0xf8] sm:$0xff]  }
  0x43   :  { %1577 = vmatpush3.bf16.msra.mxu1 %v1783_v3  ;;  %1653 = vmatmul.mubr.bf16.vlgmr.msra.gmra.mrb[0].mxu0 %v701_v53  ;;  %v435_v53 = vor.u32 %v434_v21, %v431_v44  ;;  %v1816_v3 = vld [vmem:[%s2155_s1 + $0x1f0] sm:$0xff]  }
  0x44   :  { %1657 = vmatpush3.bf16.msra.mxu0 %v1785_v5  ;;  %1578 = vmatprep.subr.bf16.mxu1 %v1787_v10  ;;  %v1818_v5 = vld [vmem:[%s2155_s1 + $0x1f8] sm:$0xff]  }
  0x45   :  { %1658 = vmatprep.subr.bf16.mxu0 %v1788_v11  ;;  %1592 = vmatprep.mubr.bf16.mxu1 %v296_v12  ;;  %v436_v58 = vsel %vm419_vm5, %v427_v52, %v435_v53  ;;  %v1826_v12 = vld [vmem:[%s2155_s1 + $0x228] sm:$0xff]  }
  0x46   :  { %1672 = vmatprep.mubr.bf16.mxu0 %v828_v13  ;;  %v1827_v13 = vld [vmem:[%s2155_s1 + $0x230] sm:$0xff]  }
  0x47   :  { %1579 = vmatpush3.bf16.msra.mxu1 %v1787_v10  ;;  %v1824_v10 = vld [vmem:[%s2155_s1 + $0x218] sm:$0xff]  }
  0x48   :  { %1659 = vmatpush3.bf16.msra.mxu0 %v1788_v11  ;;  %1580 = vmatprep.subr.bf16.mxu1 %v1789_v14  ;;  %v1825_v11 = vld [vmem:[%s2155_s1 + $0x220] sm:$0xff]  }
  0x49   :  { %1660 = vmatprep.subr.bf16.mxu0 %v1790_v16 }
  0x4b   :  { %1581 = vmatpush3.bf16.msra.mxu1 %v1789_v14  ;;  %v1828_v14 = vld [vmem:[%s2155_s1 + $0x238] sm:$0xff]  }
  0x4c   :  { %1661 = vmatpush3.bf16.msra.mxu0 %v1790_v16  ;;  %1582 = vmatprep.subr.bf16.mxu1 %v1791_v17  ;;  %v1426_v16 = vcombine.low %v2045_v26, %v2045_v26 }
  0x4d   :  { %1662 = vmatprep.subr.bf16.mxu0 %v1792_v18 }
  0x4f   :  { %1583 = vmatpush3.bf16.msra.mxu1 %v1791_v17 }
  0x50   :  { %1663 = vmatpush3.bf16.msra.mxu0 %v1792_v18  ;;  %1584 = vmatprep.subr.bf16.mxu1 %v1793_v19 }
  0x51   :  { %1664 = vmatprep.subr.bf16.mxu0 %v1794_v20 }
  0x53   :  { %1585 = vmatpush3.bf16.msra.mxu1 %v1793_v19 }
  0x54   :  { %1665 = vmatpush3.bf16.msra.mxu0 %v1794_v20  ;;  %1586 = vmatprep.subr.bf16.mxu1 %v1795_v22 }
  0x55   :  { %1666 = vmatprep.subr.bf16.mxu0 %v1796_v27 }
  0x57   :  { %1587 = vmatpush3.bf16.msra.mxu1 %v1795_v22 }
  0x58   :  { %1667 = vmatpush3.bf16.msra.mxu0 %v1796_v27  ;;  %1588 = vmatprep.subr.bf16.mxu1 %v1797_v30 }
  0x59   :  { %1668 = vmatprep.subr.bf16.mxu0 %v1798_v31 }
  0x5b   :  { %1589 = vmatpush3.bf16.msra.mxu1 %v1797_v30 }
  0x5c   :  { %1669 = vmatpush3.bf16.msra.mxu0 %v1798_v31  ;;  %1590 = vmatprep.subr.bf16.mxu1 %v1799_v40 }
  0x5d   :  { %1670 = vmatprep.subr.bf16.mxu0 %v1800_v41 }
  0x5f   :  { %1591 = vmatpush3.bf16.msra.mxu1 %v1799_v40 }
  0x60   :  { %1671 = vmatpush3.bf16.msra.mxu0 %v1800_v41  ;;  %1596 = vmatprep.subr.bf16.mxu1 %v1802_v50 }
  0x61   :  { %1676 = vmatprep.subr.bf16.mxu0 %v1804_v51 }
  0x62   :  { %1593 = vmatmul.mubr.bf16.vlgmr.msra.gmra.mrb[0].mxu1 %v295_v7  ;;  %v1425_v7 = vcombine.low %v2035_v24, %v2040_v25 }
  0x63   :  { %1597 = vmatpush3.bf16.msra.mxu1 %v1802_v50  ;;  %1673 = vmatmul.mubr.bf16.vlgmr.msra.gmra.mrb[0].mxu0 %v827_v9  ;;  %v1823_v9 = vld [vmem:[%s2155_s1 + $0x210] sm:$0xff]  }
  0x64   :  { %1677 = vmatpush3.bf16.msra.mxu0 %v1804_v51  ;;  %1598 = vmatprep.subr.bf16.mxu1 %v1805_v56 }
  0x65   :  { %1678 = vmatprep.subr.bf16.mxu0 %v1806_v57  ;;  %1612 = vmatprep.mubr.bf16.mxu1 %v436_v58 }
  0x66   :  { %1692 = vmatprep.mubr.bf16.mxu0 %v978_v59 }
  0x67   :  { %1599 = vmatpush3.bf16.msra.mxu1 %v1805_v56 }
  0x68   :  { %1679 = vmatpush3.bf16.msra.mxu0 %v1806_v57  ;;  %1600 = vmatprep.subr.bf16.mxu1 %v1807_v60 }
  0x69   :  { %1680 = vmatprep.subr.bf16.mxu0 %v1808_v61 }
  0x6b   :  { %1601 = vmatpush3.bf16.msra.mxu1 %v1807_v60 }
  0x6c   :  { %1681 = vmatpush3.bf16.msra.mxu0 %v1808_v61  ;;  %1602 = vmatprep.subr.bf16.mxu1 %v1809_v15 }
  0x6d   :  { %1682 = vmatprep.subr.bf16.mxu0 %v1810_v45 }
  0x6f   :  { %1603 = vmatpush3.bf16.msra.mxu1 %v1809_v15 }
  0x70   :  { %1683 = vmatpush3.bf16.msra.mxu0 %v1810_v45  ;;  %1604 = vmatprep.subr.bf16.mxu1 %v1811_v62 }
  0x71   :  { %1684 = vmatprep.subr.bf16.mxu0 %v1812_v63 }
  0x73   :  { %1605 = vmatpush3.bf16.msra.mxu1 %v1811_v62 }
  0x74   :  { %1685 = vmatpush3.bf16.msra.mxu0 %v1812_v63  ;;  %1606 = vmatprep.subr.bf16.mxu1 %v1813_v0 }
  0x75   :  { %1686 = vmatprep.subr.bf16.mxu0 %v1814_v1 }
  0x77   :  { %1607 = vmatpush3.bf16.msra.mxu1 %v1813_v0 }
  0x78   :  { %1687 = vmatpush3.bf16.msra.mxu0 %v1814_v1  ;;  %1608 = vmatprep.subr.bf16.mxu1 %v1815_v2 }
  0x79   :  { %1688 = vmatprep.subr.bf16.mxu0 %v1816_v3 }
  0x7b   :  { %1609 = vmatpush3.bf16.msra.mxu1 %v1815_v2 }
  0x7c   :  { %1689 = vmatpush3.bf16.msra.mxu0 %v1816_v3  ;;  %1610 = vmatprep.subr.bf16.mxu1 %v1817_v4 }
  0x7d   :  { %1690 = vmatprep.subr.bf16.mxu0 %v1818_v5 }
  0x7f   :  { %1611 = vmatpush3.bf16.msra.mxu1 %v1817_v4 }
  0x80   :  { %1691 = vmatpush3.bf16.msra.mxu0 %v1818_v5 }
  0x81   :  { %1696 = vmatprep.subr.bf16.mxu0 %v1821_v6 }
  0x82   :  { %1613 = vmatmul.mubr.bf16.vlgmr.msra.gmra.mrb[0].mxu1 %v435_v53 }
  0x83   :  { %1693 = vmatmul.mubr.bf16.vlgmr.msra.gmra.mrb[0].mxu0 %v977_v55 }
  0x84   :  { %1697 = vmatpush3.bf16.msra.mxu0 %v1821_v6  ;;  %1712 = vmatprep.mubr.bf16.mxu0 %v1425_v7 }
  0x85   :  { %1698 = vmatprep.subr.bf16.mxu0 %v1822_v8 }
  0x88   :  { %1699 = vmatpush3.bf16.msra.mxu0 %v1822_v8 }
  0x89   :  { %1700 = vmatprep.subr.bf16.mxu0 %v1823_v9 }
  0x8c   :  { %1701 = vmatpush3.bf16.msra.mxu0 %v1823_v9 }
  0x8d   :  { %1702 = vmatprep.subr.bf16.mxu0 %v1824_v10 }
  0x90   :  { %1703 = vmatpush3.bf16.msra.mxu0 %v1824_v10 }
  0x91   :  { %1704 = vmatprep.subr.bf16.mxu0 %v1825_v11 }
  0x94   :  { %1705 = vmatpush3.bf16.msra.mxu0 %v1825_v11 }
  0x95   :  { %1706 = vmatprep.subr.bf16.mxu0 %v1826_v12 }
  0x98   :  { %1707 = vmatpush3.bf16.msra.mxu0 %v1826_v12 }
  0x99   :  { %1708 = vmatprep.subr.bf16.mxu0 %v1827_v13 }
  0x9c   :  { %1709 = vmatpush3.bf16.msra.mxu0 %v1827_v13 }
  0x9d   :  { %1710 = vmatprep.subr.bf16.mxu0 %v1828_v14 }
  0xa0   :  { %1711 = vmatpush3.bf16.msra.mxu0 %v1828_v14 }
  0xa3   :  { %1713 = vmatmul.mubr.bf16.vlgmr.msra.gmra.mrb[0].mxu0 %v1426_v16 }
 0x155   :  { %v1614_v17 = vpop.f32.mrb[0].mxu1 }
 0x156   :  { %v521_v18 = vpop.f32.mrb[1].mxu1 }
 0x157   :  { %v1615_v19 = vpop.f32.mrb[2].mxu1 }
 0x158   :  { %v524_v20 = vpop.f32.mrb[3].mxu1 }
 0x176   :  { %v1714_v22 = vpop.f32.mrb[0].mxu0 }
 0x177   :  { %v1716_v23 = vadd.f32 %v1714_v22, %v1614_v17  ;;  %v1183_v24 = vpop.f32.mrb[1].mxu0 }
 0x178   :  { %v1717_v25 = vadd.f32 %v1183_v24, %v521_v18  ;;  %v1715_v27 = vpop.f32.mrb[2].mxu0 }
 0x179   :  { %v1202_v28 = vmax.f32 %v1716_v23, 0.0  ;;  %v1186_v29 = vpop.f32.mrb[3].mxu0 }
 0x17a   :  { %v1718_v30 = vadd.f32 %v1186_v29, %v524_v20  ;;  %v1200_v32 = vmax.f32 %v1717_v25, 0.0 }
 0x17b   :  { %v1440_v31 = vpack.c.bf16 %v1202_v28, %v1202_v28 }
 0x17c   :  { %v1201_v33 = vmax.f32 %v1718_v30, 0.0 }
 0x17d   :  { %1218 = vst [vmem:[%s2157_s2 + $0x8] sm:$0x1] %v1440_v31 }
 0x17e   :  { %v1444_v26 = vpack.c.bf16 %v1201_v33, %v1200_v32 }
 0x180   :  { %1445 = vst [vmem:[%s2157_s2] sm:$0xff] %v1444_v26  }

</bundles_post_ra>
